<compile_context>
chip_gen: v6e
topology: v6e:2x2x1
jax: 0.10.0
libtpu: 0.0.40
codegen_flags: <defaults>
</compile_context>

<pallas_src>
import functools

import jax
import jax.numpy as jnp
from jax.experimental import pallas as pl
from jax.experimental.pallas import tpu as pltpu


_ROW_PAD = 8  # slack rows above/below the padded activation buffer


# ------------------------------ kernel helpers ------------------------------ #

def _instance_norm_affine(acc, gamma, beta, hw, eps):
    """InstanceNorm2d(affine=True) over the spatial (sublane) axis.

    acc: (HW, C) float32; gamma/beta: (1, C) float32.
    Two-pass: mean, then biased variance of the centered values (PyTorch parity).
    """
    inv_hw = 1.0 / hw
    mean = jnp.sum(acc, axis=0, keepdims=True) * inv_hw            # (1, C)
    centered = acc - mean
    var = jnp.sum(centered * centered, axis=0, keepdims=True) * inv_hw
    scale = gamma * jax.lax.rsqrt(var + eps)                       # (1, C)
    return centered * scale + beta


# --------------------------------- kernel ----------------------------------- #

def _residual_block_kernel(x_ref, w1_ref, g1_ref, b1_ref,
                           w2_ref, g2_ref, b2_ref,
                           o_ref, buf_ref, *, H, W, eps):
    """Fused ResidualBlock for one image.

    x_ref  : (HW, C)        input, spatial on sublanes / channels on lanes
    w*_ref : (9*C, C)       conv weights, rows ordered (ky, kx, cin), cols = cout
    g*/b*  : (1, C)         InstanceNorm affine params (float32)
    o_ref  : (HW, C)        output
    buf_ref: (HW+2W+2*PAD, C) VMEM scratch: row-padded (reflected) activation,
             reused for both convs.  Conv bias omitted (cancelled by the norm).
    """
    HW = H * W
    C = x_ref.shape[1]
    cdt = buf_ref.dtype                       # matmul compute dtype (bf16 / f32)
    base = _ROW_PAD + W                       # buffer row of output position 0

    # Column-reflection masks, built once and reused by all 12 boundary selects.
    col = jax.lax.broadcasted_iota(jnp.int32, (HW, C), 0) % W
    is_first_col = col == 0
    is_last_col = col == (W - 1)

    # Zero the slack rows: only the 4 corner slab loads touch them and those
    # lanes are overwritten by the reflection selects; zeroing keeps the reads
    # deterministic.
    buf_ref[0:_ROW_PAD, :] = jnp.zeros((_ROW_PAD, C), cdt)
    buf_ref[base + HW + W:base + HW + W + _ROW_PAD, :] = jnp.zeros((_ROW_PAD, C), cdt)

    def fill_buffer(v):
        """Write v (HW, C) + the two reflected boundary rows into the buffer."""
        buf_ref[_ROW_PAD:_ROW_PAD + W, :] = v[W:2 * W, :]                # row -1 := row 1
        buf_ref[base:base + HW, :] = v
        buf_ref[base + HW:base + HW + W, :] = v[HW - 2 * W:HW - W, :]    # row H := row H-2

    def conv3x3(w_ref):
        """Reflection-padded 3x3 conv as 9 accumulated (HW,C)@(C,C) MXU matmuls."""
        acc = jnp.zeros((HW, C), jnp.float32)
        for dy in (-1, 0, 1):
            start = base + dy * W
            # Slabs are direct row-offset loads from the resident padded buffer.
            s_m = buf_ref[start - 1:start - 1 + HW, :]   # dx = -1 (wraps at x=0)
            s_0 = buf_ref[start:start + HW, :]           # dx =  0
            s_p = buf_ref[start + 1:start + 1 + HW, :]   # dx = +1 (wraps at x=W-1)
            # Reflection fix for the wrapped boundary column: the correct value
            # is exactly the opposite-shift slab at that column.
            left = jnp.where(is_first_col, s_p, s_m)     # v[.., reflect(x-1)]
            right = jnp.where(is_last_col, s_m, s_p)     # v[.., reflect(x+1)]
            ky = dy + 1
            w_m = w_ref[(ky * 3 + 0) * C:(ky * 3 + 0) * C + C, :]
            w_0 = w_ref[(ky * 3 + 1) * C:(ky * 3 + 1) * C + C, :]
            w_p = w_ref[(ky * 3 + 2) * C:(ky * 3 + 2) * C + C, :]
            acc = acc + jnp.dot(left, w_m, preferred_element_type=jnp.float32)
            acc = acc + jnp.dot(s_0, w_0, preferred_element_type=jnp.float32)
            acc = acc + jnp.dot(right, w_p, preferred_element_type=jnp.float32)
        return acc

    # --- ConvBlock 1: reflect-pad + conv3x3 + InstanceNorm + ReLU.
    fill_buffer(x_ref[...].astype(cdt))
    acc1 = conv3x3(w1_ref)
    h = _instance_norm_affine(acc1, g1_ref[...], b1_ref[...], HW, eps)
    h = jnp.maximum(h, 0.0)

    # --- ConvBlock 2 (no ReLU) + residual add (x re-read from the resident ref).
    fill_buffer(h.astype(cdt))
    acc2 = conv3x3(w2_ref)
    y = _instance_norm_affine(acc2, g2_ref[...], b2_ref[...], HW, eps)
    o_ref[...] = (y + x_ref[...].astype(jnp.float32)).astype(o_ref.dtype)


# --------------------------------- wrapper ----------------------------------- #

def _vmem_limit_bytes():
    """Generation-aware scoped VMEM budget (~100 MiB v5e/v6e, ~56 MiB v7x)."""
    try:
        cap = int(pltpu.get_tpu_info().vmem_capacity_bytes)
    except Exception:
        cap = 128 * 1024 * 1024
    return min((cap * 7) // 8, 100 * 1024 * 1024)


@functools.partial(jax.jit, static_argnames=("compute_dtype",))
def residual_block(x, params, *, compute_dtype=jnp.bfloat16):
    """ResidualBlock forward: ConvBlock(relu=True) -> ConvBlock(relu=False) + x.

    x      : (N, C, H, W) float32 (NCHW, like PyTorch)
    params : ((w1, b1, gamma1, beta1), (w2, b2, gamma2, beta2)); conv biases are
             accepted for API parity but unused (cancelled exactly by the
             InstanceNorm mean subtraction).
    compute_dtype : matmul-input dtype (bfloat16 default on all generations);
             accumulation and normalisation math are always float32.
    """
    (w1, _b1, g1, be1), (w2, _b2, g2, be2) = params
    N, C, H, W = x.shape
    C_out, C_in, K, _ = w1.shape
    assert C_out == C_in == C, "ResidualBlock requires in_channels == out_channels"
    assert K == 3  # TODO(synk): general kernel_size reflection pad not implemented
    assert H >= 2 and W >= 2
    HW = H * W

    def to_matmul_weight(w):
        # (C_out, C_in, K, K) -> (K*K*C_in, C_out), rows ordered (ky, kx, cin)
        # to match the per-tap slices taken inside the kernel.
        return (w.transpose(2, 3, 1, 0)
                 .reshape(K * K * C_in, C_out)
                 .astype(compute_dtype))

    def to_affine(p):
        return p.reshape(1, C).astype(jnp.float32)

    # Layout plumbing: spatial on sublanes, channels on lanes (lane-dense for
    # C=128 production).
    x_lanes = x.transpose(0, 2, 3, 1).reshape(N, HW, C)

    kernel = functools.partial(_residual_block_kernel, H=H, W=W, eps=1e-5)

    out_flat = pl.pallas_call(
        kernel,
        out_shape=jax.ShapeDtypeStruct((N, HW, C), x.dtype),
        grid_spec=pltpu.PrefetchScalarGridSpec(
            num_scalar_prefetch=0,
            grid=(N,),                                          # one image / step
            in_specs=[
                pl.BlockSpec((None, HW, C), lambda n: (n, 0, 0)),     # x
                pl.BlockSpec((K * K * C, C), lambda n: (0, 0)),       # w1
                pl.BlockSpec((1, C), lambda n: (0, 0)),               # gamma1
                pl.BlockSpec((1, C), lambda n: (0, 0)),               # beta1
                pl.BlockSpec((K * K * C, C), lambda n: (0, 0)),       # w2
                pl.BlockSpec((1, C), lambda n: (0, 0)),               # gamma2
                pl.BlockSpec((1, C), lambda n: (0, 0)),               # beta2
            ],
            out_specs=pl.BlockSpec((None, HW, C), lambda n: (n, 0, 0)),
            scratch_shapes=[
                # Row-padded (reflected) activation buffer, reused for both convs.
                pltpu.VMEM((HW + 2 * W + 2 * _ROW_PAD, C), compute_dtype),
            ],
        ),
        compiler_params=pltpu.CompilerParams(
            dimension_semantics=("parallel",),        # batch axis feeds both TCs
            vmem_limit_bytes=_vmem_limit_bytes(),
        ),
    )(x_lanes, to_matmul_weight(w1), to_affine(g1), to_affine(be1),
      to_matmul_weight(w2), to_affine(g2), to_affine(be2))

    return out_flat.reshape(N, H, W, C).transpose(0, 3, 1, 2)


# ---------------------------- params & reference ----------------------------- #

def init_params(key, in_channels, out_channels, kernel_size=3):
    """Deterministic synthetic parameters for the two ConvBlocks."""
    def one_block(k):
        k_w, k_b, k_g, k_be = jax.random.split(k, 4)
        fan_in = in_channels * kernel_size * kernel_size
        scale = 1.0 / jnp.sqrt(fan_in)
        w = jax.random.uniform(
            k_w, (out_channels, in_channels, kernel_size, kernel_size),
            jnp.float32, -scale, scale)
        b = jax.random.uniform(k_b, (out_channels,), jnp.float32, -scale, scale)
        gamma = 1.0 + 0.1 * jax.random.normal(k_g, (out_channels,), jnp.float32)
        beta = 0.1 * jax.random.normal(k_be, (out_channels,), jnp.float32)
        return w, b, gamma, beta

    k1, k2 = jax.random.split(key)
    return one_block(k1), one_block(k2)


def _reference_residual_block(x, params):
    """Pure-JAX (XLA) reference matching the PyTorch ResidualBlock forward."""
    def conv_block(v, w, b, gamma, beta, relu):
        pad = w.shape[-1] // 2
        vp = jnp.pad(v, ((0, 0), (0, 0), (pad, pad), (pad, pad)), mode="reflect")
        y = jax.lax.conv_general_dilated(
            vp, w, window_strides=(1, 1), padding="VALID",
            dimension_numbers=("NCHW", "OIHW", "NCHW"),
            precision=jax.lax.Precision.HIGHEST)
        y = y + b.reshape(1, -1, 1, 1)
        mean = jnp.mean(y, axis=(2, 3), keepdims=True)
        var = jnp.var(y, axis=(2, 3), keepdims=True)      # biased, like InstanceNorm
        y = (y - mean) * jax.lax.rsqrt(var + 1e-5)
        y = y * gamma.reshape(1, -1, 1, 1) + beta.reshape(1, -1, 1, 1)
        return jnp.maximum(y, 0.0) if relu else y

    (w1, b1, g1, be1), (w2, b2, g2, be2) = params
    h = conv_block(x, w1, b1, g1, be1, relu=True)
    return conv_block(h, w2, b2, g2, be2, relu=False) + x


# ------------------------------------ main ------------------------------------ #

if __name__ == "__main__":
    key = jax.random.PRNGKey(0)
    k_x, k_p = jax.random.split(key)

    # NOTE: tiny test shapes; tiling/layout decisions above target production
    # style-transfer sizes (e.g. C=128, H=W=128).
    N, C, H, W = 2, 4, 16, 16
    x = jax.random.normal(k_x, (N, C, H, W), jnp.float32)
    params = init_params(k_p, C, C, kernel_size=3)

    ref = jax.block_until_ready(_reference_residual_block(x, params))

    # f32 matmul-input path (tight check against the XLA reference).
    out_f32 = jax.block_until_ready(
        residual_block(x, params, compute_dtype=jnp.float32))
    assert out_f32.shape == (N, C, H, W)
    assert out_f32.dtype == jnp.float32
    err_f32 = float(jnp.max(jnp.abs(out_f32 - ref)))
    assert err_f32 < 5e-3, f"f32 kernel mismatch vs reference: max abs err {err_f32}"

    # Default bf16 matmul-input path (recommended on all generations).
    out_bf16 = jax.block_until_ready(residual_block(x, params))
    err_bf16 = float(jnp.max(jnp.abs(out_bf16 - ref)))
    assert err_bf16 < 0.25, f"bf16 kernel mismatch vs reference: max abs err {err_bf16}"

    print("KERNEL_OK")
</pallas_src>

<mosaic_0001>
module attributes {stable_mosaic.version = 11 : i64} {
  func.func @_residual_block_kernel(%arg0: i32, %arg1: memref<1x256x4xf32, #tpu.memory_space<vmem>>, %arg2: memref<36x4xf32, #tpu.memory_space<vmem>>, %arg3: memref<1x4xf32, #tpu.memory_space<vmem>>, %arg4: memref<1x4xf32, #tpu.memory_space<vmem>>, %arg5: memref<36x4xf32, #tpu.memory_space<vmem>>, %arg6: memref<1x4xf32, #tpu.memory_space<vmem>>, %arg7: memref<1x4xf32, #tpu.memory_space<vmem>>, %arg8: memref<1x256x4xf32, #tpu.memory_space<vmem>>, %arg9: memref<304x4xf32, #tpu.memory_space<vmem>>) attributes {dimension_semantics = [#tpu.dimension_semantics<parallel>], iteration_bounds = array<i64: 2>, scalar_prefetch = 0 : i64, scratch_operands = 1 : i64, tpu.core_type = #tpu.core_type<tc>, window_params = [{transform_indices = @transform_0, window_bounds = array<i64: 1, 256, 4>}, {pipeline_mode = #tpu.pipeline_mode<synchronous>, transform_indices = @transform_1, window_bounds = array<i64: 36, 4>}, {pipeline_mode = #tpu.pipeline_mode<synchronous>, transform_indices = @transform_2, window_bounds = array<i64: 1, 4>}, {pipeline_mode = #tpu.pipeline_mode<synchronous>, transform_indices = @transform_3, window_bounds = array<i64: 1, 4>}, {pipeline_mode = #tpu.pipeline_mode<synchronous>, transform_indices = @transform_4, window_bounds = array<i64: 36, 4>}, {pipeline_mode = #tpu.pipeline_mode<synchronous>, transform_indices = @transform_5, window_bounds = array<i64: 1, 4>}, {pipeline_mode = #tpu.pipeline_mode<synchronous>, transform_indices = @transform_6, window_bounds = array<i64: 1, 4>}, {transform_indices = @transform_7, window_bounds = array<i64: 1, 256, 4>}]} {
    %0 = tpu.iota {dimensions = array<i32: 0>} : vector<256x4xi32>
    %c16_i32 = arith.constant 16 : i32
    %c0_i32 = arith.constant 0 : i32
    %1 = arith.cmpi eq, %c16_i32, %c0_i32 : i32
    %c1_i32 = arith.constant 1 : i32
    %2 = arith.select %1, %c1_i32, %c16_i32 : i32
    %3 = vector.broadcast %2 : i32 to vector<256x4xi32>
    %4 = arith.remsi %0, %3 : vector<256x4xi32>
    %c0_i32_0 = arith.constant 0 : i32
    %5 = vector.broadcast %c0_i32_0 : i32 to vector<256x4xi32>
    %6 = arith.cmpi ne, %4, %5 : vector<256x4xi32>
    %c0_i32_1 = arith.constant 0 : i32
    %7 = vector.broadcast %c0_i32_1 : i32 to vector<256x4xi32>
    %8 = arith.cmpi slt, %4, %7 : vector<256x4xi32>
    %c0_i32_2 = arith.constant 0 : i32
    %9 = arith.cmpi slt, %2, %c0_i32_2 : i32
    %10 = vector.broadcast %9 : i1 to vector<256x4xi1>
    %11 = vector.broadcast %10 : vector<256x4xi1> to vector<256x4xi1>
    %12 = arith.xori %8, %11 : vector<256x4xi1>
    %13 = arith.andi %12, %6 : vector<256x4xi1>
    %14 = vector.broadcast %2 : i32 to vector<256x4xi32>
    %15 = arith.addi %4, %14 : vector<256x4xi32>
    %16 = arith.select %13, %15, %4 : vector<256x4xi1>, vector<256x4xi32>
    %c0_i32_3 = arith.constant 0 : i32
    %17 = vector.broadcast %c0_i32_3 : i32 to vector<256x4xi32>
    %18 = arith.cmpi eq, %16, %17 : vector<256x4xi32>
    %c15_i32 = arith.constant 15 : i32
    %19 = vector.broadcast %c15_i32 : i32 to vector<256x4xi32>
    %20 = arith.cmpi eq, %16, %19 : vector<256x4xi32>
    %cst = arith.constant 0.000000e+00 : f32
    %21 = vector.broadcast %cst : f32 to vector<8x4xf32>
    %c0 = arith.constant 0 : index
    %c0_4 = arith.constant 0 : index
    %22 = vector.load %arg9[%c0, %c0_4] : memref<304x4xf32, #tpu.memory_space<vmem>>, vector<8x4xf32>
    tpu.vector_store %arg9[%c0, %c0_4], %21 {strides = array<i32>} : memref<304x4xf32, #tpu.memory_space<vmem>>, vector<8x4xf32>,
    %cst_5 = arith.constant 0.000000e+00 : f32
    %23 = vector.broadcast %cst_5 : f32 to vector<8x4xf32>
    %c296 = arith.constant 296 : index
    %c0_6 = arith.constant 0 : index
    %24 = vector.load %arg9[%c296, %c0_6] : memref<304x4xf32, #tpu.memory_space<vmem>>, vector<8x4xf32>
    tpu.vector_store %arg9[%c296, %c0_6], %23 {strides = array<i32>} : memref<304x4xf32, #tpu.memory_space<vmem>>, vector<8x4xf32>,
    %c0_7 = arith.constant 0 : index
    %c0_8 = arith.constant 0 : index
    %c0_9 = arith.constant 0 : index
    %25 = vector.load %arg1[%c0_7, %c0_8, %c0_9] : memref<1x256x4xf32, #tpu.memory_space<vmem>>, vector<1x256x4xf32>
    %26 = vector.shape_cast %25 : vector<1x256x4xf32> to vector<256x4xf32>
    %27 = vector.extract_strided_slice %26 {offsets = [16, 0], sizes = [16, 4], strides = [1, 1]} : vector<256x4xf32> to vector<16x4xf32>
    %c8 = arith.constant 8 : index
    %c0_10 = arith.constant 0 : index
    %28 = vector.load %arg9[%c8, %c0_10] : memref<304x4xf32, #tpu.memory_space<vmem>>, vector<16x4xf32>
    tpu.vector_store %arg9[%c8, %c0_10], %27 {strides = array<i32>} : memref<304x4xf32, #tpu.memory_space<vmem>>, vector<16x4xf32>,
    %c24 = arith.constant 24 : index
    %c0_11 = arith.constant 0 : index
    %29 = vector.load %arg9[%c24, %c0_11] : memref<304x4xf32, #tpu.memory_space<vmem>>, vector<256x4xf32>
    tpu.vector_store %arg9[%c24, %c0_11], %26 {strides = array<i32>} : memref<304x4xf32, #tpu.memory_space<vmem>>, vector<256x4xf32>,
    %30 = vector.extract_strided_slice %26 {offsets = [224, 0], sizes = [16, 4], strides = [1, 1]} : vector<256x4xf32> to vector<16x4xf32>
    %c280 = arith.constant 280 : index
    %c0_12 = arith.constant 0 : index
    %31 = vector.load %arg9[%c280, %c0_12] : memref<304x4xf32, #tpu.memory_space<vmem>>, vector<16x4xf32>
    tpu.vector_store %arg9[%c280, %c0_12], %30 {strides = array<i32>} : memref<304x4xf32, #tpu.memory_space<vmem>>, vector<16x4xf32>,
    %cst_13 = arith.constant 0.000000e+00 : f32
    %32 = vector.broadcast %cst_13 : f32 to vector<256x4xf32>
    %c7 = arith.constant 7 : index
    %c0_14 = arith.constant 0 : index
    %33 = vector.load %arg9[%c7, %c0_14] : memref<304x4xf32, #tpu.memory_space<vmem>>, vector<256x4xf32>
    %c8_15 = arith.constant 8 : index
    %c0_16 = arith.constant 0 : index
    %34 = vector.load %arg9[%c8_15, %c0_16] : memref<304x4xf32, #tpu.memory_space<vmem>>, vector<256x4xf32>
    %c9 = arith.constant 9 : index
    %c0_17 = arith.constant 0 : index
    %35 = vector.load %arg9[%c9, %c0_17] : memref<304x4xf32, #tpu.memory_space<vmem>>, vector<256x4xf32>
    %36 = arith.select %18, %35, %33 : vector<256x4xi1>, vector<256x4xf32>
    %37 = arith.select %20, %33, %35 : vector<256x4xi1>, vector<256x4xf32>
    %c0_18 = arith.constant 0 : index
    %c0_19 = arith.constant 0 : index
    %38 = vector.load %arg2[%c0_18, %c0_19] : memref<36x4xf32, #tpu.memory_space<vmem>>, vector<4x4xf32>
    %c4 = arith.constant 4 : index
    %c0_20 = arith.constant 0 : index
    %39 = vector.load %arg2[%c4, %c0_20] : memref<36x4xf32, #tpu.memory_space<vmem>>, vector<4x4xf32>
    %c8_21 = arith.constant 8 : index
    %c0_22 = arith.constant 0 : index
    %40 = vector.load %arg2[%c8_21, %c0_22] : memref<36x4xf32, #tpu.memory_space<vmem>>, vector<4x4xf32>
    %cst_23 = arith.constant dense<0.000000e+00> : vector<256x4xf32>
    %41 = tpu.matmul %36, %38, %cst_23 {dimension_numbers = #tpu.dot_dimension_numbers<[1], [0], [0], [1], [0, 0, 1, 1], [], []>} : vector<256x4xf32>, vector<4x4xf32>, vector<256x4xf32> -> vector<256x4xf32>
    %42 = arith.addf %32, %41 : vector<256x4xf32>
    %cst_24 = arith.constant dense<0.000000e+00> : vector<256x4xf32>
    %43 = tpu.matmul %34, %39, %cst_24 {dimension_numbers = #tpu.dot_dimension_numbers<[1], [0], [0], [1], [0, 0, 1, 1], [], []>} : vector<256x4xf32>, vector<4x4xf32>, vector<256x4xf32> -> vector<256x4xf32>
    %44 = arith.addf %42, %43 : vector<256x4xf32>
    %cst_25 = arith.constant dense<0.000000e+00> : vector<256x4xf32>
    %45 = tpu.matmul %37, %40, %cst_25 {dimension_numbers = #tpu.dot_dimension_numbers<[1], [0], [0], [1], [0, 0, 1, 1], [], []>} : vector<256x4xf32>, vector<4x4xf32>, vector<256x4xf32> -> vector<256x4xf32>
    %46 = arith.addf %44, %45 : vector<256x4xf32>
    %c23 = arith.constant 23 : index
    %c0_26 = arith.constant 0 : index
    %47 = vector.load %arg9[%c23, %c0_26] : memref<304x4xf32, #tpu.memory_space<vmem>>, vector<256x4xf32>
    %c24_27 = arith.constant 24 : index
    %c0_28 = arith.constant 0 : index
    %48 = vector.load %arg9[%c24_27, %c0_28] : memref<304x4xf32, #tpu.memory_space<vmem>>, vector<256x4xf32>
    %c25 = arith.constant 25 : index
    %c0_29 = arith.constant 0 : index
    %49 = vector.load %arg9[%c25, %c0_29] : memref<304x4xf32, #tpu.memory_space<vmem>>, vector<256x4xf32>
    %50 = arith.select %18, %49, %47 : vector<256x4xi1>, vector<256x4xf32>
    %51 = arith.select %20, %47, %49 : vector<256x4xi1>, vector<256x4xf32>
    %c12 = arith.constant 12 : index
    %c0_30 = arith.constant 0 : index
    %52 = vector.load %arg2[%c12, %c0_30] : memref<36x4xf32, #tpu.memory_space<vmem>>, vector<4x4xf32>
    %c16 = arith.constant 16 : index
    %c0_31 = arith.constant 0 : index
    %53 = vector.load %arg2[%c16, %c0_31] : memref<36x4xf32, #tpu.memory_space<vmem>>, vector<4x4xf32>
    %c20 = arith.constant 20 : index
    %c0_32 = arith.constant 0 : index
    %54 = vector.load %arg2[%c20, %c0_32] : memref<36x4xf32, #tpu.memory_space<vmem>>, vector<4x4xf32>
    %cst_33 = arith.constant dense<0.000000e+00> : vector<256x4xf32>
    %55 = tpu.matmul %50, %52, %cst_33 {dimension_numbers = #tpu.dot_dimension_numbers<[1], [0], [0], [1], [0, 0, 1, 1], [], []>} : vector<256x4xf32>, vector<4x4xf32>, vector<256x4xf32> -> vector<256x4xf32>
    %56 = arith.addf %46, %55 : vector<256x4xf32>
    %cst_34 = arith.constant dense<0.000000e+00> : vector<256x4xf32>
    %57 = tpu.matmul %48, %53, %cst_34 {dimension_numbers = #tpu.dot_dimension_numbers<[1], [0], [0], [1], [0, 0, 1, 1], [], []>} : vector<256x4xf32>, vector<4x4xf32>, vector<256x4xf32> -> vector<256x4xf32>
    %58 = arith.addf %56, %57 : vector<256x4xf32>
    %cst_35 = arith.constant dense<0.000000e+00> : vector<256x4xf32>
    %59 = tpu.matmul %51, %54, %cst_35 {dimension_numbers = #tpu.dot_dimension_numbers<[1], [0], [0], [1], [0, 0, 1, 1], [], []>} : vector<256x4xf32>, vector<4x4xf32>, vector<256x4xf32> -> vector<256x4xf32>
    %60 = arith.addf %58, %59 : vector<256x4xf32>
    %c39 = arith.constant 39 : index
    %c0_36 = arith.constant 0 : index
    %61 = vector.load %arg9[%c39, %c0_36] : memref<304x4xf32, #tpu.memory_space<vmem>>, vector<256x4xf32>
    %c40 = arith.constant 40 : index
    %c0_37 = arith.constant 0 : index
    %62 = vector.load %arg9[%c40, %c0_37] : memref<304x4xf32, #tpu.memory_space<vmem>>, vector<256x4xf32>
    %c41 = arith.constant 41 : index
    %c0_38 = arith.constant 0 : index
    %63 = vector.load %arg9[%c41, %c0_38] : memref<304x4xf32, #tpu.memory_space<vmem>>, vector<256x4xf32>
    %64 = arith.select %18, %63, %61 : vector<256x4xi1>, vector<256x4xf32>
    %65 = arith.select %20, %61, %63 : vector<256x4xi1>, vector<256x4xf32>
    %c24_39 = arith.constant 24 : index
    %c0_40 = arith.constant 0 : index
    %66 = vector.load %arg2[%c24_39, %c0_40] : memref<36x4xf32, #tpu.memory_space<vmem>>, vector<4x4xf32>
    %c28 = arith.constant 28 : index
    %c0_41 = arith.constant 0 : index
    %67 = vector.load %arg2[%c28, %c0_41] : memref<36x4xf32, #tpu.memory_space<vmem>>, vector<4x4xf32>
    %c32 = arith.constant 32 : index
    %c0_42 = arith.constant 0 : index
    %68 = vector.load %arg2[%c32, %c0_42] : memref<36x4xf32, #tpu.memory_space<vmem>>, vector<4x4xf32>
    %cst_43 = arith.constant dense<0.000000e+00> : vector<256x4xf32>
    %69 = tpu.matmul %64, %66, %cst_43 {dimension_numbers = #tpu.dot_dimension_numbers<[1], [0], [0], [1], [0, 0, 1, 1], [], []>} : vector<256x4xf32>, vector<4x4xf32>, vector<256x4xf32> -> vector<256x4xf32>
    %70 = arith.addf %60, %69 : vector<256x4xf32>
    %cst_44 = arith.constant dense<0.000000e+00> : vector<256x4xf32>
    %71 = tpu.matmul %62, %67, %cst_44 {dimension_numbers = #tpu.dot_dimension_numbers<[1], [0], [0], [1], [0, 0, 1, 1], [], []>} : vector<256x4xf32>, vector<4x4xf32>, vector<256x4xf32> -> vector<256x4xf32>
    %72 = arith.addf %70, %71 : vector<256x4xf32>
    %cst_45 = arith.constant dense<0.000000e+00> : vector<256x4xf32>
    %73 = tpu.matmul %65, %68, %cst_45 {dimension_numbers = #tpu.dot_dimension_numbers<[1], [0], [0], [1], [0, 0, 1, 1], [], []>} : vector<256x4xf32>, vector<4x4xf32>, vector<256x4xf32> -> vector<256x4xf32>
    %74 = arith.addf %72, %73 : vector<256x4xf32>
    %c0_46 = arith.constant 0 : index
    %c0_47 = arith.constant 0 : index
    %75 = vector.load %arg3[%c0_46, %c0_47] : memref<1x4xf32, #tpu.memory_space<vmem>>, vector<1x4xf32>
    %c0_48 = arith.constant 0 : index
    %c0_49 = arith.constant 0 : index
    %76 = vector.load %arg4[%c0_48, %c0_49] : memref<1x4xf32, #tpu.memory_space<vmem>>, vector<1x4xf32>
    %cst_50 = arith.constant dense<0.000000e+00> : vector<4xf32>
    %77 = vector.multi_reduction <add>, %74, %cst_50 [0] : vector<256x4xf32> to vector<4xf32>
    %78 = vector.shape_cast %77 : vector<4xf32> to vector<1x4xf32>
    %cst_51 = arith.constant 3.906250e-03 : f32
    %79 = vector.broadcast %cst_51 : f32 to vector<1x4xf32>
    %80 = arith.mulf %78, %79 : vector<1x4xf32>
    %81 = vector.broadcast %80 : vector<1x4xf32> to vector<256x4xf32>
    %82 = arith.subf %74, %81 : vector<256x4xf32>
    %83 = arith.mulf %82, %82 : vector<256x4xf32>
    %cst_52 = arith.constant dense<0.000000e+00> : vector<4xf32>
    %84 = vector.multi_reduction <add>, %83, %cst_52 [0] : vector<256x4xf32> to vector<4xf32>
    %85 = vector.shape_cast %84 : vector<4xf32> to vector<1x4xf32>
    %cst_53 = arith.constant 3.906250e-03 : f32
    %86 = vector.broadcast %cst_53 : f32 to vector<1x4xf32>
    %87 = arith.mulf %85, %86 : vector<1x4xf32>
    %cst_54 = arith.constant 9.99999974E-6 : f32
    %88 = vector.broadcast %cst_54 : f32 to vector<1x4xf32>
    %89 = arith.addf %87, %88 : vector<1x4xf32>
    %90 = math.rsqrt %89 : vector<1x4xf32>
    %91 = arith.mulf %75, %90 : vector<1x4xf32>
    %92 = vector.broadcast %91 : vector<1x4xf32> to vector<256x4xf32>
    %93 = arith.mulf %82, %92 : vector<256x4xf32>
    %94 = vector.broadcast %76 : vector<1x4xf32> to vector<256x4xf32>
    %95 = arith.addf %93, %94 : vector<256x4xf32>
    %cst_55 = arith.constant 0.000000e+00 : f32
    %96 = vector.broadcast %cst_55 : f32 to vector<256x4xf32>
    %97 = arith.maximumf %95, %96 : vector<256x4xf32>
    %98 = vector.extract_strided_slice %97 {offsets = [16, 0], sizes = [16, 4], strides = [1, 1]} : vector<256x4xf32> to vector<16x4xf32>
    %c8_56 = arith.constant 8 : index
    %c0_57 = arith.constant 0 : index
    %99 = vector.load %arg9[%c8_56, %c0_57] : memref<304x4xf32, #tpu.memory_space<vmem>>, vector<16x4xf32>
    tpu.vector_store %arg9[%c8_56, %c0_57], %98 {strides = array<i32>} : memref<304x4xf32, #tpu.memory_space<vmem>>, vector<16x4xf32>,
    %c24_58 = arith.constant 24 : index
    %c0_59 = arith.constant 0 : index
    %100 = vector.load %arg9[%c24_58, %c0_59] : memref<304x4xf32, #tpu.memory_space<vmem>>, vector<256x4xf32>
    tpu.vector_store %arg9[%c24_58, %c0_59], %97 {strides = array<i32>} : memref<304x4xf32, #tpu.memory_space<vmem>>, vector<256x4xf32>,
    %101 = vector.extract_strided_slice %97 {offsets = [224, 0], sizes = [16, 4], strides = [1, 1]} : vector<256x4xf32> to vector<16x4xf32>
    %c280_60 = arith.constant 280 : index
    %c0_61 = arith.constant 0 : index
    %102 = vector.load %arg9[%c280_60, %c0_61] : memref<304x4xf32, #tpu.memory_space<vmem>>, vector<16x4xf32>
    tpu.vector_store %arg9[%c280_60, %c0_61], %101 {strides = array<i32>} : memref<304x4xf32, #tpu.memory_space<vmem>>, vector<16x4xf32>,
    %cst_62 = arith.constant 0.000000e+00 : f32
    %103 = vector.broadcast %cst_62 : f32 to vector<256x4xf32>
    %c7_63 = arith.constant 7 : index
    %c0_64 = arith.constant 0 : index
    %104 = vector.load %arg9[%c7_63, %c0_64] : memref<304x4xf32, #tpu.memory_space<vmem>>, vector<256x4xf32>
    %c8_65 = arith.constant 8 : index
    %c0_66 = arith.constant 0 : index
    %105 = vector.load %arg9[%c8_65, %c0_66] : memref<304x4xf32, #tpu.memory_space<vmem>>, vector<256x4xf32>
    %c9_67 = arith.constant 9 : index
    %c0_68 = arith.constant 0 : index
    %106 = vector.load %arg9[%c9_67, %c0_68] : memref<304x4xf32, #tpu.memory_space<vmem>>, vector<256x4xf32>
    %107 = arith.select %18, %106, %104 : vector<256x4xi1>, vector<256x4xf32>
    %108 = arith.select %20, %104, %106 : vector<256x4xi1>, vector<256x4xf32>
    %c0_69 = arith.constant 0 : index
    %c0_70 = arith.constant 0 : index
    %109 = vector.load %arg5[%c0_69, %c0_70] : memref<36x4xf32, #tpu.memory_space<vmem>>, vector<4x4xf32>
    %c4_71 = arith.constant 4 : index
    %c0_72 = arith.constant 0 : index
    %110 = vector.load %arg5[%c4_71, %c0_72] : memref<36x4xf32, #tpu.memory_space<vmem>>, vector<4x4xf32>
    %c8_73 = arith.constant 8 : index
    %c0_74 = arith.constant 0 : index
    %111 = vector.load %arg5[%c8_73, %c0_74] : memref<36x4xf32, #tpu.memory_space<vmem>>, vector<4x4xf32>
    %cst_75 = arith.constant dense<0.000000e+00> : vector<256x4xf32>
    %112 = tpu.matmul %107, %109, %cst_75 {dimension_numbers = #tpu.dot_dimension_numbers<[1], [0], [0], [1], [0, 0, 1, 1], [], []>} : vector<256x4xf32>, vector<4x4xf32>, vector<256x4xf32> -> vector<256x4xf32>
    %113 = arith.addf %103, %112 : vector<256x4xf32>
    %cst_76 = arith.constant dense<0.000000e+00> : vector<256x4xf32>
    %114 = tpu.matmul %105, %110, %cst_76 {dimension_numbers = #tpu.dot_dimension_numbers<[1], [0], [0], [1], [0, 0, 1, 1], [], []>} : vector<256x4xf32>, vector<4x4xf32>, vector<256x4xf32> -> vector<256x4xf32>
    %115 = arith.addf %113, %114 : vector<256x4xf32>
    %cst_77 = arith.constant dense<0.000000e+00> : vector<256x4xf32>
    %116 = tpu.matmul %108, %111, %cst_77 {dimension_numbers = #tpu.dot_dimension_numbers<[1], [0], [0], [1], [0, 0, 1, 1], [], []>} : vector<256x4xf32>, vector<4x4xf32>, vector<256x4xf32> -> vector<256x4xf32>
    %117 = arith.addf %115, %116 : vector<256x4xf32>
    %c23_78 = arith.constant 23 : index
    %c0_79 = arith.constant 0 : index
    %118 = vector.load %arg9[%c23_78, %c0_79] : memref<304x4xf32, #tpu.memory_space<vmem>>, vector<256x4xf32>
    %c24_80 = arith.constant 24 : index
    %c0_81 = arith.constant 0 : index
    %119 = vector.load %arg9[%c24_80, %c0_81] : memref<304x4xf32, #tpu.memory_space<vmem>>, vector<256x4xf32>
    %c25_82 = arith.constant 25 : index
    %c0_83 = arith.constant 0 : index
    %120 = vector.load %arg9[%c25_82, %c0_83] : memref<304x4xf32, #tpu.memory_space<vmem>>, vector<256x4xf32>
    %121 = arith.select %18, %120, %118 : vector<256x4xi1>, vector<256x4xf32>
    %122 = arith.select %20, %118, %120 : vector<256x4xi1>, vector<256x4xf32>
    %c12_84 = arith.constant 12 : index
    %c0_85 = arith.constant 0 : index
    %123 = vector.load %arg5[%c12_84, %c0_85] : memref<36x4xf32, #tpu.memory_space<vmem>>, vector<4x4xf32>
    %c16_86 = arith.constant 16 : index
    %c0_87 = arith.constant 0 : index
    %124 = vector.load %arg5[%c16_86, %c0_87] : memref<36x4xf32, #tpu.memory_space<vmem>>, vector<4x4xf32>
    %c20_88 = arith.constant 20 : index
    %c0_89 = arith.constant 0 : index
    %125 = vector.load %arg5[%c20_88, %c0_89] : memref<36x4xf32, #tpu.memory_space<vmem>>, vector<4x4xf32>
    %cst_90 = arith.constant dense<0.000000e+00> : vector<256x4xf32>
    %126 = tpu.matmul %121, %123, %cst_90 {dimension_numbers = #tpu.dot_dimension_numbers<[1], [0], [0], [1], [0, 0, 1, 1], [], []>} : vector<256x4xf32>, vector<4x4xf32>, vector<256x4xf32> -> vector<256x4xf32>
    %127 = arith.addf %117, %126 : vector<256x4xf32>
    %cst_91 = arith.constant dense<0.000000e+00> : vector<256x4xf32>
    %128 = tpu.matmul %119, %124, %cst_91 {dimension_numbers = #tpu.dot_dimension_numbers<[1], [0], [0], [1], [0, 0, 1, 1], [], []>} : vector<256x4xf32>, vector<4x4xf32>, vector<256x4xf32> -> vector<256x4xf32>
    %129 = arith.addf %127, %128 : vector<256x4xf32>
    %cst_92 = arith.constant dense<0.000000e+00> : vector<256x4xf32>
    %130 = tpu.matmul %122, %125, %cst_92 {dimension_numbers = #tpu.dot_dimension_numbers<[1], [0], [0], [1], [0, 0, 1, 1], [], []>} : vector<256x4xf32>, vector<4x4xf32>, vector<256x4xf32> -> vector<256x4xf32>
    %131 = arith.addf %129, %130 : vector<256x4xf32>
    %c39_93 = arith.constant 39 : index
    %c0_94 = arith.constant 0 : index
    %132 = vector.load %arg9[%c39_93, %c0_94] : memref<304x4xf32, #tpu.memory_space<vmem>>, vector<256x4xf32>
    %c40_95 = arith.constant 40 : index
    %c0_96 = arith.constant 0 : index
    %133 = vector.load %arg9[%c40_95, %c0_96] : memref<304x4xf32, #tpu.memory_space<vmem>>, vector<256x4xf32>
    %c41_97 = arith.constant 41 : index
    %c0_98 = arith.constant 0 : index
    %134 = vector.load %arg9[%c41_97, %c0_98] : memref<304x4xf32, #tpu.memory_space<vmem>>, vector<256x4xf32>
    %135 = arith.select %18, %134, %132 : vector<256x4xi1>, vector<256x4xf32>
    %136 = arith.select %20, %132, %134 : vector<256x4xi1>, vector<256x4xf32>
    %c24_99 = arith.constant 24 : index
    %c0_100 = arith.constant 0 : index
    %137 = vector.load %arg5[%c24_99, %c0_100] : memref<36x4xf32, #tpu.memory_space<vmem>>, vector<4x4xf32>
    %c28_101 = arith.constant 28 : index
    %c0_102 = arith.constant 0 : index
    %138 = vector.load %arg5[%c28_101, %c0_102] : memref<36x4xf32, #tpu.memory_space<vmem>>, vector<4x4xf32>
    %c32_103 = arith.constant 32 : index
    %c0_104 = arith.constant 0 : index
    %139 = vector.load %arg5[%c32_103, %c0_104] : memref<36x4xf32, #tpu.memory_space<vmem>>, vector<4x4xf32>
    %cst_105 = arith.constant dense<0.000000e+00> : vector<256x4xf32>
    %140 = tpu.matmul %135, %137, %cst_105 {dimension_numbers = #tpu.dot_dimension_numbers<[1], [0], [0], [1], [0, 0, 1, 1], [], []>} : vector<256x4xf32>, vector<4x4xf32>, vector<256x4xf32> -> vector<256x4xf32>
    %141 = arith.addf %131, %140 : vector<256x4xf32>
    %cst_106 = arith.constant dense<0.000000e+00> : vector<256x4xf32>
    %142 = tpu.matmul %133, %138, %cst_106 {dimension_numbers = #tpu.dot_dimension_numbers<[1], [0], [0], [1], [0, 0, 1, 1], [], []>} : vector<256x4xf32>, vector<4x4xf32>, vector<256x4xf32> -> vector<256x4xf32>
    %143 = arith.addf %141, %142 : vector<256x4xf32>
    %cst_107 = arith.constant dense<0.000000e+00> : vector<256x4xf32>
    %144 = tpu.matmul %136, %139, %cst_107 {dimension_numbers = #tpu.dot_dimension_numbers<[1], [0], [0], [1], [0, 0, 1, 1], [], []>} : vector<256x4xf32>, vector<4x4xf32>, vector<256x4xf32> -> vector<256x4xf32>
    %145 = arith.addf %143, %144 : vector<256x4xf32>
    %c0_108 = arith.constant 0 : index
    %c0_109 = arith.constant 0 : index
    %146 = vector.load %arg6[%c0_108, %c0_109] : memref<1x4xf32, #tpu.memory_space<vmem>>, vector<1x4xf32>
    %c0_110 = arith.constant 0 : index
    %c0_111 = arith.constant 0 : index
    %147 = vector.load %arg7[%c0_110, %c0_111] : memref<1x4xf32, #tpu.memory_space<vmem>>, vector<1x4xf32>
    %cst_112 = arith.constant dense<0.000000e+00> : vector<4xf32>
    %148 = vector.multi_reduction <add>, %145, %cst_112 [0] : vector<256x4xf32> to vector<4xf32>
    %149 = vector.shape_cast %148 : vector<4xf32> to vector<1x4xf32>
    %cst_113 = arith.constant 3.906250e-03 : f32
    %150 = vector.broadcast %cst_113 : f32 to vector<1x4xf32>
    %151 = arith.mulf %149, %150 : vector<1x4xf32>
    %152 = vector.broadcast %151 : vector<1x4xf32> to vector<256x4xf32>
    %153 = arith.subf %145, %152 : vector<256x4xf32>
    %154 = arith.mulf %153, %153 : vector<256x4xf32>
    %cst_114 = arith.constant dense<0.000000e+00> : vector<4xf32>
    %155 = vector.multi_reduction <add>, %154, %cst_114 [0] : vector<256x4xf32> to vector<4xf32>
    %156 = vector.shape_cast %155 : vector<4xf32> to vector<1x4xf32>
    %cst_115 = arith.constant 3.906250e-03 : f32
    %157 = vector.broadcast %cst_115 : f32 to vector<1x4xf32>
    %158 = arith.mulf %156, %157 : vector<1x4xf32>
    %cst_116 = arith.constant 9.99999974E-6 : f32
    %159 = vector.broadcast %cst_116 : f32 to vector<1x4xf32>
    %160 = arith.addf %158, %159 : vector<1x4xf32>
    %161 = math.rsqrt %160 : vector<1x4xf32>
    %162 = arith.mulf %146, %161 : vector<1x4xf32>
    %163 = vector.broadcast %162 : vector<1x4xf32> to vector<256x4xf32>
    %164 = arith.mulf %153, %163 : vector<256x4xf32>
    %165 = vector.broadcast %147 : vector<1x4xf32> to vector<256x4xf32>
    %166 = arith.addf %164, %165 : vector<256x4xf32>
    %c0_117 = arith.constant 0 : index
    %c0_118 = arith.constant 0 : index
    %c0_119 = arith.constant 0 : index
    %167 = vector.load %arg1[%c0_117, %c0_118, %c0_119] : memref<1x256x4xf32, #tpu.memory_space<vmem>>, vector<1x256x4xf32>
    %168 = vector.shape_cast %167 : vector<1x256x4xf32> to vector<256x4xf32>
    %169 = arith.addf %166, %168 : vector<256x4xf32>
    %c0_120 = arith.constant 0 : index
    %c0_121 = arith.constant 0 : index
    %c0_122 = arith.constant 0 : index
    %170 = vector.load %arg8[%c0_120, %c0_121, %c0_122] : memref<1x256x4xf32, #tpu.memory_space<vmem>>, vector<1x256x4xf32>
    %171 = vector.shape_cast %170 : vector<1x256x4xf32> to vector<256x4xf32>
    %172 = vector.shape_cast %169 : vector<256x4xf32> to vector<1x256x4xf32>
    tpu.vector_store %arg8[%c0_120, %c0_121, %c0_122], %172 {strides = array<i32>} : memref<1x256x4xf32, #tpu.memory_space<vmem>>, vector<1x256x4xf32>,
    return
  }
  func.func @transform_0(%arg0: i32) -> (i32, i32, i32) {
    %c0_i32 = arith.constant 0 : i32
    %c0_i32_0 = arith.constant 0 : i32
    %c0_i32_1 = arith.constant 0 : i32
    return %arg0, %c0_i32, %c0_i32_0 : i32, i32, i32
  }
  func.func @transform_1(%arg0: i32) -> (i32, i32) {
    %c0_i32 = arith.constant 0 : i32
    %c0_i32_0 = arith.constant 0 : i32
    %c0_i32_1 = arith.constant 0 : i32
    return %c0_i32, %c0_i32_0 : i32, i32
  }
  func.func @transform_2(%arg0: i32) -> (i32, i32) {
    %c0_i32 = arith.constant 0 : i32
    %c0_i32_0 = arith.constant 0 : i32
    %c0_i32_1 = arith.constant 0 : i32
    return %c0_i32, %c0_i32_0 : i32, i32
  }
  func.func @transform_3(%arg0: i32) -> (i32, i32) {
    %c0_i32 = arith.constant 0 : i32
    %c0_i32_0 = arith.constant 0 : i32
    %c0_i32_1 = arith.constant 0 : i32
    return %c0_i32, %c0_i32_0 : i32, i32
  }
  func.func @transform_4(%arg0: i32) -> (i32, i32) {
    %c0_i32 = arith.constant 0 : i32
    %c0_i32_0 = arith.constant 0 : i32
    %c0_i32_1 = arith.constant 0 : i32
    return %c0_i32, %c0_i32_0 : i32, i32
  }
  func.func @transform_5(%arg0: i32) -> (i32, i32) {
    %c0_i32 = arith.constant 0 : i32
    %c0_i32_0 = arith.constant 0 : i32
    %c0_i32_1 = arith.constant 0 : i32
    return %c0_i32, %c0_i32_0 : i32, i32
  }
  func.func @transform_6(%arg0: i32) -> (i32, i32) {
    %c0_i32 = arith.constant 0 : i32
    %c0_i32_0 = arith.constant 0 : i32
    %c0_i32_1 = arith.constant 0 : i32
    return %c0_i32, %c0_i32_0 : i32, i32
  }
  func.func @transform_7(%arg0: i32) -> (i32, i32, i32) {
    %c0_i32 = arith.constant 0 : i32
    %c0_i32_0 = arith.constant 0 : i32
    %c0_i32_1 = arith.constant 0 : i32
    return %arg0, %c0_i32, %c0_i32_0 : i32, i32, i32
  }
}

</mosaic_0001>

<bundles_post_ra>
// kernel: residual_block.1
= control target key start
LH: loop header
LB: loop body
LE: loop exit
PB: predicated region body
PF: predicated region fallthrough
CT: control target
= control target key end

     0   :  { %s11069_s24 = smov 0   ;;  %s15550_s0 = inlined_call_operand.vmem [shape: f32[2,256,4], index: 0, kind: input, shape index: {}]   ;;  %s15551_s1 = inlined_call_operand.vmem [shape: f32[36,4], index: 1, kind: input, shape index: {}]   ;;  %s15552_s2 = inlined_call_operand.vmem [shape: f32[1,4], index: 2, kind: input, shape index: {}]   ;;  %s15553_s3 = inlined_call_operand.vmem [shape: f32[1,4], index: 3, kind: input, shape index: {}]   ;;  %s15554_s4 = inlined_call_operand.vmem [shape: f32[36,4], index: 4, kind: input, shape index: {}]   ;;  %s15555_s5 = inlined_call_operand.vmem [shape: f32[1,4], index: 5, kind: input, shape index: {}]   ;;  %s15556_s6 = inlined_call_operand.vmem [shape: f32[1,4], index: 6, kind: input, shape index: {}]   ;;  %s15557_s7 = inlined_call_operand.vmem [shape: f32[2,256,4], index: 7, kind: output, shape index: {}]  }
   0x1 LB: > { %s8879_s25 = sadd.s32 4294967295, %s11026_s24   ;;  %p8883_p0 = scmp.ge.s32.totalorder %s11026_s24, 1  ;;  %s11026_s24 = sphi %s11069_s24, %s17_s24  }
   0x2   : > { %p237_p1 = scmp.lt.s32.totalorder %s11026_s24, 3 }
   0x4   : > { %p238_p2 = pnand %p8883_p0, %p237_p1 }
   0x6   : > { %241 = sbr.rel (%p238_p2) target bundleno = 1404 (0x57c), region = 48 }
   0xb   : > { %v992_v0 = vld [vmem:[%s15551_s1 + $0x4] sm:$0xf]  ;;  %vm15581_vm0 = vcmask 1043456   ;;  %p269_p3 = scmp.lt.s32.totalorder %s8879_s25, 1  ;;  %vm15723_vm1 = vcmask 31744   ;;  %v279_v3 = vlaneseq  ;;  %v11028_v4 = vmov 0.0  }
   0xc   : > { %10082 = vmatprep.subr.msk.mxu0 %vm15581_vm0, %v992_v0  ;;  %v991_v1 = vld [vmem:[%s15551_s1] sm:$0xf]  ;;  %v11087_v2 = vld [vmem:[%s15551_s1 + $0x8] sm:$0xf]  ;;  %761 = vst.msk [vmem:[#allocation2] sm:$0xff] %vm15723_vm1, %v11028_v4  ;;  %762 = vst.msk [vmem:[#allocation2 + $0x128] sm:$0xff] %vm15723_vm1, %v11028_v4 }
   0xd   : > { %v11094_v5 = vld [vmem:[%s15551_s1 + $0xc] sm:$0xf]  ;;  %10083 = vmatpush3.msk.msra.mxu0 %vm15581_vm0, %v992_v0  ;;  %s16934_s25 = smov (!%p269_p3, %s8879_s25), 1  ;;  %10132 = vmatprep.subr.msk.mxu1 %vm15581_vm0, %v991_v1  ;;  %v11113_v6 = vshrl.u32 %v279_v3, 7  ;;  %v15848_v32 = vmov 0  ;;  %v15851_v43 = vmov 0 }
   0xe   : > { %10182 = vmatprep.subr.msk.mxu0 %vm15581_vm0, %v11087_v2  ;;  %10133 = vmatpush3.msk.msra.mxu1 %vm15581_vm0, %v991_v1  ;;  %s9486_s11 = sshll.u32 %s16934_s25, 8  ;;  %v11193_v47 = vld [vmem:[%s15551_s1 + $0x10] sm:$0xf]  ;;  %v15856_v50 = vmov 0  ;;  %v15861_v60 = vmov 0 }
   0xf   : > { %10232 = vmatprep.subr.msk.mxu1 %vm15581_vm0, %v11094_v5  ;;  %s11111_s14 = scalar_lea.vmem %s15550_s0, %s9486_s11  ;;  %15847 = vst [vmem:[#allocation3_spill] sm:$0xff] %v11113_v6  ;;  %v282_v11 = vadd.s32 16, %v11113_v6  ;;  %v316_v17 = vand.u32 15, %v11113_v6  ;;  %v284_v18 = vadd.s32 32, %v11113_v6  ;;  %v286_v34 = vadd.s32 48, %v11113_v6  ;;  %s15435_s15 = scalar_lea.vmem %s15557_s7, %s9486_s11 }
  0x10   : > { %v765_v7 = vld [vmem:[%s11111_s14 + $0x10] sm:$0xff]  ;;  %v766_v8 = vld [vmem:[%s11111_s14 + $0x18] sm:$0xff]  ;;  %v763_v9 = vld [vmem:[%s11111_s14] sm:$0xff]  ;;  %v288_v52 = vadd.s32 64, %v11113_v6  ;;  %v290_v0 = vadd.s32 80, %v11113_v6 }
  0x11   : > { %795 = vst.msk [vmem:[#allocation2 + $0x8] sm:$0xff] %vm15723_vm1, %v765_v7  ;;  %799 = vst.msk [vmem:[#allocation2 + $0x28] sm:$0xff] %vm15723_vm1, %v765_v7  ;;  %v764_v10 = vld [vmem:[%s11111_s14 + $0x8] sm:$0xff]  ;;  %v767_v12 = vld [vmem:[%s11111_s14 + $0x20] sm:$0xff]  ;;  %v330_v25 = vand.u32 15, %v282_v11  ;;  %vm11159_vm2 = vcmp.eq.s32.totalorder %v316_v17, 0 }
  0x12   : > { %796 = vst.msk [vmem:[#allocation2 + $0x10] sm:$0xff] %vm15723_vm1, %v766_v8  ;;  %800 = vst.msk [vmem:[#allocation2 + $0x30] sm:$0xff] %vm15723_vm1, %v766_v8  ;;  %v768_v13 = vld [vmem:[%s11111_s14 + $0x28] sm:$0xff]  ;;  %v769_v14 = vld [vmem:[%s11111_s14 + $0x30] sm:$0xff]  ;;  %v15849_v32 = vsel %vm11159_vm2, 4294967295, %v15848_v32  ;;  %v344_v33 = vand.u32 15, %v284_v18 }
  0x13   : > { %797 = vst.msk [vmem:[#allocation2 + $0x18] sm:$0xff] %vm15723_vm1, %v763_v9  ;;  %798 = vst.msk [vmem:[#allocation2 + $0x20] sm:$0xff] %vm15723_vm1, %v764_v10  ;;  %v770_v15 = vld [vmem:[%s11111_s14 + $0x38] sm:$0xff]  ;;  %v771_v16 = vld [vmem:[%s11111_s14 + $0x40] sm:$0xff]  ;;  %vm11178_vm3 = vcmp.eq.s32.totalorder %v330_v25, 0  ;;  %v358_v51 = vand.u32 15, %v286_v34 }
  0x14   : > { %801 = vst.msk [vmem:[#allocation2 + $0x38] sm:$0xff] %vm15723_vm1, %v767_v12  ;;  %802 = vst.msk [vmem:[#allocation2 + $0x40] sm:$0xff] %vm15723_vm1, %v768_v13  ;;  %v772_v19 = vld [vmem:[%s11111_s14 + $0x48] sm:$0xff]  ;;  %v773_v20 = vld [vmem:[%s11111_s14 + $0x50] sm:$0xff]  ;;  %v15852_v43 = vsel %vm11178_vm3, 4294967295, %v15851_v43  ;;  %vm11202_vm4 = vcmp.eq.s32.totalorder %v344_v33, 0 }
  0x15   : > { %803 = vst.msk [vmem:[#allocation2 + $0x48] sm:$0xff] %vm15723_vm1, %v769_v14  ;;  %804 = vst.msk [vmem:[#allocation2 + $0x50] sm:$0xff] %vm15723_vm1, %v770_v15  ;;  %v774_v21 = vld [vmem:[%s11111_s14 + $0x58] sm:$0xff]  ;;  %v775_v22 = vld [vmem:[%s11111_s14 + $0x60] sm:$0xff]  ;;  %v15857_v50 = vsel %vm11202_vm4, 4294967295, %v15856_v50  ;;  %vm11238_vm5 = vcmp.eq.s32.totalorder %v358_v51, 0 }
  0x16   : > { %805 = vst.msk [vmem:[#allocation2 + $0x58] sm:$0xff] %vm15723_vm1, %v771_v16  ;;  %806 = vst.msk [vmem:[#allocation2 + $0x60] sm:$0xff] %vm15723_vm1, %v772_v19  ;;  %v776_v23 = vld [vmem:[%s11111_s14 + $0x68] sm:$0xff]  ;;  %v777_v24 = vld [vmem:[%s11111_s14 + $0x70] sm:$0xff]  ;;  %v15862_v60 = vsel %vm11238_vm5, 4294967295, %v15861_v60  ;;  %v372_v63 = vand.u32 15, %v288_v52 }
  0x17   : > { %807 = vst.msk [vmem:[#allocation2 + $0x68] sm:$0xff] %vm15723_vm1, %v773_v20  ;;  %808 = vst.msk [vmem:[#allocation2 + $0x70] sm:$0xff] %vm15723_vm1, %v774_v21  ;;  %v778_v26 = vld [vmem:[%s11111_s14 + $0x78] sm:$0xff]  ;;  %v779_v27 = vld [vmem:[%s11111_s14 + $0x80] sm:$0xff]  ;;  %v386_v9 = vand.u32 15, %v290_v0  ;;  %v292_v10 = vadd.s32 96, %v11113_v6 }
  0x18   : > { %809 = vst.msk [vmem:[#allocation2 + $0x78] sm:$0xff] %vm15723_vm1, %v775_v22  ;;  %810 = vst.msk [vmem:[#allocation2 + $0x80] sm:$0xff] %vm15723_vm1, %v776_v23  ;;  %v780_v28 = vld [vmem:[%s11111_s14 + $0x88] sm:$0xff]  ;;  %v781_v29 = vld [vmem:[%s11111_s14 + $0x90] sm:$0xff]  ;;  %vm11264_vm6 = vcmp.eq.s32.totalorder %v372_v63, 0  ;;  %v15871_v15 = vmov 0 }
  0x19   : > { %811 = vst.msk [vmem:[#allocation2 + $0x88] sm:$0xff] %vm15723_vm1, %v777_v24  ;;  %812 = vst.msk [vmem:[#allocation2 + $0x90] sm:$0xff] %vm15723_vm1, %v778_v26  ;;  %v782_v30 = vld [vmem:[%s11111_s14 + $0x98] sm:$0xff]  ;;  %v783_v31 = vld [vmem:[%s11111_s14 + $0xa0] sm:$0xff]  ;;  %vm11290_vm7 = vcmp.eq.s32.totalorder %v386_v9, 0  ;;  %v400_v18 = vand.u32 15, %v292_v10 }
  0x1a   : > { %813 = vst.msk [vmem:[#allocation2 + $0x98] sm:$0xff] %vm15723_vm1, %v779_v27  ;;  %814 = vst.msk [vmem:[#allocation2 + $0xa0] sm:$0xff] %vm15723_vm1, %v780_v28  ;;  %v784_v35 = vld [vmem:[%s11111_s14 + $0xa8] sm:$0xff]  ;;  %v785_v36 = vld [vmem:[%s11111_s14 + $0xb0] sm:$0xff]  ;;  %v15872_v15 = vsel %vm11290_vm7, 4294967295, %v15871_v15  ;;  %v294_v19 = vadd.s32 112, %v11113_v6 }
  0x1b   : > { %15850 = vst [vmem:[#allocation4_spill] sm:$0xff] %v15849_v32  ;;  %815 = vst.msk [vmem:[#allocation2 + $0xa8] sm:$0xff] %vm15723_vm1, %v781_v29  ;;  %v786_v37 = vld [vmem:[%s11111_s14 + $0xb8] sm:$0xff]  ;;  %v863_v38 = vld [vmem:[#allocation2 + $0x8] sm:$0xff]  ;;  %vm11316_vm8 = vcmp.eq.s32.totalorder %v400_v18, 0  ;;  %v15876_v24 = vmov 0 }
  0x1c   : > { %816 = vst.msk [vmem:[#allocation2 + $0xb0] sm:$0xff] %vm15723_vm1, %v782_v30  ;;  %817 = vst.msk [vmem:[#allocation2 + $0xb8] sm:$0xff] %vm15723_vm1, %v783_v31  ;;  %v864_v39 = vld [vmem:[#allocation2 + $0x10] sm:$0xff]  ;;  %v831_v40 = vld [vmem:[#allocation2 + $0x7] sm:$0xff]  ;;  %10084 = vmatprep.mubr.msk.f32.mxu0 %vm15723_vm1, %v863_v38  ;;  %v15877_v24 = vsel %vm11316_vm8, 4294967295, %v15876_v24  ;;  %v414_v27 = vand.u32 15, %v294_v19 }
  0x1d   : > { %818 = vst.msk [vmem:[#allocation2 + $0xc0] sm:$0xff] %vm15723_vm1, %v784_v35  ;;  %819 = vst.msk [vmem:[#allocation2 + $0xc8] sm:$0xff] %vm15723_vm1, %v785_v36  ;;  %v11174_v41 = vld [vmem:[#allocation2 + $0x9] sm:$0xff]  ;;  %10085 = vmatmul.mubr.msk.f32.vlgmr.msra.gmra.mxu0 %vm15723_vm1, %v864_v39  ;;  %v11186_v45 = vld [vmem:[#allocation2 + $0x18] sm:$0xff]  ;;  %v296_v28 = vadd.s32 128, %v11113_v6  ;;  %v15881_v39 = vmov 0 }
  0x1e   : > { %820 = vst.msk [vmem:[#allocation2 + $0xd0] sm:$0xff] %vm15723_vm1, %v786_v37  ;;  %v11176_v42 = vld [vmem:[#allocation2 + $0xf] sm:$0xff]  ;;  %15853 = vst [vmem:[#allocation5_spill] sm:$0xff] %v15852_v43  ;;  %v927_v44 = vsel %vm11159_vm2, %v11174_v41, %v831_v40  ;;  %v11188_v46 = vld [vmem:[#allocation2 + $0x17] sm:$0xff]  ;;  %10183 = vmatpush3.msk.msra.mxu0 %vm15581_vm0, %v11087_v2  ;;  %10087 = vmatprep.mubr.msk.f32.mxu0 %vm15723_vm1, %v11186_v45  ;;  %vm11349_vm9 = vcmp.eq.s32.totalorder %v414_v27, 0  ;;  %v15886_v9 = vmov 0 }
  0x1f   : > { %15854 = vst [vmem:[#allocation6_spill] sm:$0xff] %v11186_v45  ;;  %10134 = vmatprep.mubr.msk.f32.mxu1 %vm15723_vm1, %v927_v44  ;;  %v11198_v48 = vld [vmem:[#allocation2 + $0x20] sm:$0xff]  ;;  %15858 = vst [vmem:[#allocation8_spill] sm:$0xff] %v15857_v50  ;;  %v11215_v54 = vld [vmem:[#allocation2 + $0x28] sm:$0xff]  ;;  %10282 = vmatprep.subr.msk.mxu0 %vm15581_vm0, %v11193_v47  ;;  %v15882_v39 = vsel %vm11349_vm9, 4294967295, %v15881_v39  ;;  %v428_v40 = vand.u32 15, %v296_v28 }
  0x20   : > { %15855 = vst [vmem:[#allocation7_spill] sm:$0xff] %v11198_v48  ;;  %v11200_v49 = vld [vmem:[#allocation2 + $0x19] sm:$0xff]  ;;  %10135 = vmatmul.mubr.msk.f32.vlgmr.msra.gmra.mxu1 %vm15723_vm1, %v11176_v42  ;;  %15859 = vst [vmem:[#allocation9_spill] sm:$0xff] %v11215_v54  ;;  %v11217_v55 = vld [vmem:[#allocation2 + $0x27] sm:$0xff]  ;;  %v298_v44 = vadd.s32 144, %v11113_v6  ;;  %v300_v19 = vadd.s32 160, %v11113_v6 }
  0x21   : > { %v929_v53 = vsel %vm11178_vm3, %v11200_v49, %v11188_v46  ;;  %v11219_v56 = vld [vmem:[#allocation2 + $0x29] sm:$0xff]  ;;  %v11222_v57 = vld [vmem:[#allocation2 + $0x1f] sm:$0xff]  ;;  %10233 = vmatpush3.msk.msra.mxu1 %vm15581_vm0, %v11094_v5  ;;  %10088 = vmatmul.mubr.msk.f32.gmra.mxu0 %vm15723_vm1, %v11198_v48  ;;  %15863 = vst [vmem:[#allocation11_spill] sm:$0xff] %v15862_v60  ;;  %v11242_v61 = vld [vmem:[#allocation2 + $0x37] sm:$0xff]  ;;  %v15866_v5 = vmov 0  ;;  %vm11382_vm10 = vcmp.eq.s32.totalorder %v428_v40, 0 }
  0x22   : > { %10137 = vmatprep.mubr.msk.f32.mxu1 %vm15723_vm1, %v929_v53  ;;  %v931_v58 = vsel %vm11202_vm4, %v11219_v56, %v11217_v55  ;;  %10090 = vmatprep.mubr.msk.f32.mxu0 %vm15723_vm1, %v11215_v54  ;;  %v11236_v59 = vld [vmem:[#allocation2 + $0x30] sm:$0xff]  ;;  %v11244_v62 = vld [vmem:[#allocation2 + $0x39] sm:$0xff]  ;;  %v15867_v5 = vsel %vm11264_vm6, 4294967295, %v15866_v5  ;;  %v11268_v7 = vld [vmem:[#allocation2 + $0x47] sm:$0xff]  ;;  %15873 = vst [vmem:[#allocation17_spill] sm:$0xff] %v15872_v15  ;;  %v15887_v9 = vsel %vm11382_vm10, 4294967295, %v15886_v9 }
  0x23   : > { %15860 = vst [vmem:[#allocation10_spill] sm:$0xff] %v11236_v59  ;;  %v11249_v1 = vld [vmem:[#allocation2 + $0x38] sm:$0xff]  ;;  %v11252_v2 = vld [vmem:[#allocation2 + $0x2f] sm:$0xff]  ;;  %v933_v3 = vsel %vm11238_vm5, %v11244_v62, %v11242_v61  ;;  %v11262_v4 = vld [vmem:[#allocation2 + $0x40] sm:$0xff]  ;;  %v442_v18 = vand.u32 15, %v298_v44  ;;  %v15891_v40 = vmov 0 }
  0x24   : > { %10138 = vmatmul.mubr.msk.f32.gmra.mxu1 %vm15723_vm1, %v11222_v57  ;;  %15864 = vst [vmem:[#allocation12_spill] sm:$0xff] %v11249_v1  ;;  %15865 = vst [vmem:[#allocation13_spill] sm:$0xff] %v11262_v4  ;;  %v11270_v8 = vld [vmem:[#allocation2 + $0x49] sm:$0xff]  ;;  %v11278_v12 = vld [vmem:[#allocation2 + $0x3f] sm:$0xff]  ;;  %v287_v32 = vadd.s32 56, %v11113_v6 }
  0x25   : > { %10140 = vmatprep.mubr.msk.f32.mxu1 %vm15723_vm1, %v931_v58  ;;  %10091 = vmatmul.mubr.msk.f32.gmra.mxu0 %vm15723_vm1, %v11236_v59  ;;  %15868 = vst [vmem:[#allocation14_spill] sm:$0xff] %v15867_v5  ;;  %v11275_v11 = vld [vmem:[#allocation2 + $0x48] sm:$0xff]  ;;  %v935_v13 = vsel %vm11264_vm6, %v11270_v8, %v11268_v7  ;;  %v11288_v14 = vld [vmem:[#allocation2 + $0x50] sm:$0xff]  ;;  %v11296_v17 = vld [vmem:[#allocation2 + $0x59] sm:$0xff]  ;;  %vm11419_vm11 = vcmp.eq.s32.totalorder %v442_v18, 0  ;;  %v15912_v59 = vmov 0 }
  0x26   : > { %10093 = vmatprep.mubr.msk.f32.mxu0 %vm15723_vm1, %v11249_v1  ;;  %15869 = vst [vmem:[#allocation15_spill] sm:$0xff] %v11275_v11  ;;  %15870 = vst [vmem:[#allocation16_spill] sm:$0xff] %v11288_v14  ;;  %v11294_v16 = vld [vmem:[#allocation2 + $0x57] sm:$0xff]  ;;  %v11304_v21 = vld [vmem:[#allocation2 + $0x4f] sm:$0xff]  ;;  %v15892_v40 = vsel %vm11419_vm11, 4294967295, %v15891_v40 }
  0x27   : > { %v11301_v20 = vld [vmem:[#allocation2 + $0x58] sm:$0xff]  ;;  %v937_v22 = vsel %vm11290_vm7, %v11296_v17, %v11294_v16  ;;  %v11314_v23 = vld [vmem:[#allocation2 + $0x60] sm:$0xff]  ;;  %15878 = vst [vmem:[#allocation20_spill] sm:$0xff] %v15877_v24  ;;  %v11322_v26 = vld [vmem:[#allocation2 + $0x69] sm:$0xff] }
  0x28   : > { %10141 = vmatmul.mubr.msk.f32.gmra.mxu1 %vm15723_vm1, %v11252_v2  ;;  %15874 = vst [vmem:[#allocation18_spill] sm:$0xff] %v11301_v20  ;;  %15875 = vst [vmem:[#allocation19_spill] sm:$0xff] %v11314_v23  ;;  %v11320_v25 = vld [vmem:[#allocation2 + $0x67] sm:$0xff]  ;;  %v11327_v29 = vld [vmem:[#allocation2 + $0x5f] sm:$0xff] }
  0x29   : > { %10143 = vmatprep.mubr.msk.f32.mxu1 %vm15723_vm1, %v933_v3  ;;  %10094 = vmatmul.mubr.msk.f32.gmra.mxu0 %vm15723_vm1, %v11262_v4  ;;  %v11329_v30 = vld [vmem:[#allocation2 + $0x68] sm:$0xff]  ;;  %v11332_v31 = vld [vmem:[#allocation2 + $0x70] sm:$0xff]  ;;  %v11336_v34 = vld [vmem:[#allocation2 + $0x79] sm:$0xff]  ;;  %v939_v35 = vsel %vm11316_vm8, %v11322_v26, %v11320_v25  ;;  %15883 = vst [vmem:[#allocation23_spill] sm:$0xff] %v15882_v39  ;;  %v2105_v5 = vsel %vm11290_vm7, %v11322_v26, %v11320_v25  ;;  %v297_v25 = vadd.s32 136, %v11113_v6 }
  0x2a   : > { %10096 = vmatprep.mubr.msk.f32.mxu0 %vm15723_vm1, %v11275_v11  ;;  %15879 = vst [vmem:[#allocation21_spill] sm:$0xff] %v11329_v30  ;;  %15880 = vst [vmem:[#allocation22_spill] sm:$0xff] %v11332_v31  ;;  %v11334_v33 = vld [vmem:[#allocation2 + $0x77] sm:$0xff]  ;;  %v787_v36 = vld [vmem:[%s11111_s14 + $0xc0] sm:$0xff] }
  0x2b   : > { %v788_v37 = vld [vmem:[%s11111_s14 + $0xc8] sm:$0xff]  ;;  %v789_v38 = vld [vmem:[%s11111_s14 + $0xd0] sm:$0xff]  ;;  %821 = vst.msk [vmem:[#allocation2 + $0xd8] sm:$0xff] %vm15723_vm1, %v787_v36  ;;  %v790_v51 = vld [vmem:[%s11111_s14 + $0xd8] sm:$0xff]  ;;  %v941_v3 = vsel %vm11349_vm9, %v11336_v34, %v11334_v33  ;;  %v2107_v15 = vsel %vm11316_vm8, %v11336_v34, %v11334_v33  ;;  %v299_v33 = vadd.s32 152, %v11113_v6 }
  0x2c   : > { %10144 = vmatmul.mubr.msk.f32.gmra.mxu1 %vm15723_vm1, %v11278_v12  ;;  %822 = vst.msk [vmem:[#allocation2 + $0xe0] sm:$0xff] %vm15723_vm1, %v788_v37  ;;  %823 = vst.msk [vmem:[#allocation2 + $0xe8] sm:$0xff] %vm15723_vm1, %v789_v38  ;;  %v791_v52 = vld [vmem:[%s11111_s14 + $0xe0] sm:$0xff]  ;;  %v792_v53 = vld [vmem:[%s11111_s14 + $0xe8] sm:$0xff] }
  0x2d   : > { %10146 = vmatprep.mubr.msk.f32.mxu1 %vm15723_vm1, %v935_v13  ;;  %10097 = vmatmul.mubr.msk.f32.gmra.mxu0 %vm15723_vm1, %v11288_v14  ;;  %v11362_v58 = vld [vmem:[#allocation2 + $0x78] sm:$0xff]  ;;  %824 = vst.msk [vmem:[#allocation2 + $0xf0] sm:$0xff] %vm15723_vm1, %v790_v51  ;;  %825 = vst.msk [vmem:[#allocation2 + $0xf8] sm:$0xff] %vm15723_vm1, %v791_v52  ;;  %v11370_v63 = vld [vmem:[#allocation2 + $0x6f] sm:$0xff]  ;;  %v15906_v14 = vmov 0 }
  0x2e   : > { %10099 = vmatprep.mubr.msk.f32.mxu0 %vm15723_vm1, %v11301_v20  ;;  %15884 = vst [vmem:[#allocation24_spill] sm:$0xff] %v11362_v58  ;;  %829 = vst.msk [vmem:[#allocation2 + $0x118] sm:$0xff] %vm15723_vm1, %v791_v52  ;;  %v11374_v0 = vld [vmem:[#allocation2 + $0x80] sm:$0xff]  ;;  %v11388_v13 = vld [vmem:[#allocation2 + $0x89] sm:$0xff]  ;;  %v456_v52 = vand.u32 15, %v300_v19 }
  0x2f   : > { %826 = vst.msk [vmem:[#allocation2 + $0x100] sm:$0xff] %vm15723_vm1, %v792_v53  ;;  %830 = vst.msk [vmem:[#allocation2 + $0x120] sm:$0xff] %vm15723_vm1, %v792_v53  ;;  %v11386_v10 = vld [vmem:[#allocation2 + $0x87] sm:$0xff]  ;;  %v794_v28 = vld [vmem:[%s11111_s14 + $0xf8] sm:$0xff]  ;;  %v302_v53 = vadd.s32 176, %v11113_v6 }
  0x30   : > { %10147 = vmatmul.mubr.msk.f32.gmra.mxu1 %vm15723_vm1, %v11304_v21  ;;  %15885 = vst [vmem:[#allocation25_spill] sm:$0xff] %v11374_v0  ;;  %15888 = vst [vmem:[#allocation26_spill] sm:$0xff] %v15887_v9  ;;  %v11394_v27 = vld [vmem:[#allocation2 + $0x88] sm:$0xff]  ;;  %v11404_v36 = vld [vmem:[#allocation2 + $0x7f] sm:$0xff]  ;;  %v943_v37 = vsel %vm11382_vm10, %v11388_v13, %v11386_v10  ;;  %vm11445_vm12 = vcmp.eq.s32.totalorder %v456_v52, 0  ;;  %v2109_v24 = vsel %vm11349_vm9, %v11388_v13, %v11386_v10  ;;  %v301_v10 = vadd.s32 168, %v11113_v6 }
  0x31   : > { %10149 = vmatprep.mubr.msk.f32.mxu1 %vm15723_vm1, %v937_v22  ;;  %10100 = vmatmul.mubr.msk.f32.gmra.mxu0 %vm15723_vm1, %v11314_v23  ;;  %v793_v22 = vld [vmem:[%s11111_s14 + $0xf0] sm:$0xff]  ;;  %15889 = vst [vmem:[#allocation27_spill] sm:$0xff] %v11394_v27  ;;  %828 = vst.msk [vmem:[#allocation2 + $0x110] sm:$0xff] %vm15723_vm1, %v794_v28  ;;  %v11425_v51 = vld [vmem:[#allocation2 + $0x99] sm:$0xff]  ;;  %v15896_v28 = vmov 0 }
  0x32   : > { %10102 = vmatprep.mubr.msk.f32.mxu0 %vm15723_vm1, %v11329_v30  ;;  %827 = vst.msk [vmem:[#allocation2 + $0x108] sm:$0xff] %vm15723_vm1, %v793_v22  ;;  %v11417_v38 = vld [vmem:[#allocation2 + $0x90] sm:$0xff]  ;;  %15893 = vst [vmem:[#allocation29_spill] sm:$0xff] %v15892_v40  ;;  %v11443_v19 = vld [vmem:[#allocation2 + $0xa0] sm:$0xff]  ;;  %v15897_v28 = vsel %vm11445_vm12, 4294967295, %v15896_v28 }
  0x33   : > { %15890 = vst [vmem:[#allocation28_spill] sm:$0xff] %v11417_v38  ;;  %v11423_v44 = vld [vmem:[#allocation2 + $0x97] sm:$0xff]  ;;  %v11433_v22 = vld [vmem:[#allocation2 + $0x8f] sm:$0xff]  ;;  %15895 = vst [vmem:[#allocation31_spill] sm:$0xff] %v11443_v19 }
  0x34   : > { %10150 = vmatmul.mubr.msk.f32.gmra.mxu1 %vm15723_vm1, %v11327_v29  ;;  %v945_v18 = vsel %vm11419_vm11, %v11425_v51, %v11423_v44  ;;  %15898 = vst [vmem:[#allocation32_spill] sm:$0xff] %v15897_v28  ;;  %v11477_v30 = vld [vmem:[#allocation2 + $0xb9] sm:$0xff]  ;;  %v11503_v11 = vld [vmem:[#allocation2 + $0xc9] sm:$0xff]  ;;  %v2111_v39 = vsel %vm11382_vm10, %v11425_v51, %v11423_v44  ;;  %v303_v44 = vadd.s32 184, %v11113_v6 }
  0x35   : > { %10152 = vmatprep.mubr.msk.f32.mxu1 %vm15723_vm1, %v939_v35  ;;  %10103 = vmatmul.mubr.msk.f32.gmra.mxu0 %vm15723_vm1, %v11332_v31  ;;  %v11401_v35 = vld [vmem:[%s15551_s1 + $0x14] sm:$0xf]  ;;  %v15901_v31 = vmov 0  ;;  %v11482_v20 = vld [vmem:[#allocation2 + $0xb8] sm:$0xff]  ;;  %v11508_v1 = vld [vmem:[#allocation2 + $0xc8] sm:$0xff] }
  0x36   : > { %10105 = vmatprep.mubr.msk.f32.mxu0 %vm15723_vm1, %v11362_v58  ;;  %10332 = vmatprep.subr.msk.mxu1 %vm15581_vm0, %v11401_v35  ;;  %v11456_v58 = vld [vmem:[#allocation2 + $0xa8] sm:$0xff]  ;;  %15904 = vst [vmem:[#allocation36_spill] sm:$0xff] %v11482_v20  ;;  %15909 = vst [vmem:[#allocation39_spill] sm:$0xff] %v11508_v1  ;;  %v11529_v54 = vld [vmem:[#allocation2 + $0xd9] sm:$0xff] }
  0x37   : > { %15899 = vst [vmem:[#allocation33_spill] sm:$0xff] %v11456_v58  ;;  %15916 = vst [vmem:[#allocation44_spill] sm:$0xff] %v11529_v54  ;;  %v11534_v45 = vld [vmem:[#allocation2 + $0xd8] sm:$0xff] }
  0x38   : > { %10153 = vmatmul.mubr.msk.f32.gmra.mxu1 %vm15723_vm1, %v11370_v63  ;;  %15917 = vst [vmem:[#allocation45_spill] sm:$0xff] %v11534_v45 }
  0x39   : > { %10155 = vmatprep.mubr.msk.f32.mxu1 %vm15723_vm1, %v941_v3  ;;  %10106 = vmatmul.mubr.msk.f32.gmra.mxu0 %vm15723_vm1, %v11374_v0  ;;  %v11430_v3 = vld [vmem:[#allocation2 + $0x98] sm:$0xff]  ;;  %v470_v0 = vand.u32 15, %v302_v53  ;;  %v11469_v53 = vld [vmem:[#allocation2 + $0xb0] sm:$0xff] }
  0x3a   : > { %10108 = vmatprep.mubr.msk.f32.mxu0 %vm15723_vm1, %v11394_v27  ;;  %15894 = vst [vmem:[#allocation30_spill] sm:$0xff] %v11430_v3  ;;  %v11451_v27 = vld [vmem:[#allocation2 + $0xa9] sm:$0xff]  ;;  %15900 = vst [vmem:[#allocation34_spill] sm:$0xff] %v11469_v53 }
  0x3b   : > { %vm11471_vm13 = vcmp.eq.s32.totalorder %v470_v0, 0 }
  0x3c   : > { %10156 = vmatmul.mubr.msk.f32.gmra.mxu1 %vm15723_vm1, %v11404_v36  ;;  %v15902_v31 = vsel %vm11471_vm13, 4294967295, %v15901_v31 }
  0x3d   : > { %10158 = vmatprep.mubr.msk.f32.mxu1 %vm15723_vm1, %v943_v37  ;;  %10109 = vmatmul.mubr.msk.f32.gmra.mxu0 %vm15723_vm1, %v11417_v38  ;;  %v11449_v37 = vld [vmem:[#allocation2 + $0xa7] sm:$0xff]  ;;  %v304_v38 = vadd.s32 192, %v11113_v6  ;;  %15903 = vst [vmem:[#allocation35_spill] sm:$0xff] %v15902_v31 }
  0x3e   : > { %10111 = vmatprep.mubr.msk.f32.mxu0 %vm15723_vm1, %v11430_v3  ;;  %v11459_v3 = vld [vmem:[#allocation2 + $0x9f] sm:$0xff]  ;;  %v947_v52 = vsel %vm11445_vm12, %v11451_v27, %v11449_v37  ;;  %v2113_v9 = vsel %vm11419_vm11, %v11451_v27, %v11449_v37  ;;  %v305_v37 = vadd.s32 200, %v11113_v6 }
  0x3f   : > { %v484_v23 = vand.u32 15, %v304_v38  ;;  %v11495_v38 = vld [vmem:[#allocation2 + $0xc0] sm:$0xff]  ;;  %v15978_v43 = vld [vmem:[#allocation44_spill] sm:$0xff] }
  0x40   : > { %10159 = vmatmul.mubr.msk.f32.gmra.mxu1 %vm15723_vm1, %v11433_v22  ;;  %15905 = vst [vmem:[#allocation37_spill] sm:$0xff] %v11495_v38 }
  0x41   : > { %10161 = vmatprep.mubr.msk.f32.mxu1 %vm15723_vm1, %v945_v18  ;;  %10112 = vmatmul.mubr.msk.f32.gmra.mxu0 %vm15723_vm1, %v11443_v19  ;;  %v11475_v18 = vld [vmem:[#allocation2 + $0xb7] sm:$0xff]  ;;  %v306_v19 = vadd.s32 208, %v11113_v6  ;;  %vm11497_vm14 = vcmp.eq.s32.totalorder %v484_v23, 0 }
  0x42   : > { %10114 = vmatprep.mubr.msk.f32.mxu0 %vm15723_vm1, %v11456_v58  ;;  %v11485_v58 = vld [vmem:[#allocation2 + $0xaf] sm:$0xff]  ;;  %v949_v0 = vsel %vm11471_vm13, %v11477_v30, %v11475_v18  ;;  %v15907_v14 = vsel %vm11497_vm14, 4294967295, %v15906_v14  ;;  %v2115_v40 = vsel %vm11445_vm12, %v11477_v30, %v11475_v18  ;;  %v307_v18 = vadd.s32 216, %v11113_v6 }
  0x43   : > { %15908 = vst [vmem:[#allocation38_spill] sm:$0xff] %v15907_v14  ;;  %v498_v4 = vand.u32 15, %v306_v19  ;;  %v11521_v19 = vld [vmem:[#allocation2 + $0xd0] sm:$0xff]  ;;  %v15920_v14 = vmov 0 }
  0x44   : > { %10162 = vmatmul.mubr.msk.f32.gmra.mxu1 %vm15723_vm1, %v11459_v3  ;;  %15911 = vst [vmem:[#allocation41_spill] sm:$0xff] %v11521_v19 }
  0x45   : > { %10164 = vmatprep.mubr.msk.f32.mxu1 %vm15723_vm1, %v947_v52  ;;  %10115 = vmatmul.mubr.msk.f32.gmra.mxu0 %vm15723_vm1, %v11469_v53  ;;  %v11501_v52 = vld [vmem:[#allocation2 + $0xc7] sm:$0xff]  ;;  %v308_v53 = vadd.s32 224, %v11113_v6  ;;  %vm11523_vm15 = vcmp.eq.s32.totalorder %v498_v4, 0 }
  0x46   : > { %10117 = vmatprep.mubr.msk.f32.mxu0 %vm15723_vm1, %v11482_v20  ;;  %v11511_v20 = vld [vmem:[#allocation2 + $0xbf] sm:$0xff]  ;;  %v951_v23 = vsel %vm11497_vm14, %v11503_v11, %v11501_v52  ;;  %v15913_v59 = vsel %vm11523_vm15, 4294967295, %v15912_v59  ;;  %v2117_v60 = vsel %vm11471_vm13, %v11503_v11, %v11501_v52  ;;  %v309_v52 = vadd.s32 232, %v11113_v6 }
  0x47   : > { %15910 = vst [vmem:[#allocation40_spill] sm:$0xff] %v11511_v20  ;;  %15914 = vst [vmem:[#allocation42_spill] sm:$0xff] %v15913_v59  ;;  %v512_v48 = vand.u32 15, %v308_v53  ;;  %v11547_v53 = vld [vmem:[#allocation2 + $0xe0] sm:$0xff]  ;;  %v11560_v59 = vld [vmem:[#allocation2 + $0xe8] sm:$0xff] }
  0x48   : > { %10165 = vmatmul.mubr.msk.f32.gmra.mxu1 %vm15723_vm1, %v11485_v58  ;;  %15919 = vst [vmem:[#allocation47_spill] sm:$0xff] %v11547_v53  ;;  %15924 = vst [vmem:[#allocation50_spill] sm:$0xff] %v11560_v59 }
  0x49   : > { %10167 = vmatprep.mubr.msk.f32.mxu1 %vm15723_vm1, %v949_v0  ;;  %10118 = vmatmul.mubr.msk.f32.gmra.mxu0 %vm15723_vm1, %v11495_v38  ;;  %v11527_v0 = vld [vmem:[#allocation2 + $0xd7] sm:$0xff]  ;;  %v310_v38 = vadd.s32 240, %v11113_v6  ;;  %vm11549_vm0 = vcmp.eq.s32.totalorder %v512_v48, 0 }
  0x4a   : > { %10120 = vmatprep.mubr.msk.f32.mxu0 %vm15723_vm1, %v11508_v1  ;;  %15915 = vst [vmem:[#allocation43_spill] sm:$0xff] %v11527_v0  ;;  %v11537_v1 = vld [vmem:[#allocation2 + $0xcf] sm:$0xff]  ;;  %v953_v4 = vsel %vm11523_vm15, %v11529_v54, %v11527_v0  ;;  %v15921_v14 = vsel %vm11549_vm0, 4294967295, %v15920_v14  ;;  %v11581_v54 = vld [vmem:[#allocation2 + $0xf9] sm:$0xff] }
  0x4b   : > { %15918 = vst [vmem:[#allocation46_spill] sm:$0xff] %v11537_v1  ;;  %15922 = vst [vmem:[#allocation48_spill] sm:$0xff] %v15921_v14  ;;  %v526_v31 = vand.u32 15, %v310_v38  ;;  %v11573_v38 = vld [vmem:[#allocation2 + $0xf0] sm:$0xff]  ;;  %v283_v14 = vadd.s32 24, %v11113_v6 }
  0x4c   : > { %10168 = vmatmul.mubr.msk.f32.gmra.mxu1 %vm15723_vm1, %v11511_v20  ;;  %v11555_v20 = vld [vmem:[#allocation2 + $0xe9] sm:$0xff]  ;;  %15926 = vst [vmem:[#allocation52_spill] sm:$0xff] %v11573_v38 }
  0x4d   : > { %10170 = vmatprep.mubr.msk.f32.mxu1 %vm15723_vm1, %v951_v23  ;;  %10121 = vmatmul.mubr.msk.f32.gmra.mxu0 %vm15723_vm1, %v11521_v19  ;;  %v11553_v23 = vld [vmem:[#allocation2 + $0xe7] sm:$0xff]  ;;  %15923 = vst [vmem:[#allocation49_spill] sm:$0xff] %v11555_v20  ;;  %v281_v19 = vadd.s32 8, %v11113_v6  ;;  %vm11575_vm15 = vcmp.eq.s32.totalorder %v526_v31, 0 }
  0x4e   : > { %10123 = vmatprep.mubr.msk.f32.mxu0 %vm15723_vm1, %v11534_v45  ;;  %v11563_v45 = vld [vmem:[#allocation2 + $0xdf] sm:$0xff]  ;;  %v955_v48 = vsel %vm11549_vm0, %v11555_v20, %v11553_v23  ;;  %v337_v20 = vand.u32 15, %v283_v14  ;;  %v15935_v14 = vmov 0 }
  0x4f   : > { %15925 = vst [vmem:[#allocation51_spill] sm:$0xff] %v11563_v45  ;;  %v323_v0 = vand.u32 15, %v281_v19  ;;  %v11599_v19 = vld [vmem:[#allocation2 + $0x100] sm:$0xff] }
  0x50   : > { %10171 = vmatmul.mubr.msk.f32.gmra.mxu1 %vm15723_vm1, %v11537_v1  ;;  %v15927_v1 = vmov 0  ;;  %15931 = vst [vmem:[#allocation55_spill] sm:$0xff] %v11599_v19 }
  0x51   : > { %10173 = vmatprep.mubr.msk.f32.mxu1 %vm15723_vm1, %v953_v4  ;;  %10124 = vmatmul.mubr.msk.f32.gmra.mxu0 %vm15723_vm1, %v11547_v53  ;;  %v15928_v1 = vsel %vm11575_vm15, 4294967295, %v15927_v1  ;;  %v11579_v4 = vld [vmem:[#allocation2 + $0xf7] sm:$0xff]  ;;  %vm11601_vm0 = vcmp.eq.s32.totalorder %v323_v0, 15  ;;  %v2095_v0 = vsel %vm11159_vm2, %v11200_v49, %v11188_v46  ;;  %vm15938_vm2 = vcmask 1043456  }
  0x52   : > { %10126 = vmatprep.mubr.msk.f32.mxu0 %vm15723_vm1, %v11560_v59  ;;  %15929 = vst [vmem:[#allocation53_spill] sm:$0xff] %v15928_v1  ;;  %v11585_v53 = vld [vmem:[#allocation2 + $0xf8] sm:$0xff]  ;;  %v11589_v59 = vld [vmem:[#allocation2 + $0xef] sm:$0xff]  ;;  %v957_v31 = vsel %vm11575_vm15, %v11581_v54, %v11579_v4  ;;  %vm11624_vm15 = vcmp.eq.s32.totalorder %v337_v20, 15 }
  0x53   : > { %15930 = vst [vmem:[#allocation54_spill] sm:$0xff] %v11585_v53  ;;  %v11609_v1 = vld [vmem:[#allocation2 + $0xff] sm:$0xff]  ;;  %v15936_v14 = vsel %vm11624_vm15, 4294967295, %v15935_v14  ;;  %v15977_v28 = vld [vmem:[#allocation43_spill] sm:$0xff] }
  0x54   : > { %10174 = vmatmul.mubr.msk.f32.gmra.mxu1 %vm15723_vm1, %v11563_v45  ;;  %v15932_v45 = vmov 0  ;;  %15937 = vst [vmem:[#allocation57_spill] sm:$0xff] %v15936_v14  ;;  %v11653_v20 = vld [vmem:[%s15551_s1 + $0x1c] sm:$0xf] }
  0x55   : > { %10176 = vmatprep.mubr.msk.f32.mxu1 %vm15723_vm1, %v955_v48  ;;  %10127 = vmatmul.mubr.msk.f32.gmra.mxu0 %vm15723_vm1, %v11573_v38  ;;  %v15933_v45 = vsel %vm11601_vm0, 4294967295, %v15932_v45  ;;  %v896_v48 = vld [vmem:[#allocation2 + $0x11] sm:$0xff]  ;;  %v285_v38 = vadd.s32 40, %v11113_v6 }
  0x56   : > { %10129 = vmatprep.mubr.msk.f32.mxu0 %vm15723_vm1, %v11585_v53  ;;  %15934 = vst [vmem:[#allocation56_spill] sm:$0xff] %v15933_v45  ;;  %v960_v53 = vsel %vm11601_vm0, %v11176_v42, %v896_v48  ;;  %v11635_v42 = vld [vmem:[%s15551_s1 + $0x18] sm:$0xf]  ;;  %vm15943_vm0 = vmmov %vm15938_vm2  ;;  %v11688_v48 = vld [vmem:[#allocation2 + $0x41] sm:$0xff] }
  0x58   : > { %10177 = vmatmul.mubr.msk.f32.gmra.mxu1 %vm15723_vm1, %v11589_v59 }
  0x59   : > { %10179 = vmatprep.mubr.msk.f32.mxu1 %vm15723_vm1, %v957_v31  ;;  %10130 = vmatmul.mubr.msk.f32.gmra.mxu0 %vm15723_vm1, %v11599_v19  ;;  %v11628_v31 = vld [vmem:[#allocation2 + $0x21] sm:$0xff]  ;;  %v351_v19 = vand.u32 15, %v285_v38  ;;  %v289_v38 = vadd.s32 72, %v11113_v6 }
  0x5a   : > { %10184 = vmatprep.mubr.msk.f32.mxu0 %vm15723_vm1, %v11174_v41  ;;  %v2097_v41 = vsel %vm11178_vm3, %v11219_v56, %v11217_v55  ;;  %v962_v46 = vsel %vm11624_vm15, %v11222_v57, %v11628_v31  ;;  %v15939_v55 = vmov 0  ;;  %vm15942_vm15 = vmmov %vm15938_vm2 }
  0x5b   : > { %vm11657_vm3 = vcmp.eq.s32.totalorder %v351_v19, 15  ;;  %v2099_v19 = vsel %vm11202_vm4, %v11244_v62, %v11242_v61  ;;  %v379_v61 = vand.u32 15, %v289_v38  ;;  %v11709_v38 = vld [vmem:[#allocation2 + $0x51] sm:$0xff] }
  0x5c   : > { %10180 = vmatmul.mubr.msk.f32.gmra.mxu1 %vm15723_vm1, %v11609_v1  ;;  %v15940_v55 = vsel %vm11657_vm3, 4294967295, %v15939_v55 }
  0x5d   : > { %10234 = vmatprep.mubr.msk.f32.mxu1 %vm15723_vm1, %v2095_v0  ;;  %10185 = vmatmul.mubr.msk.f32.vlgmr.msra.gmra.mxu0 %vm15723_vm1, %v960_v53  ;;  %15941 = vst [vmem:[#allocation58_spill] sm:$0xff] %v15940_v55  ;;  %v365_v53 = vand.u32 15, %v287_v32  ;;  %v291_v0 = vadd.s32 88, %v11113_v6 }
  0x5e   : > { %10283 = vmatpush3.msk.msra.mxu0 %vm15938_vm2, %v11193_v47  ;;  %10187 = vmatprep.mubr.msk.f32.mxu0 %vm15723_vm1, %v11200_v49  ;;  %v11661_v47 = vld [vmem:[#allocation2 + $0x31] sm:$0xff] }
  0x5f   : > { %10382 = vmatprep.subr.msk.mxu0 %vm15938_vm2, %v11635_v42  ;;  %v964_v32 = vsel %vm11657_vm3, %v11252_v2, %v11661_v47 }
  0x60   : > { %10235 = vmatmul.mubr.msk.f32.vlgmr.msra.gmra.mxu1 %vm15723_vm1, %v11222_v57 }
  0x61   : > { %10237 = vmatprep.mubr.msk.f32.mxu1 %vm15723_vm1, %v2097_v41  ;;  %10333 = vmatpush3.msk.msra.mxu1 %vm15942_vm15, %v11401_v35  ;;  %vm11684_vm15 = vcmp.eq.s32.totalorder %v365_v53, 15  ;;  %v15944_v35 = vmov 0  ;;  %v2101_v41 = vsel %vm11238_vm5, %v11270_v8, %v11268_v7  ;;  %v15947_v53 = vmov 0 }
  0x62   : > { %10188 = vmatmul.mubr.msk.f32.gmra.mxu0 %vm15723_vm1, %v962_v46  ;;  %10432 = vmatprep.subr.msk.mxu1 %vm15943_vm0, %v11653_v20  ;;  %v15945_v35 = vsel %vm11684_vm15, 4294967295, %v15944_v35  ;;  %v966_v46 = vsel %vm11684_vm15, %v11278_v12, %v11688_v48  ;;  %vm11705_vm0 = vcmp.eq.s32.totalorder %v379_v61, 15  ;;  %v293_v7 = vadd.s32 104, %v11113_v6 }
  0x63   : > { %10190 = vmatprep.mubr.msk.f32.mxu0 %vm15723_vm1, %v11219_v56  ;;  %15946 = vst [vmem:[#allocation59_spill] sm:$0xff] %v15945_v35  ;;  %v15948_v53 = vsel %vm11705_vm0, 4294967295, %v15947_v53  ;;  %v968_v61 = vsel %vm11705_vm0, %v11304_v21, %v11709_v38 }
  0x64   : > { %10238 = vmatmul.mubr.msk.f32.gmra.mxu1 %vm15723_vm1, %v11252_v2  ;;  %15949 = vst [vmem:[#allocation60_spill] sm:$0xff] %v15948_v53 }
  0x65   : > { %10240 = vmatprep.mubr.msk.f32.mxu1 %vm15723_vm1, %v2099_v19  ;;  %v393_v19 = vand.u32 15, %v291_v0  ;;  %v15950_v0 = vmov 0 }
  0x66   : > { %10191 = vmatmul.mubr.msk.f32.gmra.mxu0 %vm15723_vm1, %v964_v32  ;;  %v2103_v32 = vsel %vm11264_vm6, %v11296_v17, %v11294_v16  ;;  %v295_v16 = vadd.s32 120, %v11113_v6 }
  0x67   : > { %10193 = vmatprep.mubr.msk.f32.mxu0 %vm15723_vm1, %v11244_v62  ;;  %vm11726_vm2 = vcmp.eq.s32.totalorder %v393_v19, 15 }
  0x68   : > { %10241 = vmatmul.mubr.msk.f32.gmra.mxu1 %vm15723_vm1, %v11278_v12  ;;  %v15951_v0 = vsel %vm11726_vm2, 4294967295, %v15950_v0 }
  0x69   : > { %10243 = vmatprep.mubr.msk.f32.mxu1 %vm15723_vm1, %v2101_v41  ;;  %15952 = vst [vmem:[#allocation61_spill] sm:$0xff] %v15951_v0  ;;  %v11730_v41 = vld [vmem:[#allocation2 + $0x61] sm:$0xff] }
  0x6a   : > { %10194 = vmatmul.mubr.msk.f32.gmra.mxu0 %vm15723_vm1, %v966_v46  ;;  %v407_v46 = vand.u32 15, %v293_v7  ;;  %v970_v19 = vsel %vm11726_vm2, %v11327_v29, %v11730_v41  ;;  %v15953_v7 = vmov 0 }
  0x6b   : > { %10196 = vmatprep.mubr.msk.f32.mxu0 %vm15723_vm1, %v11270_v8 }
  0x6c   : > { %10244 = vmatmul.mubr.msk.f32.gmra.mxu1 %vm15723_vm1, %v11304_v21  ;;  %vm11747_vm6 = vcmp.eq.s32.totalorder %v407_v46, 15 }
  0x6d   : > { %10246 = vmatprep.mubr.msk.f32.mxu1 %vm15723_vm1, %v2103_v32  ;;  %v15954_v7 = vsel %vm11747_vm6, 4294967295, %v15953_v7  ;;  %v11751_v32 = vld [vmem:[#allocation2 + $0x71] sm:$0xff] }
  0x6e   : > { %10197 = vmatmul.mubr.msk.f32.gmra.mxu0 %vm15723_vm1, %v968_v61  ;;  %15955 = vst [vmem:[#allocation62_spill] sm:$0xff] %v15954_v7  ;;  %v421_v61 = vand.u32 15, %v295_v16  ;;  %v972_v46 = vsel %vm11747_vm6, %v11370_v63, %v11751_v32  ;;  %v11772_v16 = vld [vmem:[#allocation2 + $0x81] sm:$0xff] }
  0x6f   : > { %10199 = vmatprep.mubr.msk.f32.mxu0 %vm15723_vm1, %v11296_v17 }
  0x70   : > { %10247 = vmatmul.mubr.msk.f32.gmra.mxu1 %vm15723_vm1, %v11327_v29  ;;  %vm11768_vm7 = vcmp.eq.s32.totalorder %v421_v61, 15 }
  0x71   : > { %10249 = vmatprep.mubr.msk.f32.mxu1 %vm15723_vm1, %v2105_v5  ;;  %v15956_v5 = vmov 0  ;;  %v974_v61 = vsel %vm11768_vm7, %v11404_v36, %v11772_v16 }
  0x72   : > { %10200 = vmatmul.mubr.msk.f32.gmra.mxu0 %vm15723_vm1, %v970_v19  ;;  %v15957_v5 = vsel %vm11768_vm7, 4294967295, %v15956_v5  ;;  %v435_v19 = vand.u32 15, %v297_v25  ;;  %v11793_v25 = vld [vmem:[#allocation2 + $0x91] sm:$0xff] }
  0x73   : > { %10202 = vmatprep.mubr.msk.f32.mxu0 %vm15723_vm1, %v11322_v26  ;;  %15958 = vst [vmem:[#allocation63_spill] sm:$0xff] %v15957_v5 }
  0x74   : > { %10250 = vmatmul.mubr.msk.f32.gmra.mxu1 %vm15723_vm1, %v11370_v63  ;;  %vm11789_vm8 = vcmp.eq.s32.totalorder %v435_v19, 15 }
  0x75   : > { %10252 = vmatprep.mubr.msk.f32.mxu1 %vm15723_vm1, %v2107_v15  ;;  %v15959_v15 = vmov 0  ;;  %v976_v19 = vsel %vm11789_vm8, %v11433_v22, %v11793_v25 }
  0x76   : > { %10203 = vmatmul.mubr.msk.f32.gmra.mxu0 %vm15723_vm1, %v972_v46  ;;  %v15960_v15 = vsel %vm11789_vm8, 4294967295, %v15959_v15  ;;  %v449_v46 = vand.u32 15, %v299_v33  ;;  %v11814_v33 = vld [vmem:[#allocation2 + $0xa1] sm:$0xff] }
  0x77   : > { %10205 = vmatprep.mubr.msk.f32.mxu0 %vm15723_vm1, %v11336_v34  ;;  %15961 = vst [vmem:[#allocation64_spill] sm:$0xff] %v15960_v15 }
  0x78   : > { %10253 = vmatmul.mubr.msk.f32.gmra.mxu1 %vm15723_vm1, %v11404_v36  ;;  %vm11810_vm9 = vcmp.eq.s32.totalorder %v449_v46, 15 }
  0x79   : > { %10255 = vmatprep.mubr.msk.f32.mxu1 %vm15723_vm1, %v2109_v24  ;;  %v15962_v24 = vmov 0  ;;  %v978_v46 = vsel %vm11810_vm9, %v11459_v3, %v11814_v33 }
  0x7a   : > { %10206 = vmatmul.mubr.msk.f32.gmra.mxu0 %vm15723_vm1, %v974_v61  ;;  %v15963_v24 = vsel %vm11810_vm9, 4294967295, %v15962_v24  ;;  %v463_v61 = vand.u32 15, %v301_v10  ;;  %v11835_v10 = vld [vmem:[#allocation2 + $0xb1] sm:$0xff] }
  0x7b   : > { %10208 = vmatprep.mubr.msk.f32.mxu0 %vm15723_vm1, %v11388_v13  ;;  %15964 = vst [vmem:[#allocation65_spill] sm:$0xff] %v15963_v24  ;;  %v3281_v24 = vld [vmem:[#allocation2 + $0xc0] sm:$0xff] }
  0x7c   : > { %10256 = vmatmul.mubr.msk.f32.gmra.mxu1 %vm15723_vm1, %v11433_v22  ;;  %vm11831_vm10 = vcmp.eq.s32.totalorder %v463_v61, 15 }
  0x7d   : > { %10258 = vmatprep.mubr.msk.f32.mxu1 %vm15723_vm1, %v2111_v39  ;;  %v15965_v39 = vmov 0  ;;  %v980_v61 = vsel %vm11831_vm10, %v11485_v58, %v11835_v10 }
  0x7e   : > { %10209 = vmatmul.mubr.msk.f32.gmra.mxu0 %vm15723_vm1, %v976_v19  ;;  %v15966_v39 = vsel %vm11831_vm10, 4294967295, %v15965_v39  ;;  %v477_v19 = vand.u32 15, %v303_v44  ;;  %v11856_v44 = vld [vmem:[#allocation2 + $0xc1] sm:$0xff] }
  0x7f   : > { %10211 = vmatprep.mubr.msk.f32.mxu0 %vm15723_vm1, %v11425_v51  ;;  %15967 = vst [vmem:[#allocation66_spill] sm:$0xff] %v15966_v39  ;;  %v2119_v39 = vsel %vm11497_vm14, %v15978_v43, %v15977_v28  ;;  %v311_v28 = vadd.s32 248, %v11113_v6 }
  0x80   : > { %10259 = vmatmul.mubr.msk.f32.gmra.mxu1 %vm15723_vm1, %v11459_v3  ;;  %vm11852_vm11 = vcmp.eq.s32.totalorder %v477_v19, 15  ;;  %v15972_v19 = vld [vmem:[#allocation40_spill] sm:$0xff] }
  0x81   : > { %10261 = vmatprep.mubr.msk.f32.mxu1 %vm15723_vm1, %v2113_v9  ;;  %v15968_v9 = vmov 0  ;;  %v982_v50 = vsel %vm11852_vm11, %v15972_v19, %v11856_v44 }
  0x82   : > { %10212 = vmatmul.mubr.msk.f32.gmra.mxu0 %vm15723_vm1, %v978_v46  ;;  %v15969_v9 = vsel %vm11852_vm11, 4294967295, %v15968_v9  ;;  %v491_v46 = vand.u32 15, %v305_v37  ;;  %v11877_v37 = vld [vmem:[#allocation2 + $0xd1] sm:$0xff] }
  0x83   : > { %10214 = vmatprep.mubr.msk.f32.mxu0 %vm15723_vm1, %v11451_v27  ;;  %15970 = vst [vmem:[#allocation67_spill] sm:$0xff] %v15969_v9  ;;  %15976 = vst [vmem:[#allocation69_spill] sm:$0xff] %v11877_v37  ;;  %v15984_v9 = vld [vmem:[#allocation49_spill] sm:$0xff] }
  0x84   : > { %10262 = vmatmul.mubr.msk.f32.gmra.mxu1 %vm15723_vm1, %v11485_v58  ;;  %vm11873_vm12 = vcmp.eq.s32.totalorder %v491_v46, 15  ;;  %v15980_v46 = vld [vmem:[#allocation46_spill] sm:$0xff] }
  0x85   : > { %10264 = vmatprep.mubr.msk.f32.mxu1 %vm15723_vm1, %v2115_v40  ;;  %v15973_v40 = vmov 0 }
  0x86   : > { %10215 = vmatmul.mubr.msk.f32.gmra.mxu0 %vm15723_vm1, %v980_v61  ;;  %v15974_v40 = vsel %vm11873_vm12, 4294967295, %v15973_v40  ;;  %v505_v61 = vand.u32 15, %v307_v18  ;;  %v519_v18 = vand.u32 15, %v309_v52  ;;  %v533_v52 = vand.u32 15, %v311_v28  ;;  %v11935_v28 = vld [vmem:[#allocation2 + $0x109] sm:$0xff] }
  0x87   : > { %10217 = vmatprep.mubr.msk.f32.mxu0 %vm15723_vm1, %v11477_v30  ;;  %15975 = vst [vmem:[#allocation68_spill] sm:$0xff] %v15974_v40  ;;  %v15985_v40 = vld [vmem:[#allocation42_spill] sm:$0xff] }
  0x88   : > { %10265 = vmatmul.mubr.msk.f32.gmra.mxu1 %vm15723_vm1, %v15972_v19  ;;  %v984_v19 = vsel %vm11873_vm12, %v15980_v46, %v11877_v37  ;;  %vm11894_vm13 = vcmp.eq.s32.totalorder %v505_v61, 15  ;;  %vm15986_vm14 = vnez %v15985_v40  ;;  %v15987_v61 = vld [vmem:[#allocation51_spill] sm:$0xff]  ;;  %vm11915_vm5 = vcmp.eq.s32.totalorder %v519_v18, 15  ;;  %v11933_v40 = vld [vmem:[#allocation2 + $0x107] sm:$0xff] }
  0x89   : > { %10267 = vmatprep.mubr.msk.f32.mxu1 %vm15723_vm1, %v2117_v60  ;;  %v15981_v60 = vmov 0  ;;  %v2121_v37 = vsel %vm15986_vm14, %v15984_v9, %v11553_v23  ;;  %v15991_v23 = vld [vmem:[#allocation48_spill] sm:$0xff]  ;;  %vm11939_vm4 = vcmp.eq.s32.totalorder %v533_v52, 15 }
  0x8a   : > { %10218 = vmatmul.mubr.msk.f32.gmra.mxu0 %vm15723_vm1, %v982_v50  ;;  %v15982_v60 = vsel %vm11894_vm13, 4294967295, %v15981_v60  ;;  %v11898_v50 = vld [vmem:[#allocation2 + $0xe1] sm:$0xff]  ;;  %vm15992_vm14 = vnez %v15991_v23 }
  0x8b   : > { %10220 = vmatprep.mubr.msk.f32.mxu0 %vm15723_vm1, %v11503_v11  ;;  %15983 = vst [vmem:[#allocation43_spill] sm:$0xff] %v15982_v60  ;;  %v2123_v6 = vsel %vm15992_vm14, %v11581_v54, %v11579_v4  ;;  %v11943_v4 = vld [vmem:[#allocation2 + $0x101] sm:$0xff] }
  0x8c   : > { %10268 = vmatmul.mubr.msk.f32.gmra.mxu1 %vm15723_vm1, %v15980_v46  ;;  %v986_v46 = vsel %vm11894_vm13, %v15987_v61, %v11898_v50  ;;  %v990_v52 = vsel %vm11939_vm4, %v11609_v1, %v11943_v4 }
  0x8d   : > { %10270 = vmatprep.mubr.msk.f32.mxu1 %vm15723_vm1, %v2119_v39  ;;  %v15988_v39 = vmov 0 }
  0x8e   : > { %10221 = vmatmul.mubr.msk.f32.gmra.mxu0 %vm15723_vm1, %v984_v19  ;;  %v15989_v39 = vsel %vm11915_vm5, 4294967295, %v15988_v39  ;;  %v11919_v19 = vld [vmem:[#allocation2 + $0xf1] sm:$0xff] }
  0x8f   : > { %10223 = vmatprep.mubr.msk.f32.mxu0 %vm15723_vm1, %v15978_v43  ;;  %15990 = vst [vmem:[#allocation44_spill] sm:$0xff] %v15989_v39  ;;  %v988_v18 = vsel %vm11915_vm5, %v11589_v59, %v11919_v19 }
  0x90   : > { %10271 = vmatmul.mubr.msk.f32.gmra.mxu1 %vm15723_vm1, %v15987_v61 }
  0x91   : > { %10273 = vmatprep.mubr.msk.f32.mxu1 %vm15723_vm1, %v2121_v37  ;;  %v15993_v37 = vmov 0 }
  0x92   : > { %10224 = vmatmul.mubr.msk.f32.gmra.mxu0 %vm15723_vm1, %v986_v46  ;;  %v15994_v37 = vsel %vm11939_vm4, 4294967295, %v15993_v37  ;;  %v15996_v46 = vld [vmem:[#allocation53_spill] sm:$0xff]  ;;  %vm16001_vm4 = vcmask 1043456  }
  0x93   : > { %10226 = vmatprep.mubr.msk.f32.mxu0 %vm15723_vm1, %v15984_v9  ;;  %15995 = vst [vmem:[#allocation49_spill] sm:$0xff] %v15994_v37  ;;  %vm15997_vm14 = vnez %v15996_v46  ;;  %vm16003_vm5 = vmmov %vm16001_vm4 }
  0x94   : > { %10274 = vmatmul.mubr.msk.f32.gmra.mxu1 %vm15723_vm1, %v11589_v59  ;;  %v2125_v23 = vsel %vm15997_vm14, %v11935_v28, %v11933_v40  ;;  %vm15999_vm14 = vnez %v15933_v45  ;;  %vm16005_vm13 = vmmov %vm16001_vm4 }
  0x95   : > { %10276 = vmatprep.mubr.msk.f32.mxu1 %vm15723_vm1, %v2123_v6  ;;  %v11960_v6 = vld [vmem:[#allocation2 + $0x10f] sm:$0xff]  ;;  %v2128_v46 = vsel %vm15999_vm14, %v11222_v57, %v11628_v31  ;;  %vm16004_vm14 = vnez %v15936_v14  ;;  %v16007_v31 = vld [vmem:[#allocation12_spill] sm:$0xff] }
  0x96   : > { %10227 = vmatmul.mubr.msk.f32.gmra.mxu0 %vm15723_vm1, %v988_v18  ;;  %v15998_v18 = vld [vmem:[#allocation6_spill] sm:$0xff] }
  0x97   : > { %10229 = vmatprep.mubr.msk.f32.mxu0 %vm15723_vm1, %v11581_v54  ;;  %v16006_v57 = vld [vmem:[#allocation10_spill] sm:$0xff] }
  0x98   : > { %10277 = vmatmul.mubr.msk.f32.gmra.mxu1 %vm15723_vm1, %v11609_v1 }
  0x99   : > { %10279 = vmatprep.mubr.msk.f32.mxu1 %vm15723_vm1, %v2125_v23  ;;  %v11976_v23 = vld [vmem:[%s15551_s1 + $0x20] sm:$0xf] }
  0x9a   : > { %10230 = vmatmul.mubr.msk.f32.gmra.mxu0 %vm15723_vm1, %v990_v52  ;;  %v16000_v52 = vld [vmem:[#allocation7_spill] sm:$0xff] }
  0x9b   : > { %10284 = vmatprep.mubr.msk.f32.mxu0 %vm15723_vm1, %v15998_v18  ;;  %v16002_v18 = vld [vmem:[#allocation9_spill] sm:$0xff] }
  0x9c   : > { %10280 = vmatmul.mubr.msk.f32.gmra.mxu1 %vm15723_vm1, %v11960_v6 }
  0x9d   : > { %10334 = vmatprep.mubr.msk.f32.mxu1 %vm15723_vm1, %v11200_v49  ;;  %v2130_v49 = vsel %vm16004_vm14, %v11252_v2, %v11661_v47  ;;  %v16008_v2 = vld [vmem:[#allocation13_spill] sm:$0xff]  ;;  %v16012_v47 = vld [vmem:[#allocation19_spill] sm:$0xff] }
  0x9e   : > { %10285 = vmatmul.mubr.msk.f32.vlgmr.msra.gmra.mxu0 %vm15723_vm1, %v16000_v52  ;;  %v16029_v52 = vld [vmem:[#allocation46_spill] sm:$0xff] }
  0x9f   : > { %10383 = vmatpush3.msk.msra.mxu0 %vm16001_vm4, %v11635_v42  ;;  %10287 = vmatprep.mubr.msk.f32.mxu0 %vm15723_vm1, %v16002_v18  ;;  %v16009_v42 = vld [vmem:[#allocation15_spill] sm:$0xff]  ;;  %vm16036_vm4 = vnez %v15982_v60  ;;  %v3280_v18 = vld [vmem:[#allocation2 + $0xb8] sm:$0xff] }
  0xa0   : > { %10335 = vmatmul.mubr.msk.f32.vlgmr.msra.gmra.mxu1 %vm15723_vm1, %v2128_v46  ;;  %10482 = vmatprep.subr.msk.mxu0 %vm16003_vm5, %v11976_v23  ;;  %v16026_v46 = vld [vmem:[#allocation37_spill] sm:$0xff]  ;;  %vm16039_vm5 = vnez %v15989_v39  ;;  %v3278_v39 = vld [vmem:[#allocation2 + $0xa8] sm:$0xff]  ;;  %v3279_v60 = vld [vmem:[#allocation2 + $0xb0] sm:$0xff] }
  0xa1   : > { %10337 = vmatprep.mubr.msk.f32.mxu1 %vm15723_vm1, %v11219_v56  ;;  %10433 = vmatpush3.msk.msra.mxu1 %vm16005_vm13, %v11653_v20  ;;  %v2132_v56 = vsel %vm11657_vm3, %v11278_v12, %v11688_v48  ;;  %v16010_v20 = vld [vmem:[#allocation16_spill] sm:$0xff]  ;;  %v16011_v12 = vld [vmem:[#allocation18_spill] sm:$0xff] }
  0xa2   : > { %10288 = vmatmul.mubr.msk.f32.gmra.mxu0 %vm15723_vm1, %v16006_v57  ;;  %v16014_v48 = vld [vmem:[#allocation22_spill] sm:$0xff] }
  0xa3   : > { %10290 = vmatprep.mubr.msk.f32.mxu0 %vm15723_vm1, %v16007_v31  ;;  %v16034_v31 = vld [vmem:[#allocation47_spill] sm:$0xff]  ;;  %v3250_v57 = vld [vmem:[#allocation2 + $0xc7] sm:$0xff] }
  0xa4   : > { %10338 = vmatmul.mubr.msk.f32.gmra.mxu1 %vm15723_vm1, %v2130_v49  ;;  %v16031_v49 = vld [vmem:[#allocation41_spill] sm:$0xff] }
  0xa5   : > { %10340 = vmatprep.mubr.msk.f32.mxu1 %vm15723_vm1, %v11244_v62  ;;  %v2134_v62 = vsel %vm11684_vm15, %v11304_v21, %v11709_v38  ;;  %v16013_v21 = vld [vmem:[#allocation21_spill] sm:$0xff] }
  0xa6   : > { %10291 = vmatmul.mubr.msk.f32.gmra.mxu0 %vm15723_vm1, %v16008_v2  ;;  %v16016_v38 = vld [vmem:[#allocation25_spill] sm:$0xff]  ;;  %v16037_v2 = vld [vmem:[#allocation52_spill] sm:$0xff] }
  0xa7   : > { %10293 = vmatprep.mubr.msk.f32.mxu0 %vm15723_vm1, %v16009_v42  ;;  %v3230_v42 = vld [vmem:[#allocation2 + $0x27] sm:$0xff] }
  0xa8   : > { %10341 = vmatmul.mubr.msk.f32.gmra.mxu1 %vm15723_vm1, %v2132_v56  ;;  %v16035_v56 = vld [vmem:[#allocation50_spill] sm:$0xff] }
  0xa9   : > { %10343 = vmatprep.mubr.msk.f32.mxu1 %vm15723_vm1, %v11270_v8  ;;  %v2136_v8 = vsel %vm11705_vm0, %v11327_v29, %v11730_v41  ;;  %v16015_v29 = vld [vmem:[#allocation24_spill] sm:$0xff] }
  0xaa   : > { %10294 = vmatmul.mubr.msk.f32.gmra.mxu0 %vm15723_vm1, %v16010_v20  ;;  %v16018_v41 = vld [vmem:[#allocation28_spill] sm:$0xff]  ;;  %v12148_v20 = vld [vmem:[#allocation2 + $0x110] sm:$0xff] }
  0xab   : > { %10296 = vmatprep.mubr.msk.f32.mxu0 %vm15723_vm1, %v16011_v12 }
  0xac   : > { %10344 = vmatmul.mubr.msk.f32.gmra.mxu1 %vm15723_vm1, %v2134_v62  ;;  %v12144_v62 = vld [vmem:[#allocation2 + $0x111] sm:$0xff] }
  0xad   : > { %10346 = vmatprep.mubr.msk.f32.mxu1 %vm15723_vm1, %v11296_v17  ;;  %v2138_v17 = vsel %vm11726_vm2, %v11370_v63, %v11751_v32  ;;  %v16017_v63 = vld [vmem:[#allocation27_spill] sm:$0xff]  ;;  %16041 = vst [vmem:[#allocation51_spill] sm:$0xff] %v12144_v62 }
  0xae   : > { %10297 = vmatmul.mubr.msk.f32.gmra.mxu0 %vm15723_vm1, %v16012_v47  ;;  %v16020_v32 = vld [vmem:[#allocation31_spill] sm:$0xff]  ;;  %v3262_v47 = vld [vmem:[#allocation2 + $0x28] sm:$0xff] }
  0xaf   : > { %10299 = vmatprep.mubr.msk.f32.mxu0 %vm15723_vm1, %v16013_v21  ;;  %v12165_v21 = vld [vmem:[#allocation2 + $0x2f] sm:$0xff] }
  0xb0   : > { %10347 = vmatmul.mubr.msk.f32.gmra.mxu1 %vm15723_vm1, %v2136_v8  ;;  %v12160_v8 = vld [vmem:[#allocation2 + $0x39] sm:$0xff] }
  0xb1   : > { %10349 = vmatprep.mubr.msk.f32.mxu1 %vm15723_vm1, %v11322_v26  ;;  %v2140_v26 = vsel %vm11747_vm6, %v11404_v36, %v11772_v16  ;;  %v16019_v36 = vld [vmem:[#allocation30_spill] sm:$0xff] }
  0xb2   : > { %10300 = vmatmul.mubr.msk.f32.gmra.mxu0 %vm15723_vm1, %v16014_v48  ;;  %v16022_v16 = vld [vmem:[#allocation34_spill] sm:$0xff] }
  0xb3   : > { %10302 = vmatprep.mubr.msk.f32.mxu0 %vm15723_vm1, %v16015_v29  ;;  %v3263_v29 = vld [vmem:[#allocation2 + $0x30] sm:$0xff] }
  0xb4   : > { %10350 = vmatmul.mubr.msk.f32.gmra.mxu1 %vm15723_vm1, %v2138_v17  ;;  %v16045_v17 = vld [vmem:[#allocation5_spill] sm:$0xff] }
  0xb5   : > { %10352 = vmatprep.mubr.msk.f32.mxu1 %vm15723_vm1, %v11336_v34  ;;  %v2142_v34 = vsel %vm11768_vm7, %v11433_v22, %v11793_v25  ;;  %v16021_v22 = vld [vmem:[#allocation33_spill] sm:$0xff]  ;;  %v16024_v25 = vld [vmem:[#allocation40_spill] sm:$0xff] }
  0xb6   : > { %10303 = vmatmul.mubr.msk.f32.gmra.mxu0 %vm15723_vm1, %v16016_v38  ;;  %v12172_v38 = vld [vmem:[#allocation2 + $0x49] sm:$0xff] }
  0xb7   : > { %10305 = vmatprep.mubr.msk.f32.mxu0 %vm15723_vm1, %v16017_v63 }
  0xb8   : > { %10353 = vmatmul.mubr.msk.f32.gmra.mxu1 %vm15723_vm1, %v2140_v26  ;;  %v3234_v26 = vld [vmem:[#allocation2 + $0x47] sm:$0xff] }
  0xb9   : > { %10355 = vmatprep.mubr.msk.f32.mxu1 %vm15723_vm1, %v11388_v13  ;;  %v2144_v13 = vsel %vm11789_vm8, %v11459_v3, %v11814_v33  ;;  %v16023_v3 = vld [vmem:[#allocation36_spill] sm:$0xff] }
  0xba   : > { %10306 = vmatmul.mubr.msk.f32.gmra.mxu0 %vm15723_vm1, %v16018_v41  ;;  %v12179_v41 = vld [vmem:[#allocation2 + $0x3f] sm:$0xff] }
  0xbb   : > { %10308 = vmatprep.mubr.msk.f32.mxu0 %vm15723_vm1, %v16019_v36 }
  0xbc   : > { %10356 = vmatmul.mubr.msk.f32.gmra.mxu1 %vm15723_vm1, %v2142_v34  ;;  %v3264_v34 = vld [vmem:[#allocation2 + $0x38] sm:$0xff] }
  0xbd   : > { %10358 = vmatprep.mubr.msk.f32.mxu1 %vm15723_vm1, %v11425_v51  ;;  %v2146_v51 = vsel %vm11810_vm9, %v11485_v58, %v11835_v10  ;;  %v16027_v58 = vld [vmem:[#allocation39_spill] sm:$0xff]  ;;  %v16028_v10 = vld [vmem:[#allocation69_spill] sm:$0xff] }
  0xbe   : > { %10309 = vmatmul.mubr.msk.f32.gmra.mxu0 %vm15723_vm1, %v16020_v32  ;;  %v16048_v32 = vld [vmem:[#allocation8_spill] sm:$0xff] }
  0xbf   : > { %10311 = vmatprep.mubr.msk.f32.mxu0 %vm15723_vm1, %v16021_v22 }
  0xc0   : > { %10359 = vmatmul.mubr.msk.f32.gmra.mxu1 %vm15723_vm1, %v2144_v13 }
  0xc1   : > { %10361 = vmatprep.mubr.msk.f32.mxu1 %vm15723_vm1, %v11451_v27  ;;  %v2148_v27 = vsel %vm11831_vm10, %v16024_v25, %v11856_v44  ;;  %v16032_v44 = vld [vmem:[#allocation45_spill] sm:$0xff] }
  0xc2   : > { %10312 = vmatmul.mubr.msk.f32.gmra.mxu0 %vm15723_vm1, %v16022_v16  ;;  %v3265_v16 = vld [vmem:[#allocation2 + $0x40] sm:$0xff] }
  0xc3   : > { %10314 = vmatprep.mubr.msk.f32.mxu0 %vm15723_vm1, %v16023_v3  ;;  %v3236_v3 = vld [vmem:[#allocation2 + $0x57] sm:$0xff] }
  0xc4   : > { %10362 = vmatmul.mubr.msk.f32.gmra.mxu1 %vm15723_vm1, %v2146_v51  ;;  %v12188_v25 = vld [vmem:[#allocation2 + $0x59] sm:$0xff] }
  0xc5   : > { %10364 = vmatprep.mubr.msk.f32.mxu1 %vm15723_vm1, %v11477_v30  ;;  %v2150_v30 = vsel %vm11852_vm11, %v16029_v52, %v16028_v10  ;;  %v12195_v10 = vld [vmem:[#allocation2 + $0x4f] sm:$0xff] }
  0xc6   : > { %10315 = vmatmul.mubr.msk.f32.gmra.mxu0 %vm15723_vm1, %v16026_v46  ;;  %v3266_v46 = vld [vmem:[#allocation2 + $0x48] sm:$0xff] }
  0xc7   : > { %10317 = vmatprep.mubr.msk.f32.mxu0 %vm15723_vm1, %v16027_v58 }
  0xc8   : > { %10365 = vmatmul.mubr.msk.f32.gmra.mxu1 %vm15723_vm1, %v2148_v27 }
  0xc9   : > { %10367 = vmatprep.mubr.msk.f32.mxu1 %vm15723_vm1, %v11503_v11  ;;  %v2152_v11 = vsel %vm11873_vm12, %v15987_v61, %v11898_v50  ;;  %v16038_v50 = vld [vmem:[#allocation54_spill] sm:$0xff] }
  0xca   : > { %10318 = vmatmul.mubr.msk.f32.gmra.mxu0 %vm15723_vm1, %v16031_v49  ;;  %v12132_v61 = vld [vmem:[#allocation2 + $0x108] sm:$0xff]  ;;  %v16050_v49 = vld [vmem:[#allocation11_spill] sm:$0xff] }
  0xcb   : > { %10320 = vmatprep.mubr.msk.f32.mxu0 %vm15723_vm1, %v16032_v44 }
  0xcc   : > { %10368 = vmatmul.mubr.msk.f32.gmra.mxu1 %vm15723_vm1, %v2150_v30 }
  0xcd   : > { %10370 = vmatprep.mubr.msk.f32.mxu1 %vm15723_vm1, %v15978_v43  ;;  %v2154_v43 = vsel %vm16036_vm4, %v11589_v59, %v11919_v19  ;;  %v12140_v59 = vld [vmem:[#allocation2 + $0x29] sm:$0xff] }
  0xce   : > { %10321 = vmatmul.mubr.msk.f32.gmra.mxu0 %vm15723_vm1, %v16034_v31  ;;  %v16040_v19 = vld [vmem:[#allocation55_spill] sm:$0xff] }
  0xcf   : > { %10323 = vmatprep.mubr.msk.f32.mxu0 %vm15723_vm1, %v16035_v56  ;;  %v3267_v31 = vld [vmem:[#allocation2 + $0x50] sm:$0xff]  ;;  %v3238_v56 = vld [vmem:[#allocation2 + $0x67] sm:$0xff] }
  0xd0   : > { %10371 = vmatmul.mubr.msk.f32.gmra.mxu1 %vm15723_vm1, %v2152_v11 }
  0xd1   : > { %10373 = vmatprep.mubr.msk.f32.mxu1 %vm15723_vm1, %v15984_v9  ;;  %v2156_v9 = vsel %vm16039_vm5, %v11609_v1, %v11943_v4  ;;  %vm16044_vm5 = vnez %v15994_v37  ;;  %v3232_v4 = vld [vmem:[#allocation2 + $0x37] sm:$0xff] }
  0xd2   : > { %10324 = vmatmul.mubr.msk.f32.gmra.mxu0 %vm15723_vm1, %v16037_v2  ;;  %v2158_v1 = vsel %vm16044_vm5, %v11960_v6, %v12144_v62  ;;  %vm16047_vm5 = vcmask 1043456   ;;  %v3248_v37 = vld [vmem:[#allocation2 + $0xb7] sm:$0xff] }
  0xd3   : > { %10326 = vmatprep.mubr.msk.f32.mxu0 %vm15723_vm1, %v16038_v50 }
  0xd4   : > { %10374 = vmatmul.mubr.msk.f32.gmra.mxu1 %vm15723_vm1, %v2154_v43  ;;  %v12204_v43 = vld [vmem:[#allocation2 + $0x69] sm:$0xff] }
  0xd5   : > { %10376 = vmatprep.mubr.msk.f32.mxu1 %vm15723_vm1, %v11581_v54  ;;  %v16042_v54 = vld [vmem:[#allocation4_spill] sm:$0xff] }
  0xd6   : > { %10327 = vmatmul.mubr.msk.f32.gmra.mxu0 %vm15723_vm1, %v16040_v19  ;;  %vm16043_vm13 = vnez %v16042_v54  ;;  %v12211_v19 = vld [vmem:[#allocation2 + $0x5f] sm:$0xff] }
  0xd7   : > { %10329 = vmatprep.mubr.msk.f32.mxu0 %vm15723_vm1, %v12132_v61  ;;  %v3326_v12 = vsel %vm16043_vm13, %v12140_v59, %v3230_v42  ;;  %vm16046_vm13 = vnez %v16045_v17  ;;  %v3277_v54 = vld [vmem:[#allocation2 + $0xa0] sm:$0xff] }
  0xd8   : > { %10377 = vmatmul.mubr.msk.f32.gmra.mxu1 %vm15723_vm1, %v2156_v9  ;;  %v3328_v48 = vsel %vm16046_vm13, %v12160_v8, %v3232_v4  ;;  %vm16049_vm13 = vnez %v16048_v32  ;;  %v3268_v9 = vld [vmem:[#allocation2 + $0x58] sm:$0xff]  ;;  %v16052_v4 = vld [vmem:[#allocation14_spill] sm:$0xff] }
  0xd9   : > { %10379 = vmatprep.mubr.msk.f32.mxu1 %vm15723_vm1, %v11935_v28  ;;  %v3330_v22 = vsel %vm16049_vm13, %v12172_v38, %v3234_v26  ;;  %v3240_v26 = vld [vmem:[#allocation2 + $0x77] sm:$0xff] }
  0xda   : > { %10330 = vmatmul.mubr.msk.f32.gmra.mxu0 %vm15723_vm1, %v12148_v20  ;;  %v3276_v32 = vld [vmem:[#allocation2 + $0x98] sm:$0xff] }
  0xdb   : > { %10384 = vmatprep.mubr.msk.f32.mxu0 %vm15723_vm1, %v3326_v12 }
  0xdc   : > { %10380 = vmatmul.mubr.msk.f32.gmra.mxu1 %vm15723_vm1, %v2158_v1 }
  0xdd   : > { %10434 = vmatprep.mubr.msk.f32.mxu1 %vm15723_vm1, %v3262_v47  ;;  %v10086_v63 = vpop.f32.mrf.mxu0 }
  0xde   : > { %10385 = vmatmul.mubr.msk.f32.vlgmr.msra.gmra.mxu0 %vm15723_vm1, %v12165_v21 }
  0xdf   : > { %10483 = vmatpush3.msk.msra.mxu0 %vm16047_vm5, %v11976_v23  ;;  %10387 = vmatprep.mubr.msk.f32.mxu0 %vm15723_vm1, %v3328_v48  ;;  %v1160_v13 = vpop.f32.mrf.mxu0  ;;  %vm16051_vm5 = vnez %v16050_v49  ;;  %v3246_v49 = vld [vmem:[#allocation2 + $0xa7] sm:$0xff] }
  0xe0   : > { %v10136_v36 = vpop.f32.mrf.mxu1  ;;  %10435 = vmatmul.mubr.msk.f32.vlgmr.msra.gmra.mxu1 %vm15723_vm1, %v3263_v29  ;;  %v3332_v44 = vsel %vm16051_vm5, %v12188_v25, %v3236_v3  ;;  %vm16053_vm5 = vnez %v16052_v4  ;;  %v3269_v29 = vld [vmem:[#allocation2 + $0x60] sm:$0xff]  ;;  %v3275_v4 = vld [vmem:[#allocation2 + $0x90] sm:$0xff] }
  0xe1   : > { %v12185_v51 = vadd.f32 %v10136_v36, %v10086_v63  ;;  %10437 = vmatprep.mubr.msk.f32.mxu1 %vm15723_vm1, %v3264_v34  ;;  %v10089_v27 = vpop.f32.mrf.mxu0  ;;  %v3334_v47 = vsel %vm16053_vm5, %v12204_v43, %v3238_v56  ;;  %v12220_v63 = vld [vmem:[#allocation2 + $0x79] sm:$0xff] }
  0xe2   : > { %v1484_v23 = vpop.f32.mrf.mxu1  ;;  %10388 = vmatmul.mubr.msk.f32.gmra.mxu0 %vm15723_vm1, %v12179_v41 }
  0xe3   : > { %v12192_v58 = vadd.f32 %v1484_v23, %v1160_v13  ;;  %10390 = vmatprep.mubr.msk.f32.mxu0 %vm15723_vm1, %v3330_v22  ;;  %v1170_v30 = vpop.f32.mrf.mxu0  ;;  %v3270_v13 = vld [vmem:[#allocation2 + $0x68] sm:$0xff] }
  0xe4   : > { %v10139_v52 = vpop.f32.mrf.mxu1  ;;  %10438 = vmatmul.mubr.msk.f32.gmra.mxu1 %vm15723_vm1, %v3265_v16  ;;  %v12227_v16 = vld [vmem:[#allocation2 + $0x6f] sm:$0xff] }
  0xe5   : > { %v12201_v11 = vadd.f32 %v10139_v52, %v10089_v27  ;;  %10440 = vmatprep.mubr.msk.f32.mxu1 %vm15723_vm1, %v3266_v46  ;;  %v10092_v50 = vpop.f32.mrf.mxu0  ;;  %v16054_v27 = vld [vmem:[#allocation17_spill] sm:$0xff] }
  0xe6   : > { %v1494_v2 = vpop.f32.mrf.mxu1  ;;  %10391 = vmatmul.mubr.msk.f32.gmra.mxu0 %vm15723_vm1, %v12195_v10  ;;  %vm16055_vm5 = vnez %v16054_v27 }
  0xe7   : > { %v12208_v42 = vadd.f32 %v1494_v2, %v1170_v30  ;;  %10393 = vmatprep.mubr.msk.f32.mxu0 %vm15723_vm1, %v3332_v44  ;;  %v1180_v1 = vpop.f32.mrf.mxu0  ;;  %v3336_v46 = vsel %vm16055_vm5, %v12220_v63, %v3240_v26  ;;  %v3271_v30 = vld [vmem:[#allocation2 + $0x70] sm:$0xff]  ;;  %v3242_v44 = vld [vmem:[#allocation2 + $0x87] sm:$0xff] }
  0xe8   : > { %v10142_v12 = vpop.f32.mrf.mxu1  ;;  %10441 = vmatmul.mubr.msk.f32.gmra.mxu1 %vm15723_vm1, %v3267_v31  ;;  %v12236_v31 = vld [vmem:[#allocation2 + $0x89] sm:$0xff] }
  0xe9   : > { %v12217_v48 = vadd.f32 %v10142_v12, %v10092_v50  ;;  %10443 = vmatprep.mubr.msk.f32.mxu1 %vm15723_vm1, %v3268_v9  ;;  %v10095_v36 = vpop.f32.mrf.mxu0  ;;  %v3272_v50 = vld [vmem:[#allocation2 + $0x78] sm:$0xff] }
  0xea   : > { %v1504_v34 = vpop.f32.mrf.mxu1  ;;  %10394 = vmatmul.mubr.msk.f32.gmra.mxu0 %vm15723_vm1, %v12211_v19  ;;  %v12243_v12 = vld [vmem:[#allocation2 + $0x7f] sm:$0xff] }
  0xeb   : > { %v12224_v22 = vadd.f32 %v1504_v34, %v1180_v1  ;;  %10396 = vmatprep.mubr.msk.f32.mxu0 %vm15723_vm1, %v3334_v47  ;;  %v1190_v23 = vpop.f32.mrf.mxu0 }
  0xec   : > { %v10145_v3 = vpop.f32.mrf.mxu1  ;;  %10444 = vmatmul.mubr.msk.f32.gmra.mxu1 %vm15723_vm1, %v3269_v29  ;;  %v16056_v29 = vld [vmem:[#allocation20_spill] sm:$0xff] }
  0xed   : > { %v12233_v52 = vadd.f32 %v10145_v3, %v10095_v36  ;;  %10446 = vmatprep.mubr.msk.f32.mxu1 %vm15723_vm1, %v3270_v13  ;;  %v10098_v2 = vpop.f32.mrf.mxu0  ;;  %vm16057_vm5 = vnez %v16056_v29  ;;  %v3273_v36 = vld [vmem:[#allocation2 + $0x80] sm:$0xff]  ;;  %v3244_v13 = vld [vmem:[#allocation2 + $0x97] sm:$0xff] }
  0xee   : > { %v1514_v56 = vpop.f32.mrf.mxu1  ;;  %10397 = vmatmul.mubr.msk.f32.gmra.mxu0 %vm15723_vm1, %v12227_v16  ;;  %v3338_v26 = vsel %vm16057_vm5, %v12236_v31, %v3242_v44  ;;  %v12252_v3 = vld [vmem:[#allocation2 + $0x99] sm:$0xff] }
  0xef   : > { %v12240_v9 = vadd.f32 %v1514_v56, %v1190_v23  ;;  %10399 = vmatprep.mubr.msk.f32.mxu0 %vm15723_vm1, %v3336_v46  ;;  %v1200_v47 = vpop.f32.mrf.mxu0  ;;  %v3274_v56 = vld [vmem:[#allocation2 + $0x88] sm:$0xff] }
  0xf0   : > { %v10148_v1 = vpop.f32.mrf.mxu1  ;;  %10447 = vmatmul.mubr.msk.f32.gmra.mxu1 %vm15723_vm1, %v3271_v30  ;;  %v12259_v30 = vld [vmem:[#allocation2 + $0x8f] sm:$0xff] }
  0xf1   : > { %v12249_v34 = vadd.f32 %v10148_v1, %v10098_v2  ;;  %10449 = vmatprep.mubr.msk.f32.mxu1 %vm15723_vm1, %v3272_v50  ;;  %v10101_v46 = vpop.f32.mrf.mxu0  ;;  %v16058_v50 = vld [vmem:[#allocation23_spill] sm:$0xff] }
  0xf2   : > { %v1524_v23 = vpop.f32.mrf.mxu1  ;;  %10400 = vmatmul.mubr.msk.f32.gmra.mxu0 %vm15723_vm1, %v12243_v12  ;;  %vm16059_vm5 = vnez %v16058_v50 }
  0xf3   : > { %v12256_v27 = vadd.f32 %v1524_v23, %v1200_v47  ;;  %10402 = vmatprep.mubr.msk.f32.mxu0 %vm15723_vm1, %v3338_v26  ;;  %v1210_v2 = vpop.f32.mrf.mxu0  ;;  %v3340_v1 = vsel %vm16059_vm5, %v12252_v3, %v3244_v13  ;;  %v12268_v47 = vld [vmem:[#allocation2 + $0xa9] sm:$0xff] }
  0xf4   : > { %v10151_v44 = vpop.f32.mrf.mxu1  ;;  %10450 = vmatmul.mubr.msk.f32.gmra.mxu1 %vm15723_vm1, %v3273_v36  ;;  %v12275_v36 = vld [vmem:[#allocation2 + $0x9f] sm:$0xff] }
  0xf5   : > { %v12265_v29 = vadd.f32 %v10151_v44, %v10101_v46  ;;  %10452 = vmatprep.mubr.msk.f32.mxu1 %vm15723_vm1, %v3274_v56  ;;  %v10104_v26 = vpop.f32.mrf.mxu0  ;;  %v16060_v56 = vld [vmem:[#allocation26_spill] sm:$0xff] }
  0xf6   : > { %v1534_v23 = vpop.f32.mrf.mxu1  ;;  %10403 = vmatmul.mubr.msk.f32.gmra.mxu0 %vm15723_vm1, %v12259_v30  ;;  %vm16061_vm5 = vnez %v16060_v56 }
  0xf7   : > { %v12272_v17 = vadd.f32 %v1534_v23, %v1210_v2  ;;  %10405 = vmatprep.mubr.msk.f32.mxu0 %vm15723_vm1, %v3340_v1  ;;  %v1220_v46 = vpop.f32.mrf.mxu0  ;;  %v3342_v44 = vsel %vm16061_vm5, %v12268_v47, %v3246_v49  ;;  %v12284_v2 = vld [vmem:[#allocation2 + $0xb9] sm:$0xff] }
  0xf8   : > { %v10154_v13 = vpop.f32.mrf.mxu1  ;;  %10453 = vmatmul.mubr.msk.f32.gmra.mxu1 %vm15723_vm1, %v3275_v4  ;;  %16062 = vst [vmem:[#allocation6_spill] sm:$0xff] %v12284_v2  ;;  %v12291_v4 = vld [vmem:[#allocation2 + $0xaf] sm:$0xff] }
  0xf9   : > { %v12281_v50 = vadd.f32 %v10154_v13, %v10104_v26  ;;  %10455 = vmatprep.mubr.msk.f32.mxu1 %vm15723_vm1, %v3276_v32  ;;  %v10107_v1 = vpop.f32.mrf.mxu0  ;;  %v16063_v32 = vld [vmem:[#allocation29_spill] sm:$0xff] }
  0xfa   : > { %v1544_v23 = vpop.f32.mrf.mxu1  ;;  %10406 = vmatmul.mubr.msk.f32.gmra.mxu0 %vm15723_vm1, %v12275_v36  ;;  %vm16064_vm5 = vnez %v16063_v32 }
  0xfb   : > { %v12288_v62 = vadd.f32 %v1544_v23, %v1220_v46  ;;  %10408 = vmatprep.mubr.msk.f32.mxu0 %vm15723_vm1, %v3342_v44  ;;  %v1230_v26 = vpop.f32.mrf.mxu0  ;;  %v3344_v13 = vsel %vm16064_vm5, %v12284_v2, %v3248_v37  ;;  %v12300_v46 = vld [vmem:[#allocation2 + $0xc9] sm:$0xff] }
  0xfc   : > { %v10157_v49 = vpop.f32.mrf.mxu1  ;;  %10456 = vmatmul.mubr.msk.f32.gmra.mxu1 %vm15723_vm1, %v3277_v54  ;;  %16065 = vst [vmem:[#allocation7_spill] sm:$0xff] %v12300_v46  ;;  %v12307_v54 = vld [vmem:[#allocation2 + $0xbf] sm:$0xff] }
  0xfd   : > { %v12297_v56 = vadd.f32 %v10157_v49, %v10107_v1  ;;  %10458 = vmatprep.mubr.msk.f32.mxu1 %vm15723_vm1, %v3278_v39  ;;  %v10110_v44 = vpop.f32.mrf.mxu0  ;;  %16066 = vst [vmem:[#allocation9_spill] sm:$0xff] %v12307_v54  ;;  %v16068_v39 = vld [vmem:[#allocation32_spill] sm:$0xff] }
  0xfe   : > { %v1554_v23 = vpop.f32.mrf.mxu1  ;;  %10409 = vmatmul.mubr.msk.f32.gmra.mxu0 %vm15723_vm1, %v12291_v4  ;;  %vm16069_vm5 = vnez %v16068_v39 }
  0xff   : > { %v12304_v33 = vadd.f32 %v1554_v23, %v1230_v26  ;;  %10411 = vmatprep.mubr.msk.f32.mxu0 %vm15723_vm1, %v3344_v13  ;;  %v12309_v1 = vpop.f32.mrf.mxu0  ;;  %v3346_v49 = vsel %vm16069_vm5, %v12300_v46, %v3250_v57  ;;  %v3252_v26 = vld [vmem:[#allocation2 + $0xd7] sm:$0xff]  ;;  %v3254_v46 = vld [vmem:[#allocation2 + $0xe7] sm:$0xff] }
 0x100   : > { %v10160_v37 = vpop.f32.mrf.mxu1  ;;  %16067 = vst [vmem:[#allocation10_spill] sm:$0xff] %v12309_v1  ;;  %10459 = vmatmul.mubr.msk.f32.gmra.mxu1 %vm15723_vm1, %v3279_v60  ;;  %v12318_v23 = vld [vmem:[#allocation2 + $0xd9] sm:$0xff]  ;;  %v3282_v1 = vld [vmem:[#allocation2 + $0xc8] sm:$0xff] }
 0x101   : > { %v12315_v32 = vadd.f32 %v10160_v37, %v10110_v44  ;;  %10461 = vmatprep.mubr.msk.f32.mxu1 %vm15723_vm1, %v3280_v18  ;;  %16071 = vst [vmem:[#allocation13_spill] sm:$0xff] %v12318_v23  ;;  %v10113_v2 = vpop.f32.mrf.mxu0  ;;  %v12325_v60 = vld [vmem:[#allocation2 + $0xcf] sm:$0xff] }
 0x102   : > { %v12320_v13 = vpop.f32.mrf.mxu1  ;;  %10412 = vmatmul.mubr.msk.f32.gmra.mxu0 %vm15723_vm1, %v12307_v54  ;;  %16073 = vst [vmem:[#allocation16_spill] sm:$0xff] %v12325_v60  ;;  %v16075_v18 = vld [vmem:[#allocation35_spill] sm:$0xff] }
 0x103   : > { %16070 = vst [vmem:[#allocation12_spill] sm:$0xff] %v12315_v32  ;;  %16072 = vst [vmem:[#allocation15_spill] sm:$0xff] %v12320_v13  ;;  %10414 = vmatprep.mubr.msk.f32.mxu0 %vm15723_vm1, %v3346_v49  ;;  %v12327_v44 = vpop.f32.mrf.mxu0  ;;  %vm16076_vm5 = vnez %v16075_v18  ;;  %v3283_v13 = vld [vmem:[#allocation2 + $0xd0] sm:$0xff] }
 0x104   : > { %v10163_v57 = vpop.f32.mrf.mxu1  ;;  %16074 = vst [vmem:[#allocation18_spill] sm:$0xff] %v12327_v44  ;;  %10462 = vmatmul.mubr.msk.f32.gmra.mxu1 %vm15723_vm1, %v3281_v24  ;;  %v3348_v37 = vsel %vm16076_vm5, %v12318_v23, %v3252_v26  ;;  %v12336_v54 = vld [vmem:[#allocation2 + $0xe9] sm:$0xff]  ;;  %v3284_v44 = vld [vmem:[#allocation2 + $0xd8] sm:$0xff] }
 0x105   : > { %v12333_v39 = vadd.f32 %v10163_v57, %v10113_v2  ;;  %10464 = vmatprep.mubr.msk.f32.mxu1 %vm15723_vm1, %v3282_v1  ;;  %16078 = vst [vmem:[#allocation21_spill] sm:$0xff] %v12336_v54  ;;  %v10116_v32 = vpop.f32.mrf.mxu0  ;;  %v12343_v24 = vld [vmem:[#allocation2 + $0xdf] sm:$0xff]  ;;  %v16082_v1 = vld [vmem:[#allocation38_spill] sm:$0xff]  ;;  %v3256_v23 = vld [vmem:[#allocation2 + $0xf7] sm:$0xff] }
 0x106   : > { %v12338_v49 = vpop.f32.mrf.mxu1  ;;  %10415 = vmatmul.mubr.msk.f32.gmra.mxu0 %vm15723_vm1, %v12325_v60  ;;  %16080 = vst [vmem:[#allocation24_spill] sm:$0xff] %v12343_v24  ;;  %vm16083_vm5 = vnez %v16082_v1  ;;  %v12354_v60 = vld [vmem:[#allocation2 + $0xf9] sm:$0xff] }
 0x107   : > { %16077 = vst [vmem:[#allocation19_spill] sm:$0xff] %v12333_v39  ;;  %16079 = vst [vmem:[#allocation22_spill] sm:$0xff] %v12338_v49  ;;  %10417 = vmatprep.mubr.msk.f32.mxu0 %vm15723_vm1, %v3348_v37  ;;  %v12345_v2 = vpop.f32.mrf.mxu0  ;;  %v3350_v57 = vsel %vm16083_vm5, %v12336_v54, %v3254_v46  ;;  %v3285_v49 = vld [vmem:[#allocation2 + $0xe0] sm:$0xff] }
 0x108   : > { %v10166_v26 = vpop.f32.mrf.mxu1  ;;  %16081 = vst [vmem:[#allocation25_spill] sm:$0xff] %v12345_v2  ;;  %10465 = vmatmul.mubr.msk.f32.gmra.mxu1 %vm15723_vm1, %v3283_v13  ;;  %16085 = vst [vmem:[#allocation28_spill] sm:$0xff] %v12354_v60  ;;  %v3286_v2 = vld [vmem:[#allocation2 + $0xe8] sm:$0xff] }
 0x109   : > { %v12351_v18 = vadd.f32 %v10166_v26, %v10116_v32  ;;  %10467 = vmatprep.mubr.msk.f32.mxu1 %vm15723_vm1, %v3284_v44  ;;  %v10119_v39 = vpop.f32.mrf.mxu0  ;;  %v12361_v13 = vld [vmem:[#allocation2 + $0xef] sm:$0xff] }
 0x10a   : > { %v12356_v37 = vpop.f32.mrf.mxu1  ;;  %10418 = vmatmul.mubr.msk.f32.gmra.mxu0 %vm15723_vm1, %v12343_v24  ;;  %v16088_v44 = vld [vmem:[#allocation42_spill] sm:$0xff] }
 0x10b   : > { %16084 = vst [vmem:[#allocation27_spill] sm:$0xff] %v12351_v18  ;;  %16086 = vst [vmem:[#allocation30_spill] sm:$0xff] %v12356_v37  ;;  %10420 = vmatprep.mubr.msk.f32.mxu0 %vm15723_vm1, %v3350_v57  ;;  %v12363_v32 = vpop.f32.mrf.mxu0  ;;  %vm16089_vm5 = vnez %v16088_v44  ;;  %v3287_v37 = vld [vmem:[#allocation2 + $0xf0] sm:$0xff]  ;;  %v3288_v57 = vld [vmem:[#allocation2 + $0xf8] sm:$0xff] }
 0x10c   : > { %v10169_v46 = vpop.f32.mrf.mxu1  ;;  %16087 = vst [vmem:[#allocation31_spill] sm:$0xff] %v12363_v32  ;;  %10468 = vmatmul.mubr.msk.f32.gmra.mxu1 %vm15723_vm1, %v3285_v49  ;;  %v3352_v26 = vsel %vm16089_vm5, %v12354_v60, %v3256_v23  ;;  %v12377_v32 = vld [vmem:[#allocation2 + $0xff] sm:$0xff]  ;;  %v3260_v44 = vld [vmem:[#allocation2 + $0x117] sm:$0xff] }
 0x10d   : > { %v12369_v1 = vadd.f32 %v10169_v46, %v10119_v39  ;;  %10470 = vmatprep.mubr.msk.f32.mxu1 %vm15723_vm1, %v3286_v2  ;;  %v10122_v24 = vpop.f32.mrf.mxu0  ;;  %v16092_v39 = vld [vmem:[#allocation48_spill] sm:$0xff]  ;;  %v3289_v46 = vld [vmem:[#allocation2 + $0x100] sm:$0xff] }
 0x10e   : > { %v12372_v54 = vpop.f32.mrf.mxu1  ;;  %10421 = vmatmul.mubr.msk.f32.gmra.mxu0 %vm15723_vm1, %v12361_v13  ;;  %vm16093_vm5 = vnez %v16092_v39 }
 0x10f   : > { %16090 = vst [vmem:[#allocation33_spill] sm:$0xff] %v12372_v54  ;;  %10423 = vmatprep.mubr.msk.f32.mxu0 %vm15723_vm1, %v3352_v26  ;;  %v12379_v18 = vpop.f32.mrf.mxu0  ;;  %v3354_v23 = vsel %vm16093_vm5, %v11935_v28, %v11933_v40  ;;  %v12389_v54 = vld [vmem:[#allocation2 + $0x119] sm:$0xff] }
 0x110   : > { %v10172_v49 = vpop.f32.mrf.mxu1  ;;  %16091 = vst [vmem:[#allocation34_spill] sm:$0xff] %v12379_v18  ;;  %10471 = vmatmul.mubr.msk.f32.gmra.mxu1 %vm15723_vm1, %v3287_v37  ;;  %v16096_v40 = vld [vmem:[#allocation53_spill] sm:$0xff] }
 0x111   : > { %v12386_v2 = vadd.f32 %v10172_v49, %v10122_v24  ;;  %10473 = vmatprep.mubr.msk.f32.mxu1 %vm15723_vm1, %v3288_v57  ;;  %v10125_v60 = vpop.f32.mrf.mxu0  ;;  %vm16097_vm5 = vnez %v16096_v40 }
 0x112   : > { %v12391_v26 = vpop.f32.mrf.mxu1  ;;  %10424 = vmatmul.mubr.msk.f32.gmra.mxu0 %vm15723_vm1, %v12377_v32  ;;  %v3356_v24 = vsel %vm16097_vm5, %v12389_v54, %v3260_v44  ;;  %vm16101_vm5 = vnez %v15933_v45 }
 0x113   : > { %16094 = vst [vmem:[#allocation36_spill] sm:$0xff] %v12391_v26  ;;  %10426 = vmatprep.mubr.msk.f32.mxu0 %vm15723_vm1, %v3354_v23  ;;  %v12396_v18 = vpop.f32.mrf.mxu0  ;;  %v3292_v23 = vld [vmem:[#allocation2 + $0x118] sm:$0xff] }
 0x114   : > { %v10175_v37 = vpop.f32.mrf.mxu1  ;;  %16095 = vst [vmem:[#allocation40_spill] sm:$0xff] %v12396_v18  ;;  %10474 = vmatmul.mubr.msk.f32.gmra.mxu1 %vm15723_vm1, %v3289_v46  ;;  %v12411_v18 = vld [vmem:[#allocation2 + $0x11f] sm:$0xff] }
 0x115   : > { %v12402_v57 = vadd.f32 %v10175_v37, %v10125_v60  ;;  %10476 = vmatprep.mubr.msk.f32.mxu1 %vm15723_vm1, %v12132_v61  ;;  %v10128_v39 = vpop.f32.mrf.mxu0  ;;  %v3295_v60 = vld [vmem:[#allocation2 + $0x31] sm:$0xff]  ;;  %v3293_v61 = vld [vmem:[#allocation2 + $0x120] sm:$0xff] }
 0x116   : > { %v12406_v49 = vpop.f32.mrf.mxu1  ;;  %10427 = vmatmul.mubr.msk.f32.gmra.mxu0 %vm15723_vm1, %v11960_v6 }
 0x117   : > { %16098 = vst [vmem:[#allocation37_spill] sm:$0xff] %v12406_v49  ;;  %10429 = vmatprep.mubr.msk.f32.mxu0 %vm15723_vm1, %v3356_v24  ;;  %v12413_v26 = vpop.f32.mrf.mxu0  ;;  %v3359_v24 = vsel %vm16101_vm5, %v12165_v21, %v3295_v60 }
 0x118   : > { %v10178_v46 = vpop.f32.mrf.mxu1  ;;  %16099 = vst [vmem:[#allocation39_spill] sm:$0xff] %v12413_v26  ;;  %10477 = vmatmul.mubr.msk.f32.gmra.mxu1 %vm15723_vm1, %v12148_v20 }
 0x119   : > { %v12417_v44 = vadd.f32 %v10178_v46, %v10128_v39  ;;  %10479 = vmatprep.mubr.msk.f32.mxu1 %vm15723_vm1, %v3292_v23  ;;  %v10131_v40 = vpop.f32.mrf.mxu0  ;;  %v3297_v39 = vld [vmem:[#allocation2 + $0x41] sm:$0xff] }
 0x11a   : > { %v12420_v37 = vpop.f32.mrf.mxu1  ;;  %10430 = vmatmul.mubr.msk.f32.gmra.mxu0 %vm15723_vm1, %v12411_v18 }
 0x11b   : > { %16100 = vst [vmem:[#allocation69_spill] sm:$0xff] %v12420_v37  ;;  %10484 = vmatprep.mubr.msk.f32.mxu0 %vm15723_vm1, %v12140_v59  ;;  %v12429_v26 = vpop.f32.mrf.mxu0  ;;  %v3361_v59 = vsel %vm16004_vm14, %v12179_v41, %v3297_v39 }
 0x11c   : > { %v10181_v20 = vpop.f32.mrf.mxu1  ;;  %16102 = vst [vmem:[#allocation46_spill] sm:$0xff] %v12429_v26  ;;  %10480 = vmatmul.mubr.msk.f32.gmra.mxu1 %vm15723_vm1, %v3293_v61  ;;  %v3299_v61 = vld [vmem:[#allocation2 + $0x51] sm:$0xff] }
 0x11d   : > { %v12432_v23 = vadd.f32 %v10181_v20, %v10131_v40  ;;  %v10186_v37 = vpop.f32.mrf.mxu0 }
 0x11e   : > { %v12434_v46 = vpop.f32.mrf.mxu1  ;;  %10485 = vmatmul.mubr.msk.f32.vlgmr.msra.gmra.mxu0 %vm15723_vm1, %v3359_v24  ;;  %v1968_v49 = vadd.f32 %v10186_v37, %v12185_v51 }
 0x11f   : > { %16103 = vst [vmem:[#allocation41_spill] sm:$0xff] %v12434_v46  ;;  %10487 = vmatprep.mubr.msk.f32.mxu0 %vm15723_vm1, %v12160_v8  ;;  %v1808_v21 = vpop.f32.mrf.mxu0  ;;  %v3363_v8 = vsel %vm11657_vm3, %v12195_v10, %v3299_v61 }
 0x120   : > { %v10236_v60 = vpop.f32.mrf.mxu1  ;;  %v12444_v40 = vadd.f32 %v1808_v21, %v12192_v58  ;;  %v3301_v58 = vld [vmem:[#allocation2 + $0x61] sm:$0xff] }
 0x121   : > { %v12446_v20 = vadd.f32 %v10236_v60, %v1968_v49 }
 0x122   : > { %v10189_v45 = vpop.f32.mrf.mxu0  ;;  %v12448_v46 = vpop.f32.mrf.mxu1  ;;  %10488 = vmatmul.mubr.msk.f32.gmra.mxu0 %vm15723_vm1, %v3361_v59 }
 0x123   : > { %v1970_v51 = vadd.f32 %v10189_v45, %v12201_v11  ;;  %10490 = vmatprep.mubr.msk.f32.mxu0 %vm15723_vm1, %v12172_v38  ;;  %v3365_v38 = vsel %vm11684_vm15, %v12211_v19, %v3301_v58 }
 0x124   : > { %v1818_v41 = vpop.f32.mrf.mxu0  ;;  %v10239_v37 = vpop.f32.mrf.mxu1 }
 0x125   : > { %v12458_v49 = vadd.f32 %v1818_v41, %v12208_v42  ;;  %v12460_v24 = vadd.f32 %v10239_v37, %v1970_v51  ;;  %v3303_v42 = vld [vmem:[#allocation2 + $0x71] sm:$0xff] }
 0x126   : > { %v10192_v39 = vpop.f32.mrf.mxu0  ;;  %v12462_v21 = vpop.f32.mrf.mxu1  ;;  %10491 = vmatmul.mubr.msk.f32.gmra.mxu0 %vm15723_vm1, %v3363_v8 }
 0x127   : > { %v1972_v45 = vadd.f32 %v10192_v39, %v12217_v48  ;;  %10493 = vmatprep.mubr.msk.f32.mxu0 %vm15723_vm1, %v12188_v25  ;;  %v3367_v25 = vsel %vm11705_vm0, %v12227_v16, %v3303_v42 }
 0x128   : > { %v1828_v10 = vpop.f32.mrf.mxu0  ;;  %v10242_v11 = vpop.f32.mrf.mxu1 }
 0x129   : > { %v12472_v59 = vadd.f32 %v1828_v10, %v12224_v22  ;;  %v12474_v60 = vadd.f32 %v10242_v11, %v1972_v45  ;;  %v3305_v22 = vld [vmem:[#allocation2 + $0x81] sm:$0xff] }
 0x12a   : > { %v10195_v61 = vpop.f32.mrf.mxu0  ;;  %v12476_v51 = vpop.f32.mrf.mxu1  ;;  %10494 = vmatmul.mubr.msk.f32.gmra.mxu0 %vm15723_vm1, %v3365_v38 }
 0x12b   : > { %v1974_v48 = vadd.f32 %v10195_v61, %v12233_v52  ;;  %10496 = vmatprep.mubr.msk.f32.mxu0 %vm15723_vm1, %v12204_v43  ;;  %v3369_v43 = vsel %vm11726_vm2, %v12243_v12, %v3305_v22 }
 0x12c   : > { %v1838_v19 = vpop.f32.mrf.mxu0  ;;  %v10245_v8 = vpop.f32.mrf.mxu1 }
 0x12d   : > { %v12486_v41 = vadd.f32 %v1838_v19, %v12240_v9  ;;  %v12488_v37 = vadd.f32 %v10245_v8, %v1974_v48  ;;  %v3307_v9 = vld [vmem:[#allocation2 + $0x91] sm:$0xff] }
 0x12e   : > { %v10198_v58 = vpop.f32.mrf.mxu0  ;;  %v12490_v39 = vpop.f32.mrf.mxu1  ;;  %10497 = vmatmul.mubr.msk.f32.gmra.mxu0 %vm15723_vm1, %v3367_v25 }
 0x12f   : > { %v1976_v52 = vadd.f32 %v10198_v58, %v12249_v34  ;;  %10499 = vmatprep.mubr.msk.f32.mxu0 %vm15723_vm1, %v12220_v63  ;;  %v3371_v63 = vsel %vm11747_vm6, %v12259_v30, %v3307_v9 }
 0x130   : > { %v1848_v16 = vpop.f32.mrf.mxu0  ;;  %v10248_v45 = vpop.f32.mrf.mxu1 }
 0x131   : > { %v12500_v38 = vadd.f32 %v1848_v16, %v12256_v27  ;;  %v12502_v10 = vadd.f32 %v10248_v45, %v1976_v52  ;;  %v3309_v27 = vld [vmem:[#allocation2 + $0xa1] sm:$0xff] }
 0x132   : > { %v10201_v11 = vpop.f32.mrf.mxu0  ;;  %v12504_v42 = vpop.f32.mrf.mxu1  ;;  %10500 = vmatmul.mubr.msk.f32.gmra.mxu0 %vm15723_vm1, %v3369_v43 }
 0x133   : > { %v1978_v34 = vadd.f32 %v10201_v11, %v12265_v29  ;;  %10502 = vmatprep.mubr.msk.f32.mxu0 %vm15723_vm1, %v12236_v31  ;;  %v3373_v31 = vsel %vm11768_vm7, %v12275_v36, %v3309_v27 }
 0x134   : > { %v1858_v12 = vpop.f32.mrf.mxu0  ;;  %v10251_v61 = vpop.f32.mrf.mxu1 }
 0x135   : > { %v12514_v48 = vadd.f32 %v1858_v12, %v12272_v17  ;;  %v12516_v25 = vadd.f32 %v10251_v61, %v1978_v34  ;;  %v3311_v17 = vld [vmem:[#allocation2 + $0xb1] sm:$0xff]  ;;  %v16108_v61 = vld [vmem:[#allocation9_spill] sm:$0xff] }
 0x136   : > { %v10204_v19 = vpop.f32.mrf.mxu0  ;;  %v12518_v8 = vpop.f32.mrf.mxu1  ;;  %10503 = vmatmul.mubr.msk.f32.gmra.mxu0 %vm15723_vm1, %v3371_v63 }
 0x137   : > { %v1980_v29 = vadd.f32 %v10204_v19, %v12281_v50  ;;  %10505 = vmatprep.mubr.msk.f32.mxu0 %vm15723_vm1, %v12252_v3  ;;  %v3375_v3 = vsel %vm11789_vm8, %v12291_v4, %v3311_v17  ;;  %v16112_v17 = vld [vmem:[#allocation19_spill] sm:$0xff] }
 0x138   : > { %v1868_v30 = vpop.f32.mrf.mxu0  ;;  %v10254_v22 = vpop.f32.mrf.mxu1  ;;  %v3319_v4 = vld [vmem:[#allocation2 + $0xf1] sm:$0xff] }
 0x139   : > { %v12528_v58 = vadd.f32 %v1868_v30, %v12288_v62  ;;  %v12530_v52 = vadd.f32 %v10254_v22, %v1980_v29  ;;  %v3313_v62 = vld [vmem:[#allocation2 + $0xc1] sm:$0xff]  ;;  %v3315_v29 = vld [vmem:[#allocation2 + $0xd1] sm:$0xff] }
 0x13a   : > { %v10207_v43 = vpop.f32.mrf.mxu0  ;;  %v12532_v16 = vpop.f32.mrf.mxu1  ;;  %10506 = vmatmul.mubr.msk.f32.gmra.mxu0 %vm15723_vm1, %v3373_v31  ;;  %v3377_v27 = vsel %vm11810_vm9, %v16108_v61, %v3313_v62 }
 0x13b   : > { %v1982_v50 = vadd.f32 %v10207_v43, %v12297_v56  ;;  %10508 = vmatprep.mubr.msk.f32.mxu0 %vm15723_vm1, %v12268_v47  ;;  %v16106_v56 = vld [vmem:[#allocation12_spill] sm:$0xff]  ;;  %v16107_v47 = vld [vmem:[#allocation6_spill] sm:$0xff] }
 0x13c   : > { %v1878_v36 = vpop.f32.mrf.mxu0  ;;  %v10257_v45 = vpop.f32.mrf.mxu1 }
 0x13d   : > { %v12542_v9 = vadd.f32 %v1878_v36, %v12304_v33  ;;  %v12544_v11 = vadd.f32 %v10257_v45, %v1982_v50  ;;  %v16113_v50 = vld [vmem:[#allocation7_spill] sm:$0xff] }
 0x13e   : > { %v10210_v34 = vpop.f32.mrf.mxu0  ;;  %v12546_v63 = vpop.f32.mrf.mxu1  ;;  %10509 = vmatmul.mubr.msk.f32.gmra.mxu0 %vm15723_vm1, %v3375_v3  ;;  %v16114_v3 = vld [vmem:[#allocation16_spill] sm:$0xff] }
 0x13f   : > { %16104 = vst [vmem:[#allocation45_spill] sm:$0xff] %v12542_v9  ;;  %16105 = vst [vmem:[#allocation47_spill] sm:$0xff] %v12546_v63  ;;  %v1984_v12 = vadd.f32 %v10210_v34, %v16106_v56  ;;  %10511 = vmatprep.mubr.msk.f32.mxu0 %vm15723_vm1, %v16107_v47  ;;  %v3379_v45 = vsel %vm11831_vm10, %v16114_v3, %v3315_v29  ;;  %v3317_v56 = vld [vmem:[#allocation2 + $0xe1] sm:$0xff] }
 0x140   : > { %v12555_v19 = vpop.f32.mrf.mxu0  ;;  %v10260_v33 = vpop.f32.mrf.mxu1 }
 0x141   : > { %16110 = vst [vmem:[#allocation50_spill] sm:$0xff] %v12555_v19  ;;  %v12557_v31 = vadd.f32 %v10260_v33, %v1984_v12 }
 0x142   : > { %v10213_v30 = vpop.f32.mrf.mxu0  ;;  %v12559_v22 = vpop.f32.mrf.mxu1  ;;  %10512 = vmatmul.mubr.msk.f32.gmra.mxu0 %vm15723_vm1, %v3377_v27  ;;  %v16118_v27 = vld [vmem:[#allocation27_spill] sm:$0xff] }
 0x143   : > { %16111 = vst [vmem:[#allocation52_spill] sm:$0xff] %v12559_v22  ;;  %v1986_v43 = vadd.f32 %v10213_v30, %v16112_v17  ;;  %10514 = vmatprep.mubr.msk.f32.mxu0 %vm15723_vm1, %v16113_v50  ;;  %v16119_v30 = vld [vmem:[#allocation13_spill] sm:$0xff]  ;;  %v16120_v17 = vld [vmem:[#allocation24_spill] sm:$0xff] }
 0x144   : > { %v12568_v62 = vpop.f32.mrf.mxu0  ;;  %v10263_v34 = vpop.f32.mrf.mxu1  ;;  %v3381_v29 = vsel %vm11852_vm11, %v16120_v17, %v3317_v56  ;;  %v3383_v56 = vsel %vm11873_vm12, %v12361_v13, %v3319_v4  ;;  %v3321_v50 = vld [vmem:[#allocation2 + $0x101] sm:$0xff] }
 0x145   : > { %16116 = vst [vmem:[#allocation54_spill] sm:$0xff] %v12568_v62  ;;  %v12570_v12 = vadd.f32 %v10263_v34, %v1986_v43  ;;  %v3385_v13 = vsel %vm16036_vm4, %v12377_v32, %v3321_v50 }
 0x146   : > { %v10216_v47 = vpop.f32.mrf.mxu0  ;;  %v12572_v61 = vpop.f32.mrf.mxu1  ;;  %10515 = vmatmul.mubr.msk.f32.gmra.mxu0 %vm15723_vm1, %v3379_v45 }
 0x147   : > { %16117 = vst [vmem:[#allocation55_spill] sm:$0xff] %v12572_v61  ;;  %v1988_v33 = vadd.f32 %v10216_v47, %v16118_v27  ;;  %10517 = vmatprep.mubr.msk.f32.mxu0 %vm15723_vm1, %v16119_v30  ;;  %v16124_v47 = vld [vmem:[#allocation21_spill] sm:$0xff] }
 0x148   : > { %v12581_v3 = vpop.f32.mrf.mxu0  ;;  %v10266_v36 = vpop.f32.mrf.mxu1 }
 0x149   : > { %16122 = vst [vmem:[#allocation12_spill] sm:$0xff] %v12581_v3  ;;  %v12583_v43 = vadd.f32 %v10266_v36, %v1988_v33 }
 0x14a   : > { %v10219_v34 = vpop.f32.mrf.mxu0  ;;  %v12585_v15 = vpop.f32.mrf.mxu1  ;;  %10518 = vmatmul.mubr.msk.f32.gmra.mxu0 %vm15723_vm1, %v3381_v29  ;;  %v16128_v29 = vld [vmem:[#allocation28_spill] sm:$0xff] }
 0x14b   : > { %16123 = vst [vmem:[#allocation6_spill] sm:$0xff] %v12585_v15  ;;  %v1990_v45 = vadd.f32 %v10219_v34, %v12369_v1  ;;  %10520 = vmatprep.mubr.msk.f32.mxu0 %vm15723_vm1, %v16124_v47 }
 0x14c   : > { %v12594_v30 = vpop.f32.mrf.mxu0  ;;  %v10269_v17 = vpop.f32.mrf.mxu1 }
 0x14d   : > { %16126 = vst [vmem:[#allocation9_spill] sm:$0xff] %v12594_v30  ;;  %v12596_v36 = vadd.f32 %v10269_v17, %v1990_v45 }
 0x14e   : > { %v10222_v33 = vpop.f32.mrf.mxu0  ;;  %v12598_v5 = vpop.f32.mrf.mxu1  ;;  %10521 = vmatmul.mubr.msk.f32.gmra.mxu0 %vm15723_vm1, %v3383_v56 }
 0x14f   : > { %16127 = vst [vmem:[#allocation19_spill] sm:$0xff] %v12598_v5  ;;  %v1992_v1 = vadd.f32 %v10222_v33, %v12386_v2  ;;  %10523 = vmatprep.mubr.msk.f32.mxu0 %vm15723_vm1, %v16128_v29  ;;  %v16132_v2 = vld [vmem:[#allocation51_spill] sm:$0xff]  ;;  %v16133_v33 = vld [vmem:[#allocation44_spill] sm:$0xff] }
 0x150   : > { %v12607_v4 = vpop.f32.mrf.mxu0  ;;  %v10272_v47 = vpop.f32.mrf.mxu1  ;;  %vm16134_vm12 = vnez %v16133_v33 }
 0x151   : > { %16130 = vst [vmem:[#allocation7_spill] sm:$0xff] %v12607_v4  ;;  %v12609_v27 = vadd.f32 %v10272_v47, %v1992_v1  ;;  %v3387_v32 = vsel %vm16134_vm12, %v11960_v6, %v16132_v2  ;;  %v3325_v1 = vld [vmem:[#allocation2 + $0x121] sm:$0xff] }
 0x152   : > { %v10225_v45 = vpop.f32.mrf.mxu0  ;;  %v12611_v17 = vpop.f32.mrf.mxu1  ;;  %10524 = vmatmul.mubr.msk.f32.gmra.mxu0 %vm15723_vm1, %v3385_v13 }
 0x153   : > { %16131 = vst [vmem:[#allocation16_spill] sm:$0xff] %v12611_v17  ;;  %v1994_v56 = vadd.f32 %v10225_v45, %v12402_v57  ;;  %10526 = vmatprep.mubr.msk.f32.mxu0 %vm15723_vm1, %v11935_v28  ;;  %v16137_v28 = vld [vmem:[#allocation49_spill] sm:$0xff] }
 0x154   : > { %v12621_v50 = vpop.f32.mrf.mxu0  ;;  %v10275_v29 = vpop.f32.mrf.mxu1  ;;  %vm16138_vm4 = vnez %v16137_v28 }
 0x155   : > { %16135 = vst [vmem:[#allocation27_spill] sm:$0xff] %v12621_v50  ;;  %v12623_v47 = vadd.f32 %v10275_v29, %v1994_v56  ;;  %v3389_v6 = vsel %vm16138_vm4, %v12411_v18, %v3325_v1 }
 0x156   : > { %v10228_v34 = vpop.f32.mrf.mxu0  ;;  %v12625_v7 = vpop.f32.mrf.mxu1  ;;  %10527 = vmatmul.mubr.msk.f32.gmra.mxu0 %vm15723_vm1, %v3387_v32 }
 0x157   : > { %16136 = vst [vmem:[#allocation13_spill] sm:$0xff] %v12625_v7  ;;  %v1996_v57 = vadd.f32 %v10228_v34, %v12417_v44  ;;  %10529 = vmatprep.mubr.msk.f32.mxu0 %vm15723_vm1, %v12389_v54 }
 0x158   : > { %v12634_v13 = vpop.f32.mrf.mxu0  ;;  %v10278_v45 = vpop.f32.mrf.mxu1 }
 0x159   : > { %16139 = vst [vmem:[#allocation24_spill] sm:$0xff] %v12634_v13  ;;  %v12636_v2 = vadd.f32 %v10278_v45, %v1996_v57 }
 0x15a   : > { %v10231_v56 = vpop.f32.mrf.mxu0  ;;  %v12638_v29 = vpop.f32.mrf.mxu1  ;;  %10530 = vmatmul.mubr.msk.f32.gmra.mxu0 %vm15723_vm1, %v3389_v6 }
 0x15b   : > { %16140 = vst [vmem:[#allocation21_spill] sm:$0xff] %v12638_v29  ;;  %v1998_v32 = vadd.f32 %v10231_v56, %v12432_v23 }
 0x15c   : > { %v12642_v44 = vpop.f32.mrf.mxu0  ;;  %v10281_v34 = vpop.f32.mrf.mxu1 }
 0x15d   : > { %16141 = vst [vmem:[#allocation28_spill] sm:$0xff] %v12642_v44  ;;  %v12644_v54 = vadd.f32 %v10281_v34, %v1998_v32 }
 0x15e   : > { %v12646_v33 = vpop.f32.mrf.mxu1  ;;  %v10286_v18 = vpop.f32.mrf.mxu0 }
 0x15f   : > { %16142 = vst [vmem:[#allocation51_spill] sm:$0xff] %v12646_v33  ;;  %v2843_v1 = vadd.f32 %v10286_v18, %v12446_v20 }
 0x160   : > { %v12649_v28 = vpop.f32.mrf.mxu0  ;;  %v10336_v57 = vpop.f32.mrf.mxu1 }
 0x161   : > { %v12651_v45 = vadd.f32 %v10336_v57, %v2843_v1 }
 0x162   : > { %v10289_v0 = vpop.f32.mrf.mxu0  ;;  %v12653_v53 = vpop.f32.mrf.mxu1 }
 0x163   : > { %v2845_v23 = vadd.f32 %v10289_v0, %v12460_v24 }
 0x164   : > { %v12656_v6 = vpop.f32.mrf.mxu0  ;;  %v10339_v56 = vpop.f32.mrf.mxu1 }
 0x165   : > { %v12658_v32 = vadd.f32 %v10339_v56, %v2845_v23 }
 0x166   : > { %v10292_v34 = vpop.f32.mrf.mxu0  ;;  %v12660_v35 = vpop.f32.mrf.mxu1 }
 0x167   : > { %v2847_v20 = vadd.f32 %v10292_v34, %v12474_v60 }
 0x168   : > { %v12663_v18 = vpop.f32.mrf.mxu0  ;;  %v10342_v55 = vpop.f32.mrf.mxu1 }
 0x169   : > { %v12665_v1 = vadd.f32 %v10342_v55, %v2847_v20 }
 0x16a   : > { %v10295_v57 = vpop.f32.mrf.mxu0  ;;  %v12667_v14 = vpop.f32.mrf.mxu1 }
 0x16b   : > { %v2849_v0 = vadd.f32 %v10295_v57, %v12488_v37 }
 0x16c   : > { %v12670_v24 = vpop.f32.mrf.mxu0  ;;  %v10345_v33 = vpop.f32.mrf.mxu1 }
 0x16d   : > { %v12672_v23 = vadd.f32 %v10345_v33, %v2849_v0 }
 0x16e   : > { %v10298_v56 = vpop.f32.mrf.mxu0  ;;  %v12674_v44 = vpop.f32.mrf.mxu1 }
 0x16f   : > { %v2851_v60 = vadd.f32 %v10298_v56, %v12502_v10 }
 0x170   : > { %v12677_v34 = vpop.f32.mrf.mxu0  ;;  %v10348_v29 = vpop.f32.mrf.mxu1 }
 0x171   : > { %v12679_v55 = vadd.f32 %v10348_v29, %v2851_v60 }
 0x172   : > { %v10301_v20 = vpop.f32.mrf.mxu0  ;;  %v12681_v26 = vpop.f32.mrf.mxu1 }
 0x173   : > { %v2853_v37 = vadd.f32 %v10301_v20, %v12516_v25 }
 0x174   : > { %v12684_v57 = vpop.f32.mrf.mxu0  ;;  %v10351_v13 = vpop.f32.mrf.mxu1 }
 0x175   : > { %v12686_v33 = vadd.f32 %v10351_v13, %v2853_v37 }
 0x176   : > { %v10304_v0 = vpop.f32.mrf.mxu0  ;;  %v12688_v7 = vpop.f32.mrf.mxu1 }
 0x177   : > { %v2855_v10 = vadd.f32 %v10304_v0, %v12530_v52 }
 0x178   : > { %v12691_v56 = vpop.f32.mrf.mxu0  ;;  %v10354_v50 = vpop.f32.mrf.mxu1 }
 0x179   : > { %v12693_v29 = vadd.f32 %v10354_v50, %v2855_v10 }
 0x17a   : > { %v10307_v60 = vpop.f32.mrf.mxu0  ;;  %v12695_v17 = vpop.f32.mrf.mxu1 }
 0x17b   : > { %16143 = vst [vmem:[#allocation70_spill] sm:$0xff] %v12695_v17  ;;  %v2857_v25 = vadd.f32 %v10307_v60, %v12544_v11 }
 0x17c   : > { %v12698_v20 = vpop.f32.mrf.mxu0  ;;  %v10357_v4 = vpop.f32.mrf.mxu1 }
 0x17d   : > { %16144 = vst [vmem:[#allocation71_spill] sm:$0xff] %v12698_v20  ;;  %v12700_v13 = vadd.f32 %v10357_v4, %v2857_v25 }
 0x17e   : > { %v10310_v37 = vpop.f32.mrf.mxu0  ;;  %v12702_v5 = vpop.f32.mrf.mxu1 }
 0x17f   : > { %16145 = vst [vmem:[#allocation72_spill] sm:$0xff] %v12702_v5  ;;  %v2859_v52 = vadd.f32 %v10310_v37, %v12557_v31 }
 0x180   : > { %v12705_v0 = vpop.f32.mrf.mxu0  ;;  %v10360_v30 = vpop.f32.mrf.mxu1 }
 0x181   : > { %16146 = vst [vmem:[#allocation73_spill] sm:$0xff] %v12705_v0  ;;  %v12707_v50 = vadd.f32 %v10360_v30, %v2859_v52 }
 0x182   : > { %v10313_v10 = vpop.f32.mrf.mxu0  ;;  %v12709_v15 = vpop.f32.mrf.mxu1 }
 0x183   : > { %16147 = vst [vmem:[#allocation74_spill] sm:$0xff] %v12709_v15  ;;  %v2861_v11 = vadd.f32 %v10313_v10, %v12570_v12 }
 0x184   : > { %v12712_v60 = vpop.f32.mrf.mxu0  ;;  %v10363_v3 = vpop.f32.mrf.mxu1 }
 0x185   : > { %16148 = vst [vmem:[#allocation75_spill] sm:$0xff] %v12712_v60  ;;  %v12714_v4 = vadd.f32 %v10363_v3, %v2861_v11 }
 0x186   : > { %v10316_v25 = vpop.f32.mrf.mxu0  ;;  %v12716_v61 = vpop.f32.mrf.mxu1 }
 0x187   : > { %16149 = vst [vmem:[#allocation76_spill] sm:$0xff] %v12716_v61  ;;  %v2863_v31 = vadd.f32 %v10316_v25, %v12583_v43 }
 0x188   : > { %v12719_v37 = vpop.f32.mrf.mxu0  ;;  %v10366_v5 = vpop.f32.mrf.mxu1 }
 0x189   : > { %16150 = vst [vmem:[#allocation77_spill] sm:$0xff] %v12719_v37  ;;  %v12721_v30 = vadd.f32 %v10366_v5, %v2863_v31 }
 0x18a   : > { %v10319_v52 = vpop.f32.mrf.mxu0  ;;  %v12723_v0 = vpop.f32.mrf.mxu1 }
 0x18b   : > { %16151 = vst [vmem:[#allocation78_spill] sm:$0xff] %v12723_v0  ;;  %v2865_v12 = vadd.f32 %v10319_v52, %v12596_v36 }
 0x18c   : > { %v12726_v10 = vpop.f32.mrf.mxu0  ;;  %v10369_v60 = vpop.f32.mrf.mxu1 }
 0x18d   : > { %16152 = vst [vmem:[#allocation79_spill] sm:$0xff] %v12726_v10  ;;  %v12728_v3 = vadd.f32 %v10369_v60, %v2865_v12 }
 0x18e   : > { %v10322_v11 = vpop.f32.mrf.mxu0  ;;  %v12730_v15 = vpop.f32.mrf.mxu1 }
 0x18f   : > { %16153 = vst [vmem:[#allocation80_spill] sm:$0xff] %v12730_v15  ;;  %v2867_v43 = vadd.f32 %v10322_v11, %v12609_v27 }
 0x190   : > { %v12733_v25 = vpop.f32.mrf.mxu0  ;;  %v10372_v61 = vpop.f32.mrf.mxu1 }
 0x191   : > { %16154 = vst [vmem:[#allocation81_spill] sm:$0xff] %v12733_v25  ;;  %v12735_v5 = vadd.f32 %v10372_v61, %v2867_v43 }
 0x192   : > { %v10325_v31 = vpop.f32.mrf.mxu0  ;;  %v12737_v37 = vpop.f32.mrf.mxu1 }
 0x193   : > { %16155 = vst [vmem:[#allocation82_spill] sm:$0xff] %v12737_v37  ;;  %v2869_v36 = vadd.f32 %v10325_v31, %v12623_v47 }
 0x194   : > { %v12740_v52 = vpop.f32.mrf.mxu0  ;;  %v10375_v10 = vpop.f32.mrf.mxu1 }
 0x195   : > { %16156 = vst [vmem:[#allocation83_spill] sm:$0xff] %v12740_v52  ;;  %v12742_v60 = vadd.f32 %v10375_v10, %v2869_v36 }
 0x196   : > { %v10328_v12 = vpop.f32.mrf.mxu0  ;;  %v12744_v0 = vpop.f32.mrf.mxu1 }
 0x197   : > { %16157 = vst [vmem:[#allocation84_spill] sm:$0xff] %v12744_v0  ;;  %v2871_v27 = vadd.f32 %v10328_v12, %v12636_v2 }
 0x198   : > { %v12747_v11 = vpop.f32.mrf.mxu0  ;;  %v10378_v15 = vpop.f32.mrf.mxu1 }
 0x199   : > { %16158 = vst [vmem:[#allocation85_spill] sm:$0xff] %v12747_v11  ;;  %v12749_v61 = vadd.f32 %v10378_v15, %v2871_v27 }
 0x19a   : > { %v10331_v43 = vpop.f32.mrf.mxu0  ;;  %v12751_v25 = vpop.f32.mrf.mxu1 }
 0x19b   : > { %16159 = vst [vmem:[#allocation86_spill] sm:$0xff] %v12751_v25  ;;  %v2873_v47 = vadd.f32 %v10331_v43, %v12644_v54 }
 0x19c   : > { %v12754_v31 = vpop.f32.mrf.mxu0  ;;  %v10381_v52 = vpop.f32.mrf.mxu1 }
 0x19d   : > { %16160 = vst [vmem:[#allocation87_spill] sm:$0xff] %v12754_v31  ;;  %v12756_v10 = vadd.f32 %v10381_v52, %v2873_v47 }
 0x19e   : > { %v12758_v36 = vpop.f32.mrf.mxu1  ;;  %v10386_v0 = vpop.f32.mrf.mxu0 }
 0x19f   : > { %16161 = vst [vmem:[#allocation88_spill] sm:$0xff] %v12758_v36  ;;  %v12761_v2 = vadd.f32 %v10386_v0, %v12651_v45 }
 0x1a0   : > { %v12763_v12 = vpop.f32.mrf.mxu0  ;;  %v12765_v15 = vpop.f32.mrf.mxu1 }
 0x1a2   : > { %v10389_v27 = vpop.f32.mrf.mxu0  ;;  %v12767_v11 = vpop.f32.mrf.mxu1 }
 0x1a3   : > { %v12770_v54 = vadd.f32 %v10389_v27, %v12658_v32 }
 0x1a4   : > { %v12772_v43 = vpop.f32.mrf.mxu0  ;;  %v12774_v52 = vpop.f32.mrf.mxu1 }
 0x1a6   : > { %v10392_v47 = vpop.f32.mrf.mxu0  ;;  %v12779_v45 = vpop.f32.mrf.mxu1 }
 0x1a7   : > { %v12777_v36 = vadd.f32 %v10392_v47, %v12665_v1 }
 0x1a8   : > { %v12781_v0 = vpop.f32.mrf.mxu0  ;;  %v12786_v37 = vpop.f32.mrf.mxu1 }
 0x1aa   : > { %v10395_v31 = vpop.f32.mrf.mxu0  ;;  %v12793_v22 = vpop.f32.mrf.mxu1 }
 0x1ab   : > { %v12784_v25 = vadd.f32 %v10395_v31, %v12672_v23 }
 0x1ac   : > { %v12788_v32 = vpop.f32.mrf.mxu0  ;;  %v12800_v17 = vpop.f32.mrf.mxu1 }
 0x1ae   : > { %v10398_v27 = vpop.f32.mrf.mxu0  ;;  %v12807_v63 = vpop.f32.mrf.mxu1 }
 0x1af   : > { %v12791_v62 = vadd.f32 %v10398_v27, %v12679_v55 }
 0x1b0   : > { %v12795_v1 = vpop.f32.mrf.mxu0  ;;  %v12814_v9 = vpop.f32.mrf.mxu1 }
 0x1b1   : > { %16162 = vst [vmem:[#allocation89_spill] sm:$0xff] %v12791_v62 }
 0x1b2   : > { %v10401_v47 = vpop.f32.mrf.mxu0 }
 0x1b3   : > { %v12798_v20 = vadd.f32 %v10401_v47, %v12686_v33 }
 0x1b4   : > { %v12802_v23 = vpop.f32.mrf.mxu0 }
 0x1b5   : > { %16163 = vst [vmem:[#allocation90_spill] sm:$0xff] %v12798_v20  ;;  %16164 = vst [vmem:[#allocation91_spill] sm:$0xff] %v12802_v23  ;;  %v12821_v23 = vpop.f32.mrf.mxu1 }
 0x1b6   : > { %v10404_v31 = vpop.f32.mrf.mxu0 }
 0x1b7   : > { %v12805_v19 = vadd.f32 %v10404_v31, %v12693_v29 }
 0x1b8   : > { %v12809_v55 = vpop.f32.mrf.mxu0 }
 0x1b9   : > { %16165 = vst [vmem:[#allocation92_spill] sm:$0xff] %v12805_v19  ;;  %16166 = vst [vmem:[#allocation93_spill] sm:$0xff] %v12809_v55  ;;  %v12828_v55 = vpop.f32.mrf.mxu1 }
 0x1ba   : > { %v10407_v27 = vpop.f32.mrf.mxu0 }
 0x1bb   : > { %v12812_v62 = vadd.f32 %v10407_v27, %v12700_v13 }
 0x1bc   : > { %v12816_v33 = vpop.f32.mrf.mxu0 }
 0x1bd   : > { %16167 = vst [vmem:[#allocation94_spill] sm:$0xff] %v12812_v62  ;;  %16168 = vst [vmem:[#allocation95_spill] sm:$0xff] %v12816_v33  ;;  %v12835_v33 = vpop.f32.mrf.mxu1 }
 0x1be   : > { %v10410_v47 = vpop.f32.mrf.mxu0 }
 0x1bf   : > { %v12819_v20 = vadd.f32 %v10410_v47, %v12707_v50 }
 0x1c0   : > { %v12823_v29 = vpop.f32.mrf.mxu0 }
 0x1c1   : > { %16169 = vst [vmem:[#allocation96_spill] sm:$0xff] %v12819_v20  ;;  %16170 = vst [vmem:[#allocation97_spill] sm:$0xff] %v12823_v29  ;;  %v12842_v29 = vpop.f32.mrf.mxu1 }
 0x1c2   : > { %v10413_v31 = vpop.f32.mrf.mxu0 }
 0x1c3   : > { %v12826_v19 = vadd.f32 %v10413_v31, %v12714_v4 }
 0x1c4   : > { %v12830_v13 = vpop.f32.mrf.mxu0 }
 0x1c5   : > { %16171 = vst [vmem:[#allocation98_spill] sm:$0xff] %v12826_v19  ;;  %16172 = vst [vmem:[#allocation99_spill] sm:$0xff] %v12830_v13  ;;  %v12849_v13 = vpop.f32.mrf.mxu1 }
 0x1c6   : > { %v10416_v27 = vpop.f32.mrf.mxu0 }
 0x1c7   : > { %v12833_v62 = vadd.f32 %v10416_v27, %v12721_v30 }
 0x1c8   : > { %v12837_v50 = vpop.f32.mrf.mxu0 }
 0x1c9   : > { %16173 = vst [vmem:[#allocation100_spill] sm:$0xff] %v12833_v62  ;;  %16174 = vst [vmem:[#allocation101_spill] sm:$0xff] %v12837_v50  ;;  %v2486_v62 = vadd.f32 %v12448_v46, %v12444_v40 }
 0x1ca   : > { %v10419_v47 = vpop.f32.mrf.mxu0 }
 0x1cb   : > { %v12840_v20 = vadd.f32 %v10419_v47, %v12728_v3  ;;  %v12858_v3 = vpop.f32.mrf.mxu1 }
 0x1cc   : > { %v12844_v4 = vpop.f32.mrf.mxu0 }
 0x1cd   : > { %16175 = vst [vmem:[#allocation102_spill] sm:$0xff] %v12840_v20  ;;  %16176 = vst [vmem:[#allocation103_spill] sm:$0xff] %v12844_v4  ;;  %v2842_v20 = vadd.f32 %v12649_v28, %v2486_v62 }
 0x1ce   : > { %v10422_v31 = vpop.f32.mrf.mxu0 }
 0x1cf   : > { %v12847_v19 = vadd.f32 %v10422_v31, %v12735_v5  ;;  %v2488_v5 = vadd.f32 %v12462_v21, %v12458_v49  ;;  %v3198_v46 = vadd.f32 %v12653_v53, %v2842_v20 }
 0x1d0   : > { %v12851_v30 = vpop.f32.mrf.mxu0 }
 0x1d1   : > { %16177 = vst [vmem:[#allocation104_spill] sm:$0xff] %v12847_v19  ;;  %16178 = vst [vmem:[#allocation105_spill] sm:$0xff] %v12851_v30  ;;  %v12868_v19 = vpop.f32.mrf.mxu1  ;;  %v2844_v40 = vadd.f32 %v12656_v6, %v2488_v5  ;;  %v3717_v62 = vadd.f32 %v12763_v12, %v3198_v46  ;;  %v2492_v6 = vadd.f32 %v12490_v39, %v12486_v41 }
 0x1d2   : > { %v10425_v27 = vpop.f32.mrf.mxu0  ;;  %v2494_v41 = vadd.f32 %v12504_v42, %v12500_v38 }
 0x1d3   : > { %v12856_v50 = vadd.f32 %v10425_v27, %v12742_v60  ;;  %v2490_v27 = vadd.f32 %v12476_v51, %v12472_v59  ;;  %v12880_v49 = vpop.f32.mrf.mxu1  ;;  %v4074_v59 = vadd.f32 %v12765_v15, %v12761_v2  ;;  %v4073_v51 = vadd.f32 %v12767_v11, %v3717_v62 }
 0x1d4   : > { %v12860_v47 = vpop.f32.mrf.mxu0  ;;  %v4076_v11 = vadd.f32 %v12774_v52, %v12770_v54  ;;  %v2496_v52 = vadd.f32 %v12518_v8, %v12514_v48 }
 0x1d6   : > { %v10428_v4 = vpop.f32.mrf.mxu0  ;;  %v2852_v48 = vadd.f32 %v12684_v57, %v2496_v52 }
 0x1d7   : > { %v12866_v31 = vadd.f32 %v10428_v4, %v12749_v61  ;;  %v3200_v61 = vadd.f32 %v12660_v35, %v2844_v40  ;;  %v2846_v4 = vadd.f32 %v12663_v18, %v2490_v27  ;;  %v2848_v35 = vadd.f32 %v12670_v24, %v2492_v6 }
 0x1d8   : > { %v12870_v30 = vpop.f32.mrf.mxu0  ;;  %v2850_v24 = vadd.f32 %v12677_v34, %v2494_v41  ;;  %v4078_v34 = vadd.f32 %v12786_v37, %v12777_v36 }
 0x1d9   : > { %v3719_v20 = vadd.f32 %v12772_v43, %v3200_v61  ;;  %v3202_v5 = vadd.f32 %v12667_v14, %v2846_v4 }
 0x1da   : > { %v10431_v60 = vpop.f32.mrf.mxu0  ;;  %v3206_v61 = vadd.f32 %v12681_v26, %v2850_v24  ;;  %v4080_v26 = vadd.f32 %v12800_v17, %v12784_v25 }
 0x1db   : > { %v12878_v28 = vadd.f32 %v10431_v60, %v12756_v10  ;;  %v12892_v10 = vpop.f32.mrf.mxu1  ;;  %v4075_v2 = vadd.f32 %v12779_v45, %v3719_v20  ;;  %v3721_v15 = vadd.f32 %v12781_v0, %v3202_v5  ;;  %v3204_v60 = vadd.f32 %v12674_v44, %v2848_v35  ;;  %v16180_v5 = vld [vmem:[#allocation15_spill] sm:$0xff] }
 0x1dc   : > { %v12882_v21 = vpop.f32.mrf.mxu0  ;;  %v3725_v20 = vadd.f32 %v12795_v1, %v3206_v61  ;;  %v16181_v1 = vld [vmem:[#allocation45_spill] sm:$0xff] }
 0x1dd   : > { %v12909_v43 = vpop.f32.mrf.mxu1  ;;  %v4077_v27 = vadd.f32 %v12793_v22, %v3721_v15  ;;  %v3723_v62 = vadd.f32 %v12788_v32, %v3204_v60  ;;  %v2498_v22 = vadd.f32 %v12532_v16, %v12528_v58  ;;  %v16184_v60 = vld [vmem:[#allocation89_spill] sm:$0xff] }
 0x1de   : > { %v10486_v53 = vpop.f32.mrf.mxu0  ;;  %v4081_v52 = vadd.f32 %v12821_v23, %v3725_v20 }
 0x1df   : > { %v12896_v46 = vadd.f32 %v10486_v53, %v4074_v59  ;;  %v12927_v4 = vpop.f32.mrf.mxu1  ;;  %v2854_v41 = vadd.f32 %v12691_v56, %v2498_v22 }
 0x1e0   : > { %v4270_v12 = vpop.f32.mrf.mxu0 }
 0x1e1   : > { %v12898_v18 = vadd.f32 %v4270_v12, %v4073_v51  ;;  %v4464_v38 = vsel %vm15723_vm1, %v12896_v46, 0.0  ;;  %v4079_v51 = vadd.f32 %v12807_v63, %v3723_v62  ;;  %v16179_v12 = vld [vmem:[#allocation10_spill] sm:$0xff] }
 0x1e2   : > { %v10489_v39 = vpop.f32.mrf.mxu0  ;;  %v1565_v35 = vadd.f32 %v16180_v5, %v16179_v12  ;;  %v16192_v5 = vld [vmem:[#allocation90_spill] sm:$0xff] }
 0x1e3   : > { %v4463_v14 = vsel %vm15723_vm1, %v12898_v18, 0.0  ;;  %v12914_v42 = vadd.f32 %v10489_v39, %v4076_v11  ;;  %v12947_v39 = vpop.f32.mrf.mxu1  ;;  %v3208_v11 = vadd.f32 %v12688_v7, %v2852_v48  ;;  %v16185_v7 = vld [vmem:[#allocation91_spill] sm:$0xff] }
 0x1e4   : > { %v4280_v40 = vpop.f32.mrf.mxu0  ;;  %v4465_v45 = vadd.f32 %v4464_v38, %v4463_v14  ;;  %v16183_v14 = vld [vmem:[#allocation50_spill] sm:$0xff]  ;;  %v4082_v38 = vadd.f32 %v12814_v9, %v16184_v60  ;;  %v16197_v60 = vld [vmem:[#allocation72_spill] sm:$0xff] }
 0x1e5   : > { %v12916_v54 = vadd.f32 %v4280_v40, %v4075_v2  ;;  %v4468_v8 = vsel %vm15723_vm1, %v12914_v42, 0.0  ;;  %v16182_v2 = vld [vmem:[#allocation47_spill] sm:$0xff]  ;;  %v1983_v24 = vadd.f32 %v16183_v14, %v1565_v35  ;;  %v4084_v35 = vadd.f32 %v12828_v55, %v16192_v5 }
 0x1e6   : > { %v10492_v0 = vpop.f32.mrf.mxu0  ;;  %v2500_v15 = vadd.f32 %v16182_v2, %v16181_v1  ;;  %v16195_v1 = vld [vmem:[#allocation30_spill] sm:$0xff] }
 0x1e7   : > { %v4466_v44 = vsel %vm15723_vm1, %v12916_v54, 0.0  ;;  %v12932_v59 = vadd.f32 %v10492_v0, %v4078_v34  ;;  %v16186_v34 = vld [vmem:[#allocation18_spill] sm:$0xff] }
 0x1e8   : > { %v4467_v53 = vadd.f32 %v4466_v44, %v4465_v45  ;;  %v4290_v6 = vpop.f32.mrf.mxu0  ;;  %v3727_v45 = vadd.f32 %v16185_v7, %v3208_v11  ;;  %v16188_v44 = vld [vmem:[#allocation70_spill] sm:$0xff]  ;;  %v16198_v7 = vld [vmem:[#allocation55_spill] sm:$0xff] }
 0x1e9   : > { %v12934_v37 = vadd.f32 %v4290_v6, %v4077_v27  ;;  %v4472_v17 = vsel %vm15723_vm1, %v12932_v59, 0.0  ;;  %v16187_v27 = vld [vmem:[#allocation22_spill] sm:$0xff]  ;;  %v3210_v61 = vadd.f32 %v16188_v44, %v2854_v41  ;;  %v16200_v44 = vld [vmem:[#allocation92_spill] sm:$0xff] }
 0x1ea   : > { %v4469_v36 = vadd.f32 %v4468_v8, %v4467_v53  ;;  %v10495_v32 = vpop.f32.mrf.mxu0  ;;  %v1575_v62 = vadd.f32 %v16187_v27, %v16186_v34  ;;  %v12968_v53 = vpop.f32.mrf.mxu1  ;;  %v16189_v8 = vld [vmem:[#allocation71_spill] sm:$0xff]  ;;  %v4083_v41 = vadd.f32 %v12835_v33, %v3727_v45 }
 0x1eb   : > { %v4470_v57 = vsel %vm15723_vm1, %v12934_v37, 0.0  ;;  %v12952_v63 = vadd.f32 %v10495_v32, %v4080_v26  ;;  %v2856_v22 = vadd.f32 %v16189_v8, %v2500_v15  ;;  %v16190_v32 = vld [vmem:[#allocation52_spill] sm:$0xff]  ;;  %v16196_v15 = vld [vmem:[#allocation73_spill] sm:$0xff] }
 0x1ec   : > { %v4471_v58 = vadd.f32 %v4470_v57, %v4469_v36  ;;  %v4300_v16 = vpop.f32.mrf.mxu0  ;;  %v2502_v26 = vadd.f32 %v16190_v32, %v1983_v24  ;;  %v12988_v24 = vpop.f32.mrf.mxu1  ;;  %v16203_v32 = vld [vmem:[#allocation33_spill] sm:$0xff] }
 0x1ed   : > { %v12954_v25 = vadd.f32 %v4300_v16, %v4079_v51  ;;  %v4476_v9 = vsel %vm15723_vm1, %v12952_v63, 0.0  ;;  %v16191_v51 = vld [vmem:[#allocation54_spill] sm:$0xff] }
 0x1ee   : > { %v4473_v40 = vadd.f32 %v4472_v17, %v4471_v58  ;;  %v10498_v56 = vpop.f32.mrf.mxu0  ;;  %v1985_v20 = vadd.f32 %v16191_v51, %v1575_v62  ;;  %v16193_v58 = vld [vmem:[#allocation93_spill] sm:$0xff]  ;;  %v2858_v14 = vadd.f32 %v16196_v15, %v2502_v26  ;;  %v16204_v51 = vld [vmem:[#allocation74_spill] sm:$0xff] }
 0x1ef   : > { %v4474_v0 = vsel %vm15723_vm1, %v12954_v25, 0.0  ;;  %v12973_v23 = vadd.f32 %v10498_v56, %v4082_v38  ;;  %v3729_v16 = vadd.f32 %v16193_v58, %v3210_v61  ;;  %v16194_v17 = vld [vmem:[#allocation25_spill] sm:$0xff]  ;;  %v3212_v38 = vadd.f32 %v16197_v60, %v2856_v22 }
 0x1f0   : > { %v4475_v6 = vadd.f32 %v4474_v0, %v4473_v40  ;;  %v4310_v48 = vpop.f32.mrf.mxu0  ;;  %v1585_v2 = vadd.f32 %v16195_v1, %v16194_v17  ;;  %v2504_v45 = vadd.f32 %v16198_v7, %v1985_v20  ;;  %v16199_v0 = vld [vmem:[#allocation12_spill] sm:$0xff]  ;;  %v4086_v61 = vadd.f32 %v12842_v29, %v16200_v44  ;;  %v13008_v20 = vpop.f32.mrf.mxu1  ;;  %v16207_v17 = vld [vmem:[#allocation9_spill] sm:$0xff]  ;;  %v16210_v7 = vld [vmem:[#allocation34_spill] sm:$0xff] }
 0x1f1   : > { %v12975_v36 = vadd.f32 %v4310_v48, %v4081_v52  ;;  %v4480_v55 = vsel %vm15723_vm1, %v12973_v23, 0.0  ;;  %v16201_v48 = vld [vmem:[#allocation95_spill] sm:$0xff]  ;;  %v16209_v60 = vld [vmem:[#allocation97_spill] sm:$0xff] }
 0x1f2   : > { %v4477_v57 = vadd.f32 %v4476_v9, %v4475_v6  ;;  %v10501_v12 = vpop.f32.mrf.mxu0  ;;  %v1987_v34 = vadd.f32 %v16199_v0, %v1585_v2  ;;  %v4085_v6 = vadd.f32 %v12849_v13, %v3729_v16  ;;  %v3731_v8 = vadd.f32 %v16201_v48, %v3212_v38  ;;  %v16202_v9 = vld [vmem:[#allocation31_spill] sm:$0xff]  ;;  %v16206_v16 = vld [vmem:[#allocation6_spill] sm:$0xff] }
 0x1f3   : > { %v4478_v11 = vsel %vm15723_vm1, %v12975_v36, 0.0  ;;  %v12993_v33 = vadd.f32 %v10501_v12, %v4084_v35  ;;  %v1595_v26 = vadd.f32 %v16203_v32, %v16202_v9  ;;  %v16205_v35 = vld [vmem:[#allocation75_spill] sm:$0xff] }
 0x1f4   : > { %v4479_v40 = vadd.f32 %v4478_v11, %v4477_v57  ;;  %v4320_v56 = vpop.f32.mrf.mxu0  ;;  %v3214_v57 = vadd.f32 %v16204_v51, %v2858_v14  ;;  %v2506_v11 = vadd.f32 %v16206_v16, %v1987_v34  ;;  %v16208_v14 = vld [vmem:[#allocation94_spill] sm:$0xff]  ;;  %v13028_v34 = vpop.f32.mrf.mxu1  ;;  %v16215_v32 = vld [vmem:[#allocation7_spill] sm:$0xff] }
 0x1f5   : > { %v12995_v52 = vadd.f32 %v4320_v56, %v4083_v41  ;;  %v2860_v41 = vadd.f32 %v16205_v35, %v2504_v45  ;;  %v4484_v29 = vsel %vm15723_vm1, %v12993_v33, 0.0  ;;  %v1989_v1 = vadd.f32 %v16207_v17, %v1595_v26  ;;  %v16211_v45 = vld [vmem:[#allocation36_spill] sm:$0xff]  ;;  %v16219_v17 = vld [vmem:[#allocation37_spill] sm:$0xff] }
 0x1f6   : > { %v4481_v27 = vadd.f32 %v4480_v55, %v4479_v40  ;;  %v10504_v62 = vpop.f32.mrf.mxu0  ;;  %v4088_v40 = vadd.f32 %v12858_v3, %v16208_v14  ;;  %v4087_v56 = vadd.f32 %v12868_v19, %v3731_v8  ;;  %v3733_v38 = vadd.f32 %v16209_v60, %v3214_v57  ;;  %v16221_v60 = vld [vmem:[#allocation79_spill] sm:$0xff] }
 0x1f7   : > { %v4482_v22 = vsel %vm15723_vm1, %v12995_v52, 0.0  ;;  %v13013_v13 = vadd.f32 %v10504_v62, %v4086_v61  ;;  %v1605_v0 = vadd.f32 %v16211_v45, %v16210_v7 }
 0x1f8   : > { %v4483_v12 = vadd.f32 %v4482_v22, %v4481_v27  ;;  %v4330_v5 = vpop.f32.mrf.mxu0  ;;  %v16212_v27 = vld [vmem:[#allocation77_spill] sm:$0xff]  ;;  %v16214_v22 = vld [vmem:[#allocation19_spill] sm:$0xff]  ;;  %v4089_v35 = vadd.f32 %v12892_v10, %v3733_v38  ;;  %v16222_v38 = vld [vmem:[#allocation16_spill] sm:$0xff] }
 0x1f9   : > { %v13015_v58 = vadd.f32 %v4330_v5, %v4085_v6  ;;  %v2862_v62 = vadd.f32 %v16212_v27, %v2506_v11  ;;  %v16213_v6 = vld [vmem:[#allocation76_spill] sm:$0xff]  ;;  %v4488_v3 = vsel %vm15723_vm1, %v13013_v13, 0.0  ;;  %v2508_v9 = vadd.f32 %v16214_v22, %v1989_v1  ;;  %v4034_v1 = vpop.f32.mrf.mxu1 }
 0x1fa   : > { %v4485_v2 = vadd.f32 %v4484_v29, %v4483_v12  ;;  %v10507_v15 = vpop.f32.mrf.mxu0  ;;  %v3216_v48 = vadd.f32 %v16213_v6, %v2860_v41  ;;  %v1991_v26 = vadd.f32 %v16215_v32, %v1605_v0  ;;  %v16216_v12 = vld [vmem:[#allocation96_spill] sm:$0xff]  ;;  %v16217_v29 = vld [vmem:[#allocation99_spill] sm:$0xff]  ;;  %v16224_v6 = vld [vmem:[#allocation98_spill] sm:$0xff] }
 0x1fb   : > { %v4486_v55 = vsel %vm15723_vm1, %v13015_v58, 0.0  ;;  %v13033_v19 = vadd.f32 %v10507_v15, %v4088_v40  ;;  %v4090_v5 = vadd.f32 %v12880_v49, %v16216_v12  ;;  %v16218_v11 = vld [vmem:[#allocation40_spill] sm:$0xff]  ;;  %v16220_v15 = vld [vmem:[#allocation78_spill] sm:$0xff]  ;;  %v16223_v0 = vld [vmem:[#allocation27_spill] sm:$0xff] }
 0x1fc   : > { %v4487_v44 = vadd.f32 %v4486_v55, %v4485_v2  ;;  %v4340_v61 = vpop.f32.mrf.mxu0  ;;  %v3735_v41 = vadd.f32 %v16217_v29, %v3216_v48  ;;  %v1615_v2 = vadd.f32 %v16219_v17, %v16218_v11  ;;  %v3218_v14 = vadd.f32 %v16220_v15, %v2862_v62  ;;  %v16226_v32 = vld [vmem:[#allocation39_spill] sm:$0xff]  ;;  %v16228_v12 = vld [vmem:[#allocation81_spill] sm:$0xff]  ;;  %v16231_v15 = vld [vmem:[#allocation24_spill] sm:$0xff] }
 0x1fd   : > { %v13035_v8 = vadd.f32 %v4340_v61, %v4087_v56  ;;  %v2864_v55 = vadd.f32 %v16221_v60, %v2508_v9  ;;  %v4492_v49 = vsel %vm15723_vm1, %v13033_v19, 0.0  ;;  %v2510_v45 = vadd.f32 %v16222_v38, %v1991_v26  ;;  %v10475_v26 = vpop.f32.mrf.mxu1  ;;  %v16232_v60 = vld [vmem:[#allocation100_spill] sm:$0xff] }
 0x1fe   : > { %v4489_v51 = vadd.f32 %v4488_v3, %v4487_v44  ;;  %v10510_v57 = vpop.f32.mrf.mxu0  ;;  %v1993_v27 = vadd.f32 %v16223_v0, %v1615_v2  ;;  %v4092_v62 = vadd.f32 %v12909_v43, %v16224_v6  ;;  %v4091_v48 = vadd.f32 %v12927_v4, %v3735_v41  ;;  %v16225_v3 = vld [vmem:[#allocation101_spill] sm:$0xff] }
 0x1ff   : > { %v4490_v16 = vsel %vm15723_vm1, %v13035_v8, 0.0  ;;  %v13051_v7 = vadd.f32 %v10510_v57, %v4090_v5  ;;  %v3737_v22 = vadd.f32 %v16225_v3, %v3218_v14  ;;  %v2866_v5 = vadd.f32 %v16228_v12, %v2510_v45  ;;  %v16230_v41 = vld [vmem:[#allocation13_spill] sm:$0xff]  ;;  %v16233_v45 = vld [vmem:[#allocation103_spill] sm:$0xff] }
 0x200   : > { %v4491_v40 = vadd.f32 %v4490_v16, %v4489_v51  ;;  %v4350_v56 = vpop.f32.mrf.mxu0  ;;  %v16227_v51 = vld [vmem:[#allocation69_spill] sm:$0xff]  ;;  %v16229_v16 = vld [vmem:[#allocation80_spill] sm:$0xff]  ;;  %v2512_v2 = vadd.f32 %v16230_v41, %v1993_v27  ;;  %v4044_v27 = vpop.f32.mrf.mxu1 }
 0x201   : > { %v13053_v10 = vadd.f32 %v4350_v56, %v4089_v35  ;;  %v1625_v57 = vadd.f32 %v16227_v51, %v16226_v32  ;;  %v3220_v11 = vadd.f32 %v16229_v16, %v2864_v55  ;;  %v4496_v43 = vsel %vm15723_vm1, %v13051_v7, 0.0  ;;  %v16237_v32 = vld [vmem:[#allocation83_spill] sm:$0xff] }
 0x202   : > { %v4493_v44 = vadd.f32 %v4492_v49, %v4491_v40  ;;  %v10513_v61 = vpop.f32.mrf.mxu0  ;;  %v4094_v49 = vadd.f32 %v12947_v39, %v16232_v60  ;;  %v4093_v38 = vadd.f32 %v12968_v53, %v3737_v22  ;;  %v2868_v51 = vadd.f32 %v16237_v32, %v2512_v2  ;;  %v16238_v22 = vld [vmem:[#allocation21_spill] sm:$0xff] }
 0x203   : > { %v4494_v9 = vsel %vm15723_vm1, %v13053_v10, 0.0  ;;  %v13069_v17 = vadd.f32 %v10513_v61, %v4092_v62  ;;  %v1995_v14 = vadd.f32 %v16231_v15, %v1625_v57  ;;  %v3739_v55 = vadd.f32 %v16233_v45, %v3220_v11  ;;  %v16235_v61 = vld [vmem:[#allocation41_spill] sm:$0xff]  ;;  %v16236_v62 = vld [vmem:[#allocation82_spill] sm:$0xff] }
 0x204   : > { %v4495_v35 = vadd.f32 %v4494_v9, %v4493_v44  ;;  %v4360_v29 = vpop.f32.mrf.mxu0  ;;  %v16234_v44 = vld [vmem:[#allocation46_spill] sm:$0xff]  ;;  %v16241_v15 = vld [vmem:[#allocation105_spill] sm:$0xff] }
 0x205   : > { %v13071_v4 = vadd.f32 %v4360_v29, %v4091_v48  ;;  %v1635_v6 = vadd.f32 %v16235_v61, %v16234_v44  ;;  %v3222_v48 = vadd.f32 %v16236_v62, %v2866_v5  ;;  %v4500_v39 = vsel %vm15723_vm1, %v13069_v17, 0.0 }
 0x206   : > { %v4497_v40 = vadd.f32 %v4496_v43, %v4495_v35  ;;  %v10516_v56 = vpop.f32.mrf.mxu0  ;;  %v2514_v12 = vadd.f32 %v16238_v22, %v1995_v14  ;;  %v16239_v35 = vld [vmem:[#allocation28_spill] sm:$0xff]  ;;  %v16240_v43 = vld [vmem:[#allocation102_spill] sm:$0xff]  ;;  %v4095_v41 = vadd.f32 %v13008_v20, %v3739_v55  ;;  %v16244_v20 = vld [vmem:[#allocation51_spill] sm:$0xff] }
 0x207   : > { %v4498_v0 = vsel %vm15723_vm1, %v13071_v4, 0.0  ;;  %v13087_v57 = vadd.f32 %v10516_v56, %v4094_v49  ;;  %v1997_v29 = vadd.f32 %v16239_v35, %v1635_v6  ;;  %v4096_v5 = vadd.f32 %v12988_v24, %v16240_v43  ;;  %v16242_v56 = vld [vmem:[#allocation85_spill] sm:$0xff]  ;;  %v10478_v49 = vpop.f32.mrf.mxu1  ;;  %v16243_v14 = vld [vmem:[#allocation84_spill] sm:$0xff] }
 0x208   : > { %v4499_v3 = vadd.f32 %v4498_v0, %v4497_v40  ;;  %v4370_v9 = vpop.f32.mrf.mxu0  ;;  %v3741_v2 = vadd.f32 %v16241_v15, %v3222_v48  ;;  %v2870_v60 = vadd.f32 %v16242_v56, %v2514_v12  ;;  %v3224_v0 = vadd.f32 %v16243_v14, %v2868_v51  ;;  %v16245_v48 = vld [vmem:[#allocation104_spill] sm:$0xff] }
 0x209   : > { %v13089_v53 = vadd.f32 %v4370_v9, %v4093_v38  ;;  %v4504_v44 = vsel %vm15723_vm1, %v13087_v57, 0.0  ;;  %v2516_v55 = vadd.f32 %v16244_v20, %v1997_v29  ;;  %v4054_v12 = vpop.f32.mrf.mxu1 }
 0x20a   : > { %v4501_v16 = vadd.f32 %v4500_v39, %v4499_v3  ;;  %v10519_v11 = vpop.f32.mrf.mxu0  ;;  %v4098_v3 = vadd.f32 %v13028_v34, %v16245_v48  ;;  %v4097_v9 = vadd.f32 %v4034_v1, %v3741_v2  ;;  %v3743_v32 = vadd.f32 %v12860_v47, %v3224_v0  ;;  %v16246_v39 = vld [vmem:[#allocation86_spill] sm:$0xff] }
 0x20b   : > { %v4502_v40 = vsel %vm15723_vm1, %v13089_v53, 0.0  ;;  %v13103_v61 = vadd.f32 %v10519_v11, %v4096_v5  ;;  %v3226_v22 = vadd.f32 %v16246_v39, %v2870_v60  ;;  %v16247_v11 = vld [vmem:[#allocation87_spill] sm:$0xff]  ;;  %v4100_v47 = vadd.f32 %v10475_v26, %v12856_v50  ;;  %v10481_v56 = vpop.f32.mrf.mxu1 }
 0x20c   : > { %v4503_v38 = vadd.f32 %v4502_v40, %v4501_v16  ;;  %v4380_v45 = vpop.f32.mrf.mxu0  ;;  %v2872_v43 = vadd.f32 %v16247_v11, %v2516_v55  ;;  %v4099_v15 = vadd.f32 %v4044_v27, %v3743_v32 }
 0x20d   : > { %v13105_v24 = vadd.f32 %v4380_v45, %v4095_v41  ;;  %v4508_v29 = vsel %vm15723_vm1, %v13103_v61, 0.0  ;;  %v3745_v2 = vadd.f32 %v12870_v30, %v3226_v22  ;;  %v16248_v45 = vld [vmem:[#allocation88_spill] sm:$0xff]  ;;  %v4064_v27 = vpop.f32.mrf.mxu1 }
 0x20e   : > { %v4505_v6 = vadd.f32 %v4504_v44, %v4503_v38  ;;  %v10522_v62 = vpop.f32.mrf.mxu0  ;;  %v3228_v14 = vadd.f32 %v16248_v45, %v2872_v43 }
 0x20f   : > { %v4506_v51 = vsel %vm15723_vm1, %v13105_v24, 0.0  ;;  %v13117_v5 = vadd.f32 %v10522_v62, %v4098_v3  ;;  %v4102_v62 = vadd.f32 %v10478_v49, %v12866_v31  ;;  %v4101_v50 = vadd.f32 %v4054_v12, %v3745_v2 }
 0x210   : > { %v4507_v35 = vadd.f32 %v4506_v51, %v4505_v6  ;;  %v4390_v16 = vpop.f32.mrf.mxu0  ;;  %v3747_v26 = vadd.f32 %v12882_v21, %v3228_v14 }
 0x211   : > { %v4453_v41 = vadd.f32 %v4390_v16, %v4097_v9  ;;  %v4512_v0 = vsel %vm15723_vm1, %v13117_v5, 0.0 }
 0x212   : > { %v4509_v34 = vadd.f32 %v4508_v29, %v4507_v35  ;;  %v10525_v1 = vpop.f32.mrf.mxu0  ;;  %v4104_v35 = vadd.f32 %v10481_v56, %v12878_v28  ;;  %v4103_v16 = vadd.f32 %v4064_v27, %v3747_v26 }
 0x213   : > { %v4510_v40 = vsel %vm15723_vm1, %v4453_v41, 0.0  ;;  %v4456_v44 = vadd.f32 %v10525_v1, %v4100_v47 }
 0x214   : > { %v4511_v60 = vadd.f32 %v4510_v40, %v4509_v34  ;;  %v4400_v38 = vpop.f32.mrf.mxu0 }
 0x215   : > { %v4455_v20 = vadd.f32 %v4400_v38, %v4099_v15  ;;  %v4516_v9 = vsel %vm15723_vm1, %v4456_v44, 0.0 }
 0x216   : > { %v4513_v55 = vadd.f32 %v4512_v0, %v4511_v60  ;;  %v10528_v6 = vpop.f32.mrf.mxu0 }
 0x217   : > { %v4514_v30 = vsel %vm15723_vm1, %v4455_v20, 0.0  ;;  %v4458_v32 = vadd.f32 %v10528_v6, %v4102_v62 }
 0x218   : > { %v4515_v48 = vadd.f32 %v4514_v30, %v4513_v55  ;;  %v4410_v3 = vpop.f32.mrf.mxu0 }
 0x219   : > { %v4457_v51 = vadd.f32 %v4410_v3, %v4101_v50  ;;  %v4520_v21 = vsel %vm15723_vm1, %v4458_v32, 0.0 }
 0x21a   : > { %v4517_v39 = vadd.f32 %v4516_v9, %v4515_v48  ;;  %v10531_v22 = vpop.f32.mrf.mxu0 }
 0x21b   : > { %v4518_v11 = vsel %vm15723_vm1, %v4457_v51, 0.0  ;;  %v4460_v12 = vadd.f32 %v10531_v22, %v4104_v35 }
 0x21c   : > { %v4519_v31 = vadd.f32 %v4518_v11, %v4517_v39  ;;  %v4420_v49 = vpop.f32.mrf.mxu0 }
 0x21d   : > { %v4459_v43 = vadd.f32 %v4420_v49, %v4103_v16  ;;  %v4524_v47 = vsel %vm15723_vm1, %v4460_v12, 0.0 }
 0x21e   : > { %v4521_v29 = vadd.f32 %v4520_v21, %v4519_v31 }
 0x21f   : > { %v4522_v34 = vsel %vm15723_vm1, %v4459_v43, 0.0  ;;  %vm16249_vm1 = vcmask 1043456  }
 0x220   : > { %v4523_v1 = vadd.f32 %v4522_v34, %v4521_v29  ;;  %vm16250_vm4 = vmmov %vm16249_vm1 }
 0x221   : > { %vm16251_vm12 = vmmov %vm16249_vm1 }
 0x222   : > { %v4525_v15 = vadd.f32 %v4524_v47, %v4523_v1  ;;  %vm16252_vm11 = vmmov %vm16249_vm1 }
 0x224   : > { %v4526_v2 = vrot.slane %v4525_v15, 4 }
 0x226   : > { %v4527_v40 = vadd.f32 %v4526_v2, %v4525_v15 }
 0x228   : > { %v4528_v60 = vrot.slane %v4527_v40, 2 }
 0x22a   : > { %v4529_v28 = vadd.f32 %v4528_v60, %v4527_v40 }
 0x22c   : > { %v4530_v56 = vrot.slane %v4529_v28, 1 }
 0x22e   : > { %v4531_v38 = vadd.f32 %v4530_v56, %v4529_v28 }
 0x230   : > { %v4532_v45 = vmul.f32 0.00390625, %v4531_v38 }
 0x232   : > { %v13135_v14 = vsub.f32 %v12995_v52, %v4532_v45  ;;  %v13138_v0 = vsub.f32 %v12993_v33, %v4532_v45  ;;  %v13141_v55 = vsub.f32 %v13015_v58, %v4532_v45  ;;  %v13144_v6 = vsub.f32 %v13013_v13, %v4532_v45 }
 0x233   : > { %v13147_v62 = vsub.f32 %v13035_v8, %v4532_v45  ;;  %v13150_v50 = vsub.f32 %v13033_v19, %v4532_v45  ;;  %v13153_v26 = vsub.f32 %v13053_v10, %v4532_v45  ;;  %v13156_v52 = vsub.f32 %v13051_v7, %v4532_v45 }
 0x234   : > { %v13159_v33 = vsub.f32 %v13071_v4, %v4532_v45  ;;  %v13162_v58 = vsub.f32 %v13069_v17, %v4532_v45  ;;  %v13165_v13 = vsub.f32 %v13089_v53, %v4532_v45  ;;  %v13168_v8 = vsub.f32 %v13087_v57, %v4532_v45 }
 0x235   : > { %v13171_v19 = vsub.f32 %v13105_v24, %v4532_v45  ;;  %v13174_v10 = vsub.f32 %v13103_v61, %v4532_v45  ;;  %v13176_v7 = vsub.f32 %v4453_v41, %v4532_v45  ;;  %v13179_v4 = vsub.f32 %v13117_v5, %v4532_v45 }
 0x236   : > { %v13181_v30 = vsub.f32 %v4455_v20, %v4532_v45  ;;  %v13183_v17 = vsub.f32 %v4456_v44, %v4532_v45  ;;  %v13185_v53 = vsub.f32 %v4457_v51, %v4532_v45  ;;  %v13187_v27 = vsub.f32 %v4458_v32, %v4532_v45  ;;  %v4975_v44 = vld [vmem:[%s15554_s4 + $0x4] sm:$0xf]  ;;  %v4974_v20 = vld [vmem:[%s15554_s4] sm:$0xf] }
 0x237   : > { %v13189_v57 = vsub.f32 %v4459_v43, %v4532_v45  ;;  %v13191_v24 = vsub.f32 %v4460_v12, %v4532_v45  ;;  %v13194_v61 = vsub.f32 %v12898_v18, %v4532_v45  ;;  %v13197_v41 = vsub.f32 %v12896_v46, %v4532_v45  ;;  %10532 = vmatprep.subr.msk.mxu1 %vm16249_vm1, %v4975_v44 }
 0x238   : > { %v13200_v5 = vsub.f32 %v12916_v54, %v4532_v45  ;;  %v13210_v48 = vsub.f32 %v12914_v42, %v4532_v45  ;;  %10533 = vmatpush3.msk.msra.mxu1 %vm16250_vm4, %v4975_v44  ;;  %v13220_v54 = vld [vmem:[%s15554_s4 + $0x8] sm:$0xf]  ;;  %10582 = vmatprep.subr.msk.mxu0 %vm16251_vm12, %v4974_v20  ;;  %v13224_v3 = vsub.f32 %v12934_v37, %v4532_v45  ;;  %vm16253_vm4 = vcmask 31744  }
 0x239   : > { %v4565_v46 = vmul.f32 %v13194_v61, %v13194_v61  ;;  %v4566_v18 = vmul.f32 %v13197_v41, %v13197_v41  ;;  %10583 = vmatpush3.msk.msra.mxu0 %vm16249_vm1, %v4974_v20  ;;  %10632 = vmatprep.subr.msk.mxu1 %vm16252_vm11, %v13220_v54  ;;  %v13232_v9 = vsub.f32 %v12932_v59, %v4532_v45  ;;  %vm16254_vm12 = vmmov %vm16253_vm4 }
 0x23a   : > { %v4567_v42 = vmul.f32 %v13200_v5, %v13200_v5  ;;  %v4568_v32 = vmul.f32 %v13210_v48, %v13210_v48  ;;  %v13239_v22 = vsub.f32 %v12954_v25, %v4532_v45  ;;  %v4569_v35 = vmul.f32 %v13224_v3, %v13224_v3  ;;  %vm16255_vm1 = vmmov %vm16253_vm4 }
 0x23b   : > { %v4597_v51 = vsel %vm16253_vm4, %v4565_v46, 0.0  ;;  %v4598_v39 = vsel %vm16254_vm12, %v4566_v18, 0.0  ;;  %v13245_v59 = vsub.f32 %v12952_v63, %v4532_v45  ;;  %v4570_v31 = vmul.f32 %v13232_v9, %v13232_v9  ;;  %vm16256_vm11 = vmmov %vm16255_vm1 }
 0x23c   : > { %v4599_v37 = vadd.f32 %v4598_v39, %v4597_v51  ;;  %v4600_v16 = vsel %vm16255_vm1, %v4567_v42, 0.0  ;;  %v4602_v49 = vsel %vm16256_vm11, %v4568_v32, 0.0  ;;  %v13251_v12 = vsub.f32 %v12975_v36, %v4532_v45  ;;  %vm16257_vm4 = vmmov %vm16255_vm1 }
 0x23d   : > { %v4571_v25 = vmul.f32 %v13239_v22, %v13239_v22  ;;  %v4604_v43 = vsel %vm16257_vm4, %v4569_v35, 0.0  ;;  %v13257_v34 = vsub.f32 %v12973_v23, %v4532_v45  ;;  %v4572_v63 = vmul.f32 %v13245_v59, %v13245_v59  ;;  %vm16258_vm12 = vmmov %vm16255_vm1 }
 0x23e   : > { %v4601_v11 = vadd.f32 %v4600_v16, %v4599_v37  ;;  %v4606_v1 = vsel %vm16258_vm12, %v4570_v31, 0.0  ;;  %v4573_v15 = vmul.f32 %v13251_v12, %v13251_v12  ;;  %vm16259_vm11 = vmmov %vm16255_vm1  ;;  %v4575_v23 = vmul.f32 %v13135_v14, %v13135_v14 }
 0x23f   : > { %v4608_v36 = vsel %vm16255_vm1, %v4571_v25, 0.0  ;;  %v4574_v40 = vmul.f32 %v13257_v34, %v13257_v34  ;;  %v4610_v60 = vsel %vm16259_vm11, %v4572_v63, 0.0  ;;  %vm16260_vm4 = vmmov %vm16255_vm1  ;;  %v4576_v45 = vmul.f32 %v13138_v0, %v13138_v0 }
 0x240   : > { %v4603_v21 = vadd.f32 %v4602_v49, %v4601_v11  ;;  %v4612_v56 = vsel %vm16260_vm4, %v4573_v15, 0.0  ;;  %vm16261_vm12 = vmmov %vm16255_vm1  ;;  %v4577_v46 = vmul.f32 %v13141_v55, %v13141_v55  ;;  %v4616_v18 = vsel %vm16255_vm1, %v4575_v23, 0.0 }
 0x241   : > { %v4614_v44 = vsel %vm16261_vm12, %v4574_v40, 0.0  ;;  %v4578_v32 = vmul.f32 %v13144_v6, %v13144_v6  ;;  %vm16262_vm11 = vmmov %vm16255_vm1  ;;  %v4579_v37 = vmul.f32 %v13147_v62, %v13147_v62  ;;  %v4580_v11 = vmul.f32 %v13150_v50, %v13150_v50 }
 0x242   : > { %v4605_v29 = vadd.f32 %v4604_v43, %v4603_v21  ;;  %v4618_v51 = vsel %vm16262_vm11, %v4576_v45, 0.0  ;;  %vm16263_vm4 = vmmov %vm16255_vm1  ;;  %v4581_v21 = vmul.f32 %v13153_v26, %v13153_v26 }
 0x243   : > { %v4620_v35 = vsel %vm16263_vm4, %v4577_v46, 0.0  ;;  %vm16264_vm12 = vmmov %vm16255_vm1  ;;  %v4624_v25 = vsel %vm16255_vm1, %v4579_v37, 0.0 }
 0x244   : > { %v4607_v47 = vadd.f32 %v4606_v1, %v4605_v29  ;;  %v4622_v31 = vsel %vm16264_vm12, %v4578_v32, 0.0  ;;  %v4582_v29 = vmul.f32 %v13156_v52, %v13156_v52  ;;  %vm16265_vm11 = vmmov %vm16255_vm1 }
 0x245   : > { %v4626_v63 = vsel %vm16265_vm11, %v4580_v11, 0.0  ;;  %vm16266_vm4 = vmmov %vm16255_vm1 }
 0x246   : > { %v4609_v2 = vadd.f32 %v4608_v36, %v4607_v47  ;;  %v4583_v47 = vmul.f32 %v13159_v33, %v13159_v33  ;;  %v4628_v15 = vsel %vm16266_vm4, %v4581_v21, 0.0  ;;  %vm16267_vm12 = vmmov %vm16255_vm1 }
 0x247   : > { %v4630_v40 = vsel %vm16267_vm12, %v4582_v29, 0.0  ;;  %vm16268_vm11 = vmmov %vm16255_vm1 }
 0x248   : > { %v4611_v28 = vadd.f32 %v4610_v60, %v4609_v2  ;;  %v4584_v2 = vmul.f32 %v13162_v58, %v13162_v58  ;;  %v4632_v23 = vsel %vm16255_vm1, %v4583_v47, 0.0  ;;  %vm16269_vm4 = vmmov %vm16255_vm1 }
 0x249   : > { %vm16270_vm12 = vmmov %vm16255_vm1 }
 0x24a   : > { %v4613_v38 = vadd.f32 %v4612_v56, %v4611_v28  ;;  %v4585_v28 = vmul.f32 %v13165_v13, %v13165_v13  ;;  %v4634_v45 = vsel %vm16268_vm11, %v4584_v2, 0.0  ;;  %vm16271_vm11 = vmmov %vm16255_vm1 }
 0x24b   : > { %vm16278_vm10 = vmmov %vm16255_vm1 }
 0x24c   : > { %v4615_v20 = vadd.f32 %v4614_v44, %v4613_v38  ;;  %v4586_v38 = vmul.f32 %v13168_v8, %v13168_v8  ;;  %v4636_v46 = vsel %vm16269_vm4, %v4585_v28, 0.0  ;;  %vm16272_vm4 = vmmov %vm16255_vm1 }
 0x24d   : > { %vm16285_vm9 = vmmov %vm16255_vm1 }
 0x24e   : > { %v4617_v42 = vadd.f32 %v4616_v18, %v4615_v20  ;;  %v4587_v20 = vmul.f32 %v13171_v19, %v13171_v19  ;;  %v4638_v32 = vsel %vm16270_vm12, %v4586_v38, 0.0  ;;  %vm16273_vm12 = vmmov %vm16255_vm1 }
 0x24f   : > { %vm16286_vm8 = vmmov %vm16255_vm1 }
 0x250   : > { %v4619_v39 = vadd.f32 %v4618_v51, %v4617_v42  ;;  %v4588_v42 = vmul.f32 %v13174_v10, %v13174_v10  ;;  %v4640_v37 = vsel %vm16255_vm1, %v4587_v20, 0.0  ;;  %v13338_v20 = vld [vmem:[%s15554_s4 + $0xc] sm:$0xf]  ;;  %vm16287_vm7 = vmmov %vm16255_vm1 }
 0x251   : > { %vm16288_vm6 = vmmov %vm16255_vm1 }
 0x252   : > { %v4621_v16 = vadd.f32 %v4620_v35, %v4619_v39  ;;  %v4589_v39 = vmul.f32 %v13176_v7, %v13176_v7  ;;  %v4642_v11 = vsel %vm16271_vm11, %v4588_v42, 0.0  ;;  %vm16274_vm11 = vmmov %vm16255_vm1 }
 0x253   : > { %vm16307_vm2 = vmmov %vm16255_vm1 }
 0x254   : > { %v4623_v49 = vadd.f32 %v4622_v31, %v4621_v16  ;;  %v4590_v16 = vmul.f32 %v13179_v4, %v13179_v4  ;;  %v4644_v21 = vsel %vm16272_vm4, %v4589_v39, 0.0  ;;  %vm16275_vm4 = vmmov %vm16255_vm1 }
 0x255   : > { %vm16308_vm0 = vmmov %vm16255_vm1 }
 0x256   : > { %v4625_v43 = vadd.f32 %v4624_v25, %v4623_v49  ;;  %v4591_v49 = vmul.f32 %v13181_v30, %v13181_v30  ;;  %v4646_v29 = vsel %vm16273_vm12, %v4590_v16, 0.0  ;;  %vm16276_vm12 = vmmov %vm16255_vm1 }
 0x258   : > { %v4627_v1 = vadd.f32 %v4626_v63, %v4625_v43  ;;  %v4592_v43 = vmul.f32 %v13183_v17, %v13183_v17  ;;  %v4648_v47 = vsel %vm16255_vm1, %v4591_v49, 0.0  ;;  %v4461_v49 = vld [vmem:[%s15552_s2] sm:$0x1] }
 0x25a   : > { %v4629_v36 = vadd.f32 %v4628_v15, %v4627_v1  ;;  %v4593_v1 = vmul.f32 %v13185_v53, %v13185_v53  ;;  %v4650_v2 = vsel %vm16274_vm11, %v4592_v43, 0.0  ;;  %vm16277_vm11 = vcmask 1043456  }
 0x25b   : > { %10682 = vmatprep.subr.msk.mxu0 %vm16277_vm11, %v13338_v20  ;;  %vm16283_vm11 = vmmov %vm16255_vm1 }
 0x25c   : > { %v4631_v60 = vadd.f32 %v4630_v40, %v4629_v36  ;;  %v4594_v36 = vmul.f32 %v13187_v27, %v13187_v27  ;;  %v4652_v28 = vsel %vm16275_vm4, %v4593_v1, 0.0  ;;  %v13352_v1 = vld [vmem:[%s15553_s3] ss:$0 sm:$0xff]  ;;  %vm16281_vm4 = vmmov %vm16255_vm1 }
 0x25e   : > { %v4633_v56 = vadd.f32 %v4632_v23, %v4631_v60  ;;  %v4595_v60 = vmul.f32 %v13189_v57, %v13189_v57  ;;  %v4654_v38 = vsel %vm16276_vm12, %v4594_v36, 0.0  ;;  %vm16282_vm12 = vmmov %vm16255_vm1 }
 0x260   : > { %v4635_v44 = vadd.f32 %v4634_v45, %v4633_v56  ;;  %v4596_v56 = vmul.f32 %v13191_v24, %v13191_v24 }
 0x262   : > { %v4637_v18 = vadd.f32 %v4636_v46, %v4635_v44  ;;  %v4656_v44 = vsel %vm16255_vm1, %v4595_v60, 0.0 }
 0x264   : > { %v4639_v51 = vadd.f32 %v4638_v32, %v4637_v18  ;;  %v4658_v18 = vsel %vm16278_vm10, %v4596_v56, 0.0  ;;  %vm16280_vm10 = vmmov %vm16255_vm1 }
 0x266   : > { %v4641_v35 = vadd.f32 %v4640_v37, %v4639_v51 }
 0x268   : > { %v4643_v31 = vadd.f32 %v4642_v11, %v4641_v35 }
 0x26a   : > { %v4645_v25 = vadd.f32 %v4644_v21, %v4643_v31  ;;  %v16279_v21 = vld [vmem:[#allocation3_spill] sm:$0xff] }
 0x26c   : > { %v4647_v63 = vadd.f32 %v4646_v29, %v4645_v25  ;;  %v15740_v25 = vsub.s32 0, %v16279_v21 }
 0x26e   : > { %v4649_v15 = vadd.f32 %v4648_v47, %v4647_v63 }
 0x270   : > { %v4651_v40 = vadd.f32 %v4650_v2, %v4649_v15 }
 0x272   : > { %v4653_v23 = vadd.f32 %v4652_v28, %v4651_v40 }
 0x274   : > { %v4655_v45 = vadd.f32 %v4654_v38, %v4653_v23 }
 0x276   : > { %v4657_v46 = vadd.f32 %v4656_v44, %v4655_v45 }
 0x278   : > { %v4659_v42 = vadd.f32 %v4658_v18, %v4657_v46 }
 0x27a   : > { %v4660_v32 = vrot.slane %v4659_v42, 4 }
 0x27c   : > { %v4661_v51 = vadd.f32 %v4660_v32, %v4659_v42 }
 0x27e   : > { %v4662_v39 = vrot.slane %v4661_v51, 2 }
 0x280   : > { %v4663_v37 = vadd.f32 %v4662_v39, %v4661_v51 }
 0x282   : > { %v4664_v35 = vrot.slane %v4663_v37, 1 }
 0x284   : > { %v4665_v16 = vadd.f32 %v4664_v35, %v4663_v37 }
 0x286   : > { %v4666_v11 = vmul.f32 0.00390625, %v4665_v16 }
 0x288   : > { %v4667_v31 = vadd.f32 1e-05, %v4666_v11 }
 0x28a   : > { %10991 = vrsqrt.f32 %v4667_v31 }
 0x297   : > { %v10992_v43 = vpop.eup %10991 }
 0x298   : > { %v4669_v29 = vmul.f32 %v10992_v43, %v4461_v49 }
 0x29a   : > { %v4674_v63 = vrot.slane %v4669_v29, %v15740_v25 }
 0x29c   : > { %v4706_v47 = vmul.f32 %v4674_v63, %v13189_v57  ;;  %v4676_v15 = vmul.f32 %v4674_v63, %v13194_v61  ;;  %v4677_v36 = vmul.f32 %v4674_v63, %v13197_v41  ;;  %v4678_v2 = vmul.f32 %v4674_v63, %v13200_v5 }
 0x29d   : > { %v4679_v40 = vmul.f32 %v4674_v63, %v13210_v48  ;;  %v4680_v60 = vmul.f32 %v4674_v63, %v13224_v3  ;;  %v4681_v28 = vmul.f32 %v4674_v63, %v13232_v9  ;;  %v4682_v23 = vmul.f32 %v4674_v63, %v13239_v22 }
 0x29e   : > { %v4744_v56 = vadd.f32 %v13352_v1, %v4706_v47  ;;  %v4683_v38 = vmul.f32 %v4674_v63, %v13245_v59  ;;  %v4684_v57 = vmul.f32 %v4674_v63, %v13251_v12  ;;  %v4685_v61 = vmul.f32 %v4674_v63, %v13257_v34 }
 0x29f   : > { %v4686_v41 = vmul.f32 %v4674_v63, %v13135_v14  ;;  %v4687_v5 = vmul.f32 %v4674_v63, %v13138_v0  ;;  %v4688_v48 = vmul.f32 %v4674_v63, %v13141_v55  ;;  %v4689_v3 = vmul.f32 %v4674_v63, %v13144_v6 }
 0x2a0   : > { %v4776_v45 = vmax.f32 %v4744_v56, 0.0  ;;  %v4690_v9 = vmul.f32 %v4674_v63, %v13147_v62  ;;  %v4691_v22 = vmul.f32 %v4674_v63, %v13150_v50  ;;  %v4692_v44 = vmul.f32 %v4674_v63, %v13153_v26 }
 0x2a1   : > { %v4693_v59 = vmul.f32 %v4674_v63, %v13156_v52  ;;  %v4694_v12 = vmul.f32 %v4674_v63, %v13159_v33  ;;  %v4695_v34 = vmul.f32 %v4674_v63, %v13162_v58  ;;  %v4696_v14 = vmul.f32 %v4674_v63, %v13165_v13 }
 0x2a2   : > { %v4697_v0 = vmul.f32 %v4674_v63, %v13168_v8  ;;  %v4698_v55 = vmul.f32 %v4674_v63, %v13171_v19  ;;  %v4699_v6 = vmul.f32 %v4674_v63, %v13174_v10  ;;  %v4700_v62 = vmul.f32 %v4674_v63, %v13176_v7  ;;  %4810 = vst.msk [vmem:[#allocation2 + $0x108] sm:$0xff] %vm16280_vm10, %v4776_v45  ;;  %vm16284_vm10 = vmmov %vm16255_vm1 }
 0x2a3   : > { %v4701_v50 = vmul.f32 %v4674_v63, %v13179_v4  ;;  %v4702_v26 = vmul.f32 %v4674_v63, %v13181_v30  ;;  %v4703_v52 = vmul.f32 %v4674_v63, %v13183_v17  ;;  %v4704_v33 = vmul.f32 %v4674_v63, %v13185_v53 }
 0x2a4   : > { %v4705_v58 = vmul.f32 %v4674_v63, %v13187_v27  ;;  %v4707_v13 = vmul.f32 %v4674_v63, %v13191_v24  ;;  %v4714_v8 = vadd.f32 %v13352_v1, %v4676_v15  ;;  %v4715_v19 = vadd.f32 %v13352_v1, %v4677_v36 }
 0x2a5   : > { %v4716_v10 = vadd.f32 %v13352_v1, %v4678_v2  ;;  %v4717_v7 = vadd.f32 %v13352_v1, %v4679_v40  ;;  %v4718_v4 = vadd.f32 %v13352_v1, %v4680_v60  ;;  %v4719_v30 = vadd.f32 %v13352_v1, %v4681_v28 }
 0x2a6   : > { %v4720_v17 = vadd.f32 %v13352_v1, %v4682_v23  ;;  %v4721_v53 = vadd.f32 %v13352_v1, %v4683_v38  ;;  %v4722_v27 = vadd.f32 %v13352_v1, %v4684_v57  ;;  %v4723_v24 = vadd.f32 %v13352_v1, %v4685_v61 }
 0x2a7   : > { %v4724_v46 = vadd.f32 %v13352_v1, %v4686_v41  ;;  %v4725_v18 = vadd.f32 %v13352_v1, %v4687_v5  ;;  %v4726_v42 = vadd.f32 %v13352_v1, %v4688_v48  ;;  %v4727_v32 = vadd.f32 %v13352_v1, %v4689_v3 }
 0x2a8   : > { %v4728_v51 = vadd.f32 %v13352_v1, %v4690_v9  ;;  %v4729_v39 = vadd.f32 %v13352_v1, %v4691_v22  ;;  %v4730_v37 = vadd.f32 %v13352_v1, %v4692_v44  ;;  %v4731_v35 = vadd.f32 %v13352_v1, %v4693_v59 }
 0x2a9   : > { %v4732_v16 = vadd.f32 %v13352_v1, %v4694_v12  ;;  %v13408_v11 = vadd.f32 %v13352_v1, %v4695_v34  ;;  %v13411_v31 = vadd.f32 %v13352_v1, %v4696_v14  ;;  %v13414_v49 = vadd.f32 %v13352_v1, %v4697_v0 }
 0x2aa   : > { %v13417_v43 = vadd.f32 %v13352_v1, %v4698_v55  ;;  %v13420_v29 = vadd.f32 %v13352_v1, %v4699_v6  ;;  %v13423_v63 = vadd.f32 %v13352_v1, %v4700_v62  ;;  %v13426_v47 = vadd.f32 %v13352_v1, %v4701_v50 }
 0x2ab   : > { %v13429_v15 = vadd.f32 %v13352_v1, %v4702_v26  ;;  %v13432_v36 = vadd.f32 %v13352_v1, %v4703_v52  ;;  %v13435_v2 = vadd.f32 %v13352_v1, %v4704_v33  ;;  %v13438_v40 = vadd.f32 %v13352_v1, %v4705_v58 }
 0x2ac   : > { %v13441_v60 = vadd.f32 %v13352_v1, %v4707_v13  ;;  %v4746_v28 = vmax.f32 %v4714_v8, 0.0  ;;  %v4747_v23 = vmax.f32 %v4715_v19, 0.0  ;;  %v4748_v56 = vmax.f32 %v4716_v10, 0.0 }
 0x2ad   : > { %v4749_v38 = vmax.f32 %v4717_v7, 0.0  ;;  %v4750_v57 = vmax.f32 %v4718_v4, 0.0  ;;  %v4751_v61 = vmax.f32 %v4719_v30, 0.0  ;;  %v4752_v41 = vmax.f32 %v4720_v17, 0.0  ;;  %v16314_v17 = vld [vmem:[#allocation4_spill] sm:$0xff] }
 0x2ae   : > { %v4753_v5 = vmax.f32 %v4721_v53, 0.0  ;;  %v4754_v48 = vmax.f32 %v4722_v27, 0.0  ;;  %v4755_v3 = vmax.f32 %v4723_v24, 0.0  ;;  %v4756_v45 = vmax.f32 %v4724_v46, 0.0  ;;  %4778 = vst.msk [vmem:[#allocation2 + $0x8] sm:$0xff] %vm16281_vm4, %v4748_v56  ;;  %vm16289_vm4 = vmmov %vm16255_vm1 }
 0x2af   : > { %4780 = vst.msk [vmem:[#allocation2 + $0x18] sm:$0xff] %vm16282_vm12, %v4746_v28  ;;  %v4757_v1 = vmax.f32 %v4725_v18, 0.0  ;;  %v4758_v9 = vmax.f32 %v4726_v42, 0.0  ;;  %v4759_v22 = vmax.f32 %v4727_v32, 0.0  ;;  %v4760_v44 = vmax.f32 %v4728_v51, 0.0  ;;  %vm16290_vm12 = vmmov %vm16255_vm1  ;;  %v16320_v32 = vld [vmem:[#allocation5_spill] sm:$0xff] }
 0x2b0   : > { %4781 = vst.msk [vmem:[#allocation2 + $0x20] sm:$0xff] %vm16255_vm1, %v4747_v23  ;;  %v4761_v59 = vmax.f32 %v4729_v39, 0.0  ;;  %v4762_v12 = vmax.f32 %v4730_v37, 0.0  ;;  %v4763_v34 = vmax.f32 %v4731_v35, 0.0  ;;  %v4764_v14 = vmax.f32 %v4732_v16, 0.0  ;;  %4789 = vst.msk [vmem:[#allocation2 + $0x60] sm:$0xff] %vm16255_vm1, %v4755_v3 }
 0x2b1   : > { %4782 = vst.msk [vmem:[#allocation2 + $0x28] sm:$0xff] %vm16283_vm11, %v4748_v56  ;;  %vm16291_vm11 = vmmov %vm16255_vm1  ;;  %v4765_v0 = vmax.f32 %v13408_v11, 0.0  ;;  %v4766_v55 = vmax.f32 %v13411_v31, 0.0  ;;  %v4767_v6 = vmax.f32 %v13414_v49, 0.0  ;;  %v4768_v62 = vmax.f32 %v13417_v43, 0.0  ;;  %v16346_v23 = vld [vmem:[#allocation14_spill] sm:$0xff] }
 0x2b2   : > { %4779 = vst.msk [vmem:[#allocation2 + $0x10] sm:$0xff] %vm16284_vm10, %v4749_v38  ;;  %v4769_v50 = vmax.f32 %v13420_v29, 0.0  ;;  %v4770_v26 = vmax.f32 %v13423_v63, 0.0  ;;  %v4771_v52 = vmax.f32 %v13426_v47, 0.0  ;;  %v4772_v33 = vmax.f32 %v13429_v15, 0.0  ;;  %vm16296_vm10 = vmmov %vm16255_vm1  ;;  %v16338_v47 = vld [vmem:[#allocation11_spill] sm:$0xff] }
 0x2b3   : > { %4783 = vst.msk [vmem:[#allocation2 + $0x30] sm:$0xff] %vm16285_vm9, %v4749_v38  ;;  %vm16295_vm9 = vmmov %vm16255_vm1  ;;  %v4773_v58 = vmax.f32 %v13432_v36, 0.0  ;;  %v4774_v13 = vmax.f32 %v13435_v2, 0.0  ;;  %v4775_v8 = vmax.f32 %v13438_v40, 0.0  ;;  %v4777_v19 = vmax.f32 %v13441_v60, 0.0 }
 0x2b4   : > { %4784 = vst.msk [vmem:[#allocation2 + $0x38] sm:$0xff] %vm16286_vm8, %v4750_v57  ;;  %vm16294_vm8 = vmmov %vm16255_vm1  ;;  %v13511_v42 = vld [vmem:[%s15554_s4 + $0x10] sm:$0xf] }
 0x2b5   : > { %4785 = vst.msk [vmem:[#allocation2 + $0x40] sm:$0xff] %vm16287_vm7, %v4751_v61  ;;  %vm16293_vm7 = vmmov %vm16255_vm1  ;;  %v4846_v10 = vld [vmem:[#allocation2 + $0x8] sm:$0xff] }
 0x2b6   : > { %4786 = vst.msk [vmem:[#allocation2 + $0x48] sm:$0xff] %vm16288_vm6, %v4752_v41  ;;  %vm16292_vm6 = vmmov %vm16255_vm1  ;;  %v4814_v7 = vld [vmem:[#allocation2 + $0x7] sm:$0xff]  ;;  %v13504_v46 = vld [vmem:[#allocation2 + $0x18] sm:$0xff] }
 0x2b7   : > { %4787 = vst.msk [vmem:[#allocation2 + $0x50] sm:$0xff] %vm16289_vm4, %v4753_v5  ;;  %vm16297_vm4 = vmmov %vm16255_vm1  ;;  %v13499_v24 = vld [vmem:[#allocation2 + $0x19] sm:$0xff] }
 0x2b8   : > { %4788 = vst.msk [vmem:[#allocation2 + $0x58] sm:$0xff] %vm16290_vm12, %v4754_v48  ;;  %vm16298_vm12 = vmmov %vm16255_vm1  ;;  %v13522_v51 = vld [vmem:[#allocation2 + $0x20] sm:$0xff]  ;;  %v13532_v35 = vld [vmem:[#allocation2 + $0x28] sm:$0xff] }
 0x2b9   : > { %4790 = vst.msk [vmem:[#allocation2 + $0x68] sm:$0xff] %vm16291_vm11, %v4756_v45  ;;  %vm16299_vm11 = vmmov %vm16255_vm1  ;;  %v4847_v4 = vld [vmem:[#allocation2 + $0x10] sm:$0xff]  ;;  %v13524_v39 = vld [vmem:[#allocation2 + $0x27] sm:$0xff] }
 0x2ba   : > { %4791 = vst.msk [vmem:[#allocation2 + $0x70] sm:$0xff] %vm16292_vm6, %v4757_v1  ;;  %vm16300_vm6 = vmmov %vm16255_vm1  ;;  %v13491_v30 = vld [vmem:[#allocation2 + $0x9] sm:$0xff]  ;;  %v13497_v27 = vld [vmem:[#allocation2 + $0x17] sm:$0xff] }
 0x2bb   : > { %4792 = vst.msk [vmem:[#allocation2 + $0x78] sm:$0xff] %vm16293_vm7, %v4758_v9  ;;  %vm16301_vm7 = vmmov %vm16255_vm1  ;;  %v13506_v18 = vld [vmem:[#allocation2 + $0xf] sm:$0xff]  ;;  %v13538_v16 = vld [vmem:[#allocation2 + $0x1f] sm:$0xff] }
 0x2bc   : > { %4793 = vst.msk [vmem:[#allocation2 + $0x80] sm:$0xff] %vm16294_vm8, %v4759_v22  ;;  %vm16302_vm8 = vmmov %vm16255_vm1  ;;  %v13526_v37 = vld [vmem:[#allocation2 + $0x29] sm:$0xff]  ;;  %v13549_v49 = vld [vmem:[#allocation2 + $0x37] sm:$0xff] }
 0x2bd   : > { %4794 = vst.msk [vmem:[#allocation2 + $0x88] sm:$0xff] %vm16295_vm9, %v4760_v44  ;;  %vm16303_vm9 = vmmov %vm16255_vm1  ;;  %v13547_v31 = vld [vmem:[#allocation2 + $0x30] sm:$0xff]  ;;  %v13551_v43 = vld [vmem:[#allocation2 + $0x39] sm:$0xff] }
 0x2be   : > { %4795 = vst.msk [vmem:[#allocation2 + $0x90] sm:$0xff] %vm16296_vm10, %v4761_v59  ;;  %vm16304_vm10 = vmmov %vm16255_vm1  ;;  %v13555_v29 = vld [vmem:[#allocation2 + $0x38] sm:$0xff]  ;;  %v13559_v63 = vld [vmem:[#allocation2 + $0x2f] sm:$0xff] }
 0x2bf   : > { %4796 = vst.msk [vmem:[#allocation2 + $0x98] sm:$0xff] %vm16297_vm4, %v4762_v12  ;;  %vm16305_vm4 = vmmov %vm16255_vm1  ;;  %v13568_v36 = vld [vmem:[#allocation2 + $0x40] sm:$0xff]  ;;  %v13572_v40 = vld [vmem:[#allocation2 + $0x49] sm:$0xff] }
 0x2c0   : > { %4797 = vst.msk [vmem:[#allocation2 + $0xa0] sm:$0xff] %vm16298_vm12, %v4763_v34  ;;  %vm16306_vm12 = vmmov %vm16255_vm1  ;;  %v13570_v2 = vld [vmem:[#allocation2 + $0x47] sm:$0xff]  ;;  %v13580_v28 = vld [vmem:[#allocation2 + $0x3f] sm:$0xff] }
 0x2c1   : > { %4798 = vst.msk [vmem:[#allocation2 + $0xa8] sm:$0xff] %vm16255_vm1, %v4764_v14  ;;  %4813 = vst.msk [vmem:[#allocation2 + $0x120] sm:$0xff] %vm16255_vm1, %v4775_v8  ;;  %vm16321_vm1 = vnez %v16320_v32  ;;  %v13576_v60 = vld [vmem:[#allocation2 + $0x48] sm:$0xff]  ;;  %v13589_v38 = vld [vmem:[#allocation2 + $0x50] sm:$0xff] }
 0x2c2   : > { %4799 = vst.msk [vmem:[#allocation2 + $0xb0] sm:$0xff] %vm16299_vm11, %v4765_v0  ;;  %vm16309_vm11 = vmmov %vm16308_vm0  ;;  %v13591_v57 = vld [vmem:[#allocation2 + $0x57] sm:$0xff]  ;;  %v13601_v5 = vld [vmem:[#allocation2 + $0x4f] sm:$0xff] }
 0x2c3   : > { %4800 = vst.msk [vmem:[#allocation2 + $0xb8] sm:$0xff] %vm16300_vm6, %v4766_v55  ;;  %vm16310_vm6 = vmmov %vm16308_vm0  ;;  %v13593_v61 = vld [vmem:[#allocation2 + $0x59] sm:$0xff]  ;;  %v13612_v1 = vld [vmem:[#allocation2 + $0x67] sm:$0xff] }
 0x2c4   : > { %4801 = vst.msk [vmem:[#allocation2 + $0xc0] sm:$0xff] %vm16301_vm7, %v4767_v6  ;;  %vm16311_vm7 = vmmov %vm16308_vm0  ;;  %v13597_v41 = vld [vmem:[#allocation2 + $0x58] sm:$0xff]  ;;  %v16355_v48 = vld [vmem:[#allocation17_spill] sm:$0xff] }
 0x2c5   : > { %4802 = vst.msk [vmem:[#allocation2 + $0xc8] sm:$0xff] %vm16302_vm8, %v4768_v62  ;;  %vm16312_vm8 = vmmov %vm16308_vm0  ;;  %v13610_v45 = vld [vmem:[#allocation2 + $0x60] sm:$0xff]  ;;  %v13614_v9 = vld [vmem:[#allocation2 + $0x69] sm:$0xff] }
 0x2c6   : > { %4803 = vst.msk [vmem:[#allocation2 + $0xd0] sm:$0xff] %vm16303_vm9, %v4769_v50  ;;  %10534 = vmatprep.mubr.msk.f32.mxu1 %vm16312_vm8, %v4846_v10  ;;  %vm16313_vm9 = vmmov %vm16308_vm0  ;;  %v13618_v22 = vld [vmem:[#allocation2 + $0x68] sm:$0xff]  ;;  %v13622_v44 = vld [vmem:[#allocation2 + $0x5f] sm:$0xff] }
 0x2c7   : > { %4804 = vst.msk [vmem:[#allocation2 + $0xd8] sm:$0xff] %vm16304_vm10, %v4770_v26  ;;  %10535 = vmatmul.mubr.msk.f32.vlgmr.msra.gmra.mxu1 %vm16313_vm9, %v4847_v4  ;;  %vm16316_vm10 = vcmask 1043456   ;;  %16317 = vst [vmem:[#allocation10_spill] sm:$0xff] %v13504_v46  ;;  %v16363_v59 = vld [vmem:[#allocation20_spill] sm:$0xff]  ;;  %v13631_v34 = vld [vmem:[#allocation2 + $0x70] sm:$0xff] }
 0x2c8   : > { %4805 = vst.msk [vmem:[#allocation2 + $0xe0] sm:$0xff] %vm16305_vm4, %v4771_v52  ;;  %10633 = vmatpush3.msk.msra.mxu1 %vm16316_vm10, %v13220_v54  ;;  %vm16318_vm4 = vmmov %vm16308_vm0  ;;  %v4912_v54 = vsel %vm16321_vm1, %v13499_v24, %v13497_v27  ;;  %v13633_v14 = vld [vmem:[#allocation2 + $0x77] sm:$0xff]  ;;  %v13643_v6 = vld [vmem:[#allocation2 + $0x6f] sm:$0xff] }
 0x2c9   : > { %4806 = vst.msk [vmem:[#allocation2 + $0xe8] sm:$0xff] %vm16306_vm12, %v4772_v33  ;;  %10537 = vmatprep.mubr.msk.f32.mxu1 %vm16318_vm4, %v13504_v46  ;;  %vm16319_vm12 = vmmov %vm16308_vm0  ;;  %v13635_v0 = vld [vmem:[#allocation2 + $0x79] sm:$0xff]  ;;  %v16371_v62 = vld [vmem:[#allocation23_spill] sm:$0xff] }
 0x2ca   : > { %4807 = vst.msk [vmem:[#allocation2 + $0xf0] sm:$0xff] %vm16307_vm2, %v4773_v58  ;;  %vm16315_vm2 = vnez %v16314_v17  ;;  %16323 = vst [vmem:[#allocation15_spill] sm:$0xff] %v13522_v51  ;;  %v13639_v55 = vld [vmem:[#allocation2 + $0x78] sm:$0xff]  ;;  %v13652_v26 = vld [vmem:[#allocation2 + $0x80] sm:$0xff] }
 0x2cb   : > { %4808 = vst.msk [vmem:[#allocation2 + $0xf8] sm:$0xff] %vm16308_vm0, %v4774_v13  ;;  %v4910_v53 = vsel %vm16315_vm2, %v13491_v30, %v4814_v7  ;;  %16324 = vst [vmem:[#allocation45_spill] sm:$0xff] %v13524_v39  ;;  %v13654_v52 = vld [vmem:[#allocation2 + $0x87] sm:$0xff]  ;;  %v13672_v10 = vld [vmem:[#allocation2 + $0x90] sm:$0xff] }
 0x2cc   : > { %4809 = vst.msk [vmem:[#allocation2 + $0x100] sm:$0xff] %vm16309_vm11, %v4775_v8  ;;  %10584 = vmatprep.mubr.msk.f32.mxu0 %vm16308_vm0, %v4910_v53  ;;  %vm16322_vm11 = vmmov %vm16308_vm0  ;;  %v13656_v33 = vld [vmem:[#allocation2 + $0x89] sm:$0xff]  ;;  %v13675_v7 = vld [vmem:[#allocation2 + $0x97] sm:$0xff] }
 0x2cd   : > { %4811 = vst.msk [vmem:[#allocation2 + $0x110] sm:$0xff] %vm16310_vm6, %v4777_v19  ;;  %10585 = vmatmul.mubr.msk.f32.vlgmr.msra.gmra.mxu0 %vm16319_vm12, %v13506_v18  ;;  %vm16325_vm6 = vmmov %vm16316_vm10  ;;  %v13660_v58 = vld [vmem:[#allocation2 + $0x88] sm:$0xff]  ;;  %v13677_v4 = vld [vmem:[#allocation2 + $0x99] sm:$0xff] }
 0x2ce   : > { %4812 = vst.msk [vmem:[#allocation2 + $0x118] sm:$0xff] %vm16311_vm7, %v4774_v13  ;;  %10587 = vmatprep.mubr.msk.f32.mxu0 %vm16322_vm11, %v4912_v54  ;;  %10683 = vmatpush3.msk.msra.mxu0 %vm16325_vm6, %v13338_v20  ;;  %vm16326_vm7 = vmmov %vm16308_vm0  ;;  %v4914_v20 = vsel %vm16049_vm13, %v13526_v37, %v13524_v39  ;;  %v13664_v13 = vld [vmem:[#allocation2 + $0x7f] sm:$0xff]  ;;  %v16379_v8 = vld [vmem:[#allocation26_spill] sm:$0xff] }
 0x2cf   : > { %10538 = vmatmul.mubr.msk.f32.gmra.mxu1 %vm16326_vm7, %v13522_v51  ;;  %16327 = vst [vmem:[#allocation47_spill] sm:$0xff] %v13532_v35  ;;  %vm16328_vm8 = vmmov %vm16325_vm6  ;;  %vm16339_vm6 = vnez %v16338_v47  ;;  %v13682_v53 = vld [vmem:[%s15554_s4 + $0x14] sm:$0xf]  ;;  %v13686_v54 = vld [vmem:[#allocation2 + $0x98] sm:$0xff] }
 0x2d0   : > { %10732 = vmatprep.subr.msk.mxu1 %vm16328_vm8, %v13511_v42  ;;  %vm16329_vm9 = vmmov %vm16308_vm0  ;;  %16332 = vst [vmem:[#allocation50_spill] sm:$0xff] %v13547_v31  ;;  %v4916_v15 = vsel %vm16339_vm6, %v13551_v43, %v13549_v49  ;;  %v13713_v25 = vld [vmem:[#allocation2 + $0x9f] sm:$0xff]  ;;  %v13912_v32 = vld [vmem:[#allocation2 + $0x51] sm:$0xff] }
 0x2d1   : > { %10540 = vmatprep.mubr.msk.f32.mxu1 %vm16329_vm9, %v13532_v35  ;;  %10588 = vmatmul.mubr.msk.f32.gmra.mxu0 %vm16308_vm0, %v13538_v16  ;;  %vm16331_vm10 = vmmov %vm16308_vm0  ;;  %16333 = vst [vmem:[#allocation89_spill] sm:$0xff] %v13549_v49  ;;  %v13797_v35 = vld [vmem:[#allocation2 + $0xdf] sm:$0xff]  ;;  %v13806_v46 = vld [vmem:[#allocation2 + $0xf0] sm:$0xff] }
 0x2d2   : > { %10590 = vmatprep.mubr.msk.f32.mxu0 %vm16331_vm10, %v4914_v20  ;;  %vm16334_vm4 = vmmov %vm16308_vm0  ;;  %16335 = vst [vmem:[#allocation91_spill] sm:$0xff] %v13555_v29  ;;  %vm16347_vm10 = vnez %v16346_v23  ;;  %v13692_v20 = vld [vmem:[#allocation2 + $0x8f] sm:$0xff]  ;;  %v16467_v47 = vld [vmem:[#allocation60_spill] sm:$0xff] }
 0x2d3   : > { %10541 = vmatmul.mubr.msk.f32.gmra.mxu1 %vm16334_vm4, %v13547_v31  ;;  %vm16336_vm12 = vmmov %vm16308_vm0  ;;  %16341 = vst [vmem:[#allocation18_spill] sm:$0xff] %v13568_v36  ;;  %v4918_v56 = vsel %vm16347_vm10, %v13572_v40, %v13570_v2  ;;  %v13789_v31 = vld [vmem:[#allocation2 + $0xe9] sm:$0xff]  ;;  %v16472_v23 = vld [vmem:[#allocation61_spill] sm:$0xff] }
 0x2d4   : > { %10543 = vmatprep.mubr.msk.f32.mxu1 %vm16336_vm12, %v13555_v29  ;;  %vm16337_vm11 = vmmov %vm16308_vm0  ;;  %16342 = vst [vmem:[#allocation22_spill] sm:$0xff] %v13570_v2  ;;  %v13785_v29 = vld [vmem:[#allocation2 + $0xe0] sm:$0xff] }
 0x2d5   : > { %10591 = vmatmul.mubr.msk.f32.gmra.mxu0 %vm16337_vm11, %v13559_v63  ;;  %vm16340_vm7 = vmmov %vm16308_vm0  ;;  %16344 = vst [vmem:[#allocation70_spill] sm:$0xff] %v13576_v60 }
 0x2d6   : > { %10593 = vmatprep.mubr.msk.f32.mxu0 %vm16340_vm7, %v4916_v15  ;;  %vm16343_vm8 = vmmov %vm16308_vm0  ;;  %16349 = vst [vmem:[#allocation71_spill] sm:$0xff] %v13589_v38  ;;  %v16388_v15 = vld [vmem:[#allocation29_spill] sm:$0xff] }
 0x2d7   : > { %10544 = vmatmul.mubr.msk.f32.gmra.mxu1 %vm16343_vm8, %v13568_v36  ;;  %vm16345_vm9 = vmmov %vm16308_vm0  ;;  %16350 = vst [vmem:[#allocation52_spill] sm:$0xff] %v13591_v57  ;;  %vm16356_vm8 = vnez %v16355_v48  ;;  %v16478_v48 = vld [vmem:[#allocation62_spill] sm:$0xff] }
 0x2d8   : > { %10546 = vmatprep.mubr.msk.f32.mxu1 %vm16345_vm9, %v13576_v60  ;;  %vm16348_vm4 = vmmov %vm16308_vm0  ;;  %16352 = vst [vmem:[#allocation54_spill] sm:$0xff] %v13597_v41  ;;  %v4920_v3 = vsel %vm16356_vm8, %v13593_v61, %v13591_v57  ;;  %v13776_v60 = vld [vmem:[#allocation2 + $0xcf] sm:$0xff] }
 0x2d9   : > { %10594 = vmatmul.mubr.msk.f32.gmra.mxu0 %vm16308_vm0, %v13580_v28  ;;  %vm16351_vm12 = vmmov %vm16308_vm0  ;;  %16358 = vst [vmem:[#allocation90_spill] sm:$0xff] %v13610_v45 }
 0x2da   : > { %10596 = vmatprep.mubr.msk.f32.mxu0 %vm16348_vm4, %v4918_v56  ;;  %vm16353_vm11 = vmmov %vm16308_vm0  ;;  %16359 = vst [vmem:[#allocation93_spill] sm:$0xff] %v13612_v1 }
 0x2db   : > { %10547 = vmatmul.mubr.msk.f32.gmra.mxu1 %vm16351_vm12, %v13589_v38  ;;  %vm16354_vm7 = vmmov %vm16308_vm0  ;;  %16360 = vst [vmem:[#allocation25_spill] sm:$0xff] %v13618_v22  ;;  %v13768_v38 = vld [vmem:[#allocation2 + $0xd9] sm:$0xff] }
 0x2dc   : > { %10549 = vmatprep.mubr.msk.f32.mxu1 %vm16353_vm11, %v13597_v41  ;;  %vm16357_vm9 = vmmov %vm16308_vm0  ;;  %vm16364_vm11 = vnez %v16363_v59  ;;  %16366 = vst [vmem:[#allocation30_spill] sm:$0xff] %v13631_v34  ;;  %v13764_v41 = vld [vmem:[#allocation2 + $0xd0] sm:$0xff] }
 0x2dd   : > { %10597 = vmatmul.mubr.msk.f32.gmra.mxu0 %vm16354_vm7, %v13601_v5  ;;  %vm16361_vm4 = vmmov %vm16308_vm0  ;;  %v4922_v12 = vsel %vm16364_vm11, %v13614_v9, %v13612_v1  ;;  %16367 = vst [vmem:[#allocation73_spill] sm:$0xff] %v13633_v14 }
 0x2de   : > { %10599 = vmatprep.mubr.msk.f32.mxu0 %vm16357_vm9, %v4920_v3  ;;  %vm16362_vm12 = vmmov %vm16308_vm0  ;;  %16369 = vst [vmem:[#allocation72_spill] sm:$0xff] %v13639_v55  ;;  %v13701_v3 = vld [vmem:[#allocation2 + $0xa0] sm:$0xff] }
 0x2df   : > { %10550 = vmatmul.mubr.msk.f32.gmra.mxu1 %vm16308_vm0, %v13610_v45  ;;  %vm16365_vm7 = vmmov %vm16308_vm0  ;;  %16374 = vst [vmem:[#allocation55_spill] sm:$0xff] %v13652_v26 }
 0x2e0   : > { %10552 = vmatprep.mubr.msk.f32.mxu1 %vm16361_vm4, %v13618_v22  ;;  %vm16368_vm9 = vmmov %vm16308_vm0  ;;  %16375 = vst [vmem:[#allocation12_spill] sm:$0xff] %v13654_v52  ;;  %v13755_v22 = vld [vmem:[#allocation2 + $0xbf] sm:$0xff] }
 0x2e1   : > { %10600 = vmatmul.mubr.msk.f32.gmra.mxu0 %vm16362_vm12, %v13622_v44  ;;  %vm16370_vm4 = vmmov %vm16308_vm0  ;;  %vm16372_vm12 = vnez %v16371_v62  ;;  %16377 = vst [vmem:[#allocation92_spill] sm:$0xff] %v13660_v58 }
 0x2e2   : > { %10602 = vmatprep.mubr.msk.f32.mxu0 %vm16365_vm7, %v4922_v12  ;;  %v4924_v50 = vsel %vm16372_vm12, %v13635_v0, %v13633_v14  ;;  %vm16373_vm7 = vmmov %vm16308_vm0  ;;  %16381 = vst [vmem:[#allocation95_spill] sm:$0xff] %v13672_v10  ;;  %v13703_v12 = vld [vmem:[#allocation2 + $0xa7] sm:$0xff] }
 0x2e3   : > { %10553 = vmatmul.mubr.msk.f32.gmra.mxu1 %vm16368_vm9, %v13631_v34  ;;  %vm16376_vm9 = vmmov %vm16308_vm0  ;;  %16383 = vst [vmem:[#allocation31_spill] sm:$0xff] %v13675_v7  ;;  %v13747_v34 = vld [vmem:[#allocation2 + $0xc9] sm:$0xff] }
 0x2e4   : > { %10555 = vmatprep.mubr.msk.f32.mxu1 %vm16308_vm0, %v13639_v55  ;;  %vm16382_vm12 = vmmov %vm16308_vm0  ;;  %16385 = vst [vmem:[#allocation33_spill] sm:$0xff] %v13686_v54  ;;  %v13743_v55 = vld [vmem:[#allocation2 + $0xc0] sm:$0xff] }
 0x2e5   : > { %10603 = vmatmul.mubr.msk.f32.gmra.mxu0 %vm16370_vm4, %v13643_v6  ;;  %vm16378_vm4 = vmmov %vm16308_vm0  ;;  %16391 = vst [vmem:[#allocation74_spill] sm:$0xff] %v13701_v3 }
 0x2e6   : > { %10605 = vmatprep.mubr.msk.f32.mxu0 %vm16373_vm7, %v4924_v50  ;;  %vm16380_vm7 = vnez %v16379_v8  ;;  %vm16390_vm11 = vmmov %vm16378_vm4  ;;  %16392 = vst [vmem:[#allocation75_spill] sm:$0xff] %v13703_v12  ;;  %v13705_v50 = vld [vmem:[#allocation2 + $0xa9] sm:$0xff] }
 0x2e7   : > { %10556 = vmatmul.mubr.msk.f32.gmra.mxu1 %vm16376_vm9, %v13652_v26  ;;  %v4926_v19 = vsel %vm16380_vm7, %v13656_v33, %v13654_v52  ;;  %vm16384_vm9 = vmmov %vm16308_vm0  ;;  %vm16389_vm7 = vnez %v16388_v15  ;;  %16408 = vst [vmem:[#allocation34_spill] sm:$0xff] %v13743_v55  ;;  %v16501_v15 = vld [vmem:[#allocation66_spill] sm:$0xff] }
 0x2e8   : > { %10558 = vmatprep.mubr.msk.f32.mxu1 %vm16308_vm0, %v13660_v58  ;;  %vm16386_vm0 = vcmask 1043456   ;;  %v4928_v56 = vsel %vm16389_vm7, %v13677_v4, %v13675_v7  ;;  %v13734_v58 = vld [vmem:[#allocation2 + $0xaf] sm:$0xff]  ;;  %16416 = vst [vmem:[#allocation76_spill] sm:$0xff] %v13764_v41  ;;  %16424 = vst [vmem:[#allocation96_spill] sm:$0xff] %v13785_v29 }
 0x2e9   : > { %10606 = vmatmul.mubr.msk.f32.gmra.mxu0 %vm16378_vm4, %v13664_v13  ;;  %10782 = vmatprep.subr.msk.mxu0 %vm16386_vm0, %v13682_v53  ;;  %vm16395_vm0 = vmmov %vm16378_vm4  ;;  %16426 = vst [vmem:[#allocation40_spill] sm:$0xff] %v13789_v31 }
 0x2ea   : > { %10608 = vmatprep.mubr.msk.f32.mxu0 %vm16382_vm12, %v4926_v19  ;;  %vm16387_vm12 = vmmov %vm16378_vm4  ;;  %v13709_v19 = vld [vmem:[#allocation2 + $0xa8] sm:$0xff]  ;;  %16429 = vst [vmem:[#allocation78_spill] sm:$0xff] %v13797_v35 }
 0x2eb   : > { %10559 = vmatmul.mubr.msk.f32.gmra.mxu1 %vm16384_vm9, %v13672_v10  ;;  %vm16393_vm9 = vmmov %vm16378_vm4  ;;  %16394 = vst [vmem:[#allocation6_spill] sm:$0xff] %v13709_v19  ;;  %v13726_v10 = vld [vmem:[#allocation2 + $0xb9] sm:$0xff] }
 0x2ec   : > { %10561 = vmatprep.mubr.msk.f32.mxu1 %vm16378_vm4, %v13686_v54  ;;  %vm16396_vm4 = vmmov %vm16395_vm0  ;;  %v13722_v54 = vld [vmem:[#allocation2 + $0xb0] sm:$0xff]  ;;  %16434 = vst [vmem:[#allocation79_spill] sm:$0xff] %v13806_v46 }
 0x2ed   : > { %10609 = vmatmul.mubr.msk.f32.gmra.mxu0 %vm16387_vm12, %v13692_v20  ;;  %vm16399_vm12 = vmmov %vm16395_vm0  ;;  %16400 = vst [vmem:[#allocation9_spill] sm:$0xff] %v13722_v54 }
 0x2ee   : > { %10611 = vmatprep.mubr.msk.f32.mxu0 %vm16390_vm11, %v4928_v56  ;;  %v16397_v56 = vld [vmem:[#allocation32_spill] sm:$0xff] }
 0x2ef   : > { %10562 = vmatmul.mubr.msk.f32.gmra.mxu1 %vm16393_vm9, %v13701_v3  ;;  %vm16398_vm11 = vnez %v16397_v56  ;;  %v13724_v3 = vld [vmem:[#allocation2 + $0xb7] sm:$0xff]  ;;  %vm16402_vm9 = vmmov %vm16395_vm0 }
 0x2f0   : > { %10564 = vmatprep.mubr.msk.f32.mxu1 %vm16395_vm0, %v13709_v19  ;;  %v4930_v21 = vsel %vm16398_vm11, %v13705_v50, %v13703_v12  ;;  %16401 = vst [vmem:[#allocation94_spill] sm:$0xff] %v13724_v3  ;;  %v13730_v19 = vld [vmem:[#allocation2 + $0xb8] sm:$0xff]  ;;  %vm16407_vm11 = vmmov %vm16395_vm0 }
 0x2f1   : > { %10612 = vmatmul.mubr.msk.f32.gmra.mxu0 %vm16396_vm4, %v13713_v25  ;;  %16403 = vst [vmem:[#allocation97_spill] sm:$0xff] %v13730_v19  ;;  %vm16404_vm4 = vmmov %vm16395_vm0 }
 0x2f2   : > { %10614 = vmatprep.mubr.msk.f32.mxu0 %vm16399_vm12, %v4930_v21  ;;  %v16405_v21 = vld [vmem:[#allocation35_spill] sm:$0xff] }
 0x2f3   : > { %10565 = vmatmul.mubr.msk.f32.gmra.mxu1 %vm16402_vm9, %v13722_v54  ;;  %vm16406_vm12 = vnez %v16405_v21  ;;  %v13745_v54 = vld [vmem:[#allocation2 + $0xc7] sm:$0xff]  ;;  %vm16410_vm9 = vmmov %vm16395_vm0 }
 0x2f4   : > { %10567 = vmatprep.mubr.msk.f32.mxu1 %vm16395_vm0, %v13730_v19  ;;  %v4932_v26 = vsel %vm16406_vm12, %v13726_v10, %v13724_v3  ;;  %16409 = vst [vmem:[#allocation36_spill] sm:$0xff] %v13745_v54  ;;  %v13751_v19 = vld [vmem:[#allocation2 + $0xc8] sm:$0xff]  ;;  %vm16415_vm12 = vmmov %vm16395_vm0 }
 0x2f5   : > { %10615 = vmatmul.mubr.msk.f32.gmra.mxu0 %vm16404_vm4, %v13734_v58  ;;  %16411 = vst [vmem:[#allocation77_spill] sm:$0xff] %v13751_v19  ;;  %vm16412_vm4 = vmmov %vm16395_vm0 }
 0x2f6   : > { %10617 = vmatprep.mubr.msk.f32.mxu0 %vm16407_vm11, %v4932_v26  ;;  %v16413_v26 = vld [vmem:[#allocation38_spill] sm:$0xff] }
 0x2f7   : > { %10568 = vmatmul.mubr.msk.f32.gmra.mxu1 %vm16410_vm9, %v13743_v55  ;;  %vm16414_vm11 = vnez %v16413_v26  ;;  %v13766_v55 = vld [vmem:[#allocation2 + $0xd7] sm:$0xff]  ;;  %vm16418_vm9 = vmmov %vm16395_vm0 }
 0x2f8   : > { %10570 = vmatprep.mubr.msk.f32.mxu1 %vm16395_vm0, %v13751_v19  ;;  %v4934_v45 = vsel %vm16414_vm11, %v13747_v34, %v13745_v54  ;;  %16417 = vst [vmem:[#allocation19_spill] sm:$0xff] %v13766_v55  ;;  %v13772_v19 = vld [vmem:[#allocation2 + $0xd8] sm:$0xff]  ;;  %vm16423_vm11 = vmmov %vm16395_vm0 }
 0x2f9   : > { %10618 = vmatmul.mubr.msk.f32.gmra.mxu0 %vm16412_vm4, %v13755_v22  ;;  %16419 = vst [vmem:[#allocation7_spill] sm:$0xff] %v13772_v19  ;;  %vm16420_vm4 = vmmov %vm16395_vm0 }
 0x2fa   : > { %10620 = vmatprep.mubr.msk.f32.mxu0 %vm16415_vm12, %v4934_v45  ;;  %v16421_v45 = vld [vmem:[#allocation42_spill] sm:$0xff] }
 0x2fb   : > { %10571 = vmatmul.mubr.msk.f32.gmra.mxu1 %vm16418_vm9, %v13764_v41  ;;  %vm16422_vm12 = vnez %v16421_v45  ;;  %v13787_v41 = vld [vmem:[#allocation2 + $0xe7] sm:$0xff]  ;;  %vm16427_vm9 = vmmov %vm16395_vm0  ;;  %v13810_v45 = vld [vmem:[#allocation2 + $0xf9] sm:$0xff] }
 0x2fc   : > { %10573 = vmatprep.mubr.msk.f32.mxu1 %vm16395_vm0, %v13772_v19  ;;  %v4936_v36 = vsel %vm16422_vm12, %v13768_v38, %v13766_v55  ;;  %16425 = vst [vmem:[#allocation99_spill] sm:$0xff] %v13787_v41  ;;  %v13793_v19 = vld [vmem:[#allocation2 + $0xe8] sm:$0xff]  ;;  %vm16433_vm12 = vmmov %vm16395_vm0 }
 0x2fd   : > { %10621 = vmatmul.mubr.msk.f32.gmra.mxu0 %vm16420_vm4, %v13776_v60  ;;  %16428 = vst [vmem:[#allocation37_spill] sm:$0xff] %v13793_v19  ;;  %vm16430_vm4 = vmmov %vm16395_vm0 }
 0x2fe   : > { %10623 = vmatprep.mubr.msk.f32.mxu0 %vm16423_vm11, %v4936_v36  ;;  %v16431_v36 = vld [vmem:[#allocation48_spill] sm:$0xff]  ;;  %16435 = vst [vmem:[#allocation16_spill] sm:$0xff] %v13810_v45 }
 0x2ff   : > { %10574 = vmatmul.mubr.msk.f32.gmra.mxu1 %vm16427_vm9, %v13785_v29  ;;  %vm16432_vm11 = vnez %v16431_v36  ;;  %v13808_v29 = vld [vmem:[#allocation2 + $0xf7] sm:$0xff]  ;;  %vm16436_vm9 = vmmov %vm16395_vm0 }
 0x300   : > { %10576 = vmatprep.mubr.msk.f32.mxu1 %vm16395_vm0, %v13793_v19  ;;  %v4938_v51 = vsel %vm16432_vm11, %v13789_v31, %v13787_v41  ;;  %v13814_v19 = vld [vmem:[#allocation2 + $0xf8] sm:$0xff]  ;;  %vm16441_vm11 = vmmov %vm16395_vm0  ;;  %v13827_v31 = vld [vmem:[#allocation2 + $0x100] sm:$0xff] }
 0x301   : > { %10624 = vmatmul.mubr.msk.f32.gmra.mxu0 %vm16430_vm4, %v13797_v35  ;;  %16437 = vst [vmem:[#allocation27_spill] sm:$0xff] %v13814_v19  ;;  %v13818_v35 = vld [vmem:[#allocation2 + $0xef] sm:$0xff]  ;;  %vm16438_vm4 = vmmov %vm16395_vm0  ;;  %v13831_v41 = vld [vmem:[#allocation2 + $0xff] sm:$0xff] }
 0x302   : > { %10626 = vmatprep.mubr.msk.f32.mxu0 %vm16433_vm12, %v4938_v51  ;;  %v16439_v51 = vld [vmem:[#allocation53_spill] sm:$0xff]  ;;  %16442 = vst [vmem:[#allocation98_spill] sm:$0xff] %v13827_v31 }
 0x303   : > { %10577 = vmatmul.mubr.msk.f32.gmra.mxu1 %vm16436_vm9, %v13806_v46  ;;  %vm16440_vm12 = vnez %v16439_v51  ;;  %vm16443_vm9 = vmmov %vm16395_vm0  ;;  %v4879_v46 = vld [vmem:[#allocation2 + $0x11] sm:$0xff] }
 0x304   : > { %10579 = vmatprep.mubr.msk.f32.mxu1 %vm16395_vm0, %v13814_v19  ;;  %v4940_v36 = vsel %vm16440_vm12, %v13810_v45, %v13808_v29  ;;  %v6077_v19 = vsel %vm16315_vm2, %v13499_v24, %v13497_v27  ;;  %v13848_v51 = vld [vmem:[%s15554_s4 + $0x18] sm:$0xf]  ;;  %v13860_v27 = vld [vmem:[%s15554_s4 + $0x1c] sm:$0xf]  ;;  %v16518_v17 = vld [vmem:[#allocation99_spill] sm:$0xff] }
 0x305   : > { %10627 = vmatmul.mubr.msk.f32.gmra.mxu0 %vm16438_vm4, %v13818_v35  ;;  %vm16444_vm4 = vmmov %vm16395_vm0 }
 0x306   : > { %10629 = vmatprep.mubr.msk.f32.mxu0 %vm16441_vm11, %v4940_v36  ;;  %vm16445_vm11 = vmmov %vm16395_vm0  ;;  %v10998_v36 = vld [vmem:[#allocation2 + $0x3f] sm:$0xff] }
 0x307   : > { %10580 = vmatmul.mubr.msk.f32.gmra.mxu1 %vm16443_vm9, %v13827_v31  ;;  %v4943_v31 = vsel %vm16101_vm5, %v13506_v18, %v4879_v46  ;;  %vm16447_vm9 = vmmov %vm16395_vm0  ;;  %v6079_v46 = vsel %vm16321_vm1, %v13526_v37, %v13524_v39  ;;  %v16523_v39 = vld [vmem:[#allocation43_spill] sm:$0xff] }
 0x308   : > { %10634 = vmatprep.mubr.msk.f32.mxu1 %vm16395_vm0, %v13491_v30  ;;  %v13851_v30 = vld [vmem:[#allocation2 + $0x21] sm:$0xff]  ;;  %vm16448_vm0 = vcmask 1043456   ;;  %v11000_v18 = vld [vmem:[#allocation2 + $0x4f] sm:$0xff] }
 0x309   : > { %10630 = vmatmul.mubr.msk.f32.gmra.mxu0 %vm16444_vm4, %v13831_v41 }
 0x30a   : > { %10684 = vmatprep.mubr.msk.f32.mxu0 %vm16445_vm11, %v6077_v19  ;;  %vm16449_vm11 = vmmov %vm16444_vm4  ;;  %v6081_v19 = vsel %vm16049_vm13, %v13551_v43, %v13549_v49  ;;  %v16517_v49 = vld [vmem:[#allocation78_spill] sm:$0xff] }
 0x30b   : > { %10635 = vmatmul.mubr.msk.f32.vlgmr.msra.gmra.mxu1 %vm16447_vm9, %v4943_v31  ;;  %vm16450_vm9 = vmmov %vm16448_vm0  ;;  %v13878_v31 = vld [vmem:[#allocation2 + $0x31] sm:$0xff] }
 0x30c   : > { %10733 = vmatpush3.msk.msra.mxu1 %vm16448_vm0, %v13511_v42  ;;  %10637 = vmatprep.mubr.msk.f32.mxu1 %vm16444_vm4, %v13499_v24  ;;  %vm16451_vm0 = vmmov %vm16444_vm4  ;;  %v4945_v42 = vsel %vm16004_vm14, %v13538_v16, %v13851_v30 }
 0x30d   : > { %10685 = vmatmul.mubr.msk.f32.vlgmr.msra.gmra.mxu0 %vm16449_vm11, %v13538_v16  ;;  %10832 = vmatprep.subr.msk.mxu1 %vm16450_vm9, %v13848_v51  ;;  %vm16453_vm4 = vmmov %vm16450_vm9 }
 0x30e   : > { %10687 = vmatprep.mubr.msk.f32.mxu0 %vm16451_vm0, %v6079_v46  ;;  %10783 = vmatpush3.msk.msra.mxu0 %vm16453_vm4, %v13682_v53  ;;  %vm16454_vm2 = vmmov %vm16451_vm0  ;;  %v4947_v46 = vsel %vm11657_vm3, %v13559_v63, %v13878_v31 }
 0x30f   : > { %10638 = vmatmul.mubr.msk.f32.gmra.mxu1 %vm16454_vm2, %v4945_v42  ;;  %vm16455_vm11 = vmmov %vm16453_vm4  ;;  %v13896_v42 = vld [vmem:[#allocation2 + $0x41] sm:$0xff] }
 0x310   : > { %10882 = vmatprep.subr.msk.mxu0 %vm16455_vm11, %v13860_v27  ;;  %vm16456_vm1 = vmmov %vm16451_vm0 }
 0x311   : > { %10640 = vmatprep.mubr.msk.f32.mxu1 %vm16456_vm1, %v13526_v37  ;;  %vm16457_vm9 = vmmov %vm16451_vm0 }
 0x312   : > { %10688 = vmatmul.mubr.msk.f32.gmra.mxu0 %vm16457_vm9, %v13559_v63  ;;  %vm16459_vm2 = vmmov %vm16451_vm0 }
 0x313   : > { %10690 = vmatprep.mubr.msk.f32.mxu0 %vm16451_vm0, %v6081_v19  ;;  %10641 = vmatmul.mubr.msk.f32.gmra.mxu1 %vm16459_vm2, %v4947_v46  ;;  %vm16460_vm1 = vmmov %vm16451_vm0  ;;  %v6083_v19 = vsel %vm16339_vm6, %v13572_v40, %v13570_v2  ;;  %v4949_v46 = vsel %vm11684_vm15, %v13580_v28, %v13896_v42  ;;  %v13928_v2 = vld [vmem:[#allocation2 + $0x61] sm:$0xff] }
 0x314   : > { %10643 = vmatprep.mubr.msk.f32.mxu1 %vm16460_vm1, %v13551_v43  ;;  %vm16461_vm4 = vmmov %vm16451_vm0 }
 0x315   : > { %vm16462_vm11 = vmmov %vm16451_vm0 }
 0x316   : > { %10691 = vmatmul.mubr.msk.f32.gmra.mxu0 %vm16461_vm4, %v13580_v28  ;;  %vm16464_vm9 = vmmov %vm16451_vm0  ;;  %vm16468_vm4 = vnez %v16467_v47 }
 0x317   : > { %10693 = vmatprep.mubr.msk.f32.mxu0 %vm16462_vm11, %v6083_v19  ;;  %10644 = vmatmul.mubr.msk.f32.gmra.mxu1 %vm16464_vm9, %v4949_v46  ;;  %vm16465_vm2 = vmmov %vm16451_vm0  ;;  %v6085_v19 = vsel %vm16347_vm10, %v13593_v61, %v13591_v57  ;;  %v4951_v46 = vsel %vm16468_vm4, %v13601_v5, %v13912_v32  ;;  %v13944_v57 = vld [vmem:[#allocation2 + $0x71] sm:$0xff]  ;;  %vm16479_vm10 = vnez %v16478_v48  ;;  %v6118_v53 = vsel %vm16468_vm4, %v13622_v44, %v13928_v2 }
 0x318   : > { %10646 = vmatprep.mubr.msk.f32.mxu1 %vm16451_vm0, %v13572_v40  ;;  %vm16466_vm1 = vmmov %vm16451_vm0 }
 0x319   : > { %vm16469_vm11 = vmmov %vm16451_vm0 }
 0x31a   : > { %10694 = vmatmul.mubr.msk.f32.gmra.mxu0 %vm16465_vm2, %v13601_v5  ;;  %vm16470_vm9 = vmmov %vm16451_vm0 }
 0x31b   : > { %10696 = vmatprep.mubr.msk.f32.mxu0 %vm16466_vm1, %v6085_v19  ;;  %10647 = vmatmul.mubr.msk.f32.gmra.mxu1 %vm16469_vm11, %v4951_v46  ;;  %v6087_v19 = vsel %vm16356_vm8, %v13614_v9, %v13612_v1  ;;  %vm16471_vm2 = vmmov %vm16451_vm0  ;;  %vm16473_vm1 = vnez %v16472_v23  ;;  %vm16476_vm8 = vnez %v16363_v59  ;;  %v13960_v1 = vld [vmem:[#allocation2 + $0x81] sm:$0xff]  ;;  %v16484_v59 = vld [vmem:[#allocation63_spill] sm:$0xff] }
 0x31c   : > { %10649 = vmatprep.mubr.msk.f32.mxu1 %vm16470_vm9, %v13593_v61  ;;  %v4953_v46 = vsel %vm16473_vm1, %v13622_v44, %v13928_v2  ;;  %vm16474_vm11 = vmmov %vm16451_vm0  ;;  %vm16485_vm6 = vnez %v16484_v59  ;;  %v6120_v11 = vsel %vm16473_vm1, %v13643_v6, %v13944_v57  ;;  %v16577_v2 = vld [vmem:[#allocation55_spill] sm:$0xff]  ;;  %v6122_v47 = vsel %vm16479_vm10, %v13664_v13, %v13960_v1 }
 0x31d   : > { %vm16475_vm9 = vmmov %vm16451_vm0 }
 0x31e   : > { %10697 = vmatmul.mubr.msk.f32.gmra.mxu0 %vm16451_vm0, %v13622_v44 }
 0x31f   : > { %10699 = vmatprep.mubr.msk.f32.mxu0 %vm16471_vm2, %v6087_v19  ;;  %10650 = vmatmul.mubr.msk.f32.gmra.mxu1 %vm16474_vm11, %v4953_v46  ;;  %v6089_v19 = vsel %vm16476_vm8, %v13635_v0, %v13633_v14  ;;  %vm16477_vm2 = vmmov %vm16451_vm0  ;;  %v4955_v46 = vsel %vm16479_vm10, %v13643_v6, %v13944_v57  ;;  %vm16482_vm8 = vnez %v16371_v62  ;;  %v13976_v14 = vld [vmem:[#allocation2 + $0x91] sm:$0xff]  ;;  %v16584_v57 = vld [vmem:[#allocation33_spill] sm:$0xff] }
 0x320   : > { %10652 = vmatprep.mubr.msk.f32.mxu1 %vm16475_vm9, %v13614_v9  ;;  %vm16480_vm11 = vmmov %vm16451_vm0  ;;  %v16490_v62 = vld [vmem:[#allocation64_spill] sm:$0xff]  ;;  %v6124_v23 = vsel %vm16485_vm6, %v13692_v20, %v13976_v14 }
 0x321   : > { %vm16481_vm9 = vmmov %vm16451_vm0  ;;  %vm16491_vm13 = vnez %v16490_v62 }
 0x322   : > { %10700 = vmatmul.mubr.msk.f32.gmra.mxu0 %vm16451_vm0, %v13643_v6 }
 0x323   : > { %10702 = vmatprep.mubr.msk.f32.mxu0 %vm16477_vm2, %v6089_v19  ;;  %10653 = vmatmul.mubr.msk.f32.gmra.mxu1 %vm16480_vm11, %v4955_v46  ;;  %v6091_v19 = vsel %vm16482_vm8, %v13656_v33, %v13654_v52  ;;  %vm16483_vm2 = vmmov %vm16451_vm0  ;;  %v4957_v46 = vsel %vm16485_vm6, %v13664_v13, %v13960_v1  ;;  %vm16488_vm8 = vnez %v16379_v8  ;;  %v13992_v52 = vld [vmem:[#allocation2 + $0xa1] sm:$0xff] }
 0x324   : > { %10655 = vmatprep.mubr.msk.f32.mxu1 %vm16481_vm9, %v13635_v0  ;;  %vm16486_vm11 = vmmov %vm16451_vm0  ;;  %v16495_v8 = vld [vmem:[#allocation65_spill] sm:$0xff]  ;;  %v16589_v1 = vld [vmem:[#allocation6_spill] sm:$0xff]  ;;  %v6126_v48 = vsel %vm16491_vm13, %v13713_v25, %v13992_v52 }
 0x325   : > { %vm16487_vm9 = vmmov %vm16451_vm0 }
 0x326   : > { %10703 = vmatmul.mubr.msk.f32.gmra.mxu0 %vm16451_vm0, %v13664_v13 }
 0x327   : > { %10705 = vmatprep.mubr.msk.f32.mxu0 %vm16483_vm2, %v6091_v19  ;;  %10656 = vmatmul.mubr.msk.f32.gmra.mxu1 %vm16486_vm11, %v4957_v46  ;;  %v6093_v19 = vsel %vm16488_vm8, %v13677_v4, %v13675_v7  ;;  %vm16489_vm2 = vmmov %vm16451_vm0  ;;  %v4959_v46 = vsel %vm16491_vm13, %v13692_v20, %v13976_v14  ;;  %vm16496_vm8 = vnez %v16495_v8  ;;  %v14008_v7 = vld [vmem:[#allocation2 + $0xb1] sm:$0xff]  ;;  %v16595_v14 = vld [vmem:[#allocation97_spill] sm:$0xff] }
 0x328   : > { %10658 = vmatprep.mubr.msk.f32.mxu1 %vm16487_vm9, %v13656_v33  ;;  %vm16492_vm11 = vmmov %vm16451_vm0 }
 0x329   : > { %vm16493_vm9 = vmmov %vm16451_vm0 }
 0x32a   : > { %10706 = vmatmul.mubr.msk.f32.gmra.mxu0 %vm16451_vm0, %v13692_v20 }
 0x32b   : > { %10708 = vmatprep.mubr.msk.f32.mxu0 %vm16489_vm2, %v6093_v19  ;;  %10659 = vmatmul.mubr.msk.f32.gmra.mxu1 %vm16492_vm11, %v4959_v46  ;;  %v6095_v19 = vsel %vm16389_vm7, %v13705_v50, %v13703_v12  ;;  %vm16494_vm2 = vmmov %vm16451_vm0  ;;  %v4961_v46 = vsel %vm16496_vm8, %v13713_v25, %v13992_v52  ;;  %vm16499_vm7 = vnez %v16397_v56  ;;  %vm16502_vm8 = vnez %v16501_v15  ;;  %v14024_v12 = vld [vmem:[#allocation2 + $0xc1] sm:$0xff]  ;;  %v16507_v56 = vld [vmem:[#allocation67_spill] sm:$0xff] }
 0x32c   : > { %10661 = vmatprep.mubr.msk.f32.mxu1 %vm16493_vm9, %v13677_v4  ;;  %vm16497_vm11 = vmmov %vm16451_vm0  ;;  %v16601_v52 = vld [vmem:[#allocation77_spill] sm:$0xff] }
 0x32d   : > { %vm16498_vm9 = vmmov %vm16451_vm0 }
 0x32e   : > { %10709 = vmatmul.mubr.msk.f32.gmra.mxu0 %vm16451_vm0, %v13713_v25 }
 0x32f   : > { %10711 = vmatprep.mubr.msk.f32.mxu0 %vm16494_vm2, %v6095_v19  ;;  %10662 = vmatmul.mubr.msk.f32.gmra.mxu1 %vm16497_vm11, %v4961_v46  ;;  %v6097_v19 = vsel %vm16499_vm7, %v13726_v10, %v13724_v3  ;;  %vm16500_vm2 = vmmov %vm16451_vm0  ;;  %v4963_v46 = vsel %vm16502_vm8, %v13734_v58, %v14008_v7  ;;  %vm16505_vm7 = vnez %v16405_v21  ;;  %vm16508_vm8 = vnez %v16507_v56  ;;  %v14040_v3 = vld [vmem:[#allocation2 + $0xd1] sm:$0xff] }
 0x330   : > { %10664 = vmatprep.mubr.msk.f32.mxu1 %vm16498_vm9, %v13705_v50  ;;  %vm16503_vm11 = vmmov %vm16451_vm0  ;;  %v16513_v21 = vld [vmem:[#allocation68_spill] sm:$0xff] }
 0x331   : > { %vm16504_vm9 = vmmov %vm16451_vm0 }
 0x332   : > { %10712 = vmatmul.mubr.msk.f32.gmra.mxu0 %vm16451_vm0, %v13734_v58 }
 0x333   : > { %10714 = vmatprep.mubr.msk.f32.mxu0 %vm16500_vm2, %v6097_v19  ;;  %10665 = vmatmul.mubr.msk.f32.gmra.mxu1 %vm16503_vm11, %v4963_v46  ;;  %v6099_v19 = vsel %vm16505_vm7, %v13747_v34, %v13745_v54  ;;  %vm16506_vm2 = vmmov %vm16451_vm0  ;;  %v4965_v46 = vsel %vm16508_vm8, %v13755_v22, %v14024_v12  ;;  %vm16511_vm7 = vnez %v16413_v26  ;;  %vm16514_vm8 = vnez %v16513_v21  ;;  %v14056_v54 = vld [vmem:[#allocation2 + $0xe1] sm:$0xff]  ;;  %v16519_v26 = vld [vmem:[#allocation40_spill] sm:$0xff] }
 0x334   : > { %10667 = vmatprep.mubr.msk.f32.mxu1 %vm16504_vm9, %v13726_v10  ;;  %vm16509_vm11 = vmmov %vm16451_vm0  ;;  %v14072_v21 = vld [vmem:[#allocation2 + $0xf1] sm:$0xff] }
 0x335   : > { %vm16510_vm9 = vmmov %vm16451_vm0 }
 0x336   : > { %10715 = vmatmul.mubr.msk.f32.gmra.mxu0 %vm16451_vm0, %v13755_v22 }
 0x337   : > { %10717 = vmatprep.mubr.msk.f32.mxu0 %vm16506_vm2, %v6099_v19  ;;  %10668 = vmatmul.mubr.msk.f32.gmra.mxu1 %vm16509_vm11, %v4965_v46  ;;  %v6101_v19 = vsel %vm16511_vm7, %v13768_v38, %v13766_v55  ;;  %vm16512_vm2 = vmmov %vm16451_vm0  ;;  %v4967_v46 = vsel %vm16514_vm8, %v13776_v60, %v14040_v3  ;;  %v16520_v55 = vld [vmem:[#allocation42_spill] sm:$0xff]  ;;  %vm16524_vm8 = vnez %v16523_v39 }
 0x338   : > { %10670 = vmatprep.mubr.msk.f32.mxu1 %vm16510_vm9, %v13747_v34  ;;  %vm16515_vm11 = vmmov %vm16451_vm0  ;;  %vm16521_vm7 = vnez %v16520_v55  ;;  %v16527_v55 = vld [vmem:[#allocation48_spill] sm:$0xff]  ;;  %v14087_v39 = vld [vmem:[#allocation2 + $0x107] sm:$0xff] }
 0x339   : > { %vm16516_vm9 = vmmov %vm16451_vm0 }
 0x33a   : > { %10718 = vmatmul.mubr.msk.f32.gmra.mxu0 %vm16451_vm0, %v13776_v60 }
 0x33b   : > { %10720 = vmatprep.mubr.msk.f32.mxu0 %vm16512_vm2, %v6101_v19  ;;  %10671 = vmatmul.mubr.msk.f32.gmra.mxu1 %vm16515_vm11, %v4967_v46  ;;  %v6103_v19 = vsel %vm16521_vm7, %v16519_v26, %v16518_v17  ;;  %vm16522_vm2 = vmmov %vm16451_vm0  ;;  %v4969_v46 = vsel %vm16524_vm8, %v16517_v49, %v14056_v54  ;;  %vm16528_vm7 = vnez %v16527_v55  ;;  %v16530_v17 = vld [vmem:[#allocation44_spill] sm:$0xff]  ;;  %v16536_v55 = vld [vmem:[#allocation49_spill] sm:$0xff] }
 0x33c   : > { %10673 = vmatprep.mubr.msk.f32.mxu1 %vm16516_vm9, %v13768_v38  ;;  %vm16525_vm11 = vmmov %vm16451_vm0  ;;  %vm16531_vm8 = vnez %v16530_v17  ;;  %v14108_v17 = vld [vmem:[#allocation2 + $0x10f] sm:$0xff] }
 0x33d   : > { %vm16526_vm9 = vmmov %vm16451_vm0 }
 0x33e   : > { %10721 = vmatmul.mubr.msk.f32.gmra.mxu0 %vm16451_vm0, %v16517_v49  ;;  %v14089_v49 = vld [vmem:[#allocation2 + $0x109] sm:$0xff] }
 0x33f   : > { %10723 = vmatprep.mubr.msk.f32.mxu0 %vm16522_vm2, %v6103_v19  ;;  %10674 = vmatmul.mubr.msk.f32.gmra.mxu1 %vm16525_vm11, %v4969_v46  ;;  %v6105_v19 = vsel %vm16528_vm7, %v13810_v45, %v13808_v29  ;;  %vm16529_vm2 = vmmov %vm16451_vm0  ;;  %v4971_v46 = vsel %vm16531_vm8, %v13818_v35, %v14072_v21  ;;  %vm16537_vm7 = vnez %v16536_v55  ;;  %v16542_v29 = vld [vmem:[#allocation15_spill] sm:$0xff] }
 0x340   : > { %10676 = vmatprep.mubr.msk.f32.mxu1 %vm16526_vm9, %v16519_v26  ;;  %vm16532_vm11 = vmmov %vm16451_vm0  ;;  %v14092_v26 = vld [vmem:[#allocation2 + $0x101] sm:$0xff] }
 0x341   : > { %vm16533_vm9 = vmmov %vm16451_vm0 }
 0x342   : > { %10724 = vmatmul.mubr.msk.f32.gmra.mxu0 %vm16451_vm0, %v13818_v35  ;;  %vm16541_vm8 = vmmov %vm16451_vm0 }
 0x343   : > { %10726 = vmatprep.mubr.msk.f32.mxu0 %vm16529_vm2, %v6105_v19  ;;  %10677 = vmatmul.mubr.msk.f32.gmra.mxu1 %vm16532_vm11, %v4971_v46  ;;  %v6107_v19 = vsel %vm16440_vm12, %v14089_v49, %v14087_v39  ;;  %vm16535_vm2 = vmmov %vm16451_vm0  ;;  %v4973_v46 = vsel %vm16537_vm7, %v13831_v41, %v14092_v26 }
 0x344   : > { %10679 = vmatprep.mubr.msk.f32.mxu1 %vm16533_vm9, %v13810_v45  ;;  %vm16538_vm11 = vmmov %vm16451_vm0  ;;  %v16539_v45 = vld [vmem:[#allocation10_spill] sm:$0xff] }
 0x345   : > { %vm16540_vm9 = vmmov %vm16451_vm0 }
 0x346   : > { %10727 = vmatmul.mubr.msk.f32.gmra.mxu0 %vm16451_vm0, %v13831_v41  ;;  %vm16546_vm12 = vmmov %vm16451_vm0 }
 0x347   : > { %10729 = vmatprep.mubr.msk.f32.mxu0 %vm16535_vm2, %v6107_v19  ;;  %10680 = vmatmul.mubr.msk.f32.gmra.mxu1 %vm16538_vm11, %v4973_v46  ;;  %v14119_v19 = vld [vmem:[%s15554_s4 + $0x20] sm:$0xf]  ;;  %vm16543_vm2 = vmmov %vm16451_vm0  ;;  %vm16544_vm11 = vcmask 1043456   ;;  %v16545_v46 = vld [vmem:[#allocation47_spill] sm:$0xff] }
 0x348   : > { %10734 = vmatprep.mubr.msk.f32.mxu1 %vm16540_vm9, %v16539_v45  ;;  %v6110_v45 = vsel %vm16101_vm5, %v13538_v16, %v13851_v30  ;;  %vm16548_vm9 = vmmov %vm16544_vm11  ;;  %v6112_v16 = vsel %vm16004_vm14, %v13559_v63, %v13878_v31  ;;  %v16556_v30 = vld [vmem:[#allocation18_spill] sm:$0xff]  ;;  %v16561_v31 = vld [vmem:[#allocation71_spill] sm:$0xff] }
 0x34a   : > { %10730 = vmatmul.mubr.msk.f32.gmra.mxu0 %vm16451_vm0, %v14108_v17 }
 0x34b   : > { %10784 = vmatprep.mubr.msk.f32.mxu0 %vm16541_vm8, %v13499_v24  ;;  %10735 = vmatmul.mubr.msk.f32.vlgmr.msra.gmra.mxu1 %vm16543_vm2, %v16542_v29  ;;  %vm16547_vm8 = vmmov %vm16451_vm0  ;;  %v16550_v24 = vld [vmem:[#allocation50_spill] sm:$0xff]  ;;  %v6114_v29 = vsel %vm11657_vm3, %v13580_v28, %v13896_v42 }
 0x34c   : > { %10833 = vmatpush3.msk.msra.mxu1 %vm16544_vm11, %v13848_v51  ;;  %10737 = vmatprep.mubr.msk.f32.mxu1 %vm16546_vm12, %v16545_v46  ;;  %vm16549_vm2 = vmmov %vm16548_vm9  ;;  %v16552_v51 = vld [vmem:[#allocation91_spill] sm:$0xff]  ;;  %v16566_v42 = vld [vmem:[#allocation90_spill] sm:$0xff] }
 0x34d   : > { %10932 = vmatprep.subr.msk.mxu1 %vm16548_vm9, %v14119_v19  ;;  %vm16551_vm11 = vmmov %vm16451_vm0 }
 0x34e   : > { %10785 = vmatmul.mubr.msk.f32.vlgmr.msra.gmra.mxu0 %vm16547_vm8, %v6110_v45  ;;  %vm16553_vm12 = vmmov %vm16451_vm0  ;;  %v16563_v45 = vld [vmem:[#allocation54_spill] sm:$0xff] }
 0x34f   : > { %10787 = vmatprep.mubr.msk.f32.mxu0 %vm16451_vm0, %v13526_v37  ;;  %10883 = vmatpush3.msk.msra.mxu0 %vm16549_vm2, %v13860_v27  ;;  %vm16554_vm8 = vmmov %vm16451_vm0  ;;  %v16557_v27 = vld [vmem:[#allocation70_spill] sm:$0xff] }
 0x350   : > { %10738 = vmatmul.mubr.msk.f32.gmra.mxu1 %vm16551_vm11, %v16550_v24  ;;  %vm16555_vm9 = vmmov %vm16451_vm0 }
 0x351   : > { %10740 = vmatprep.mubr.msk.f32.mxu1 %vm16553_vm12, %v16552_v51  ;;  %vm16558_vm2 = vmmov %vm16451_vm0 }
 0x352   : > { %10788 = vmatmul.mubr.msk.f32.gmra.mxu0 %vm16554_vm8, %v6112_v16  ;;  %vm16559_vm11 = vmmov %vm16451_vm0  ;;  %v6116_v16 = vsel %vm11684_vm15, %v13601_v5, %v13912_v32  ;;  %v16572_v32 = vld [vmem:[#allocation30_spill] sm:$0xff] }
 0x353   : > { %10790 = vmatprep.mubr.msk.f32.mxu0 %vm16555_vm9, %v13551_v43  ;;  %vm16560_vm12 = vmmov %vm16451_vm0 }
 0x354   : > { %10741 = vmatmul.mubr.msk.f32.gmra.mxu1 %vm16451_vm0, %v16556_v30  ;;  %vm16562_vm8 = vmmov %vm16451_vm0 }
 0x355   : > { %10743 = vmatprep.mubr.msk.f32.mxu1 %vm16558_vm2, %v16557_v27  ;;  %vm16564_vm9 = vmmov %vm16451_vm0 }
 0x356   : > { %10791 = vmatmul.mubr.msk.f32.gmra.mxu0 %vm16559_vm11, %v6114_v29  ;;  %vm16565_vm2 = vmmov %vm16451_vm0  ;;  %v16568_v29 = vld [vmem:[#allocation25_spill] sm:$0xff] }
 0x357   : > { %10793 = vmatprep.mubr.msk.f32.mxu0 %vm16560_vm12, %v13572_v40  ;;  %vm16567_vm11 = vmmov %vm16451_vm0 }
 0x358   : > { %10744 = vmatmul.mubr.msk.f32.gmra.mxu1 %vm16562_vm8, %v16561_v31  ;;  %vm16569_vm12 = vmmov %vm16451_vm0 }
 0x359   : > { %10746 = vmatprep.mubr.msk.f32.mxu1 %vm16564_vm9, %v16563_v45  ;;  %vm16570_vm8 = vmmov %vm16451_vm0 }
 0x35a   : > { %10794 = vmatmul.mubr.msk.f32.gmra.mxu0 %vm16451_vm0, %v6116_v16  ;;  %vm16571_vm9 = vmmov %vm16451_vm0  ;;  %v16573_v16 = vld [vmem:[#allocation72_spill] sm:$0xff] }
 0x35b   : > { %10796 = vmatprep.mubr.msk.f32.mxu0 %vm16565_vm2, %v13593_v61  ;;  %vm16574_vm2 = vmmov %vm16451_vm0 }
 0x35c   : > { %10747 = vmatmul.mubr.msk.f32.gmra.mxu1 %vm16567_vm11, %v16566_v42  ;;  %vm16575_vm11 = vmmov %vm16451_vm0 }
 0x35d   : > { %10749 = vmatprep.mubr.msk.f32.mxu1 %vm16569_vm12, %v16568_v29  ;;  %vm16576_vm12 = vmmov %vm16451_vm0 }
 0x35e   : > { %10797 = vmatmul.mubr.msk.f32.gmra.mxu0 %vm16570_vm8, %v6118_v53  ;;  %vm16578_vm8 = vmmov %vm16451_vm0  ;;  %v16579_v53 = vld [vmem:[#allocation92_spill] sm:$0xff] }
 0x35f   : > { %10799 = vmatprep.mubr.msk.f32.mxu0 %vm16571_vm9, %v13614_v9  ;;  %vm16580_vm9 = vmmov %vm16451_vm0 }
 0x360   : > { %10750 = vmatmul.mubr.msk.f32.gmra.mxu1 %vm16451_vm0, %v16572_v32 }
 0x361   : > { %10752 = vmatprep.mubr.msk.f32.mxu1 %vm16574_vm2, %v16573_v16  ;;  %vm16581_vm2 = vmmov %vm16451_vm0 }
 0x362   : > { %10800 = vmatmul.mubr.msk.f32.gmra.mxu0 %vm16575_vm11, %v6120_v11  ;;  %v16582_v11 = vld [vmem:[#allocation95_spill] sm:$0xff]  ;;  %vm16583_vm11 = vmmov %vm16451_vm0 }
 0x363   : > { %10802 = vmatprep.mubr.msk.f32.mxu0 %vm16576_vm12, %v13635_v0  ;;  %vm16585_vm12 = vmmov %vm16451_vm0 }
 0x364   : > { %10753 = vmatmul.mubr.msk.f32.gmra.mxu1 %vm16578_vm8, %v16577_v2  ;;  %vm16586_vm8 = vmmov %vm16451_vm0 }
 0x365   : > { %10755 = vmatprep.mubr.msk.f32.mxu1 %vm16580_vm9, %v16579_v53  ;;  %vm16587_vm9 = vmmov %vm16451_vm0 }
 0x366   : > { %10803 = vmatmul.mubr.msk.f32.gmra.mxu0 %vm16451_vm0, %v6122_v47  ;;  %v16588_v47 = vld [vmem:[#allocation74_spill] sm:$0xff] }
 0x367   : > { %10805 = vmatprep.mubr.msk.f32.mxu0 %vm16581_vm2, %v13656_v33  ;;  %vm16590_vm2 = vmmov %vm16451_vm0 }
 0x368   : > { %10756 = vmatmul.mubr.msk.f32.gmra.mxu1 %vm16583_vm11, %v16582_v11  ;;  %vm16591_vm11 = vmmov %vm16451_vm0 }
 0x369   : > { %10758 = vmatprep.mubr.msk.f32.mxu1 %vm16585_vm12, %v16584_v57  ;;  %vm16592_vm12 = vmmov %vm16451_vm0 }
 0x36a   : > { %10806 = vmatmul.mubr.msk.f32.gmra.mxu0 %vm16586_vm8, %v6124_v23  ;;  %v16593_v23 = vld [vmem:[#allocation9_spill] sm:$0xff]  ;;  %vm16594_vm8 = vmmov %vm16451_vm0 }
 0x36b   : > { %10808 = vmatprep.mubr.msk.f32.mxu0 %vm16587_vm9, %v13677_v4  ;;  %vm16596_vm9 = vmmov %vm16451_vm0 }
 0x36c   : > { %10759 = vmatmul.mubr.msk.f32.gmra.mxu1 %vm16451_vm0, %v16588_v47  ;;  %vm16597_vm0 = vnez %v16495_v8  ;;  %vm16598_vm13 = vmmov %vm16590_vm2 }
 0x36d   : > { %10761 = vmatprep.mubr.msk.f32.mxu1 %vm16590_vm2, %v16589_v1  ;;  %v6128_v59 = vsel %vm16597_vm0, %v13734_v58, %v14008_v7  ;;  %vm16605_vm0 = vmmov %vm16590_vm2  ;;  %v16608_v7 = vld [vmem:[#allocation7_spill] sm:$0xff] }
 0x36e   : > { %10809 = vmatmul.mubr.msk.f32.gmra.mxu0 %vm16591_vm11, %v6126_v48  ;;  %v16599_v48 = vld [vmem:[#allocation34_spill] sm:$0xff]  ;;  %vm16600_vm11 = vmmov %vm16590_vm2 }
 0x36f   : > { %10811 = vmatprep.mubr.msk.f32.mxu0 %vm16592_vm12, %v13705_v50  ;;  %vm16602_vm12 = vmmov %vm16590_vm2 }
 0x370   : > { %10762 = vmatmul.mubr.msk.f32.gmra.mxu1 %vm16594_vm8, %v16593_v23  ;;  %vm16603_vm8 = vnez %v16501_v15  ;;  %v16617_v15 = vld [vmem:[#allocation68_spill] sm:$0xff] }
 0x371   : > { %10764 = vmatprep.mubr.msk.f32.mxu1 %vm16596_vm9, %v16595_v14  ;;  %v6130_v62 = vsel %vm16603_vm8, %v13755_v22, %v14024_v12  ;;  %vm16604_vm9 = vmmov %vm16590_vm2  ;;  %v16615_v12 = vld [vmem:[#allocation37_spill] sm:$0xff] }
 0x372   : > { %10812 = vmatmul.mubr.msk.f32.gmra.mxu0 %vm16590_vm2, %v6128_v59  ;;  %v16606_v59 = vld [vmem:[#allocation76_spill] sm:$0xff]  ;;  %vm16607_vm2 = vmmov %vm16605_vm0 }
 0x373   : > { %10814 = vmatprep.mubr.msk.f32.mxu0 %vm16598_vm13, %v13726_v10  ;;  %vm16609_vm13 = vmmov %vm16605_vm0 }
 0x374   : > { %10765 = vmatmul.mubr.msk.f32.gmra.mxu1 %vm16600_vm11, %v16599_v48  ;;  %vm16610_vm11 = vnez %v16507_v56  ;;  %vm16612_vm8 = vmmov %vm16605_vm0  ;;  %v16620_v56 = vld [vmem:[#allocation40_spill] sm:$0xff] }
 0x375   : > { %10767 = vmatprep.mubr.msk.f32.mxu1 %vm16602_vm12, %v16601_v52  ;;  %v6132_v8 = vsel %vm16610_vm11, %v13776_v60, %v14040_v3  ;;  %vm16611_vm12 = vmmov %vm16605_vm0  ;;  %v16624_v3 = vld [vmem:[#allocation27_spill] sm:$0xff] }
 0x376   : > { %10815 = vmatmul.mubr.msk.f32.gmra.mxu0 %vm16604_vm9, %v6130_v62  ;;  %v16613_v62 = vld [vmem:[#allocation96_spill] sm:$0xff]  ;;  %vm16614_vm9 = vmmov %vm16605_vm0 }
 0x377   : > { %10817 = vmatprep.mubr.msk.f32.mxu0 %vm16605_vm0, %v13747_v34  ;;  %vm16621_vm11 = vmmov %vm16605_vm0 }
 0x378   : > { %10768 = vmatmul.mubr.msk.f32.gmra.mxu1 %vm16607_vm2, %v16606_v59  ;;  %v16616_v59 = vld [vmem:[#allocation78_spill] sm:$0xff]  ;;  %vm16618_vm2 = vnez %v16617_v15  ;;  %v16628_v15 = vld [vmem:[#allocation16_spill] sm:$0xff] }
 0x379   : > { %10770 = vmatprep.mubr.msk.f32.mxu1 %vm16609_vm13, %v16608_v7  ;;  %v6134_v7 = vsel %vm16618_vm2, %v16616_v59, %v14056_v54  ;;  %vm16619_vm13 = vmmov %vm16605_vm0  ;;  %v16630_v54 = vld [vmem:[#allocation98_spill] sm:$0xff] }
 0x37a   : > { %10818 = vmatmul.mubr.msk.f32.gmra.mxu0 %vm16611_vm12, %v6132_v8  ;;  %v16622_v8 = vld [vmem:[#allocation79_spill] sm:$0xff]  ;;  %vm16623_vm12 = vmmov %vm16605_vm0 }
 0x37b   : > { %10820 = vmatprep.mubr.msk.f32.mxu0 %vm16612_vm8, %v13768_v38  ;;  %vm16625_vm8 = vmmov %vm16605_vm0 }
 0x37c   : > { %10771 = vmatmul.mubr.msk.f32.gmra.mxu1 %vm16614_vm9, %v16613_v62  ;;  %v16626_v62 = vld [vmem:[#allocation43_spill] sm:$0xff]  ;;  %vm16629_vm2 = vmmov %vm16605_vm0 }
 0x37d   : > { %10773 = vmatprep.mubr.msk.f32.mxu1 %vm16605_vm0, %v16615_v12  ;;  %vm16627_vm9 = vnez %v16626_v62 }
 0x37e   : > { %10821 = vmatmul.mubr.msk.f32.gmra.mxu0 %vm16619_vm13, %v6134_v7  ;;  %v6136_v12 = vsel %vm16627_vm9, %v13818_v35, %v14072_v21  ;;  %vm16631_vm13 = vmmov %vm16605_vm0  ;;  %v14283_v7 = vld [vmem:[#allocation2 + $0x108] sm:$0xff]  ;;  %v14292_v35 = vld [vmem:[#allocation2 + $0x111] sm:$0xff] }
 0x37f   : > { %10823 = vmatprep.mubr.msk.f32.mxu0 %vm16621_vm11, %v16620_v56  ;;  %vm16632_vm11 = vmmov %vm16605_vm0  ;;  %v16637_v21 = vld [vmem:[#allocation45_spill] sm:$0xff] }
 0x380   : > { %10774 = vmatmul.mubr.msk.f32.gmra.mxu1 %vm16623_vm12, %v16622_v8  ;;  %v16633_v8 = vld [vmem:[#allocation44_spill] sm:$0xff] }
 0x381   : > { %10776 = vmatprep.mubr.msk.f32.mxu1 %vm16625_vm8, %v16624_v3  ;;  %vm16634_vm12 = vnez %v16633_v8  ;;  %vm16635_vm8 = vmmov %vm16605_vm0 }
 0x382   : > { %10824 = vmatmul.mubr.msk.f32.gmra.mxu0 %vm16605_vm0, %v6136_v12  ;;  %v6138_v3 = vsel %vm16634_vm12, %v13831_v41, %v14092_v26  ;;  %v16638_v12 = vld [vmem:[#allocation4_spill] sm:$0xff]  ;;  %v6140_v41 = vsel %vm16537_vm7, %v14108_v17, %v14292_v35  ;;  %vm16646_vm12 = vcmask 1043456   ;;  %vm16647_vm7 = vmmov %vm16605_vm0 }
 0x383   : > { %10826 = vmatprep.mubr.msk.f32.mxu0 %vm16629_vm2, %v16628_v15  ;;  %v14296_v15 = vld [vmem:[#allocation2 + $0x110] sm:$0xff]  ;;  %vm16636_vm2 = vmmov %vm16605_vm0 }
 0x384   : > { %10777 = vmatmul.mubr.msk.f32.gmra.mxu1 %vm16631_vm13, %v16630_v54  ;;  %vm16639_vm13 = vnez %v16638_v12  ;;  %v16644_v12 = vld [vmem:[#allocation5_spill] sm:$0xff] }
 0x385   : > { %10779 = vmatprep.mubr.msk.f32.mxu1 %vm16632_vm11, %v14283_v7  ;;  %v7308_v54 = vsel %vm16639_vm13, %v13526_v37, %v16637_v21  ;;  %vm16640_vm11 = vmmov %vm16605_vm0  ;;  %vm16645_vm13 = vnez %v16644_v12 }
 0x386   : > { %10827 = vmatmul.mubr.msk.f32.gmra.mxu0 %vm16635_vm8, %v6138_v3  ;;  %vm16641_vm8 = vmmov %vm16605_vm0  ;;  %v16643_v3 = vld [vmem:[#allocation89_spill] sm:$0xff] }
 0x387   : > { %10829 = vmatprep.mubr.msk.f32.mxu0 %vm16605_vm0, %v14089_v49  ;;  %v10536_v26 = vpop.f32.mrf.mxu1  ;;  %v7310_v37 = vsel %vm16645_vm13, %v13551_v43, %v16643_v3  ;;  %v16650_v43 = vld [vmem:[#allocation22_spill] sm:$0xff]  ;;  %vm16655_vm13 = vmmov %vm16605_vm0 }
 0x388   : > { %10780 = vmatmul.mubr.msk.f32.gmra.mxu1 %vm16636_vm2, %v14296_v15  ;;  %vm16642_vm2 = vmmov %vm16605_vm0 }
 0x389   : > { %10834 = vmatprep.mubr.msk.f32.mxu1 %vm16640_vm11, %v7308_v54  ;;  %vm16648_vm11 = vmmov %vm16605_vm0  ;;  %v5142_v54 = vpop.f32.mrf.mxu1 }
 0x38a   : > { %10830 = vmatmul.mubr.msk.f32.gmra.mxu0 %vm16641_vm8, %v6140_v41  ;;  %vm16649_vm8 = vmmov %vm16605_vm0 }
 0x38b   : > { %10884 = vmatprep.mubr.msk.f32.mxu0 %vm16605_vm0, %v16545_v46 }
 0x38c   : > { %10835 = vmatmul.mubr.msk.f32.vlgmr.msra.gmra.mxu1 %vm16642_vm2, %v13559_v63  ;;  %vm16654_vm2 = vmmov %vm16605_vm0 }
 0x38d   : > { %10933 = vmatpush3.msk.msra.mxu1 %vm16646_vm12, %v14119_v19  ;;  %10837 = vmatprep.mubr.msk.f32.mxu1 %vm16647_vm7, %v7310_v37  ;;  %v10586_v21 = vpop.f32.mrf.mxu0  ;;  %v16651_v19 = vld [vmem:[#allocation8_spill] sm:$0xff]  ;;  %vm16653_vm7 = vmmov %vm16605_vm0 }
 0x38e   : > { %10885 = vmatmul.mubr.msk.f32.vlgmr.msra.gmra.mxu0 %vm16648_vm11, %v16550_v24  ;;  %v14323_v46 = vadd.f32 %v10586_v21, %v10536_v26  ;;  %vm16652_vm12 = vnez %v16651_v19  ;;  %vm16656_vm11 = vmmov %vm16605_vm0  ;;  %v16658_v21 = vld [vmem:[#allocation11_spill] sm:$0xff]  ;;  %v16664_v19 = vld [vmem:[#allocation14_spill] sm:$0xff] }
 0x38f   : > { %10887 = vmatprep.mubr.msk.f32.mxu0 %vm16649_vm8, %v16552_v51  ;;  %v5466_v63 = vpop.f32.mrf.mxu0  ;;  %v10539_v41 = vpop.f32.mrf.mxu1  ;;  %v7312_v3 = vsel %vm16652_vm12, %v13572_v40, %v16650_v43  ;;  %v16657_v40 = vld [vmem:[#allocation52_spill] sm:$0xff]  ;;  %vm16659_vm8 = vnez %v16658_v21  ;;  %vm16660_vm12 = vmmov %vm16605_vm0 }
 0x390   : > { %10838 = vmatmul.mubr.msk.f32.gmra.mxu1 %vm16605_vm0, %v13580_v28  ;;  %v14333_v12 = vadd.f32 %v5466_v63, %v5142_v54  ;;  %v7314_v54 = vsel %vm16659_vm8, %v13593_v61, %v16657_v40  ;;  %v16663_v61 = vld [vmem:[#allocation93_spill] sm:$0xff]  ;;  %vm16667_vm8 = vmmov %vm16605_vm0 }
 0x391   : > { %10840 = vmatprep.mubr.msk.f32.mxu1 %vm16653_vm7, %v7312_v3  ;;  %v10589_v24 = vpop.f32.mrf.mxu0  ;;  %v5152_v26 = vpop.f32.mrf.mxu1  ;;  %vm16661_vm7 = vmmov %vm16605_vm0 }
 0x392   : > { %10888 = vmatmul.mubr.msk.f32.gmra.mxu0 %vm16654_vm2, %v16556_v30  ;;  %v14338_v51 = vadd.f32 %v10589_v24, %v10539_v41  ;;  %vm16662_vm2 = vmmov %vm16605_vm0 }
 0x393   : > { %10890 = vmatprep.mubr.msk.f32.mxu0 %vm16655_vm13, %v16557_v27  ;;  %v5476_v28 = vpop.f32.mrf.mxu0  ;;  %v10542_v37 = vpop.f32.mrf.mxu1  ;;  %vm16665_vm13 = vnez %v16664_v19 }
 0x394   : > { %10841 = vmatmul.mubr.msk.f32.gmra.mxu1 %vm16656_vm11, %v13601_v5  ;;  %v14348_v63 = vadd.f32 %v5476_v28, %v5152_v26  ;;  %v7316_v3 = vsel %vm16665_vm13, %v13614_v9, %v16663_v61  ;;  %vm16666_vm11 = vmmov %vm16605_vm0  ;;  %v16669_v9 = vld [vmem:[#allocation73_spill] sm:$0xff] }
 0x395   : > { %10843 = vmatprep.mubr.msk.f32.mxu1 %vm16605_vm0, %v7314_v54  ;;  %v10592_v30 = vpop.f32.mrf.mxu0  ;;  %v5162_v41 = vpop.f32.mrf.mxu1  ;;  %vm16673_vm13 = vmmov %vm16605_vm0 }
 0x396   : > { %10891 = vmatmul.mubr.msk.f32.gmra.mxu0 %vm16660_vm12, %v16561_v31  ;;  %v14353_v27 = vadd.f32 %v10592_v30, %v10542_v37  ;;  %vm16668_vm12 = vmmov %vm16605_vm0  ;;  %v16670_v37 = vld [vmem:[#allocation17_spill] sm:$0xff] }
 0x397   : > { %10893 = vmatprep.mubr.msk.f32.mxu0 %vm16661_vm7, %v16563_v45  ;;  %v5486_v5 = vpop.f32.mrf.mxu0  ;;  %v10545_v43 = vpop.f32.mrf.mxu1  ;;  %vm16671_vm7 = vnez %v16670_v37 }
 0x398   : > { %10844 = vmatmul.mubr.msk.f32.gmra.mxu1 %vm16662_vm2, %v13622_v44  ;;  %v14363_v24 = vadd.f32 %v5486_v5, %v5162_v41  ;;  %v7318_v40 = vsel %vm16671_vm7, %v13635_v0, %v16669_v9  ;;  %vm16672_vm2 = vmmov %vm16605_vm0  ;;  %v16676_v0 = vld [vmem:[#allocation12_spill] sm:$0xff]  ;;  %v16690_v9 = vld [vmem:[#allocation26_spill] sm:$0xff] }
 0x399   : > { %10846 = vmatprep.mubr.msk.f32.mxu1 %vm16666_vm11, %v7316_v3  ;;  %v10595_v31 = vpop.f32.mrf.mxu0  ;;  %v5172_v26 = vpop.f32.mrf.mxu1  ;;  %vm16674_vm11 = vmmov %vm16605_vm0  ;;  %v16677_v41 = vld [vmem:[#allocation20_spill] sm:$0xff]  ;;  %v16683_v3 = vld [vmem:[#allocation23_spill] sm:$0xff] }
 0x39a   : > { %10894 = vmatmul.mubr.msk.f32.gmra.mxu0 %vm16667_vm8, %v16566_v42  ;;  %v14368_v45 = vadd.f32 %v10595_v31, %v10545_v43  ;;  %vm16675_vm8 = vmmov %vm16605_vm0 }
 0x39b   : > { %10896 = vmatprep.mubr.msk.f32.mxu0 %vm16605_vm0, %v16568_v29  ;;  %v5496_v44 = vpop.f32.mrf.mxu0  ;;  %v10548_v28 = vpop.f32.mrf.mxu1  ;;  %vm16678_vm0 = vnez %v16677_v41  ;;  %vm16680_vm7 = vmmov %vm16672_vm2 }
 0x39c   : > { %10847 = vmatmul.mubr.msk.f32.gmra.mxu1 %vm16668_vm12, %v13643_v6  ;;  %v14378_v21 = vadd.f32 %v5496_v44, %v5172_v26  ;;  %v7320_v5 = vsel %vm16678_vm0, %v13656_v33, %v16676_v0  ;;  %vm16679_vm12 = vmmov %vm16672_vm2  ;;  %v16682_v33 = vld [vmem:[#allocation31_spill] sm:$0xff] }
 0x39d   : > { %10849 = vmatprep.mubr.msk.f32.mxu1 %vm16672_vm2, %v7318_v40  ;;  %v10598_v42 = vpop.f32.mrf.mxu0  ;;  %v5182_v54 = vpop.f32.mrf.mxu1  ;;  %vm16686_vm0 = vmmov %vm16672_vm2 }
 0x39e   : > { %10897 = vmatmul.mubr.msk.f32.gmra.mxu0 %vm16673_vm13, %v16572_v32  ;;  %v14383_v29 = vadd.f32 %v10598_v42, %v10548_v28  ;;  %vm16681_vm13 = vmmov %vm16672_vm2 }
 0x39f   : > { %10899 = vmatprep.mubr.msk.f32.mxu0 %vm16674_vm11, %v16573_v16  ;;  %v5506_v6 = vpop.f32.mrf.mxu0  ;;  %v10551_v30 = vpop.f32.mrf.mxu1  ;;  %vm16684_vm11 = vnez %v16683_v3  ;;  %v16709_v3 = vld [vmem:[#allocation35_spill] sm:$0xff] }
 0x3a0   : > { %10850 = vmatmul.mubr.msk.f32.gmra.mxu1 %vm16675_vm8, %v13664_v13  ;;  %v14393_v43 = vadd.f32 %v5506_v6, %v5182_v54  ;;  %v7322_v31 = vsel %vm16684_vm11, %v13677_v4, %v16682_v33  ;;  %vm16685_vm8 = vmmov %vm16672_vm2  ;;  %v16689_v4 = vld [vmem:[#allocation75_spill] sm:$0xff]  ;;  %v16696_v6 = vld [vmem:[#allocation29_spill] sm:$0xff] }
 0x3a1   : > { %10852 = vmatprep.mubr.msk.f32.mxu1 %vm16679_vm12, %v7320_v5  ;;  %v10601_v32 = vpop.f32.mrf.mxu0  ;;  %v5192_v61 = vpop.f32.mrf.mxu1  ;;  %vm16687_vm12 = vmmov %vm16686_vm0 }
 0x3a2   : > { %10900 = vmatmul.mubr.msk.f32.gmra.mxu0 %vm16680_vm7, %v16577_v2  ;;  %v14398_v16 = vadd.f32 %v10601_v32, %v10551_v30  ;;  %vm16688_vm7 = vmmov %vm16686_vm0  ;;  %v16703_v32 = vld [vmem:[#allocation32_spill] sm:$0xff] }
 0x3a3   : > { %10902 = vmatprep.mubr.msk.f32.mxu0 %vm16672_vm2, %v16579_v53  ;;  %v5516_v13 = vpop.f32.mrf.mxu0  ;;  %v10554_v19 = vpop.f32.mrf.mxu1  ;;  %vm16691_vm2 = vnez %v16690_v9  ;;  %vm16693_vm11 = vmmov %vm16686_vm0  ;;  %v16715_v9 = vld [vmem:[#allocation38_spill] sm:$0xff] }
 0x3a4   : > { %10853 = vmatmul.mubr.msk.f32.gmra.mxu1 %vm16681_vm13, %v13692_v20  ;;  %v14408_v26 = vadd.f32 %v5516_v13, %v5192_v61  ;;  %v7324_v37 = vsel %vm16691_vm2, %v13705_v50, %v16689_v4  ;;  %vm16692_vm13 = vmmov %vm16686_vm0  ;;  %v16695_v50 = vld [vmem:[#allocation94_spill] sm:$0xff] }
 0x3a5   : > { %10855 = vmatprep.mubr.msk.f32.mxu1 %vm16685_vm8, %v7322_v31  ;;  %v10604_v2 = vpop.f32.mrf.mxu0  ;;  %v5202_v44 = vpop.f32.mrf.mxu1  ;;  %vm16694_vm8 = vmmov %vm16686_vm0 }
 0x3a6   : > { %10903 = vmatmul.mubr.msk.f32.gmra.mxu0 %vm16686_vm0, %v16582_v11  ;;  %v14413_v53 = vadd.f32 %v10604_v2, %v10554_v19  ;;  %vm16699_vm2 = vmmov %vm16686_vm0 }
 0x3a7   : > { %10905 = vmatprep.mubr.msk.f32.mxu0 %vm16687_vm12, %v16584_v57  ;;  %v5526_v20 = vpop.f32.mrf.mxu0  ;;  %v10557_v28 = vpop.f32.mrf.mxu1  ;;  %vm16697_vm12 = vnez %v16696_v6 }
 0x3a8   : > { %10856 = vmatmul.mubr.msk.f32.gmra.mxu1 %vm16688_vm7, %v13713_v25  ;;  %v14423_v40 = vadd.f32 %v5526_v20, %v5202_v44  ;;  %v7326_v30 = vsel %vm16697_vm12, %v13726_v10, %v16695_v50  ;;  %vm16698_vm7 = vmmov %vm16686_vm0  ;;  %v16702_v10 = vld [vmem:[#allocation36_spill] sm:$0xff] }
 0x3a9   : > { %10858 = vmatprep.mubr.msk.f32.mxu1 %vm16692_vm13, %v7324_v37  ;;  %v10607_v11 = vpop.f32.mrf.mxu0  ;;  %v5212_v42 = vpop.f32.mrf.mxu1  ;;  %vm16700_vm13 = vmmov %vm16686_vm0 }
 0x3aa   : > { %10906 = vmatmul.mubr.msk.f32.gmra.mxu0 %vm16693_vm11, %v16588_v47  ;;  %v14428_v57 = vadd.f32 %v10607_v11, %v10557_v28  ;;  %vm16701_vm11 = vmmov %vm16686_vm0 }
 0x3ab   : > { %10908 = vmatprep.mubr.msk.f32.mxu0 %vm16694_vm8, %v16589_v1  ;;  %v5536_v25 = vpop.f32.mrf.mxu0  ;;  %v10560_v54 = vpop.f32.mrf.mxu1  ;;  %vm16704_vm8 = vnez %v16703_v32  ;;  %vm16705_vm12 = vmmov %vm16686_vm0  ;;  %v7269_v32 = vld [vmem:[#allocation2 + $0xf0] sm:$0xff] }
 0x3ac   : > { %10859 = vmatmul.mubr.msk.f32.gmra.mxu1 %vm16686_vm0, %v13734_v58  ;;  %v14438_v0 = vadd.f32 %v5536_v25, %v5212_v42  ;;  %v7328_v61 = vsel %vm16704_vm8, %v13747_v34, %v16702_v10  ;;  %v16708_v34 = vld [vmem:[#allocation19_spill] sm:$0xff]  ;;  %vm16712_vm8 = vmmov %vm16686_vm0  ;;  %v7267_v42 = vld [vmem:[#allocation2 + $0xe0] sm:$0xff] }
 0x3ad   : > { %10861 = vmatprep.mubr.msk.f32.mxu1 %vm16698_vm7, %v7326_v30  ;;  %v10610_v47 = vpop.f32.mrf.mxu0  ;;  %v5222_v41 = vpop.f32.mrf.mxu1  ;;  %vm16706_vm7 = vmmov %vm16686_vm0  ;;  %v7238_v25 = vld [vmem:[#allocation2 + $0xf7] sm:$0xff]  ;;  %v7268_v30 = vld [vmem:[#allocation2 + $0xe8] sm:$0xff] }
 0x3ae   : > { %10909 = vmatmul.mubr.msk.f32.gmra.mxu0 %vm16699_vm2, %v16593_v23  ;;  %v14443_v1 = vadd.f32 %v10610_v47, %v10560_v54  ;;  %vm16707_vm2 = vmmov %vm16686_vm0  ;;  %v14484_v54 = vld [vmem:[#allocation2 + $0xf9] sm:$0xff] }
 0x3af   : > { %10911 = vmatprep.mubr.msk.f32.mxu0 %vm16700_vm13, %v16595_v14  ;;  %v5546_v58 = vpop.f32.mrf.mxu0  ;;  %v10563_v5 = vpop.f32.mrf.mxu1  ;;  %vm16710_vm13 = vnez %v16709_v3 }
 0x3b0   : > { %10862 = vmatmul.mubr.msk.f32.gmra.mxu1 %vm16701_vm11, %v13755_v22  ;;  %v14453_v13 = vadd.f32 %v5546_v58, %v5222_v41  ;;  %v7330_v31 = vsel %vm16710_vm13, %v13768_v38, %v16708_v34  ;;  %vm16711_vm11 = vmmov %vm16686_vm0  ;;  %v16714_v38 = vld [vmem:[#allocation99_spill] sm:$0xff]  ;;  %v16721_v58 = vld [vmem:[#allocation42_spill] sm:$0xff] }
 0x3b1   : > { %10864 = vmatprep.mubr.msk.f32.mxu1 %vm16686_vm0, %v7328_v61  ;;  %v10613_v23 = vpop.f32.mrf.mxu0  ;;  %v5232_v19 = vpop.f32.mrf.mxu1  ;;  %vm16718_vm13 = vmmov %vm16686_vm0 }
 0x3b2   : > { %10912 = vmatmul.mubr.msk.f32.gmra.mxu0 %vm16705_vm12, %v16599_v48  ;;  %v14458_v14 = vadd.f32 %v10613_v23, %v10563_v5  ;;  %v7265_v48 = vld [vmem:[#allocation2 + $0xd0] sm:$0xff]  ;;  %vm16713_vm12 = vmmov %vm16686_vm0 }
 0x3b3   : > { %10914 = vmatprep.mubr.msk.f32.mxu0 %vm16706_vm7, %v16601_v52  ;;  %v5556_v22 = vpop.f32.mrf.mxu0  ;;  %v10566_v33 = vpop.f32.mrf.mxu1  ;;  %v7266_v52 = vld [vmem:[#allocation2 + $0xd8] sm:$0xff]  ;;  %vm16716_vm7 = vnez %v16715_v9 }
 0x3b4   : > { %10865 = vmatmul.mubr.msk.f32.gmra.mxu1 %vm16707_vm2, %v13776_v60  ;;  %v14468_v2 = vadd.f32 %v5556_v22, %v5232_v19  ;;  %v7332_v37 = vsel %vm16716_vm7, %v16620_v56, %v16714_v38  ;;  %vm16717_vm2 = vmmov %vm16686_vm0  ;;  %v7270_v19 = vld [vmem:[#allocation2 + $0xf8] sm:$0xff] }
 0x3b5   : > { %10867 = vmatprep.mubr.msk.f32.mxu1 %vm16711_vm11, %v7330_v31  ;;  %v10616_v44 = vpop.f32.mrf.mxu0  ;;  %v5242_v20 = vpop.f32.mrf.mxu1  ;;  %vm16719_vm11 = vmmov %vm16686_vm0  ;;  %v16726_v31 = vld [vmem:[#allocation48_spill] sm:$0xff] }
 0x3b6   : > { %10915 = vmatmul.mubr.msk.f32.gmra.mxu0 %vm16712_vm8, %v7265_v48  ;;  %v14472_v28 = vadd.f32 %v10616_v44, %v10566_v33  ;;  %vm16720_vm8 = vmmov %vm16686_vm0  ;;  %v14504_v33 = vld [vmem:[#allocation2 + $0xff] sm:$0xff] }
 0x3b7   : > { %10917 = vmatprep.mubr.msk.f32.mxu0 %vm16686_vm0, %v7266_v52  ;;  %v5566_v60 = vpop.f32.mrf.mxu0  ;;  %v10569_v4 = vpop.f32.mrf.mxu1  ;;  %vm16722_vm0 = vnez %v16721_v58  ;;  %vm16724_vm7 = vmmov %vm16717_vm2  ;;  %v7242_v52 = vld [vmem:[#allocation2 + $0x117] sm:$0xff] }
 0x3b8   : > { %10868 = vmatmul.mubr.msk.f32.gmra.mxu1 %vm16713_vm12, %v16616_v59  ;;  %v14481_v11 = vadd.f32 %v5566_v60, %v5242_v20  ;;  %v14490_v59 = vld [vmem:[#allocation2 + $0xef] sm:$0xff]  ;;  %v7334_v5 = vsel %vm16722_vm0, %v14484_v54, %v7238_v25  ;;  %vm16723_vm12 = vmmov %vm16717_vm2  ;;  %v7271_v20 = vld [vmem:[#allocation2 + $0x100] sm:$0xff] }
 0x3b9   : > { %10870 = vmatprep.mubr.msk.f32.mxu1 %vm16717_vm2, %v7332_v37  ;;  %v10619_v50 = vpop.f32.mrf.mxu0  ;;  %v5252_v6 = vpop.f32.mrf.mxu1  ;;  %v14515_v60 = vld [vmem:[#allocation2 + $0x119] sm:$0xff]  ;;  %vm16729_vm0 = vmmov %vm16717_vm2 }
 0x3ba   : > { %10918 = vmatmul.mubr.msk.f32.gmra.mxu0 %vm16718_vm13, %v7267_v42  ;;  %v14487_v47 = vadd.f32 %v10619_v50, %v10569_v4  ;;  %vm16725_vm13 = vmmov %vm16717_vm2 }
 0x3bb   : > { %10920 = vmatprep.mubr.msk.f32.mxu0 %vm16719_vm11, %v7268_v30  ;;  %v5576_v56 = vpop.f32.mrf.mxu0  ;;  %v10572_v41 = vpop.f32.mrf.mxu1  ;;  %vm16727_vm11 = vnez %v16726_v31  ;;  %v10996_v31 = vld [vmem:[#allocation2 + $0x2f] sm:$0xff] }
 0x3bc   : > { %10871 = vmatmul.mubr.msk.f32.gmra.mxu1 %vm16720_vm8, %v14490_v59  ;;  %v14497_v10 = vadd.f32 %v5576_v56, %v5252_v6  ;;  %v7336_v48 = vsel %vm16727_vm11, %v14089_v49, %v14087_v39  ;;  %vm16728_vm8 = vmmov %vm16717_vm2  ;;  %v16732_v39 = vld [vmem:[#allocation53_spill] sm:$0xff]  ;;  %v7274_v56 = vld [vmem:[#allocation2 + $0x118] sm:$0xff] }
 0x3bd   : > { %10873 = vmatprep.mubr.msk.f32.mxu1 %vm16723_vm12, %v7334_v5  ;;  %v10622_v61 = vpop.f32.mrf.mxu0  ;;  %v5262_v23 = vpop.f32.mrf.mxu1  ;;  %vm16730_vm12 = vmmov %vm16729_vm0 }
 0x3be   : > { %10921 = vmatmul.mubr.msk.f32.gmra.mxu0 %vm16724_vm7, %v7269_v32  ;;  %v14501_v22 = vadd.f32 %v10622_v61, %v10572_v41  ;;  %vm16731_vm7 = vmmov %vm16729_vm0  ;;  %v14535_v41 = vld [vmem:[#allocation2 + $0x11f] sm:$0xff]  ;;  %v7277_v32 = vld [vmem:[#allocation2 + $0x31] sm:$0xff] }
 0x3bf   : > { %10923 = vmatprep.mubr.msk.f32.mxu0 %vm16717_vm2, %v7270_v19  ;;  %v5586_v34 = vpop.f32.mrf.mxu0  ;;  %v10575_v3 = vpop.f32.mrf.mxu1  ;;  %vm16733_vm2 = vnez %v16732_v39  ;;  %vm16735_vm11 = vmmov %vm16729_vm0  ;;  %v10995_v19 = vld [vmem:[#allocation2 + $0x29] sm:$0xff] }
 0x3c0   : > { %10874 = vmatmul.mubr.msk.f32.gmra.mxu1 %vm16725_vm13, %v14504_v33  ;;  %v14512_v44 = vadd.f32 %v5586_v34, %v5262_v23  ;;  %v7338_v25 = vsel %vm16733_vm2, %v14515_v60, %v7242_v52  ;;  %vm16734_vm13 = vmmov %vm16729_vm0  ;;  %v7275_v23 = vld [vmem:[#allocation2 + $0x120] sm:$0xff] }
 0x3c1   : > { %10876 = vmatprep.mubr.msk.f32.mxu1 %vm16728_vm8, %v7336_v48  ;;  %v10625_v4 = vpop.f32.mrf.mxu0  ;;  %v5272_v38 = vpop.f32.mrf.mxu1  ;;  %vm16736_vm8 = vmmov %vm16729_vm0  ;;  %v7341_v48 = vsel %vm16101_vm5, %v10996_v31, %v7277_v32  ;;  %v7281_v32 = vld [vmem:[#allocation2 + $0x51] sm:$0xff] }
 0x3c2   : > { %10924 = vmatmul.mubr.msk.f32.gmra.mxu0 %vm16729_vm0, %v7271_v20  ;;  %v14518_v9 = vadd.f32 %v10625_v4, %v10575_v3  ;;  %vm16739_vm2 = vmmov %vm16729_vm0  ;;  %v7279_v4 = vld [vmem:[#allocation2 + $0x41] sm:$0xff] }
 0x3c3   : > { %10926 = vmatprep.mubr.msk.f32.mxu0 %vm16730_vm12, %v14283_v7  ;;  %v5596_v37 = vpop.f32.mrf.mxu0  ;;  %v10578_v42 = vpop.f32.mrf.mxu1  ;;  %vm16737_vm12 = vmmov %vm16729_vm0 }
 0x3c4   : > { %10877 = vmatmul.mubr.msk.f32.gmra.mxu1 %vm16731_vm7, %v14108_v17  ;;  %v14527_v50 = vadd.f32 %v5596_v37, %v5272_v38  ;;  %vm16738_vm7 = vmmov %vm16729_vm0 }
 0x3c5   : > { %10879 = vmatprep.mubr.msk.f32.mxu1 %vm16734_vm13, %v7338_v25  ;;  %v10628_v6 = vpop.f32.mrf.mxu0  ;;  %v5282_v30 = vpop.f32.mrf.mxu1  ;;  %vm16740_vm13 = vmmov %vm16729_vm0 }
 0x3c6   : > { %10927 = vmatmul.mubr.msk.f32.gmra.mxu0 %vm16735_vm11, %v14296_v15  ;;  %v14532_v7 = vadd.f32 %v10628_v6, %v10578_v42  ;;  %v10997_v42 = vld [vmem:[#allocation2 + $0x39] sm:$0xff]  ;;  %vm16741_vm5 = vmmov %vm16729_vm0 }
 0x3c7   : > { %10929 = vmatprep.mubr.msk.f32.mxu0 %vm16736_vm8, %v7274_v56  ;;  %v5606_v58 = vpop.f32.mrf.mxu0  ;;  %v10581_v5 = vpop.f32.mrf.mxu1  ;;  %v7343_v56 = vsel %vm16004_vm14, %v10998_v36, %v7279_v4  ;;  %vm16742_vm11 = vmmov %vm16729_vm0 }
 0x3c8   : > { %10880 = vmatmul.mubr.msk.f32.gmra.mxu1 %vm16729_vm0, %v14535_v41  ;;  %v14539_v61 = vadd.f32 %v5606_v58, %v5282_v30  ;;  %vm16744_vm14 = vmmov %vm16729_vm0 }
 0x3c9   : > { %10934 = vmatprep.mubr.msk.f32.mxu1 %vm16737_vm12, %v10995_v19  ;;  %v10631_v15 = vpop.f32.mrf.mxu0  ;;  %v5292_v34 = vpop.f32.mrf.mxu1  ;;  %v10999_v19 = vld [vmem:[#allocation2 + $0x49] sm:$0xff]  ;;  %vm16745_vm8 = vmmov %vm16729_vm0 }
 0x3ca   : > { %10930 = vmatmul.mubr.msk.f32.gmra.mxu0 %vm16738_vm7, %v7275_v23  ;;  %v14543_v3 = vadd.f32 %v10631_v15, %v10581_v5  ;;  %vm16750_vm12 = vmmov %vm16729_vm0 }
 0x3cb   : > { %v5616_v20 = vpop.f32.mrf.mxu0  ;;  %v10636_v52 = vpop.f32.mrf.mxu1  ;;  %vm16753_vm7 = vmmov %vm16729_vm0 }
 0x3cc   : > { %10935 = vmatmul.mubr.msk.f32.vlgmr.msra.gmra.mxu1 %vm16739_vm2, %v7341_v48  ;;  %v14548_v38 = vadd.f32 %v5616_v20, %v5292_v34  ;;  %v5950_v37 = vadd.f32 %v10636_v52, %v14323_v46  ;;  %v7345_v20 = vsel %vm11657_vm3, %v11000_v18, %v7281_v32  ;;  %vm16747_vm3 = vmmov %vm16729_vm0 }
 0x3cd   : > { %10937 = vmatprep.mubr.msk.f32.mxu1 %vm16740_vm13, %v10997_v42  ;;  %v10686_v39 = vpop.f32.mrf.mxu0  ;;  %v5790_v25 = vpop.f32.mrf.mxu1  ;;  %vm16756_vm2 = vmmov %vm16729_vm0 }
 0x3ce   : > { %v14552_v6 = vadd.f32 %v10686_v39, %v5950_v37  ;;  %v5949_v30 = vadd.f32 %v5790_v25, %v14333_v12  ;;  %v7283_v37 = vld [vmem:[#allocation2 + $0x61] sm:$0xff]  ;;  %v11001_v39 = vld [vmem:[#allocation2 + $0x59] sm:$0xff]  ;;  %vm16759_vm13 = vmmov %vm16729_vm0 }
 0x3cf   : > { %v6309_v58 = vpop.f32.mrf.mxu0  ;;  %v10639_v5 = vpop.f32.mrf.mxu1 }
 0x3d0   : > { %10938 = vmatmul.mubr.msk.f32.gmra.mxu1 %vm16741_vm5, %v7343_v56  ;;  %v14558_v23 = vadd.f32 %v6309_v58, %v5949_v30  ;;  %v5952_v46 = vadd.f32 %v10639_v5, %v14338_v51  ;;  %v11002_v56 = vld [vmem:[#allocation2 + $0x5f] sm:$0xff]  ;;  %vm16762_vm5 = vmmov %vm16729_vm0 }
 0x3d1   : > { %10940 = vmatprep.mubr.msk.f32.mxu1 %vm16742_vm11, %v10999_v19  ;;  %v5800_v34 = vpop.f32.mrf.mxu1  ;;  %v7347_v5 = vsel %vm11684_vm15, %v11002_v56, %v7283_v37  ;;  %v7285_v19 = vld [vmem:[#allocation2 + $0x71] sm:$0xff]  ;;  %vm16749_vm15 = vmmov %vm16729_vm0 }
 0x3d2   : > { %v10689_v15 = vpop.f32.mrf.mxu0  ;;  %v5951_v12 = vadd.f32 %v5800_v34, %v14348_v63  ;;  %v11003_v34 = vld [vmem:[#allocation2 + $0x69] sm:$0xff]  ;;  %vm16763_vm11 = vmmov %vm16729_vm0 }
 0x3d3   : > { %v14562_v31 = vadd.f32 %v10689_v15, %v5952_v46  ;;  %v10642_v4 = vpop.f32.mrf.mxu1 }
 0x3d4   : > { %v6319_v52 = vpop.f32.mrf.mxu0  ;;  %10941 = vmatmul.mubr.msk.f32.gmra.mxu1 %vm16744_vm14, %v7345_v20  ;;  %v5954_v51 = vadd.f32 %v10642_v4, %v14353_v27  ;;  %v11004_v20 = vld [vmem:[#allocation2 + $0x6f] sm:$0xff] }
 0x3d5   : > { %v14568_v42 = vadd.f32 %v6319_v52, %v5951_v12  ;;  %10943 = vmatprep.mubr.msk.f32.mxu1 %vm16745_vm8, %v11001_v39  ;;  %v5810_v30 = vpop.f32.mrf.mxu1  ;;  %v7349_v4 = vsel %vm16468_vm4, %v11004_v20, %v7285_v19  ;;  %v7287_v39 = vld [vmem:[#allocation2 + $0x81] sm:$0xff]  ;;  %vm16752_vm4 = vmmov %vm16729_vm0 }
 0x3d6   : > { %v10692_v25 = vpop.f32.mrf.mxu0  ;;  %v5953_v63 = vadd.f32 %v5810_v30, %v14363_v24  ;;  %v11005_v30 = vld [vmem:[#allocation2 + $0x79] sm:$0xff]  ;;  %vm16766_vm8 = vmmov %vm16729_vm0 }
 0x3d7   : > { %v14572_v36 = vadd.f32 %v10692_v25, %v5954_v51  ;;  %v10645_v46 = vpop.f32.mrf.mxu1 }
 0x3d8   : > { %v6329_v32 = vpop.f32.mrf.mxu0  ;;  %10944 = vmatmul.mubr.msk.f32.gmra.mxu1 %vm16747_vm3, %v7347_v5  ;;  %v5956_v27 = vadd.f32 %v10645_v46, %v14368_v45  ;;  %v11006_v5 = vld [vmem:[#allocation2 + $0x7f] sm:$0xff]  ;;  %vm16767_vm3 = vmmov %vm16729_vm0 }
 0x3d9   : > { %v14578_v15 = vadd.f32 %v6329_v32, %v5953_v63  ;;  %10946 = vmatprep.mubr.msk.f32.mxu1 %vm16729_vm0, %v11003_v34  ;;  %v5820_v18 = vpop.f32.mrf.mxu1  ;;  %v7351_v46 = vsel %vm16473_vm1, %v11006_v5, %v7287_v39  ;;  %v7289_v34 = vld [vmem:[#allocation2 + $0x91] sm:$0xff]  ;;  %vm16755_vm1 = vmmov %vm16729_vm0 }
 0x3da   : > { %v10695_v12 = vpop.f32.mrf.mxu0  ;;  %v5955_v24 = vadd.f32 %v5820_v18, %v14378_v21  ;;  %v11007_v18 = vld [vmem:[#allocation2 + $0x89] sm:$0xff] }
 0x3db   : > { %v14582_v48 = vadd.f32 %v10695_v12, %v5956_v27  ;;  %v10648_v51 = vpop.f32.mrf.mxu1 }
 0x3dc   : > { %v6339_v37 = vpop.f32.mrf.mxu0  ;;  %10947 = vmatmul.mubr.msk.f32.gmra.mxu1 %vm16749_vm15, %v7349_v4  ;;  %v5958_v45 = vadd.f32 %v10648_v51, %v14383_v29  ;;  %v11008_v4 = vld [vmem:[#allocation2 + $0x8f] sm:$0xff]  ;;  %vm16770_vm15 = vmmov %vm16755_vm1 }
 0x3dd   : > { %v14588_v25 = vadd.f32 %v6339_v37, %v5955_v24  ;;  %10949 = vmatprep.mubr.msk.f32.mxu1 %vm16750_vm12, %v11005_v30  ;;  %v5830_v56 = vpop.f32.mrf.mxu1  ;;  %v7353_v51 = vsel %vm16479_vm10, %v11008_v4, %v7289_v34  ;;  %v7291_v30 = vld [vmem:[#allocation2 + $0xa1] sm:$0xff]  ;;  %vm16758_vm10 = vmmov %vm16729_vm0 }
 0x3de   : > { %v10698_v63 = vpop.f32.mrf.mxu0  ;;  %v5957_v21 = vadd.f32 %v5830_v56, %v14393_v43  ;;  %v11009_v56 = vld [vmem:[#allocation2 + $0x99] sm:$0xff]  ;;  %vm16771_vm12 = vmmov %vm16755_vm1 }
 0x3df   : > { %v14592_v58 = vadd.f32 %v10698_v63, %v5958_v45  ;;  %v10651_v27 = vpop.f32.mrf.mxu1 }
 0x3e0   : > { %v6349_v19 = vpop.f32.mrf.mxu0  ;;  %10950 = vmatmul.mubr.msk.f32.gmra.mxu1 %vm16752_vm4, %v7351_v46  ;;  %v5960_v29 = vadd.f32 %v10651_v27, %v14398_v16  ;;  %v11010_v46 = vld [vmem:[#allocation2 + $0x9f] sm:$0xff] }
 0x3e1   : > { %v14598_v12 = vadd.f32 %v6349_v19, %v5957_v21  ;;  %10952 = vmatprep.mubr.msk.f32.mxu1 %vm16753_vm7, %v11007_v18  ;;  %v5840_v20 = vpop.f32.mrf.mxu1  ;;  %v7355_v27 = vsel %vm16485_vm6, %v11010_v46, %v7291_v30  ;;  %v7293_v18 = vld [vmem:[#allocation2 + $0xb1] sm:$0xff]  ;;  %vm16774_vm7 = vmmov %vm16755_vm1 }
 0x3e2   : > { %v10701_v24 = vpop.f32.mrf.mxu0  ;;  %v5959_v43 = vadd.f32 %v5840_v20, %v14408_v26  ;;  %v11011_v20 = vld [vmem:[#allocation2 + $0xa9] sm:$0xff] }
 0x3e3   : > { %v14602_v52 = vadd.f32 %v10701_v24, %v5960_v29  ;;  %v10654_v45 = vpop.f32.mrf.mxu1 }
 0x3e4   : > { %v6359_v39 = vpop.f32.mrf.mxu0  ;;  %10953 = vmatmul.mubr.msk.f32.gmra.mxu1 %vm16755_vm1, %v7353_v51  ;;  %v5962_v16 = vadd.f32 %v10654_v45, %v14413_v53  ;;  %v11012_v51 = vld [vmem:[#allocation2 + $0xaf] sm:$0xff] }
 0x3e5   : > { %v14608_v63 = vadd.f32 %v6359_v39, %v5959_v43  ;;  %10955 = vmatprep.mubr.msk.f32.mxu1 %vm16756_vm2, %v11009_v56  ;;  %v5850_v5 = vpop.f32.mrf.mxu1  ;;  %v16760_v39 = vld [vmem:[#allocation64_spill] sm:$0xff]  ;;  %v7295_v56 = vld [vmem:[#allocation2 + $0xc1] sm:$0xff] }
 0x3e6   : > { %v10704_v21 = vpop.f32.mrf.mxu0  ;;  %v5961_v26 = vadd.f32 %v5850_v5, %v14423_v40  ;;  %vm16761_vm6 = vnez %v16760_v39  ;;  %v11013_v5 = vld [vmem:[#allocation2 + $0xb9] sm:$0xff] }
 0x3e7   : > { %v14612_v32 = vadd.f32 %v10704_v21, %v5962_v16  ;;  %v10657_v29 = vpop.f32.mrf.mxu1  ;;  %v7357_v45 = vsel %vm16761_vm6, %v11012_v51, %v7293_v18  ;;  %vm16779_vm6 = vmmov %vm16755_vm1 }
 0x3e8   : > { %v6369_v34 = vpop.f32.mrf.mxu0  ;;  %10956 = vmatmul.mubr.msk.f32.gmra.mxu1 %vm16758_vm10, %v7355_v27  ;;  %v5964_v53 = vadd.f32 %v10657_v29, %v14428_v57  ;;  %v11014_v27 = vld [vmem:[#allocation2 + $0xbf] sm:$0xff]  ;;  %vm16777_vm10 = vmmov %vm16755_vm1 }
 0x3e9   : > { %v14618_v24 = vadd.f32 %v6369_v34, %v5961_v26  ;;  %10958 = vmatprep.mubr.msk.f32.mxu1 %vm16759_vm13, %v11011_v20  ;;  %v5860_v4 = vpop.f32.mrf.mxu1  ;;  %v16764_v34 = vld [vmem:[#allocation65_spill] sm:$0xff]  ;;  %v7297_v20 = vld [vmem:[#allocation2 + $0xd1] sm:$0xff]  ;;  %vm16778_vm13 = vmmov %vm16755_vm1 }
 0x3ea   : > { %v10707_v43 = vpop.f32.mrf.mxu0  ;;  %v5963_v40 = vadd.f32 %v5860_v4, %v14438_v0  ;;  %vm16765_vm14 = vnez %v16764_v34  ;;  %v11015_v4 = vld [vmem:[#allocation2 + $0xc9] sm:$0xff] }
 0x3eb   : > { %v14622_v37 = vadd.f32 %v10707_v43, %v5964_v53  ;;  %v10660_v16 = vpop.f32.mrf.mxu1  ;;  %v7359_v29 = vsel %vm16765_vm14, %v11014_v27, %v7295_v56  ;;  %vm16783_vm14 = vmmov %vm16755_vm1 }
 0x3ec   : > { %v6379_v30 = vpop.f32.mrf.mxu0  ;;  %10959 = vmatmul.mubr.msk.f32.gmra.mxu1 %vm16762_vm5, %v7357_v45  ;;  %v5966_v57 = vadd.f32 %v10660_v16, %v14443_v1  ;;  %v11016_v45 = vld [vmem:[#allocation2 + $0xcf] sm:$0xff]  ;;  %vm16780_vm5 = vmmov %vm16755_vm1 }
 0x3ed   : > { %v14628_v21 = vadd.f32 %v6379_v30, %v5963_v40  ;;  %10961 = vmatprep.mubr.msk.f32.mxu1 %vm16763_vm11, %v11013_v5  ;;  %v5870_v46 = vpop.f32.mrf.mxu1  ;;  %v16768_v30 = vld [vmem:[#allocation66_spill] sm:$0xff]  ;;  %vm16782_vm11 = vmmov %vm16755_vm1 }
 0x3ee   : > { %v10710_v26 = vpop.f32.mrf.mxu0  ;;  %v5965_v0 = vadd.f32 %v5870_v46, %v14453_v13  ;;  %vm16769_vm0 = vnez %v16768_v30  ;;  %v7299_v5 = vld [vmem:[#allocation2 + $0xe1] sm:$0xff]  ;;  %v11017_v46 = vld [vmem:[#allocation2 + $0xd9] sm:$0xff] }
 0x3ef   : > { %v14632_v19 = vadd.f32 %v10710_v26, %v5966_v57  ;;  %v10663_v53 = vpop.f32.mrf.mxu1  ;;  %v7361_v16 = vsel %vm16769_vm0, %v11016_v45, %v7297_v20  ;;  %vm16812_vm0 = vmmov %vm16755_vm1 }
 0x3f0   : > { %v6389_v18 = vpop.f32.mrf.mxu0  ;;  %10962 = vmatmul.mubr.msk.f32.gmra.mxu1 %vm16766_vm8, %v7359_v29  ;;  %v5968_v1 = vadd.f32 %v10663_v53, %v14458_v14  ;;  %v11018_v29 = vld [vmem:[#allocation2 + $0xdf] sm:$0xff]  ;;  %vm16784_vm8 = vnez %v16536_v55 }
 0x3f1   : > { %v14638_v43 = vadd.f32 %v6389_v18, %v5965_v0  ;;  %10964 = vmatprep.mubr.msk.f32.mxu1 %vm16767_vm3, %v11015_v4  ;;  %v5880_v51 = vpop.f32.mrf.mxu1  ;;  %v16772_v18 = vld [vmem:[#allocation67_spill] sm:$0xff]  ;;  %vm16785_vm3 = vmmov %vm16755_vm1 }
 0x3f2   : > { %v10713_v40 = vpop.f32.mrf.mxu0  ;;  %v5967_v13 = vadd.f32 %v5880_v51, %v14468_v2  ;;  %vm16773_vm4 = vnez %v16772_v18  ;;  %v7301_v4 = vld [vmem:[#allocation2 + $0xf1] sm:$0xff]  ;;  %v11019_v51 = vld [vmem:[#allocation2 + $0xe9] sm:$0xff] }
 0x3f3   : > { %v14642_v39 = vadd.f32 %v10713_v40, %v5968_v1  ;;  %v10666_v57 = vpop.f32.mrf.mxu1  ;;  %v7363_v53 = vsel %vm16773_vm4, %v11018_v29, %v7299_v5  ;;  %vm16815_vm4 = vmmov %vm16812_vm0 }
 0x3f4   : > { %v6399_v56 = vpop.f32.mrf.mxu0  ;;  %10965 = vmatmul.mubr.msk.f32.gmra.mxu1 %vm16770_vm15, %v7361_v16  ;;  %v5970_v14 = vadd.f32 %v10666_v57, %v14472_v28  ;;  %v16775_v16 = vld [vmem:[#allocation68_spill] sm:$0xff]  ;;  %vm16813_vm15 = vmmov %vm16812_vm0 }
 0x3f5   : > { %v14648_v26 = vadd.f32 %v6399_v56, %v5967_v13  ;;  %10967 = vmatprep.mubr.msk.f32.mxu1 %vm16771_vm12, %v11017_v46  ;;  %v5890_v27 = vpop.f32.mrf.mxu1  ;;  %vm16776_vm2 = vnez %v16775_v16  ;;  %vm16814_vm12 = vmmov %vm16812_vm0 }
 0x3f6   : > { %v10716_v0 = vpop.f32.mrf.mxu0  ;;  %v5969_v2 = vadd.f32 %v5890_v27, %v14481_v11  ;;  %v7365_v56 = vsel %vm16776_vm2, %v14490_v59, %v7301_v4  ;;  %vm16818_vm2 = vmmov %vm16812_vm0 }
 0x3f7   : > { %v14652_v34 = vadd.f32 %v10716_v0, %v5970_v14  ;;  %v10669_v1 = vpop.f32.mrf.mxu1  ;;  %v7303_v14 = vld [vmem:[#allocation2 + $0x101] sm:$0xff] }
 0x3f8   : > { %v6409_v20 = vpop.f32.mrf.mxu0  ;;  %10968 = vmatmul.mubr.msk.f32.gmra.mxu1 %vm16774_vm7, %v7363_v53  ;;  %v5972_v28 = vadd.f32 %v10669_v1, %v14487_v47  ;;  %v7367_v59 = vsel %vm16627_vm9, %v14504_v33, %v7303_v14  ;;  %vm16781_vm9 = vnez %v16633_v8  ;;  %vm16816_vm7 = vmmov %vm16812_vm0 }
 0x3f9   : > { %v14658_v40 = vadd.f32 %v6409_v20, %v5969_v2  ;;  %10970 = vmatprep.mubr.msk.f32.mxu1 %vm16755_vm1, %v11019_v51  ;;  %v5900_v45 = vpop.f32.mrf.mxu1  ;;  %v7369_v62 = vsel %vm16781_vm9, %v14108_v17, %v14292_v35  ;;  %vm16817_vm1 = vmmov %vm16812_vm0 }
 0x3fa   : > { %v10719_v13 = vpop.f32.mrf.mxu0  ;;  %v5971_v11 = vadd.f32 %v5900_v45, %v14497_v10  ;;  %vm16823_vm9 = vmmov %vm16812_vm0 }
 0x3fb   : > { %v14662_v30 = vadd.f32 %v10719_v13, %v5972_v28  ;;  %v10672_v5 = vpop.f32.mrf.mxu1  ;;  %v7307_v28 = vld [vmem:[#allocation2 + $0x121] sm:$0xff] }
 0x3fc   : > { %v6419_v57 = vpop.f32.mrf.mxu0  ;;  %10971 = vmatmul.mubr.msk.f32.gmra.mxu1 %vm16777_vm10, %v7365_v56  ;;  %v5974_v47 = vadd.f32 %v10672_v5, %v14501_v22  ;;  %v7371_v17 = vsel %vm16784_vm8, %v14535_v41, %v7307_v28  ;;  %vm16819_vm10 = vmmov %vm16812_vm0 }
 0x3fd   : > { %v14669_v46 = vadd.f32 %v6419_v57, %v5971_v11  ;;  %10973 = vmatprep.mubr.msk.f32.mxu1 %vm16778_vm13, %v14484_v54  ;;  %v5910_v27 = vpop.f32.mrf.mxu1  ;;  %vm16820_vm13 = vmmov %vm16812_vm0 }
 0x3fe   : > { %v10722_v0 = vpop.f32.mrf.mxu0  ;;  %v5973_v10 = vadd.f32 %v5910_v27, %v14512_v44  ;;  %vm16829_vm8 = vmmov %vm16812_vm0 }
 0x3ff   : > { %v14674_v2 = vadd.f32 %v10722_v0, %v5974_v47  ;;  %v10675_v18 = vpop.f32.mrf.mxu1 }
 0x400   : > { %v6429_v29 = vpop.f32.mrf.mxu0  ;;  %10974 = vmatmul.mubr.msk.f32.gmra.mxu1 %vm16779_vm6, %v7367_v59  ;;  %v5976_v22 = vadd.f32 %v10675_v18, %v14518_v9  ;;  %vm16821_vm6 = vmmov %vm16812_vm0 }
 0x401   : > { %v14681_v53 = vadd.f32 %v6429_v29, %v5973_v10  ;;  %10976 = vmatprep.mubr.msk.f32.mxu1 %vm16780_vm5, %v14089_v49  ;;  %v5920_v20 = vpop.f32.mrf.mxu1  ;;  %vm16822_vm5 = vmmov %vm16812_vm0 }
 0x402   : > { %v10725_v54 = vpop.f32.mrf.mxu0  ;;  %v5975_v44 = vadd.f32 %v5920_v20, %v14527_v50 }
 0x403   : > { %v14686_v1 = vadd.f32 %v10725_v54, %v5976_v22  ;;  %v10678_v4 = vpop.f32.mrf.mxu1 }
 0x404   : > { %v6439_v33 = vpop.f32.mrf.mxu0  ;;  %10977 = vmatmul.mubr.msk.f32.gmra.mxu1 %vm16782_vm11, %v7369_v62  ;;  %v5978_v49 = vadd.f32 %v10678_v4, %v14532_v7  ;;  %vm16824_vm11 = vmmov %vm16812_vm0 }
 0x405   : > { %v14694_v9 = vadd.f32 %v6439_v33, %v5975_v44  ;;  %10979 = vmatprep.mubr.msk.f32.mxu1 %vm16783_vm14, %v14515_v60  ;;  %v5930_v13 = vpop.f32.mrf.mxu1  ;;  %vm16826_vm14 = vmmov %vm16812_vm0 }
 0x406   : > { %v10728_v51 = vpop.f32.mrf.mxu0  ;;  %v5977_v45 = vadd.f32 %v5930_v13, %v14539_v61 }
 0x407   : > { %v14699_v50 = vadd.f32 %v10728_v51, %v5978_v49  ;;  %v10681_v35 = vpop.f32.mrf.mxu1 }
 0x408   : > { %v6449_v8 = vpop.f32.mrf.mxu0  ;;  %10980 = vmatmul.mubr.msk.f32.gmra.mxu1 %vm16785_vm3, %v7371_v17  ;;  %v5980_v7 = vadd.f32 %v10681_v35, %v14543_v3  ;;  %vm16832_vm3 = vmmov %vm16812_vm0 }
 0x409   : > { %v14706_v11 = vadd.f32 %v6449_v8, %v5977_v45  ;;  %v5940_v60 = vpop.f32.mrf.mxu1 }
 0x40a   : > { %v10731_v16 = vpop.f32.mrf.mxu0  ;;  %v5979_v57 = vadd.f32 %v5940_v60, %v14548_v38 }
 0x40b   : > { %v14709_v56 = vadd.f32 %v10731_v16, %v5980_v7  ;;  %v10736_v61 = vpop.f32.mrf.mxu1 }
 0x40c   : > { %v6459_v5 = vpop.f32.mrf.mxu0  ;;  %v6825_v55 = vadd.f32 %v10736_v61, %v14552_v6 }
 0x40d   : > { %v14712_v14 = vadd.f32 %v6459_v5, %v5979_v57  ;;  %v6665_v47 = vpop.f32.mrf.mxu1 }
 0x40e   : > { %v10786_v41 = vpop.f32.mrf.mxu0  ;;  %v14718_v27 = vadd.f32 %v6665_v47, %v14558_v23 }
 0x40f   : > { %v14715_v0 = vadd.f32 %v10786_v41, %v6825_v55 }
 0x410   : > { %v14720_v3 = vpop.f32.mrf.mxu0  ;;  %v10739_v10 = vpop.f32.mrf.mxu1 }
 0x411   : > { %v6827_v59 = vadd.f32 %v10739_v10, %v14562_v31 }
 0x412   : > { %v10789_v29 = vpop.f32.mrf.mxu0  ;;  %v6675_v38 = vpop.f32.mrf.mxu1 }
 0x413   : > { %v14723_v18 = vadd.f32 %v10789_v29, %v6827_v59  ;;  %v14726_v22 = vadd.f32 %v6675_v38, %v14568_v42 }
 0x414   : > { %v14728_v6 = vpop.f32.mrf.mxu0  ;;  %v10742_v54 = vpop.f32.mrf.mxu1 }
 0x415   : > { %v6829_v20 = vadd.f32 %v10742_v54, %v14572_v36 }
 0x416   : > { %v10792_v44 = vpop.f32.mrf.mxu0  ;;  %v6685_v23 = vpop.f32.mrf.mxu1 }
 0x417   : > { %v14731_v62 = vadd.f32 %v10792_v44, %v6829_v20  ;;  %v14734_v33 = vadd.f32 %v6685_v23, %v14578_v15 }
 0x418   : > { %v14736_v31 = vpop.f32.mrf.mxu0  ;;  %v10745_v4 = vpop.f32.mrf.mxu1 }
 0x419   : > { %v6831_v28 = vadd.f32 %v10745_v4, %v14582_v48 }
 0x41a   : > { %v10795_v49 = vpop.f32.mrf.mxu0  ;;  %v6695_v42 = vpop.f32.mrf.mxu1 }
 0x41b   : > { %v14739_v51 = vadd.f32 %v10795_v49, %v6831_v28  ;;  %v14742_v13 = vadd.f32 %v6695_v42, %v14588_v25 }
 0x41c   : > { %v14744_v36 = vpop.f32.mrf.mxu0  ;;  %v10748_v45 = vpop.f32.mrf.mxu1 }
 0x41d   : > { %v6833_v17 = vadd.f32 %v10748_v45, %v14592_v58 }
 0x41e   : > { %v10798_v8 = vpop.f32.mrf.mxu0  ;;  %v6705_v15 = vpop.f32.mrf.mxu1 }
 0x41f   : > { %v14747_v35 = vadd.f32 %v10798_v8, %v6833_v17  ;;  %v14750_v7 = vadd.f32 %v6705_v15, %v14598_v12 }
 0x420   : > { %v14752_v48 = vpop.f32.mrf.mxu0  ;;  %v10751_v16 = vpop.f32.mrf.mxu1 }
 0x421   : > { %v6835_v60 = vadd.f32 %v10751_v16, %v14602_v52 }
 0x422   : > { %v10801_v57 = vpop.f32.mrf.mxu0  ;;  %v6715_v25 = vpop.f32.mrf.mxu1 }
 0x423   : > { %v14755_v5 = vadd.f32 %v10801_v57, %v6835_v60  ;;  %v14758_v61 = vadd.f32 %v6715_v25, %v14608_v63 }
 0x424   : > { %v14760_v58 = vpop.f32.mrf.mxu0  ;;  %v10754_v55 = vpop.f32.mrf.mxu1 }
 0x425   : > { %v6837_v41 = vadd.f32 %v10754_v55, %v14612_v32 }
 0x426   : > { %v10804_v47 = vpop.f32.mrf.mxu0  ;;  %v6725_v12 = vpop.f32.mrf.mxu1 }
 0x427   : > { %v14763_v10 = vadd.f32 %v10804_v47, %v6837_v41  ;;  %v14766_v59 = vadd.f32 %v6725_v12, %v14618_v24 }
 0x428   : > { %v14768_v52 = vpop.f32.mrf.mxu0  ;;  %v10757_v29 = vpop.f32.mrf.mxu1 }
 0x429   : > { %v6839_v38 = vadd.f32 %v10757_v29, %v14622_v37 }
 0x42a   : > { %v10807_v54 = vpop.f32.mrf.mxu0  ;;  %v6735_v63 = vpop.f32.mrf.mxu1 }
 0x42b   : > { %v14771_v20 = vadd.f32 %v10807_v54, %v6839_v38  ;;  %v14774_v44 = vadd.f32 %v6735_v63, %v14628_v21 }
 0x42c   : > { %v14776_v32 = vpop.f32.mrf.mxu0  ;;  %v10760_v23 = vpop.f32.mrf.mxu1 }
 0x42d   : > { %v6841_v4 = vadd.f32 %v10760_v23, %v14632_v19 }
 0x42e   : > { %v10810_v28 = vpop.f32.mrf.mxu0  ;;  %v6745_v24 = vpop.f32.mrf.mxu1 }
 0x42f   : > { %v14779_v49 = vadd.f32 %v10810_v28, %v6841_v4  ;;  %v14782_v42 = vadd.f32 %v6745_v24, %v14638_v43 }
 0x430   : > { %v14784_v37 = vpop.f32.mrf.mxu0  ;;  %v10763_v45 = vpop.f32.mrf.mxu1 }
 0x431   : > { %v6843_v17 = vadd.f32 %v10763_v45, %v14642_v39 }
 0x432   : > { %v10813_v8 = vpop.f32.mrf.mxu0  ;;  %v6755_v21 = vpop.f32.mrf.mxu1 }
 0x433   : > { %v14787_v15 = vadd.f32 %v10813_v8, %v6843_v17  ;;  %v14790_v16 = vadd.f32 %v6755_v21, %v14648_v26 }
 0x434   : > { %v14792_v19 = vpop.f32.mrf.mxu0  ;;  %v10766_v60 = vpop.f32.mrf.mxu1 }
 0x435   : > { %16786 = vst [vmem:[#allocation101_spill] sm:$0xff] %v14792_v19  ;;  %v6845_v57 = vadd.f32 %v10766_v60, %v14652_v34 }
 0x436   : > { %v10816_v25 = vpop.f32.mrf.mxu0  ;;  %v6765_v43 = vpop.f32.mrf.mxu1 }
 0x437   : > { %v14795_v55 = vadd.f32 %v10816_v25, %v6845_v57  ;;  %v14798_v41 = vadd.f32 %v6765_v43, %v14658_v40 }
 0x438   : > { %v14800_v39 = vpop.f32.mrf.mxu0  ;;  %v10769_v47 = vpop.f32.mrf.mxu1 }
 0x439   : > { %16787 = vst [vmem:[#allocation39_spill] sm:$0xff] %v14798_v41  ;;  %16788 = vst [vmem:[#allocation69_spill] sm:$0xff] %v14800_v39  ;;  %v6847_v12 = vadd.f32 %v10769_v47, %v14662_v30 }
 0x43a   : > { %v10819_v29 = vpop.f32.mrf.mxu0  ;;  %v6775_v26 = vpop.f32.mrf.mxu1 }
 0x43b   : > { %v14803_v38 = vadd.f32 %v10819_v29, %v6847_v12  ;;  %v14806_v54 = vadd.f32 %v6775_v26, %v14669_v46 }
 0x43c   : > { %v14808_v34 = vpop.f32.mrf.mxu0  ;;  %v10772_v63 = vpop.f32.mrf.mxu1 }
 0x43d   : > { %16789 = vst [vmem:[#allocation81_spill] sm:$0xff] %v14806_v54  ;;  %16790 = vst [vmem:[#allocation80_spill] sm:$0xff] %v14808_v34  ;;  %v6849_v23 = vadd.f32 %v10772_v63, %v14674_v2 }
 0x43e   : > { %v10822_v4 = vpop.f32.mrf.mxu0  ;;  %v6785_v40 = vpop.f32.mrf.mxu1 }
 0x43f   : > { %v14811_v28 = vadd.f32 %v10822_v4, %v6849_v23  ;;  %v14814_v24 = vadd.f32 %v6785_v40, %v14681_v53 }
 0x440   : > { %v14816_v30 = vpop.f32.mrf.mxu0  ;;  %v10775_v45 = vpop.f32.mrf.mxu1 }
 0x441   : > { %16791 = vst [vmem:[#allocation13_spill] sm:$0xff] %v14814_v24  ;;  %16792 = vst [vmem:[#allocation24_spill] sm:$0xff] %v14816_v30  ;;  %v6851_v17 = vadd.f32 %v10775_v45, %v14686_v1 }
 0x442   : > { %v10825_v8 = vpop.f32.mrf.mxu0  ;;  %v6795_v46 = vpop.f32.mrf.mxu1 }
 0x443   : > { %v14819_v21 = vadd.f32 %v10825_v8, %v6851_v17  ;;  %v14822_v60 = vadd.f32 %v6795_v46, %v14694_v9 }
 0x444   : > { %v14824_v2 = vpop.f32.mrf.mxu0  ;;  %v10778_v57 = vpop.f32.mrf.mxu1 }
 0x445   : > { %16793 = vst [vmem:[#allocation100_spill] sm:$0xff] %v14822_v60  ;;  %16794 = vst [vmem:[#allocation103_spill] sm:$0xff] %v14824_v2  ;;  %v6853_v25 = vadd.f32 %v10778_v57, %v14699_v50 }
 0x446   : > { %v10828_v43 = vpop.f32.mrf.mxu0  ;;  %v6805_v53 = vpop.f32.mrf.mxu1 }
 0x447   : > { %v14827_v47 = vadd.f32 %v10828_v43, %v6853_v25  ;;  %v14830_v12 = vadd.f32 %v6805_v53, %v14706_v11 }
 0x448   : > { %v14832_v1 = vpop.f32.mrf.mxu0  ;;  %v10781_v29 = vpop.f32.mrf.mxu1 }
 0x449   : > { %16795 = vst [vmem:[#allocation46_spill] sm:$0xff] %v14830_v12  ;;  %16796 = vst [vmem:[#allocation41_spill] sm:$0xff] %v14832_v1  ;;  %v6855_v26 = vadd.f32 %v10781_v29, %v14709_v56 }
 0x44a   : > { %v10831_v63 = vpop.f32.mrf.mxu0  ;;  %v6815_v9 = vpop.f32.mrf.mxu1 }
 0x44b   : > { %v14835_v23 = vadd.f32 %v10831_v63, %v6855_v26  ;;  %v14838_v4 = vadd.f32 %v6815_v9, %v14712_v14 }
 0x44c   : > { %v14840_v50 = vpop.f32.mrf.mxu0  ;;  %v10836_v40 = vpop.f32.mrf.mxu1 }
 0x44d   : > { %16797 = vst [vmem:[#allocation82_spill] sm:$0xff] %v14838_v4  ;;  %16798 = vst [vmem:[#allocation83_spill] sm:$0xff] %v14840_v50  ;;  %v14843_v45 = vadd.f32 %v10836_v40, %v14715_v0 }
 0x44e   : > { %v14845_v11 = vpop.f32.mrf.mxu0  ;;  %v7540_v17 = vpop.f32.mrf.mxu1 }
 0x450   : > { %v14847_v8 = vpop.f32.mrf.mxu0  ;;  %v10839_v46 = vpop.f32.mrf.mxu1 }
 0x451   : > { %v14850_v56 = vadd.f32 %v10839_v46, %v14723_v18 }
 0x452   : > { %v14852_v57 = vpop.f32.mrf.mxu0  ;;  %v14854_v25 = vpop.f32.mrf.mxu1 }
 0x454   : > { %v10842_v14 = vpop.f32.mrf.mxu1  ;;  %v14859_v53 = vpop.f32.mrf.mxu0 }
 0x455   : > { %v14857_v43 = vadd.f32 %v10842_v14, %v14731_v62 }
 0x456   : > { %v14861_v0 = vpop.f32.mrf.mxu1  ;;  %v14866_v63 = vpop.f32.mrf.mxu0 }
 0x458   : > { %v10845_v29 = vpop.f32.mrf.mxu1  ;;  %v14873_v46 = vpop.f32.mrf.mxu0 }
 0x459   : > { %v14864_v26 = vadd.f32 %v10845_v29, %v14739_v51 }
 0x45a   : > { %v14868_v18 = vpop.f32.mrf.mxu1  ;;  %v14880_v4 = vpop.f32.mrf.mxu0 }
 0x45c   : > { %v10848_v9 = vpop.f32.mrf.mxu1  ;;  %v14887_v12 = vpop.f32.mrf.mxu0 }
 0x45d   : > { %v14871_v40 = vadd.f32 %v10848_v9, %v14747_v35 }
 0x45e   : > { %v14875_v62 = vpop.f32.mrf.mxu1  ;;  %v14894_v60 = vpop.f32.mrf.mxu0 }
 0x460   : > { %v10851_v14 = vpop.f32.mrf.mxu1  ;;  %v14901_v24 = vpop.f32.mrf.mxu0 }
 0x461   : > { %v14878_v50 = vadd.f32 %v10851_v14, %v14755_v5 }
 0x462   : > { %v14882_v51 = vpop.f32.mrf.mxu1  ;;  %v14908_v54 = vpop.f32.mrf.mxu0 }
 0x464   : > { %v10854_v29 = vpop.f32.mrf.mxu1  ;;  %v14915_v41 = vpop.f32.mrf.mxu0 }
 0x465   : > { %v14885_v1 = vadd.f32 %v10854_v29, %v14763_v10 }
 0x466   : > { %v14889_v35 = vpop.f32.mrf.mxu1  ;;  %v14922_v19 = vpop.f32.mrf.mxu0 }
 0x468   : > { %v10857_v9 = vpop.f32.mrf.mxu1 }
 0x469   : > { %v14892_v2 = vadd.f32 %v10857_v9, %v14771_v20 }
 0x46a   : > { %v14896_v5 = vpop.f32.mrf.mxu1 }
 0x46c   : > { %v10860_v14 = vpop.f32.mrf.mxu1 }
 0x46d   : > { %v14899_v30 = vadd.f32 %v10860_v14, %v14779_v49 }
 0x46e   : > { %v14903_v10 = vpop.f32.mrf.mxu1 }
 0x46f   : > { %16799 = vst [vmem:[#allocation21_spill] sm:$0xff] %v14899_v30 }
 0x470   : > { %v10863_v29 = vpop.f32.mrf.mxu1 }
 0x471   : > { %v14906_v34 = vadd.f32 %v10863_v29, %v14787_v15 }
 0x472   : > { %v14910_v20 = vpop.f32.mrf.mxu1 }
 0x473   : > { %16800 = vst [vmem:[#allocation28_spill] sm:$0xff] %v14906_v34  ;;  %16801 = vst [vmem:[#allocation102_spill] sm:$0xff] %v14910_v20  ;;  %v14929_v20 = vpop.f32.mrf.mxu0 }
 0x474   : > { %v10866_v9 = vpop.f32.mrf.mxu1 }
 0x475   : > { %v14913_v39 = vadd.f32 %v10866_v9, %v14795_v55 }
 0x476   : > { %v14917_v49 = vpop.f32.mrf.mxu1 }
 0x477   : > { %16802 = vst [vmem:[#allocation105_spill] sm:$0xff] %v14913_v39  ;;  %16803 = vst [vmem:[#allocation85_spill] sm:$0xff] %v14917_v49  ;;  %v14936_v49 = vpop.f32.mrf.mxu0 }
 0x478   : > { %v10869_v14 = vpop.f32.mrf.mxu1 }
 0x479   : > { %v14920_v30 = vadd.f32 %v10869_v14, %v14803_v38 }
 0x47a   : > { %v14924_v15 = vpop.f32.mrf.mxu1 }
 0x47b   : > { %16804 = vst [vmem:[#allocation84_spill] sm:$0xff] %v14920_v30  ;;  %16805 = vst [vmem:[#allocation51_spill] sm:$0xff] %v14924_v15  ;;  %v14943_v15 = vpop.f32.mrf.mxu0 }
 0x47c   : > { %v10872_v29 = vpop.f32.mrf.mxu1 }
 0x47d   : > { %v14927_v34 = vadd.f32 %v10872_v29, %v14811_v28  ;;  %v7180_v29 = vadd.f32 %v14720_v3, %v14718_v27 }
 0x47e   : > { %v14931_v55 = vpop.f32.mrf.mxu1 }
 0x47f   : > { %16806 = vst [vmem:[#allocation104_spill] sm:$0xff] %v14927_v34  ;;  %16807 = vst [vmem:[#allocation86_spill] sm:$0xff] %v14931_v55  ;;  %v7699_v55 = vadd.f32 %v7540_v17, %v7180_v29 }
 0x480   : > { %v10875_v9 = vpop.f32.mrf.mxu1 }
 0x481   : > { %v14934_v39 = vadd.f32 %v10875_v9, %v14819_v21  ;;  %v14952_v9 = vpop.f32.mrf.mxu0 }
 0x482   : > { %v14938_v38 = vpop.f32.mrf.mxu1 }
 0x483   : > { %16808 = vst [vmem:[#allocation87_spill] sm:$0xff] %v14934_v39  ;;  %v14962_v3 = vpop.f32.mrf.mxu0 }
 0x484   : > { %v10878_v14 = vpop.f32.mrf.mxu1 }
 0x485   : > { %v14941_v30 = vadd.f32 %v10878_v14, %v14827_v47  ;;  %v7182_v47 = vadd.f32 %v14728_v6, %v14726_v22  ;;  %v8058_v22 = vadd.f32 %v14852_v57, %v14850_v56 }
 0x486   : > { %v14945_v28 = vpop.f32.mrf.mxu1 }
 0x487   : > { %16809 = vst [vmem:[#allocation88_spill] sm:$0xff] %v14941_v30  ;;  %16810 = vst [vmem:[#allocation56_spill] sm:$0xff] %v14945_v28  ;;  %v8056_v30 = vadd.f32 %v14845_v11, %v14843_v45  ;;  %v8055_v28 = vadd.f32 %v14847_v8, %v7699_v55  ;;  %v7701_v27 = vadd.f32 %v14854_v25, %v7182_v47  ;;  %v14976_v8 = vpop.f32.mrf.mxu0 }
 0x488   : > { %v10881_v34 = vpop.f32.mrf.mxu1 }
 0x489   : > { %v14950_v21 = vadd.f32 %v10881_v34, %v14835_v23  ;;  %v7184_v34 = vadd.f32 %v14736_v31, %v14734_v33  ;;  %v8057_v6 = vadd.f32 %v14859_v53, %v7701_v27  ;;  %v7186_v33 = vadd.f32 %v14744_v36, %v14742_v13  ;;  %v14992_v13 = vpop.f32.mrf.mxu0 }
 0x48a   : > { %v14954_v39 = vpop.f32.mrf.mxu1  ;;  %v8060_v53 = vadd.f32 %v14866_v63, %v14857_v43 }
 0x48b   : > { %16811 = vst [vmem:[#allocation57_spill] sm:$0xff] %v14950_v21  ;;  %v7703_v45 = vadd.f32 %v14861_v0, %v7184_v34 }
 0x48c   : > { %v10936_v14 = vpop.f32.mrf.mxu1 }
 0x48d   : > { %v14966_v23 = vadd.f32 %v10936_v14, %v8056_v30  ;;  %v8059_v0 = vadd.f32 %v14873_v46, %v7703_v45 }
 0x48e   : > { %v8252_v17 = vpop.f32.mrf.mxu1 }
 0x48f   : > { %v14968_v29 = vadd.f32 %v8252_v17, %v8055_v28  ;;  %v8446_v31 = vsel %vm16813_vm15, %v14966_v23, 0.0  ;;  %v7705_v28 = vadd.f32 %v14868_v18, %v7186_v33  ;;  %v8062_v18 = vadd.f32 %v14880_v4, %v14864_v26  ;;  %vm16837_vm15 = vmmov %vm16812_vm0 }
 0x490   : > { %v10939_v21 = vpop.f32.mrf.mxu1 }
 0x491   : > { %v8445_v11 = vsel %vm16812_vm0, %v14968_v29, 0.0  ;;  %v14982_v30 = vadd.f32 %v10939_v21, %v8058_v22  ;;  %v7188_v21 = vadd.f32 %v14752_v48, %v14750_v7  ;;  %v8061_v34 = vadd.f32 %v14887_v12, %v7705_v28  ;;  %v15008_v7 = vpop.f32.mrf.mxu0 }
 0x492   : > { %v8262_v25 = vpop.f32.mrf.mxu1  ;;  %v8447_v56 = vadd.f32 %v8446_v31, %v8445_v11  ;;  %v7190_v11 = vadd.f32 %v14760_v58, %v14758_v61 }
 0x493   : > { %v14984_v55 = vadd.f32 %v8262_v25, %v8057_v6  ;;  %v8450_v27 = vsel %vm16815_vm4, %v14982_v30, 0.0  ;;  %v7707_v22 = vadd.f32 %v14875_v62, %v7188_v21  ;;  %v8064_v62 = vadd.f32 %v14894_v60, %v14871_v40  ;;  %v15024_v61 = vpop.f32.mrf.mxu0  ;;  %vm16843_vm4 = vmmov %vm16812_vm0 }
 0x494   : > { %v10942_v57 = vpop.f32.mrf.mxu1 }
 0x495   : > { %v8448_v47 = vsel %vm16814_vm12, %v14984_v55, 0.0  ;;  %v14998_v17 = vadd.f32 %v10942_v57, %v8060_v53  ;;  %v8063_v31 = vadd.f32 %v14901_v24, %v7707_v22  ;;  %vm16840_vm12 = vmmov %vm16812_vm0 }
 0x496   : > { %v8449_v36 = vadd.f32 %v8448_v47, %v8447_v56  ;;  %v8272_v14 = vpop.f32.mrf.mxu1  ;;  %v7709_v56 = vadd.f32 %v14882_v51, %v7190_v11  ;;  %v8066_v51 = vadd.f32 %v14908_v54, %v14878_v50 }
 0x497   : > { %v15000_v43 = vadd.f32 %v8272_v14, %v8059_v0  ;;  %v8454_v25 = vsel %vm16817_vm1, %v14998_v17, 0.0  ;;  %v7192_v0 = vadd.f32 %v14768_v52, %v14766_v59  ;;  %v15040_v59 = vpop.f32.mrf.mxu0  ;;  %vm16849_vm1 = vmmov %vm16812_vm0 }
 0x498   : > { %v8451_v63 = vadd.f32 %v8450_v27, %v8449_v36  ;;  %v10945_v46 = vpop.f32.mrf.mxu1  ;;  %v8065_v36 = vadd.f32 %v14915_v41, %v7709_v56  ;;  %v16825_v56 = vld [vmem:[#allocation101_spill] sm:$0xff] }
 0x499   : > { %v8452_v6 = vsel %vm16816_vm7, %v15000_v43, 0.0  ;;  %v15014_v33 = vadd.f32 %v10945_v46, %v8062_v18  ;;  %v7711_v14 = vadd.f32 %v14889_v35, %v7192_v0  ;;  %v8068_v35 = vadd.f32 %v14922_v19, %v14885_v1  ;;  %vm16846_vm7 = vmmov %vm16812_vm0 }
 0x49a   : > { %v8453_v48 = vadd.f32 %v8452_v6, %v8451_v63  ;;  %v8282_v45 = vpop.f32.mrf.mxu1  ;;  %v7194_v63 = vadd.f32 %v14776_v32, %v14774_v44  ;;  %v8006_v44 = vpop.f32.mrf.mxu0 }
 0x49b   : > { %v15016_v4 = vadd.f32 %v8282_v45, %v8061_v34  ;;  %v8458_v28 = vsel %vm16819_vm10, %v15014_v33, 0.0  ;;  %v8067_v34 = vadd.f32 %v14929_v20, %v7711_v14  ;;  %v7196_v45 = vadd.f32 %v14784_v37, %v14782_v42  ;;  %vm16854_vm10 = vmmov %vm16812_vm0 }
 0x49c   : > { %v8455_v12 = vadd.f32 %v8454_v25, %v8453_v48  ;;  %v10948_v26 = vpop.f32.mrf.mxu1  ;;  %v7713_v22 = vadd.f32 %v14896_v5, %v7194_v63  ;;  %v8070_v5 = vadd.f32 %v14936_v49, %v14892_v2  ;;  %v10922_v42 = vpop.f32.mrf.mxu0 }
 0x49d   : > { %v8456_v57 = vsel %vm16818_vm2, %v15016_v4, 0.0  ;;  %v15030_v47 = vadd.f32 %v10948_v26, %v8064_v62  ;;  %v7715_v26 = vadd.f32 %v14903_v10, %v7196_v45  ;;  %vm16851_vm2 = vmmov %vm16812_vm0 }
 0x49e   : > { %v8457_v58 = vadd.f32 %v8456_v57, %v8455_v12  ;;  %v8292_v53 = vpop.f32.mrf.mxu1  ;;  %v8069_v20 = vadd.f32 %v14943_v15, %v7713_v22  ;;  %v7198_v57 = vadd.f32 %v16825_v56, %v14790_v16  ;;  %v16827_v15 = vld [vmem:[#allocation21_spill] sm:$0xff]  ;;  %v8016_v16 = vpop.f32.mrf.mxu0 }
 0x49f   : > { %v15032_v60 = vadd.f32 %v8292_v53, %v8063_v31  ;;  %v8462_v46 = vsel %vm16821_vm6, %v15030_v47, 0.0  ;;  %v8072_v10 = vadd.f32 %v14952_v9, %v16827_v15  ;;  %v16834_v22 = vld [vmem:[#allocation85_spill] sm:$0xff]  ;;  %vm16860_vm6 = vmmov %vm16812_vm0 }
 0x4a0   : > { %v8459_v24 = vadd.f32 %v8458_v28, %v8457_v58  ;;  %v10951_v40 = vpop.f32.mrf.mxu1  ;;  %v8071_v28 = vadd.f32 %v14962_v3, %v7715_v26 }
 0x4a1   : > { %v8460_v21 = vsel %vm16820_vm13, %v15032_v60, 0.0  ;;  %v15046_v18 = vadd.f32 %v10951_v40, %v8066_v51  ;;  %vm16857_vm13 = vmmov %vm16812_vm0 }
 0x4a2   : > { %v8461_v52 = vadd.f32 %v8460_v21, %v8459_v24  ;;  %v8302_v27 = vpop.f32.mrf.mxu1  ;;  %v16828_v24 = vld [vmem:[#allocation102_spill] sm:$0xff]  ;;  %v16830_v21 = vld [vmem:[#allocation39_spill] sm:$0xff] }
 0x4a3   : > { %v15048_v54 = vadd.f32 %v8302_v27, %v8065_v36  ;;  %v8466_v11 = vsel %vm16823_vm9, %v15046_v18, 0.0  ;;  %v7717_v40 = vadd.f32 %v16828_v24, %v7198_v57  ;;  %v16839_v57 = vld [vmem:[#allocation51_spill] sm:$0xff]  ;;  %v16842_v24 = vld [vmem:[#allocation24_spill] sm:$0xff]  ;;  %vm16863_vm9 = vmmov %vm16812_vm0 }
 0x4a4   : > { %v8463_v41 = vadd.f32 %v8462_v46, %v8461_v52  ;;  %v10954_v50 = vpop.f32.mrf.mxu1  ;;  %v16831_v52 = vld [vmem:[#allocation69_spill] sm:$0xff] }
 0x4a5   : > { %v8464_v6 = vsel %vm16822_vm5, %v15048_v54, 0.0  ;;  %v15060_v25 = vadd.f32 %v10954_v50, %v8068_v35  ;;  %v7200_v27 = vadd.f32 %v16831_v52, %v16830_v21  ;;  %v16833_v50 = vld [vmem:[#allocation28_spill] sm:$0xff]  ;;  %vm16862_vm5 = vmmov %vm16812_vm0 }
 0x4a6   : > { %v8465_v32 = vadd.f32 %v8464_v6, %v8463_v41  ;;  %v8312_v48 = vpop.f32.mrf.mxu1  ;;  %v8074_v35 = vadd.f32 %v14976_v8, %v16833_v50  ;;  %v16844_v21 = vld [vmem:[#allocation84_spill] sm:$0xff] }
 0x4a7   : > { %v15062_v12 = vadd.f32 %v8312_v48, %v8067_v34  ;;  %v8470_v58 = vsel %vm16826_vm14, %v15060_v25, 0.0  ;;  %v8073_v34 = vadd.f32 %v14992_v13, %v7717_v40  ;;  %v7719_v6 = vadd.f32 %v16834_v22, %v7200_v27  ;;  %v10925_v48 = vpop.f32.mrf.mxu0  ;;  %v16847_v22 = vld [vmem:[#allocation100_spill] sm:$0xff]  ;;  %vm16866_vm14 = vmmov %vm16812_vm0 }
 0x4a8   : > { %v8467_v19 = vadd.f32 %v8466_v11, %v8465_v32  ;;  %v10957_v1 = vpop.f32.mrf.mxu1  ;;  %v8078_v52 = vadd.f32 %v15040_v59, %v16844_v21 }
 0x4a9   : > { %v8468_v62 = vsel %vm16824_vm11, %v15062_v12, 0.0  ;;  %v15074_v53 = vadd.f32 %v10957_v1, %v8070_v5  ;;  %v16836_v1 = vld [vmem:[#allocation80_spill] sm:$0xff]  ;;  %v8075_v56 = vadd.f32 %v15024_v61, %v7719_v6  ;;  %v16848_v6 = vld [vmem:[#allocation103_spill] sm:$0xff]  ;;  %vm16865_vm11 = vmmov %vm16812_vm0 }
 0x4aa   : > { %v8469_v37 = vadd.f32 %v8468_v62, %v8467_v19  ;;  %v8322_v31 = vpop.f32.mrf.mxu1  ;;  %v16835_v19 = vld [vmem:[#allocation81_spill] sm:$0xff] }
 0x4ab   : > { %v15076_v0 = vadd.f32 %v8322_v31, %v8069_v20  ;;  %v8474_v63 = vsel %vm16832_vm3, %v15074_v53, 0.0  ;;  %v7202_v5 = vadd.f32 %v16836_v1, %v16835_v19  ;;  %v16850_v1 = vld [vmem:[#allocation104_spill] sm:$0xff]  ;;  %vm16868_vm3 = vmmov %vm16812_vm0 }
 0x4ac   : > { %v8471_v2 = vadd.f32 %v8470_v58, %v8469_v37  ;;  %v10960_v49 = vpop.f32.mrf.mxu1  ;;  %v16838_v37 = vld [vmem:[#allocation105_spill] sm:$0xff] }
 0x4ad   : > { %v8472_v51 = vsel %vm16829_vm8, %v15076_v0, 0.0  ;;  %v15088_v46 = vadd.f32 %v10960_v49, %v8072_v10  ;;  %v8076_v31 = vadd.f32 %v15008_v7, %v16838_v37  ;;  %v7721_v58 = vadd.f32 %v16839_v57, %v7202_v5  ;;  %v8026_v49 = vpop.f32.mrf.mxu0  ;;  %v16852_v57 = vld [vmem:[#allocation46_spill] sm:$0xff]  ;;  %vm16867_vm8 = vmmov %vm16812_vm0 }
 0x4ae   : > { %v8473_v36 = vadd.f32 %v8472_v51, %v8471_v2  ;;  %v8332_v14 = vpop.f32.mrf.mxu1  ;;  %v8080_v5 = vadd.f32 %v10922_v42, %v16850_v1 }
 0x4af   : > { %v15090_v41 = vadd.f32 %v8332_v14, %v8071_v28  ;;  %v8478_v20 = vsel %vm16837_vm15, %v15088_v46, 0.0  ;;  %v16841_v28 = vld [vmem:[#allocation13_spill] sm:$0xff]  ;;  %v8077_v27 = vadd.f32 %v8006_v44, %v7721_v58  ;;  %v10928_v50 = vpop.f32.mrf.mxu0  ;;  %vm16869_vm15 = vmmov %vm16812_vm0 }
 0x4b0   : > { %v8475_v9 = vadd.f32 %v8474_v63, %v8473_v36  ;;  %v10963_v3 = vpop.f32.mrf.mxu1  ;;  %v7204_v40 = vadd.f32 %v16842_v24, %v16841_v28  ;;  %v16845_v63 = vld [vmem:[#allocation86_spill] sm:$0xff]  ;;  %v16853_v58 = vld [vmem:[#allocation41_spill] sm:$0xff] }
 0x4b1   : > { %v8476_v32 = vsel %vm16812_vm0, %v15090_v41, 0.0  ;;  %v15102_v26 = vadd.f32 %v10963_v3, %v8074_v35  ;;  %v8036_v37 = vpop.f32.mrf.mxu0 }
 0x4b2   : > { %v8477_v45 = vadd.f32 %v8476_v32, %v8475_v9  ;;  %v8342_v11 = vpop.f32.mrf.mxu1  ;;  %v7723_v9 = vadd.f32 %v16845_v63, %v7204_v40  ;;  %v7206_v32 = vadd.f32 %v16848_v6, %v16847_v22  ;;  %v16858_v63 = vld [vmem:[#allocation82_spill] sm:$0xff] }
 0x4b3   : > { %v15104_v62 = vadd.f32 %v8342_v11, %v8073_v34  ;;  %v8482_v51 = vsel %vm16843_vm4, %v15102_v26, 0.0  ;;  %v10931_v21 = vpop.f32.mrf.mxu0  ;;  %vm16871_vm4 = vmmov %vm16812_vm0 }
 0x4b4   : > { %v8479_v8 = vadd.f32 %v8478_v20, %v8477_v45  ;;  %v10966_v13 = vpop.f32.mrf.mxu1  ;;  %v8079_v20 = vadd.f32 %v8016_v16, %v7723_v9  ;;  %v16855_v16 = vld [vmem:[#allocation87_spill] sm:$0xff] }
 0x4b5   : > { %v8480_v2 = vsel %vm16840_vm12, %v15104_v62, 0.0  ;;  %v15116_v36 = vadd.f32 %v10966_v13, %v8076_v31  ;;  %v8082_v40 = vadd.f32 %v10925_v48, %v16855_v16  ;;  %v16859_v9 = vld [vmem:[#allocation83_spill] sm:$0xff]  ;;  %v8046_v1 = vpop.f32.mrf.mxu0  ;;  %vm16870_vm12 = vmmov %vm16812_vm0 }
 0x4b6   : > { %v8481_v15 = vadd.f32 %v8480_v2, %v8479_v8  ;;  %v8352_v10 = vpop.f32.mrf.mxu1  ;;  %v7725_v8 = vadd.f32 %v14938_v38, %v7206_v32  ;;  %v7208_v2 = vadd.f32 %v16853_v58, %v16852_v57  ;;  %v16864_v58 = vld [vmem:[#allocation57_spill] sm:$0xff] }
 0x4b7   : > { %v15118_v14 = vadd.f32 %v8352_v10, %v8075_v56  ;;  %v8486_v45 = vsel %vm16849_vm1, %v15116_v36, 0.0  ;;  %vm16873_vm1 = vmmov %vm16812_vm0 }
 0x4b8   : > { %v8483_v7 = vadd.f32 %v8482_v51, %v8481_v15  ;;  %v10969_v61 = vpop.f32.mrf.mxu1  ;;  %v8081_v38 = vadd.f32 %v8026_v49, %v7725_v8  ;;  %v16856_v51 = vld [vmem:[#allocation56_spill] sm:$0xff] }
 0x4b9   : > { %v8484_v3 = vsel %vm16846_vm7, %v15118_v14, 0.0  ;;  %v15129_v11 = vadd.f32 %v10969_v61, %v8078_v52  ;;  %vm16872_vm7 = vmmov %vm16812_vm0 }
 0x4ba   : > { %v8485_v35 = vadd.f32 %v8484_v3, %v8483_v7  ;;  %v8362_v34 = vpop.f32.mrf.mxu1  ;;  %v7727_v7 = vadd.f32 %v16856_v51, %v7208_v2  ;;  %v7210_v3 = vadd.f32 %v16859_v9, %v16858_v63  ;;  %v8086_v2 = vadd.f32 %v10931_v21, %v16864_v58 }
 0x4bb   : > { %v15131_v19 = vadd.f32 %v8362_v34, %v8077_v27  ;;  %v8490_v15 = vsel %vm16854_vm10, %v15129_v11, 0.0  ;;  %vm16875_vm10 = vmmov %vm16812_vm0 }
 0x4bc   : > { %v8487_v59 = vadd.f32 %v8486_v45, %v8485_v35  ;;  %v10972_v44 = vpop.f32.mrf.mxu1  ;;  %v16861_v45 = vld [vmem:[#allocation88_spill] sm:$0xff]  ;;  %v8083_v49 = vadd.f32 %v8036_v37, %v7727_v7 }
 0x4bd   : > { %v8488_v13 = vsel %vm16851_vm2, %v15131_v19, 0.0  ;;  %v15141_v10 = vadd.f32 %v10972_v44, %v8080_v5  ;;  %v8084_v48 = vadd.f32 %v10928_v50, %v16861_v45  ;;  %vm16874_vm2 = vmmov %vm16812_vm0 }
 0x4be   : > { %v8489_v31 = vadd.f32 %v8488_v13, %v8487_v59  ;;  %v8372_v56 = vpop.f32.mrf.mxu1  ;;  %v7729_v59 = vadd.f32 %v14954_v39, %v7210_v3 }
 0x4bf   : > { %v8435_v28 = vadd.f32 %v8372_v56, %v8079_v20  ;;  %v8494_v35 = vsel %vm16860_vm6, %v15141_v10, 0.0  ;;  %vm16877_vm6 = vmmov %vm16812_vm0 }
 0x4c0   : > { %v8491_v24 = vadd.f32 %v8490_v15, %v8489_v31  ;;  %v10975_v42 = vpop.f32.mrf.mxu1  ;;  %v8085_v15 = vadd.f32 %v8046_v1, %v7729_v59 }
 0x4c1   : > { %v8492_v61 = vsel %vm16857_vm13, %v8435_v28, 0.0  ;;  %v8438_v34 = vadd.f32 %v10975_v42, %v8082_v40  ;;  %vm16876_vm13 = vmmov %vm16812_vm0 }
 0x4c2   : > { %v8493_v52 = vadd.f32 %v8492_v61, %v8491_v24  ;;  %v8382_v27 = vpop.f32.mrf.mxu1 }
 0x4c3   : > { %v8437_v22 = vadd.f32 %v8382_v27, %v8081_v38  ;;  %v8498_v8 = vsel %vm16863_vm9, %v8438_v34, 0.0  ;;  %vm16879_vm9 = vmmov %vm16812_vm0 }
 0x4c4   : > { %v8495_v6 = vadd.f32 %v8494_v35, %v8493_v52  ;;  %v10978_v32 = vpop.f32.mrf.mxu1 }
 0x4c5   : > { %v8496_v44 = vsel %vm16862_vm5, %v8437_v22, 0.0  ;;  %v8440_v13 = vadd.f32 %v10978_v32, %v8084_v48  ;;  %vm16878_vm5 = vmmov %vm16812_vm0 }
 0x4c6   : > { %v8497_v5 = vadd.f32 %v8496_v44, %v8495_v6  ;;  %v8392_v20 = vpop.f32.mrf.mxu1 }
 0x4c7   : > { %v8439_v31 = vadd.f32 %v8392_v20, %v8083_v49  ;;  %v8502_v39 = vsel %vm16866_vm14, %v8440_v13, 0.0  ;;  %vm16881_vm14 = vmmov %vm16812_vm0 }
 0x4c8   : > { %v8499_v56 = vadd.f32 %v8498_v8, %v8497_v5  ;;  %v10981_v57 = vpop.f32.mrf.mxu1 }
 0x4c9   : > { %v8500_v24 = vsel %vm16865_vm11, %v8439_v31, 0.0  ;;  %v8442_v42 = vadd.f32 %v10981_v57, %v8086_v2  ;;  %vm16880_vm11 = vmmov %vm16812_vm0 }
 0x4ca   : > { %v8501_v50 = vadd.f32 %v8500_v24, %v8499_v56  ;;  %v8402_v37 = vpop.f32.mrf.mxu1 }
 0x4cb   : > { %v8441_v16 = vadd.f32 %v8402_v37, %v8085_v15  ;;  %v8506_v7 = vsel %vm16868_vm3, %v8442_v42, 0.0  ;;  %vm16883_vm3 = vmmov %vm16812_vm0 }
 0x4cc   : > { %v8503_v40 = vadd.f32 %v8502_v39, %v8501_v50 }
 0x4cd   : > { %v8504_v38 = vsel %vm16867_vm8, %v8441_v16, 0.0  ;;  %vm16882_vm8 = vmmov %vm16812_vm0 }
 0x4ce   : > { %v8505_v51 = vadd.f32 %v8504_v38, %v8503_v40 }
 0x4d0   : > { %v8507_v61 = vadd.f32 %v8506_v7, %v8505_v51 }
 0x4d2   : > { %v8508_v52 = vrot.slane %v8507_v61, 4 }
 0x4d4   : > { %v8509_v27 = vadd.f32 %v8508_v52, %v8507_v61 }
 0x4d6   : > { %v8510_v63 = vrot.slane %v8509_v27, 2 }
 0x4d8   : > { %v8511_v21 = vadd.f32 %v8510_v63, %v8509_v27 }
 0x4da   : > { %v8512_v9 = vrot.slane %v8511_v21, 1 }
 0x4dc   : > { %v8513_v3 = vadd.f32 %v8512_v9, %v8511_v21 }
 0x4de   : > { %v8514_v35 = vmul.f32 0.00390625, %v8513_v3 }
 0x4e0   : > { %v15160_v6 = vsub.f32 %v15048_v54, %v8514_v35  ;;  %v15163_v32 = vsub.f32 %v15046_v18, %v8514_v35  ;;  %v15166_v45 = vsub.f32 %v15062_v12, %v8514_v35  ;;  %v15169_v48 = vsub.f32 %v15060_v25, %v8514_v35 }
 0x4e1   : > { %v15172_v49 = vsub.f32 %v15076_v0, %v8514_v35  ;;  %v15175_v59 = vsub.f32 %v15074_v53, %v8514_v35  ;;  %v15178_v44 = vsub.f32 %v15090_v41, %v8514_v35  ;;  %v15181_v54 = vsub.f32 %v15088_v46, %v8514_v35 }
 0x4e2   : > { %v15184_v18 = vsub.f32 %v15104_v62, %v8514_v35  ;;  %v15187_v12 = vsub.f32 %v15102_v26, %v8514_v35  ;;  %v15190_v25 = vsub.f32 %v15118_v14, %v8514_v35  ;;  %v15193_v0 = vsub.f32 %v15116_v36, %v8514_v35 }
 0x4e3   : > { %v15196_v53 = vsub.f32 %v15131_v19, %v8514_v35  ;;  %v15199_v41 = vsub.f32 %v15129_v11, %v8514_v35  ;;  %v15201_v46 = vsub.f32 %v8435_v28, %v8514_v35  ;;  %v15204_v62 = vsub.f32 %v15141_v10, %v8514_v35 }
 0x4e4   : > { %v15206_v1 = vsub.f32 %v8437_v22, %v8514_v35  ;;  %v15208_v26 = vsub.f32 %v8438_v34, %v8514_v35  ;;  %v15210_v14 = vsub.f32 %v8439_v31, %v8514_v35  ;;  %v15212_v5 = vsub.f32 %v8440_v13, %v8514_v35 }
 0x4e5   : > { %v15214_v36 = vsub.f32 %v8441_v16, %v8514_v35  ;;  %v15216_v19 = vsub.f32 %v8442_v42, %v8514_v35  ;;  %v15219_v11 = vsub.f32 %v14968_v29, %v8514_v35  ;;  %v15222_v28 = vsub.f32 %v14966_v23, %v8514_v35 }
 0x4e6   : > { %v15225_v10 = vsub.f32 %v14984_v55, %v8514_v35  ;;  %v15228_v34 = vsub.f32 %v14982_v30, %v8514_v35  ;;  %v15235_v8 = vsub.f32 %v15000_v43, %v8514_v35  ;;  %v15240_v23 = vsub.f32 %v14998_v17, %v8514_v35 }
 0x4e7   : > { %v8547_v22 = vmul.f32 %v15219_v11, %v15219_v11  ;;  %v8548_v20 = vmul.f32 %v15222_v28, %v15222_v28  ;;  %v15247_v56 = vsub.f32 %v15016_v4, %v8514_v35  ;;  %v15253_v17 = vsub.f32 %v15014_v33, %v8514_v35 }
 0x4e8   : > { %v8549_v29 = vmul.f32 %v15225_v10, %v15225_v10  ;;  %v8550_v55 = vmul.f32 %v15228_v34, %v15228_v34  ;;  %v8551_v43 = vmul.f32 %v15235_v8, %v15235_v8  ;;  %v8552_v2 = vmul.f32 %v15240_v23, %v15240_v23 }
 0x4e9   : > { %v8579_v30 = vsel %vm16812_vm0, %v8547_v22, 0.0  ;;  %v8580_v13 = vsel %vm16869_vm15, %v8548_v20, 0.0  ;;  %v15259_v50 = vsub.f32 %v15032_v60, %v8514_v35  ;;  %v8553_v4 = vmul.f32 %v15247_v56, %v15247_v56  ;;  %vm16884_vm15 = vmmov %vm16812_vm0 }
 0x4ea   : > { %v8581_v31 = vadd.f32 %v8580_v13, %v8579_v30  ;;  %v8582_v57 = vsel %vm16870_vm12, %v8549_v29, 0.0  ;;  %v8584_v15 = vsel %vm16871_vm4, %v8550_v55, 0.0  ;;  %v8586_v37 = vsel %vm16872_vm7, %v8551_v43, 0.0  ;;  %vm16885_vm12 = vmmov %vm16812_vm0 }
 0x4eb   : > { %v15265_v42 = vsub.f32 %v15030_v47, %v8514_v35  ;;  %v8554_v33 = vmul.f32 %v15253_v17, %v15253_v17  ;;  %v8588_v16 = vsel %vm16873_vm1, %v8552_v2, 0.0  ;;  %v8555_v38 = vmul.f32 %v15259_v50, %v15259_v50  ;;  %vm16886_vm4 = vmmov %vm16812_vm0 }
 0x4ec   : > { %v8583_v58 = vadd.f32 %v8582_v57, %v8581_v31  ;;  %v8590_v60 = vsel %vm16874_vm2, %v8553_v4, 0.0  ;;  %v8557_v47 = vmul.f32 %v15160_v6, %v15160_v6  ;;  %v8558_v21 = vmul.f32 %v15163_v32, %v15163_v32  ;;  %vm16887_vm7 = vmmov %vm16812_vm0 }
 0x4ed   : > { %v8556_v7 = vmul.f32 %v15265_v42, %v15265_v42  ;;  %v8592_v61 = vsel %vm16875_vm10, %v8554_v33, 0.0  ;;  %v8594_v27 = vsel %vm16876_vm13, %v8555_v38, 0.0  ;;  %v8559_v35 = vmul.f32 %v15166_v45, %v15166_v45  ;;  %vm16888_vm1 = vmmov %vm16812_vm0 }
 0x4ee   : > { %v8585_v24 = vadd.f32 %v8584_v15, %v8583_v58  ;;  %v8598_v22 = vsel %vm16878_vm5, %v8557_v47, 0.0  ;;  %v8560_v29 = vmul.f32 %v15169_v48, %v15169_v48  ;;  %v8600_v55 = vsel %vm16879_vm9, %v8558_v21, 0.0  ;;  %vm16889_vm2 = vmmov %vm16812_vm0 }
 0x4ef   : > { %v8596_v9 = vsel %vm16877_vm6, %v8556_v7, 0.0  ;;  %v8561_v13 = vmul.f32 %v15172_v49, %v15172_v49  ;;  %v8602_v31 = vsel %vm16880_vm11, %v8559_v35, 0.0  ;;  %v8562_v57 = vmul.f32 %v15175_v59, %v15175_v59  ;;  %vm16890_vm10 = vmmov %vm16812_vm0 }
 0x4f0   : > { %v8587_v39 = vadd.f32 %v8586_v37, %v8585_v24  ;;  %v8604_v58 = vsel %vm16881_vm14, %v8560_v29, 0.0  ;;  %v8563_v15 = vmul.f32 %v15178_v44, %v15178_v44  ;;  %v8564_v37 = vmul.f32 %v15181_v54, %v15181_v54  ;;  %vm16891_vm13 = vmmov %vm16812_vm0 }
 0x4f1   : > { %v8606_v24 = vsel %vm16882_vm8, %v8561_v13, 0.0  ;;  %vm16892_vm6 = vmmov %vm16812_vm0 }
 0x4f2   : > { %v8589_v40 = vadd.f32 %v8588_v16, %v8587_v39  ;;  %v8608_v39 = vsel %vm16883_vm3, %v8562_v57, 0.0  ;;  %v8565_v16 = vmul.f32 %v15184_v18, %v15184_v18  ;;  %vm16893_vm5 = vmmov %vm16812_vm0 }
 0x4f3   : > { %vm16894_vm9 = vmmov %vm16812_vm0 }
 0x4f4   : > { %v8591_v51 = vadd.f32 %v8590_v60, %v8589_v40  ;;  %v8610_v40 = vsel %vm16812_vm0, %v8563_v15, 0.0  ;;  %v8566_v60 = vmul.f32 %v15187_v12, %v15187_v12  ;;  %vm16895_vm11 = vmmov %vm16812_vm0 }
 0x4f5   : > { %vm16896_vm14 = vmmov %vm16812_vm0 }
 0x4f6   : > { %v8593_v52 = vadd.f32 %v8592_v61, %v8591_v51  ;;  %v8612_v51 = vsel %vm16884_vm15, %v8564_v37, 0.0  ;;  %v8567_v61 = vmul.f32 %v15190_v25, %v15190_v25  ;;  %vm16897_vm8 = vmmov %vm16812_vm0 }
 0x4f7   : > { %vm16898_vm3 = vmmov %vm16812_vm0 }
 0x4f8   : > { %v8595_v63 = vadd.f32 %v8594_v27, %v8593_v52  ;;  %v8614_v52 = vsel %vm16885_vm12, %v8565_v16, 0.0  ;;  %v8568_v27 = vmul.f32 %v15193_v0, %v15193_v0  ;;  %vm16902_vm15 = vmmov %vm16812_vm0 }
 0x4f9   : > { %vm16903_vm12 = vmmov %vm16812_vm0 }
 0x4fa   : > { %v8597_v3 = vadd.f32 %v8596_v9, %v8595_v63  ;;  %v8616_v63 = vsel %vm16886_vm4, %v8566_v60, 0.0  ;;  %v8569_v9 = vmul.f32 %v15196_v53, %v15196_v53  ;;  %vm16904_vm4 = vmmov %vm16812_vm0 }
 0x4fc   : > { %v8599_v20 = vadd.f32 %v8598_v22, %v8597_v3  ;;  %v8618_v3 = vsel %vm16887_vm7, %v8567_v61, 0.0  ;;  %v8570_v22 = vmul.f32 %v15199_v41, %v15199_v41  ;;  %vm16905_vm7 = vmmov %vm16812_vm0 }
 0x4fe   : > { %v8601_v30 = vadd.f32 %v8600_v55, %v8599_v20  ;;  %v8620_v20 = vsel %vm16888_vm1, %v8568_v27, 0.0  ;;  %v8571_v55 = vmul.f32 %v15201_v46, %v15201_v46  ;;  %vm16906_vm1 = vmmov %vm16812_vm0 }
 0x500   : > { %v8603_v43 = vadd.f32 %v8602_v31, %v8601_v30  ;;  %v8622_v30 = vsel %vm16889_vm2, %v8569_v9, 0.0  ;;  %v8572_v31 = vmul.f32 %v15204_v62, %v15204_v62  ;;  %vm16907_vm2 = vmmov %vm16812_vm0 }
 0x502   : > { %v8605_v2 = vadd.f32 %v8604_v58, %v8603_v43  ;;  %v8624_v43 = vsel %vm16890_vm10, %v8570_v22, 0.0  ;;  %v8573_v58 = vmul.f32 %v15206_v1, %v15206_v1  ;;  %vm16908_vm10 = vmmov %vm16812_vm0 }
 0x504   : > { %v8607_v4 = vadd.f32 %v8606_v24, %v8605_v2  ;;  %v8626_v2 = vsel %vm16891_vm13, %v8571_v55, 0.0  ;;  %v8574_v24 = vmul.f32 %v15208_v26, %v15208_v26  ;;  %vm16909_vm13 = vmmov %vm16812_vm0 }
 0x506   : > { %v8609_v33 = vadd.f32 %v8608_v39, %v8607_v4  ;;  %v8628_v4 = vsel %vm16892_vm6, %v8572_v31, 0.0  ;;  %v8575_v39 = vmul.f32 %v15210_v14, %v15210_v14  ;;  %vm16910_vm6 = vmmov %vm16812_vm0 }
 0x508   : > { %v8611_v38 = vadd.f32 %v8610_v40, %v8609_v33  ;;  %v8630_v33 = vsel %vm16893_vm5, %v8573_v58, 0.0  ;;  %v8576_v40 = vmul.f32 %v15212_v5, %v15212_v5  ;;  %vm16911_vm5 = vmmov %vm16812_vm0 }
 0x50a   : > { %v8613_v7 = vadd.f32 %v8612_v51, %v8611_v38  ;;  %v8632_v38 = vsel %vm16894_vm9, %v8574_v24, 0.0  ;;  %v8577_v51 = vmul.f32 %v15214_v36, %v15214_v36  ;;  %vm16912_vm9 = vmmov %vm16812_vm0 }
 0x50c   : > { %v8615_v47 = vadd.f32 %v8614_v52, %v8613_v7  ;;  %v8634_v7 = vsel %vm16895_vm11, %v8575_v39, 0.0  ;;  %v8578_v52 = vmul.f32 %v15216_v19, %v15216_v19  ;;  %vm16913_vm11 = vmmov %vm16812_vm0 }
 0x50e   : > { %v8617_v21 = vadd.f32 %v8616_v63, %v8615_v47  ;;  %v8636_v47 = vsel %vm16896_vm14, %v8576_v40, 0.0  ;;  %v8638_v63 = vsel %vm16897_vm8, %v8577_v51, 0.0  ;;  %v8640_v9 = vsel %vm16898_vm3, %v8578_v52, 0.0  ;;  %vm16914_vm14 = vmmov %vm16812_vm0 }
 0x50f   : > { %vm16915_vm8 = vmmov %vm16812_vm0 }
 0x510   : > { %v8619_v35 = vadd.f32 %v8618_v3, %v8617_v21  ;;  %vm16916_vm3 = vmmov %vm16812_vm0 }
 0x512   : > { %v8621_v29 = vadd.f32 %v8620_v20, %v8619_v35 }
 0x514   : > { %v8623_v13 = vadd.f32 %v8622_v30, %v8621_v29 }
 0x516   : > { %v8625_v57 = vadd.f32 %v8624_v43, %v8623_v13  ;;  %v8443_v43 = vld [vmem:[%s15555_s5] sm:$0x1] }
 0x518   : > { %v8627_v15 = vadd.f32 %v8626_v2, %v8625_v57  ;;  %v16899_v2 = vld [vmem:[#allocation3_spill] sm:$0xff] }
 0x51a   : > { %v8629_v37 = vadd.f32 %v8628_v4, %v8627_v15  ;;  %v16900_v15 = vsub.s32 0, %v16899_v2 }
 0x51c   : > { %v8631_v16 = vadd.f32 %v8630_v33, %v8629_v37 }
 0x51e   : > { %v8633_v60 = vadd.f32 %v8632_v38, %v8631_v16 }
 0x520   : > { %v8635_v61 = vadd.f32 %v8634_v7, %v8633_v60 }
 0x522   : > { %v8637_v27 = vadd.f32 %v8636_v47, %v8635_v61 }
 0x524   : > { %v8639_v21 = vadd.f32 %v8638_v63, %v8637_v27 }
 0x526   : > { %v8641_v3 = vadd.f32 %v8640_v9, %v8639_v21 }
 0x528   : > { %v8642_v35 = vrot.slane %v8641_v3, 4 }
 0x52a   : > { %v8643_v22 = vadd.f32 %v8642_v35, %v8641_v3  ;;  %v8728_v3 = vld [vmem:[%s11111_s14] sm:$0xff]  ;;  %v8729_v35 = vld [vmem:[%s11111_s14 + $0x8] sm:$0xff] }
 0x52c   : > { %v8644_v20 = vrot.slane %v8643_v22, 2 }
 0x52e   : > { %v8645_v29 = vadd.f32 %v8644_v20, %v8643_v22  ;;  %v8730_v22 = vld [vmem:[%s11111_s14 + $0x10] sm:$0xff]  ;;  %v8731_v20 = vld [vmem:[%s11111_s14 + $0x18] sm:$0xff] }
 0x530   : > { %v8646_v55 = vrot.slane %v8645_v29, 1 }
 0x532   : > { %v8647_v30 = vadd.f32 %v8646_v55, %v8645_v29 }
 0x534   : > { %v8648_v13 = vmul.f32 0.00390625, %v8647_v30 }
 0x536   : > { %v8649_v31 = vadd.f32 1e-05, %v8648_v13 }
 0x538   : > { %10993 = vrsqrt.f32 %v8649_v31  ;;  %v8732_v31 = vld [vmem:[%s11111_s14 + $0x20] sm:$0xff] }
 0x545   : > { %v10994_v57 = vpop.eup %10993 }
 0x546   : > { %v8651_v58 = vmul.f32 %v10994_v57, %v8443_v43  ;;  %v8733_v43 = vld [vmem:[%s11111_s14 + $0x28] sm:$0xff]  ;;  %v8734_v57 = vld [vmem:[%s11111_s14 + $0x30] sm:$0xff] }
 0x548   : > { %v8656_v24 = vrot.slane %v8651_v58, %v16900_v15  ;;  %v8735_v58 = vld [vmem:[%s11111_s14 + $0x38] sm:$0xff] }
 0x54a   : > { %v8658_v4 = vmul.f32 %v8656_v24, %v15219_v11  ;;  %v8659_v37 = vmul.f32 %v8656_v24, %v15222_v28  ;;  %v8660_v39 = vmul.f32 %v8656_v24, %v15225_v10  ;;  %v8661_v33 = vmul.f32 %v8656_v24, %v15228_v34 }
 0x54b   : > { %v8662_v16 = vmul.f32 %v8656_v24, %v15235_v8  ;;  %v8663_v40 = vmul.f32 %v8656_v24, %v15240_v23  ;;  %v8664_v38 = vmul.f32 %v8656_v24, %v15247_v56  ;;  %v8665_v60 = vmul.f32 %v8656_v24, %v15253_v17 }
 0x54c   : > { %v8666_v51 = vmul.f32 %v8656_v24, %v15259_v50  ;;  %v8667_v7 = vmul.f32 %v8656_v24, %v15265_v42  ;;  %v8668_v11 = vmul.f32 %v8656_v24, %v15160_v6  ;;  %v8669_v28 = vmul.f32 %v8656_v24, %v15163_v32  ;;  %v9483_v6 = vld [vmem:[%s15556_s6] ss:$0 sm:$0xff] }
 0x54d   : > { %v8670_v10 = vmul.f32 %v8656_v24, %v15166_v45  ;;  %v8671_v34 = vmul.f32 %v8656_v24, %v15169_v48  ;;  %v8672_v8 = vmul.f32 %v8656_v24, %v15172_v49  ;;  %v8673_v23 = vmul.f32 %v8656_v24, %v15175_v59 }
 0x54e   : > { %v8674_v56 = vmul.f32 %v8656_v24, %v15178_v44  ;;  %v8675_v17 = vmul.f32 %v8656_v24, %v15181_v54  ;;  %v8676_v50 = vmul.f32 %v8656_v24, %v15184_v18  ;;  %v8677_v42 = vmul.f32 %v8656_v24, %v15187_v12 }
 0x54f   : > { %v8678_v32 = vmul.f32 %v8656_v24, %v15190_v25  ;;  %v8679_v45 = vmul.f32 %v8656_v24, %v15193_v0  ;;  %v8680_v48 = vmul.f32 %v8656_v24, %v15196_v53  ;;  %v8681_v49 = vmul.f32 %v8656_v24, %v15199_v41 }
 0x550   : > { %v8682_v59 = vmul.f32 %v8656_v24, %v15201_v46  ;;  %v8683_v44 = vmul.f32 %v8656_v24, %v15204_v62  ;;  %v8684_v54 = vmul.f32 %v8656_v24, %v15206_v1  ;;  %v8685_v18 = vmul.f32 %v8656_v24, %v15208_v26 }
 0x551   : > { %v8686_v12 = vmul.f32 %v8656_v24, %v15210_v14  ;;  %v8687_v61 = vmul.f32 %v8656_v24, %v15212_v5  ;;  %v8688_v25 = vmul.f32 %v8656_v24, %v15214_v36  ;;  %v8689_v0 = vmul.f32 %v8656_v24, %v15216_v19 }
 0x552   : > { %v8696_v52 = vadd.f32 %v9483_v6, %v8658_v4  ;;  %v8697_v53 = vadd.f32 %v9483_v6, %v8659_v37  ;;  %v8698_v41 = vadd.f32 %v9483_v6, %v8660_v39  ;;  %v8699_v46 = vadd.f32 %v9483_v6, %v8661_v33  ;;  %v8736_v37 = vld [vmem:[%s11111_s14 + $0x40] sm:$0xff]  ;;  %v8737_v39 = vld [vmem:[%s11111_s14 + $0x48] sm:$0xff]  ;;  %v8738_v33 = vld [vmem:[%s11111_s14 + $0x50] sm:$0xff] }
 0x553   : > { %v8700_v62 = vadd.f32 %v9483_v6, %v8662_v16  ;;  %v8701_v1 = vadd.f32 %v9483_v6, %v8663_v40  ;;  %v8702_v47 = vadd.f32 %v9483_v6, %v8664_v38  ;;  %v8703_v26 = vadd.f32 %v9483_v6, %v8665_v60 }
 0x554   : > { %v8704_v27 = vadd.f32 %v9483_v6, %v8666_v51  ;;  %v8705_v14 = vadd.f32 %v9483_v6, %v8667_v7  ;;  %v8706_v5 = vadd.f32 %v9483_v6, %v8668_v11  ;;  %v8707_v36 = vadd.f32 %v9483_v6, %v8669_v28  ;;  %v8739_v51 = vld [vmem:[%s11111_s14 + $0x58] sm:$0xff]  ;;  %v8740_v7 = vld [vmem:[%s11111_s14 + $0x60] sm:$0xff]  ;;  %v8741_v11 = vld [vmem:[%s11111_s14 + $0x68] sm:$0xff] }
 0x555   : > { %v15384_v19 = vadd.f32 %v9483_v6, %v8670_v10  ;;  %v15386_v63 = vadd.f32 %v9483_v6, %v8671_v34  ;;  %v15388_v21 = vadd.f32 %v9483_v6, %v8672_v8  ;;  %v15390_v9 = vadd.f32 %v9483_v6, %v8673_v23  ;;  %v8742_v23 = vld [vmem:[%s11111_s14 + $0x70] sm:$0xff] }
 0x556   : > { %v15396_v29 = vadd.f32 %v9483_v6, %v8674_v56  ;;  %v15398_v55 = vadd.f32 %v9483_v6, %v8675_v17  ;;  %v15400_v30 = vadd.f32 %v9483_v6, %v8676_v50  ;;  %v15402_v13 = vadd.f32 %v9483_v6, %v8677_v42  ;;  %v8743_v56 = vld [vmem:[%s11111_s14 + $0x78] sm:$0xff]  ;;  %v8744_v17 = vld [vmem:[%s11111_s14 + $0x80] sm:$0xff]  ;;  %v8745_v50 = vld [vmem:[%s11111_s14 + $0x88] sm:$0xff] }
 0x557   : > { %v15408_v2 = vadd.f32 %v9483_v6, %v8678_v32  ;;  %v15410_v15 = vadd.f32 %v9483_v6, %v8679_v45  ;;  %v15412_v24 = vadd.f32 %v9483_v6, %v8680_v48  ;;  %v15414_v4 = vadd.f32 %v9483_v6, %v8681_v49  ;;  %v8746_v42 = vld [vmem:[%s11111_s14 + $0x90] sm:$0xff]  ;;  %v8747_v32 = vld [vmem:[%s11111_s14 + $0x98] sm:$0xff] }
 0x558   : > { %v15419_v16 = vadd.f32 %v9483_v6, %v8682_v59  ;;  %v15421_v40 = vadd.f32 %v9483_v6, %v8683_v44  ;;  %v15423_v38 = vadd.f32 %v9483_v6, %v8684_v54  ;;  %v15425_v60 = vadd.f32 %v9483_v6, %v8685_v18  ;;  %v8748_v44 = vld [vmem:[%s11111_s14 + $0xa0] sm:$0xff]  ;;  %v8749_v54 = vld [vmem:[%s11111_s14 + $0xa8] sm:$0xff] }
 0x559   : > { %v15437_v28 = vadd.f32 %v9483_v6, %v8686_v12  ;;  %v15439_v10 = vadd.f32 %v9483_v6, %v8687_v61  ;;  %v15441_v34 = vadd.f32 %v9483_v6, %v8688_v25  ;;  %v15443_v8 = vadd.f32 %v9483_v6, %v8689_v0  ;;  %v8750_v6 = vld [vmem:[%s11111_s14 + $0xb0] sm:$0xff]  ;;  %v8751_v0 = vld [vmem:[%s11111_s14 + $0xb8] sm:$0xff] }
 0x55a   : > { %v8760_v45 = vadd.f32 %v8728_v3, %v8696_v52  ;;  %v8761_v48 = vadd.f32 %v8729_v35, %v8697_v53  ;;  %v8762_v49 = vadd.f32 %v8730_v22, %v8698_v41  ;;  %v8763_v59 = vadd.f32 %v8731_v20, %v8699_v46  ;;  %v8753_v52 = vld [vmem:[%s11111_s14 + $0xc8] sm:$0xff] }
 0x55b   : > { %16901 = vst [vmem:[#allocation49_spill] sm:$0xff] %v15443_v8  ;;  %v8764_v18 = vadd.f32 %v8732_v31, %v8700_v62  ;;  %v8765_v12 = vadd.f32 %v8733_v43, %v8701_v1  ;;  %v8766_v61 = vadd.f32 %v8734_v57, %v8702_v47  ;;  %v8767_v25 = vadd.f32 %v8735_v58, %v8703_v26  ;;  %v8752_v8 = vld [vmem:[%s11111_s14 + $0xc0] sm:$0xff]  ;;  %v8754_v62 = vld [vmem:[%s11111_s14 + $0xd0] sm:$0xff]  ;;  %v8755_v1 = vld [vmem:[%s11111_s14 + $0xd8] sm:$0xff] }
 0x55c   : > { %v8768_v53 = vadd.f32 %v8736_v37, %v8704_v27  ;;  %v8769_v41 = vadd.f32 %v8737_v39, %v8705_v14  ;;  %v8770_v46 = vadd.f32 %v8738_v33, %v8706_v5  ;;  %v8771_v3 = vadd.f32 %v8739_v51, %v8707_v36  ;;  %8792 = vst.msk [vmem:[%s15435_s15] sm:$0xff] %vm16812_vm0, %v8760_v45  ;;  %v8756_v47 = vld [vmem:[%s11111_s14 + $0xe0] sm:$0xff]  ;;  %v8757_v36 = vld [vmem:[%s11111_s14 + $0xe8] sm:$0xff] }
 0x55d   : > { %8793 = vst.msk [vmem:[%s15435_s15 + $0x8] sm:$0xff] %vm16902_vm15, %v8761_v48  ;;  %v8772_v26 = vadd.f32 %v8740_v7, %v15384_v19  ;;  %v8773_v27 = vadd.f32 %v8741_v11, %v15386_v63  ;;  %v8774_v14 = vadd.f32 %v8742_v23, %v15388_v21  ;;  %v8775_v5 = vadd.f32 %v8743_v56, %v15390_v9  ;;  %v8758_v19 = vld [vmem:[%s11111_s14 + $0xf0] sm:$0xff]  ;;  %v8759_v63 = vld [vmem:[%s11111_s14 + $0xf8] sm:$0xff]  ;;  %vm16917_vm15 = vmmov %vm16812_vm0 }
 0x55e   : > { %8794 = vst.msk [vmem:[%s15435_s15 + $0x10] sm:$0xff] %vm16903_vm12, %v8762_v49  ;;  %v8776_v21 = vadd.f32 %v8744_v17, %v15396_v29  ;;  %v8777_v35 = vadd.f32 %v8745_v50, %v15398_v55  ;;  %v8778_v9 = vadd.f32 %v8746_v42, %v15400_v30  ;;  %v8779_v22 = vadd.f32 %v8747_v32, %v15402_v13  ;;  %vm16918_vm12 = vmmov %vm16812_vm0 }
 0x55f   : > { %8795 = vst.msk [vmem:[%s15435_s15 + $0x18] sm:$0xff] %vm16904_vm4, %v8763_v59  ;;  %v8780_v20 = vadd.f32 %v8748_v44, %v15408_v2  ;;  %v8781_v29 = vadd.f32 %v8749_v54, %v15410_v15  ;;  %v8782_v55 = vadd.f32 %v8750_v6, %v15412_v24  ;;  %v8783_v30 = vadd.f32 %v8751_v0, %v15414_v4  ;;  %vm16919_vm4 = vmmov %vm16812_vm0 }
 0x560   : > { %8796 = vst.msk [vmem:[%s15435_s15 + $0x20] sm:$0xff] %vm16905_vm7, %v8764_v18  ;;  %v8784_v13 = vadd.f32 %v8752_v8, %v15419_v16  ;;  %v8785_v31 = vadd.f32 %v8753_v52, %v15421_v40  ;;  %v8786_v43 = vadd.f32 %v8754_v62, %v15423_v38  ;;  %v8787_v57 = vadd.f32 %v8755_v1, %v15425_v60  ;;  %vm16921_vm7 = vmmov %vm16812_vm0 }
 0x561   : > { %8797 = vst.msk [vmem:[%s15435_s15 + $0x28] sm:$0xff] %vm16906_vm1, %v8765_v12  ;;  %v8788_v58 = vadd.f32 %v8756_v47, %v15437_v28  ;;  %v8789_v2 = vadd.f32 %v8757_v36, %v15439_v10  ;;  %v8790_v15 = vadd.f32 %v8758_v19, %v15441_v34  ;;  %vm16922_vm1 = vmmov %vm16812_vm0 }
 0x562   : > { %8798 = vst.msk [vmem:[%s15435_s15 + $0x30] sm:$0xff] %vm16907_vm2, %v8766_v61  ;;  %v16920_v24 = vld [vmem:[#allocation49_spill] sm:$0xff]  ;;  %vm16923_vm2 = vmmov %vm16812_vm0 }
 0x563   : > { %8799 = vst.msk [vmem:[%s15435_s15 + $0x38] sm:$0xff] %vm16908_vm10, %v8767_v25  ;;  %v8791_v4 = vadd.f32 %v8759_v63, %v16920_v24  ;;  %vm16924_vm10 = vmmov %vm16812_vm0 }
 0x564   : > { %8800 = vst.msk [vmem:[%s15435_s15 + $0x40] sm:$0xff] %vm16909_vm13, %v8768_v53  ;;  %vm16925_vm13 = vmmov %vm16812_vm0 }
 0x565   : > { %8801 = vst.msk [vmem:[%s15435_s15 + $0x48] sm:$0xff] %vm16910_vm6, %v8769_v41  ;;  %vm16926_vm6 = vmmov %vm16812_vm0 }
 0x566   : > { %8802 = vst.msk [vmem:[%s15435_s15 + $0x50] sm:$0xff] %vm16911_vm5, %v8770_v46  ;;  %vm16927_vm5 = vmmov %vm16812_vm0 }
 0x567   : > { %8803 = vst.msk [vmem:[%s15435_s15 + $0x58] sm:$0xff] %vm16912_vm9, %v8771_v3  ;;  %vm16928_vm9 = vmmov %vm16812_vm0 }
 0x568   : > { %8804 = vst.msk [vmem:[%s15435_s15 + $0x60] sm:$0xff] %vm16913_vm11, %v8772_v26  ;;  %vm16929_vm11 = vmmov %vm16812_vm0 }
 0x569   : > { %8805 = vst.msk [vmem:[%s15435_s15 + $0x68] sm:$0xff] %vm16914_vm14, %v8773_v27  ;;  %vm16930_vm14 = vmmov %vm16812_vm0 }
 0x56a   : > { %8806 = vst.msk [vmem:[%s15435_s15 + $0x70] sm:$0xff] %vm16915_vm8, %v8774_v14  ;;  %vm16931_vm8 = vmmov %vm16812_vm0 }
 0x56b   : > { %8807 = vst.msk [vmem:[%s15435_s15 + $0x78] sm:$0xff] %vm16916_vm3, %v8775_v5  ;;  %vm16932_vm3 = vmmov %vm16812_vm0 }
 0x56c   : > { %8808 = vst.msk [vmem:[%s15435_s15 + $0x80] sm:$0xff] %vm16812_vm0, %v8776_v21 }
 0x56d   : > { %8809 = vst.msk [vmem:[%s15435_s15 + $0x88] sm:$0xff] %vm16917_vm15, %v8777_v35 }
 0x56e   : > { %8810 = vst.msk [vmem:[%s15435_s15 + $0x90] sm:$0xff] %vm16918_vm12, %v8778_v9 }
 0x56f   : > { %8811 = vst.msk [vmem:[%s15435_s15 + $0x98] sm:$0xff] %vm16919_vm4, %v8779_v22 }
 0x570   : > { %8812 = vst.msk [vmem:[%s15435_s15 + $0xa0] sm:$0xff] %vm16921_vm7, %v8780_v20 }
 0x571   : > { %8813 = vst.msk [vmem:[%s15435_s15 + $0xa8] sm:$0xff] %vm16922_vm1, %v8781_v29 }
 0x572   : > { %8814 = vst.msk [vmem:[%s15435_s15 + $0xb0] sm:$0xff] %vm16923_vm2, %v8782_v55 }
 0x573   : > { %8815 = vst.msk [vmem:[%s15435_s15 + $0xb8] sm:$0xff] %vm16924_vm10, %v8783_v30 }
 0x574   : > { %8816 = vst.msk [vmem:[%s15435_s15 + $0xc0] sm:$0xff] %vm16925_vm13, %v8784_v13 }
 0x575   : > { %8817 = vst.msk [vmem:[%s15435_s15 + $0xc8] sm:$0xff] %vm16926_vm6, %v8785_v31 }
 0x576   : > { %8818 = vst.msk [vmem:[%s15435_s15 + $0xd0] sm:$0xff] %vm16927_vm5, %v8786_v43 }
 0x577   : > { %8819 = vst.msk [vmem:[%s15435_s15 + $0xd8] sm:$0xff] %vm16928_vm9, %v8787_v57 }
 0x578   : > { %8820 = vst.msk [vmem:[%s15435_s15 + $0xe0] sm:$0xff] %vm16929_vm11, %v8788_v58 }
 0x579   : > { %8821 = vst.msk [vmem:[%s15435_s15 + $0xe8] sm:$0xff] %vm16930_vm14, %v8789_v2 }
 0x57a   : > { %8822 = vst.msk [vmem:[%s15435_s15 + $0xf0] sm:$0xff] %vm16931_vm8, %v8790_v15 }
 0x57b   : > { %8823 = vst.msk [vmem:[%s15435_s15 + $0xf8] sm:$0xff] %vm16932_vm3, %v8791_v4 }
 0x57c PF: > { %s17_s24 = sadd.s32 1, %s11026_s24  }
 0x57d   : > { %p14_p4 = scmp.ge.s32.totalorder %s17_s24, 4  }
 0x57f   :  { %16 = sbr.rel (!%p14_p4) target bundleno = 1 (0x1), region = 78 }

</bundles_post_ra>
